<compile_context>
chip_gen: v7x
topology: tpu7x:2x2x1
jax: 0.10.0
libtpu: 0.0.40
codegen_flags: <defaults>
</compile_context>

<pallas_src>
import functools

import jax
import jax.numpy as jnp
from jax.experimental import pallas as pl
from jax.experimental.pallas import tpu as pltpu

SQRT_HALF = 0.7071067811865476


def _gelu(x):
    # exact (erf-based) GELU, matching torch.nn.functional.gelu default
    return 0.5 * x * (1.0 + jax.lax.erf(x * SQRT_HALF))


@functools.lru_cache(maxsize=1)
def _tpu_arch():
    """Generation-dependent tiling knobs (grid steps for multi-TC, VMEM budget)."""
    try:
        kind = jax.devices()[0].device_kind.lower()
    except Exception:
        kind = ""
    if "v7" in kind:
        # 2 TensorCores / chip, 64 MiB physical VMEM -> keep a parallel axis, smaller budget
        return {"min_steps": 2, "tile_budget": 20 << 20, "vmem_limit": 40 << 20}
    # v5e / v6e: single TensorCore, 128 MiB physical VMEM
    return {"min_steps": 1, "tile_budget": 32 << 20, "vmem_limit": 64 << 20}


# ----------------------------- Pallas kernels ------------------------------
# Point-wise kernels: channels-first blocks.  x block (Cin, tm), weights (Cout, Cin) bf16,
# bias (Cout, 1) f32, output block (Cout, tm) with tm (points) lane-dense.
# Dots run bf16 x bf16 on the MXU, accumulate f32; epilogue math in f32.

def linear_kernel(x_ref, w_ref, b_ref, o_ref):
    x = x_ref[...].astype(jnp.bfloat16)
    y = jnp.dot(w_ref[...], x, preferred_element_type=jnp.float32) + b_ref[...]
    o_ref[...] = y.astype(o_ref.dtype)


def mlp_kernel(x_ref, w1_ref, b1_ref, w2_ref, b2_ref, o_ref):
    x = x_ref[...].astype(jnp.bfloat16)
    h = jnp.dot(w1_ref[...], x, preferred_element_type=jnp.float32) + b1_ref[...]
    h = _gelu(h).astype(jnp.bfloat16)
    y = jnp.dot(w2_ref[...], h, preferred_element_type=jnp.float32) + b2_ref[...]
    o_ref[...] = y.astype(o_ref.dtype)


def make_fused_layer_kernel(apply_gelu):
    # One Fourier-layer epilogue:  y = MLP(K(u)) + W(u);  optionally GELU(y)
    def kernel(xs_ref, xo_ref, m1_ref, b1_ref, m2_ref, b2_ref, wk_ref, wb_ref, o_ref):
        xs = xs_ref[...].astype(jnp.bfloat16)     # spectral branch (f32 straight from irfft)
        xo = xo_ref[...].astype(jnp.bfloat16)     # residual branch (bf16 activation)
        h = jnp.dot(m1_ref[...], xs, preferred_element_type=jnp.float32) + b1_ref[...]
        h = _gelu(h).astype(jnp.bfloat16)
        y = jnp.dot(m2_ref[...], h, preferred_element_type=jnp.float32) + b2_ref[...]
        y = y + jnp.dot(wk_ref[...], xo, preferred_element_type=jnp.float32) + wb_ref[...]
        if apply_gelu:
            y = _gelu(y)
        o_ref[...] = y.astype(o_ref.dtype)
    return kernel


def spectral_mul_kernel(x_ref, w_ref, o_ref):
    # Per-mode complex channel mixing, modes lane-dense, contraction over the small
    # channel axis done as a VPU broadcast multiply-accumulate (no tiny MXU matmuls,
    # no masked 40-lane stores):
    #   x: (2Ci, B, mt)  f32  = [xr ; xi] stacked along channels
    #   w: (2Ci, 2Co, mt) bf16 block-complex [[wr, wi], [-wi, wr]]
    #   o: (B, 2Co, mt)  f32  = [out_r | out_i]
    ci2 = x_ref.shape[0]
    acc = jnp.zeros(o_ref.shape, jnp.float32)
    for i in range(ci2):                               # static unroll, small channel dim
        xi = x_ref[i]                                  # (B, mt)
        wi = w_ref[i].astype(jnp.float32)              # (2Co, mt)
        acc = acc + xi[:, None, :] * wi[None, :, :]    # (B, 2Co, mt)
    o_ref[...] = acc


# ----------------------------- tiling helpers ------------------------------

def _choose_tile(n, bytes_per_col, min_steps, budget, lane=128, hard_cap=32768):
    """Lane-dense tile along the point axis, sized from the VMEM budget.

    Prefers a multiple of 128 that divides n exactly (no pad/slice copies); keeps
    >= min_steps grid steps so multi-TC chips (v7x) get a parallel axis.
    """
    npad = pl.cdiv(n, lane) * lane
    cap = budget // max(bytes_per_col, 1)
    cap = min(cap, hard_cap, npad)
    if min_steps > 1:
        cap = min(cap, max(lane, pl.cdiv(npad, min_steps)))
    cap = max(lane, cap // lane * lane)
    for t in range(cap, lane - 1, -lane):      # exact divisor: no wrapper pad/slice pass
        if n % t == 0:
            return t, n
    for t in range(cap, lane - 1, -lane):      # rare fallback: pad to a 128 multiple
        if npad % t == 0:
            return t, npad
    return lane, npad


def _choose_mode_tile(mtot, bytes_per_mode, budget, lane=128):
    cap = max(lane, min(mtot, budget // max(bytes_per_mode, 1)) // lane * lane)
    if mtot % lane == 0:
        for t in range(cap, lane - 1, -lane):
            if mtot % t == 0:
                return t
    return mtot      # small / odd mode counts: one full block (fits easily)


# ----------------------------- Pallas wrappers -----------------------------

def _pointwise_call(kernel, col_inputs, params, out_rows, out_dtype):
    """col_inputs: list of (C_i, N) arrays tiled over N (lane axis); params resident."""
    arch = _tpu_arch()
    n = col_inputs[0].shape[1]
    bytes_per_col = (2 * sum(a.shape[0] * a.dtype.itemsize for a in col_inputs)
                     + 2 * out_rows * jnp.dtype(out_dtype).itemsize)   # double-buffered
    tm, npad = _choose_tile(n, bytes_per_col, arch["min_steps"], arch["tile_budget"])
    cols = [jnp.pad(a, ((0, 0), (0, npad - n))) if npad != n else a for a in col_inputs]
    in_specs = [pl.BlockSpec((a.shape[0], tm), lambda i: (0, i)) for a in cols]
    in_specs += [pl.BlockSpec(p.shape, lambda i, nd=p.ndim: (0,) * nd) for p in params]
    out = pl.pallas_call(
        kernel,
        out_shape=jax.ShapeDtypeStruct((out_rows, npad), out_dtype),
        grid_spec=pltpu.PrefetchScalarGridSpec(
            num_scalar_prefetch=0,
            grid=(npad // tm,),
            in_specs=in_specs,
            out_specs=pl.BlockSpec((out_rows, tm), lambda i: (0, i)),
        ),
        compiler_params=pltpu.CompilerParams(
            dimension_semantics=("parallel",),
            vmem_limit_bytes=arch["vmem_limit"]),
    )(*cols, *params)
    return out if npad == n else out[:, :n]


def linear_pallas(x_cf, w, b):
    return _pointwise_call(linear_kernel, [x_cf], [w, b], w.shape[0], jnp.bfloat16)


def mlp_pallas(x_cf, w1, b1, w2, b2):
    return _pointwise_call(mlp_kernel, [x_cf], [w1, b1, w2, b2], w2.shape[0], jnp.float32)


def fused_layer_pallas(xs, xo, m1, b1, m2, b2, wk, wb, apply_gelu):
    return _pointwise_call(make_fused_layer_kernel(apply_gelu), [xs, xo],
                           [m1, b1, m2, b2, wk, wb], m2.shape[0], jnp.bfloat16)


def spectral_mul_pallas(x_packed, w_packed):
    """x: (2Ci, B, Mt) f32, w: (2Ci, 2Co, Mt) bf16 -> (B, 2Co, Mt) f32, tiled over Mt."""
    arch = _tpu_arch()
    ci2, b, mt = x_packed.shape
    co2 = w_packed.shape[1]
    bytes_per_mode = 2 * (ci2 * b * 4 + ci2 * co2 * w_packed.dtype.itemsize + b * co2 * 4)
    m_blk = _choose_mode_tile(mt, bytes_per_mode, arch["tile_budget"])
    return pl.pallas_call(
        spectral_mul_kernel,
        out_shape=jax.ShapeDtypeStruct((b, co2, mt), jnp.float32),
        grid_spec=pltpu.PrefetchScalarGridSpec(
            num_scalar_prefetch=0,
            grid=(mt // m_blk,),
            in_specs=[pl.BlockSpec((ci2, b, m_blk), lambda m: (0, 0, m)),
                      pl.BlockSpec((ci2, co2, m_blk), lambda m: (0, 0, m))],
            out_specs=pl.BlockSpec((b, co2, m_blk), lambda m: (0, 0, m)),
        ),
        compiler_params=pltpu.CompilerParams(
            dimension_semantics=("parallel",),
            vmem_limit_bytes=arch["vmem_limit"]),
    )(x_packed, w_packed)


# ----------------------------- FNO3d forward -------------------------------

def spectral_conv3d(x, w_packed, modes):
    """x: (Ci, B, X, Y, Z) bf16 channels-first.  w_packed: (2Ci, 2Co, 4M) bf16."""
    ci, b, sx, sy, sz = x.shape
    m1, m2, m3 = modes
    co = w_packed.shape[1] // 2
    zf = sz // 2 + 1
    M = m1 * m2 * m3
    assert 2 * m1 <= sx and 2 * m2 <= sy and m3 <= zf, "modes too large for the grid"

    # TODO(synk): FFT has no Pallas primitive — rfftn/irfftn stay in plain JAX (XLA FFT).
    x_ft = jnp.fft.rfftn(x.astype(jnp.float32), axes=(2, 3, 4))   # (Ci, B, X, Y, Zf) c64

    # Four corner blocks kept modes-LAST (natural FFT layout, no big complex transposes).
    # Corner order matches torch weights1..4.
    corners = [
        x_ft[:, :, :m1, :m2, :m3],
        x_ft[:, :, sx - m1:, :m2, :m3],
        x_ft[:, :, :m1, sy - m2:, :m3],
        x_ft[:, :, sx - m1:, sy - m2:, :m3],
    ]
    xin = jnp.concatenate([c.reshape(ci, b, M) for c in corners], axis=-1)   # (Ci, B, 4M)
    x_packed = jnp.concatenate([jnp.real(xin), jnp.imag(xin)],
                               axis=0).astype(jnp.float32)                   # (2Ci, B, 4M)

    o_packed = spectral_mul_pallas(x_packed, w_packed)                       # (B, 2Co, 4M)
    o = jax.lax.complex(o_packed[:, :co, :], o_packed[:, co:, :])            # (B, Co, 4M)
    o = jnp.transpose(o, (1, 0, 2)).reshape(co, b, 4, m1, m2, m3)            # small transpose

    # Assemble the (mostly-zero) output spectrum from corner blocks (concat + pad,
    # instead of a full zero spectrum plus 4 scatters).
    zero_y = jnp.zeros((co, b, m1, sy - 2 * m2, m3), jnp.complex64)
    top = jnp.concatenate([o[:, :, 0], zero_y, o[:, :, 2]], axis=3)          # X-low rows
    bot = jnp.concatenate([o[:, :, 1], zero_y, o[:, :, 3]], axis=3)          # X-high rows
    zero_x = jnp.zeros((co, b, sx - 2 * m1, sy, m3), jnp.complex64)
    out_ft = jnp.concatenate([top, zero_x, bot], axis=2)                     # (Co,B,sx,sy,m3)
    out_ft = jnp.pad(out_ft, ((0, 0), (0, 0), (0, 0), (0, 0), (0, zf - m3)))
    return jnp.fft.irfftn(out_ft, s=(sx, sy, sz), axes=(2, 3, 4)).astype(jnp.float32)


def get_grid_cf(b, sx, sy, sz):
    # Channels-first grid: (3, B, X, Y, Z)
    gx = jnp.broadcast_to(jnp.linspace(0.0, 1.0, sx, dtype=jnp.float32).reshape(1, 1, sx, 1, 1),
                          (1, b, sx, sy, sz))
    gy = jnp.broadcast_to(jnp.linspace(0.0, 1.0, sy, dtype=jnp.float32).reshape(1, 1, 1, sy, 1),
                          (1, b, sx, sy, sz))
    gz = jnp.broadcast_to(jnp.linspace(0.0, 1.0, sz, dtype=jnp.float32).reshape(1, 1, 1, 1, sz),
                          (1, b, sx, sy, sz))
    return jnp.concatenate([gx, gy, gz], axis=0)


def fno3d_forward(params, x, modes, width, padding=6):
    """x: (B, X, Y, T, in_channels) f32, channels-last (== torch input before permute)."""
    b, sx, sy, st, cin = x.shape
    x_cf = jnp.transpose(x, (4, 0, 1, 2, 3))                            # (Cin, B, X, Y, T)
    x_cf = jnp.concatenate([x_cf, get_grid_cf(b, sx, sy, st)], axis=0)  # (Cin+3, B,X,Y,T)

    xf = linear_pallas(x_cf.reshape(cin + 3, -1), params['p_w'], params['p_b'])   # bf16
    x_cf = xf.reshape(width, b, sx, sy, st)
    x_cf = jnp.pad(x_cf, ((0, 0), (0, 0), (0, 0), (0, 0), (0, padding)))          # pad time
    sz = st + padding
    n = b * sx * sy * sz

    for l in range(4):
        x1 = spectral_conv3d(x_cf, params[f'conv{l}'], modes)     # K(u), f32 (cast in-kernel)
        y = fused_layer_pallas(                                   # MLP(K(u)) + W(u) [+ GELU]
            x1.reshape(width, n), x_cf.reshape(width, n),
            params[f'mlp{l}_w1'], params[f'mlp{l}_b1'],
            params[f'mlp{l}_w2'], params[f'mlp{l}_b2'],
            params[f'w{l}_w'], params[f'w{l}_b'],
            apply_gelu=(l < 3))
        x_cf = y.reshape(width, b, sx, sy, sz)                    # bf16 activation

    x_cf = x_cf[..., :st]                                         # drop time padding
    out = mlp_pallas(x_cf.reshape(width, -1),
                     params['q_w1'], params['q_b1'],
                     params['q_w2'], params['q_b2'])              # f32 output
    out_ch = params['q_w2'].shape[0]
    out = out.reshape(out_ch, b, sx, sy, st)
    return jnp.transpose(out, (1, 2, 3, 4, 0))                    # (B, X, Y, T, out_ch)


# ----------------------------- parameter init ------------------------------

def pack_spectral_weights(wr, wi):
    """wr, wi: (4, Ci, Co, m1, m2, m3) real/imag -> block-complex (2Ci, 2Co, 4M) bf16."""
    four, ci, co, m1, m2, m3 = wr.shape
    m4 = four * m1 * m2 * m3
    wr_ = jnp.transpose(wr, (1, 2, 0, 3, 4, 5)).reshape(ci, co, m4)
    wi_ = jnp.transpose(wi, (1, 2, 0, 3, 4, 5)).reshape(ci, co, m4)
    top = jnp.concatenate([wr_, wi_], axis=1)      # rows multiplied by xr
    bot = jnp.concatenate([-wi_, wr_], axis=1)     # rows multiplied by xi
    return jnp.concatenate([top, bot], axis=0).astype(jnp.bfloat16)   # (2Ci, 2Co, 4M)


def init_params(key, modes, width, in_ch, out_ch):
    m1, m2, m3 = modes
    keys = jax.random.split(key, 64)
    it = iter(keys)

    def nrm(shape, scale=0.1, dtype=jnp.bfloat16):
        return (scale * jax.random.normal(next(it), shape, jnp.float32)).astype(dtype)

    p = {}
    p['p_w'] = nrm((width, in_ch + 3))                       # Linear(in+3 -> width), (Cout,Cin)
    p['p_b'] = nrm((width, 1), dtype=jnp.float32)
    scale = 1.0 / (width * width)
    for l in range(4):
        wr = scale * jax.random.uniform(next(it), (4, width, width, m1, m2, m3), jnp.float32)
        wi = scale * jax.random.uniform(next(it), (4, width, width, m1, m2, m3), jnp.float32)
        p[f'conv{l}'] = pack_spectral_weights(wr, wi)        # packed once at init
        p[f'mlp{l}_w1'] = nrm((width, width))
        p[f'mlp{l}_b1'] = nrm((width, 1), dtype=jnp.float32)
        p[f'mlp{l}_w2'] = nrm((width, width))
        p[f'mlp{l}_b2'] = nrm((width, 1), dtype=jnp.float32)
        p[f'w{l}_w'] = nrm((width, width))
        p[f'w{l}_b'] = nrm((width, 1), dtype=jnp.float32)
    p['q_w1'] = nrm((width * 4, width))
    p['q_b1'] = nrm((width * 4, 1), dtype=jnp.float32)
    p['q_w2'] = nrm((out_ch, width * 4))
    p['q_b2'] = nrm((out_ch, 1), dtype=jnp.float32)
    return p


# ----------------------------------- main -----------------------------------

if __name__ == "__main__":
    B, X, Y, T = 2, 8, 8, 8
    IN_CH, OUT_CH = 3, 3
    MODES = (4, 4, 3)
    WIDTH = 20

    root = jax.random.PRNGKey(0)
    k_param, k_x = jax.random.split(root)
    params = init_params(k_param, MODES, WIDTH, IN_CH, OUT_CH)
    x = jax.random.normal(k_x, (B, X, Y, T, IN_CH), jnp.float32)

    fwd = jax.jit(lambda p, xx: fno3d_forward(p, xx, modes=MODES, width=WIDTH, padding=6))
    out = jax.block_until_ready(fwd(params, x))
    assert out.shape == (B, X, Y, T, OUT_CH), out.shape
    assert out.dtype == jnp.float32
    print("KERNEL_OK")
</pallas_src>

<mosaic_0001>
module attributes {stable_mosaic.version = 11 : i64} {
  func.func @linear_kernel(%arg0: i32, %arg1: memref<6x1024xf32, #tpu.memory_space<vmem>>, %arg2: memref<20x6xbf16, #tpu.memory_space<vmem>>, %arg3: memref<20x1xf32, #tpu.memory_space<vmem>>, %arg4: memref<20x1024xbf16, #tpu.memory_space<vmem>>) attributes {dimension_semantics = [#tpu.dimension_semantics<parallel>], iteration_bounds = array<i64: 1>, scalar_prefetch = 0 : i64, scratch_operands = 0 : i64, tpu.core_type = #tpu.core_type<tc>, window_params = [{transform_indices = @transform_0, window_bounds = array<i64: 6, 1024>}, {pipeline_mode = #tpu.pipeline_mode<synchronous>, transform_indices = @transform_1, window_bounds = array<i64: 20, 6>}, {pipeline_mode = #tpu.pipeline_mode<synchronous>, transform_indices = @transform_2, window_bounds = array<i64: 20, 1>}, {transform_indices = @transform_3, window_bounds = array<i64: 20, 1024>}]} {
    %c0 = arith.constant 0 : index
    %c0_0 = arith.constant 0 : index
    %0 = vector.load %arg1[%c0, %c0_0] : memref<6x1024xf32, #tpu.memory_space<vmem>>, vector<6x1024xf32>
    %1 = arith.truncf %0 : vector<6x1024xf32> to vector<6x1024xbf16>
    %c0_1 = arith.constant 0 : index
    %c0_2 = arith.constant 0 : index
    %2 = vector.load %arg2[%c0_1, %c0_2] : memref<20x6xbf16, #tpu.memory_space<vmem>>, vector<20x6xbf16>
    %cst = arith.constant dense<0.000000e+00> : vector<20x1024xf32>
    %3 = tpu.matmul %2, %1, %cst {dimension_numbers = #tpu.dot_dimension_numbers<[1], [0], [0], [1], [0, 0, 1, 1], [], []>} : vector<20x6xbf16>, vector<6x1024xbf16>, vector<20x1024xf32> -> vector<20x1024xf32>
    %c0_3 = arith.constant 0 : index
    %c0_4 = arith.constant 0 : index
    %4 = vector.load %arg3[%c0_3, %c0_4] : memref<20x1xf32, #tpu.memory_space<vmem>>, vector<20x1xf32>
    %5 = vector.broadcast %4 : vector<20x1xf32> to vector<20x1024xf32>
    %6 = arith.addf %3, %5 : vector<20x1024xf32>
    %7 = arith.truncf %6 : vector<20x1024xf32> to vector<20x1024xbf16>
    %c0_5 = arith.constant 0 : index
    %c0_6 = arith.constant 0 : index
    %8 = vector.load %arg4[%c0_5, %c0_6] : memref<20x1024xbf16, #tpu.memory_space<vmem>>, vector<20x1024xbf16>
    tpu.vector_store %arg4[%c0_5, %c0_6], %7 {strides = array<i32>} : memref<20x1024xbf16, #tpu.memory_space<vmem>>, vector<20x1024xbf16>,
    return
  }
  func.func @transform_0(%arg0: i32) -> (i32, i32) {
    %c0_i32 = arith.constant 0 : i32
    %c0_i32_0 = arith.constant 0 : i32
    return %c0_i32, %arg0 : i32, i32
  }
  func.func @transform_1(%arg0: i32) -> (i32, i32) {
    %c0_i32 = arith.constant 0 : i32
    %c0_i32_0 = arith.constant 0 : i32
    %c0_i32_1 = arith.constant 0 : i32
    return %c0_i32, %c0_i32_0 : i32, i32
  }
  func.func @transform_2(%arg0: i32) -> (i32, i32) {
    %c0_i32 = arith.constant 0 : i32
    %c0_i32_0 = arith.constant 0 : i32
    %c0_i32_1 = arith.constant 0 : i32
    return %c0_i32, %c0_i32_0 : i32, i32
  }
  func.func @transform_3(%arg0: i32) -> (i32, i32) {
    %c0_i32 = arith.constant 0 : i32
    %c0_i32_0 = arith.constant 0 : i32
    return %c0_i32, %arg0 : i32, i32
  }
}

module attributes {stable_mosaic.version = 11 : i64} {
  func.func @spectral_mul_kernel(%arg0: i32, %arg1: memref<40x2x192xf32, #tpu.memory_space<vmem>>, %arg2: memref<40x40x192xbf16, #tpu.memory_space<vmem>>, %arg3: memref<2x40x192xf32, #tpu.memory_space<vmem>>) attributes {dimension_semantics = [#tpu.dimension_semantics<parallel>], iteration_bounds = array<i64: 1>, scalar_prefetch = 0 : i64, scratch_operands = 0 : i64, tpu.core_type = #tpu.core_type<tc>, window_params = [{transform_indices = @transform_0, window_bounds = array<i64: 40, 2, 192>}, {transform_indices = @transform_1, window_bounds = array<i64: 40, 40, 192>}, {transform_indices = @transform_2, window_bounds = array<i64: 2, 40, 192>}]} {
    %cst = arith.constant 0.000000e+00 : f32
    %0 = vector.broadcast %cst : f32 to vector<2x40x192xf32>
    %c0 = arith.constant 0 : index
    %c0_0 = arith.constant 0 : index
    %c0_1 = arith.constant 0 : index
    %1 = vector.load %arg1[%c0, %c0_0, %c0_1] : memref<40x2x192xf32, #tpu.memory_space<vmem>>, vector<1x2x192xf32>
    %2 = vector.shape_cast %1 : vector<1x2x192xf32> to vector<2x192xf32>
    %c0_2 = arith.constant 0 : index
    %c0_3 = arith.constant 0 : index
    %c0_4 = arith.constant 0 : index
    %3 = vector.load %arg2[%c0_2, %c0_3, %c0_4] : memref<40x40x192xbf16, #tpu.memory_space<vmem>>, vector<1x40x192xbf16>
    %4 = vector.shape_cast %3 : vector<1x40x192xbf16> to vector<40x192xbf16>
    %5 = arith.extf %4 : vector<40x192xbf16> to vector<40x192xf32>
    %6 = vector.shape_cast %2 : vector<2x192xf32> to vector<2x1x192xf32>
    %7 = vector.shape_cast %5 : vector<40x192xf32> to vector<1x40x192xf32>
    %8 = vector.broadcast %6 : vector<2x1x192xf32> to vector<2x40x192xf32>
    %9 = vector.broadcast %7 : vector<1x40x192xf32> to vector<2x40x192xf32>
    %10 = arith.mulf %8, %9 : vector<2x40x192xf32>
    %11 = arith.addf %0, %10 : vector<2x40x192xf32>
    %c1 = arith.constant 1 : index
    %c0_5 = arith.constant 0 : index
    %c0_6 = arith.constant 0 : index
    %12 = vector.load %arg1[%c1, %c0_5, %c0_6] : memref<40x2x192xf32, #tpu.memory_space<vmem>>, vector<1x2x192xf32>
    %13 = vector.shape_cast %12 : vector<1x2x192xf32> to vector<2x192xf32>
    %c1_7 = arith.constant 1 : index
    %c0_8 = arith.constant 0 : index
    %c0_9 = arith.constant 0 : index
    %14 = vector.load %arg2[%c1_7, %c0_8, %c0_9] : memref<40x40x192xbf16, #tpu.memory_space<vmem>>, vector<1x40x192xbf16>
    %15 = vector.shape_cast %14 : vector<1x40x192xbf16> to vector<40x192xbf16>
    %16 = arith.extf %15 : vector<40x192xbf16> to vector<40x192xf32>
    %17 = vector.shape_cast %13 : vector<2x192xf32> to vector<2x1x192xf32>
    %18 = vector.shape_cast %16 : vector<40x192xf32> to vector<1x40x192xf32>
    %19 = vector.broadcast %17 : vector<2x1x192xf32> to vector<2x40x192xf32>
    %20 = vector.broadcast %18 : vector<1x40x192xf32> to vector<2x40x192xf32>
    %21 = arith.mulf %19, %20 : vector<2x40x192xf32>
    %22 = arith.addf %11, %21 : vector<2x40x192xf32>
    %c2 = arith.constant 2 : index
    %c0_10 = arith.constant 0 : index
    %c0_11 = arith.constant 0 : index
    %23 = vector.load %arg1[%c2, %c0_10, %c0_11] : memref<40x2x192xf32, #tpu.memory_space<vmem>>, vector<1x2x192xf32>
    %24 = vector.shape_cast %23 : vector<1x2x192xf32> to vector<2x192xf32>
    %c2_12 = arith.constant 2 : index
    %c0_13 = arith.constant 0 : index
    %c0_14 = arith.constant 0 : index
    %25 = vector.load %arg2[%c2_12, %c0_13, %c0_14] : memref<40x40x192xbf16, #tpu.memory_space<vmem>>, vector<1x40x192xbf16>
    %26 = vector.shape_cast %25 : vector<1x40x192xbf16> to vector<40x192xbf16>
    %27 = arith.extf %26 : vector<40x192xbf16> to vector<40x192xf32>
    %28 = vector.shape_cast %24 : vector<2x192xf32> to vector<2x1x192xf32>
    %29 = vector.shape_cast %27 : vector<40x192xf32> to vector<1x40x192xf32>
    %30 = vector.broadcast %28 : vector<2x1x192xf32> to vector<2x40x192xf32>
    %31 = vector.broadcast %29 : vector<1x40x192xf32> to vector<2x40x192xf32>
    %32 = arith.mulf %30, %31 : vector<2x40x192xf32>
    %33 = arith.addf %22, %32 : vector<2x40x192xf32>
    %c3 = arith.constant 3 : index
    %c0_15 = arith.constant 0 : index
    %c0_16 = arith.constant 0 : index
    %34 = vector.load %arg1[%c3, %c0_15, %c0_16] : memref<40x2x192xf32, #tpu.memory_space<vmem>>, vector<1x2x192xf32>
    %35 = vector.shape_cast %34 : vector<1x2x192xf32> to vector<2x192xf32>
    %c3_17 = arith.constant 3 : index
    %c0_18 = arith.constant 0 : index
    %c0_19 = arith.constant 0 : index
    %36 = vector.load %arg2[%c3_17, %c0_18, %c0_19] : memref<40x40x192xbf16, #tpu.memory_space<vmem>>, vector<1x40x192xbf16>
    %37 = vector.shape_cast %36 : vector<1x40x192xbf16> to vector<40x192xbf16>
    %38 = arith.extf %37 : vector<40x192xbf16> to vector<40x192xf32>
    %39 = vector.shape_cast %35 : vector<2x192xf32> to vector<2x1x192xf32>
    %40 = vector.shape_cast %38 : vector<40x192xf32> to vector<1x40x192xf32>
    %41 = vector.broadcast %39 : vector<2x1x192xf32> to vector<2x40x192xf32>
    %42 = vector.broadcast %40 : vector<1x40x192xf32> to vector<2x40x192xf32>
    %43 = arith.mulf %41, %42 : vector<2x40x192xf32>
    %44 = arith.addf %33, %43 : vector<2x40x192xf32>
    %c4 = arith.constant 4 : index
    %c0_20 = arith.constant 0 : index
    %c0_21 = arith.constant 0 : index
    %45 = vector.load %arg1[%c4, %c0_20, %c0_21] : memref<40x2x192xf32, #tpu.memory_space<vmem>>, vector<1x2x192xf32>
    %46 = vector.shape_cast %45 : vector<1x2x192xf32> to vector<2x192xf32>
    %c4_22 = arith.constant 4 : index
    %c0_23 = arith.constant 0 : index
    %c0_24 = arith.constant 0 : index
    %47 = vector.load %arg2[%c4_22, %c0_23, %c0_24] : memref<40x40x192xbf16, #tpu.memory_space<vmem>>, vector<1x40x192xbf16>
    %48 = vector.shape_cast %47 : vector<1x40x192xbf16> to vector<40x192xbf16>
    %49 = arith.extf %48 : vector<40x192xbf16> to vector<40x192xf32>
    %50 = vector.shape_cast %46 : vector<2x192xf32> to vector<2x1x192xf32>
    %51 = vector.shape_cast %49 : vector<40x192xf32> to vector<1x40x192xf32>
    %52 = vector.broadcast %50 : vector<2x1x192xf32> to vector<2x40x192xf32>
    %53 = vector.broadcast %51 : vector<1x40x192xf32> to vector<2x40x192xf32>
    %54 = arith.mulf %52, %53 : vector<2x40x192xf32>
    %55 = arith.addf %44, %54 : vector<2x40x192xf32>
    %c5 = arith.constant 5 : index
    %c0_25 = arith.constant 0 : index
    %c0_26 = arith.constant 0 : index
    %56 = vector.load %arg1[%c5, %c0_25, %c0_26] : memref<40x2x192xf32, #tpu.memory_space<vmem>>, vector<1x2x192xf32>
    %57 = vector.shape_cast %56 : vector<1x2x192xf32> to vector<2x192xf32>
    %c5_27 = arith.constant 5 : index
    %c0_28 = arith.constant 0 : index
    %c0_29 = arith.constant 0 : index
    %58 = vector.load %arg2[%c5_27, %c0_28, %c0_29] : memref<40x40x192xbf16, #tpu.memory_space<vmem>>, vector<1x40x192xbf16>
    %59 = vector.shape_cast %58 : vector<1x40x192xbf16> to vector<40x192xbf16>
    %60 = arith.extf %59 : vector<40x192xbf16> to vector<40x192xf32>
    %61 = vector.shape_cast %57 : vector<2x192xf32> to vector<2x1x192xf32>
    %62 = vector.shape_cast %60 : vector<40x192xf32> to vector<1x40x192xf32>
    %63 = vector.broadcast %61 : vector<2x1x192xf32> to vector<2x40x192xf32>
    %64 = vector.broadcast %62 : vector<1x40x192xf32> to vector<2x40x192xf32>
    %65 = arith.mulf %63, %64 : vector<2x40x192xf32>
    %66 = arith.addf %55, %65 : vector<2x40x192xf32>
    %c6 = arith.constant 6 : index
    %c0_30 = arith.constant 0 : index
    %c0_31 = arith.constant 0 : index
    %67 = vector.load %arg1[%c6, %c0_30, %c0_31] : memref<40x2x192xf32, #tpu.memory_space<vmem>>, vector<1x2x192xf32>
    %68 = vector.shape_cast %67 : vector<1x2x192xf32> to vector<2x192xf32>
    %c6_32 = arith.constant 6 : index
    %c0_33 = arith.constant 0 : index
    %c0_34 = arith.constant 0 : index
    %69 = vector.load %arg2[%c6_32, %c0_33, %c0_34] : memref<40x40x192xbf16, #tpu.memory_space<vmem>>, vector<1x40x192xbf16>
    %70 = vector.shape_cast %69 : vector<1x40x192xbf16> to vector<40x192xbf16>
    %71 = arith.extf %70 : vector<40x192xbf16> to vector<40x192xf32>
    %72 = vector.shape_cast %68 : vector<2x192xf32> to vector<2x1x192xf32>
    %73 = vector.shape_cast %71 : vector<40x192xf32> to vector<1x40x192xf32>
    %74 = vector.broadcast %72 : vector<2x1x192xf32> to vector<2x40x192xf32>
    %75 = vector.broadcast %73 : vector<1x40x192xf32> to vector<2x40x192xf32>
    %76 = arith.mulf %74, %75 : vector<2x40x192xf32>
    %77 = arith.addf %66, %76 : vector<2x40x192xf32>
    %c7 = arith.constant 7 : index
    %c0_35 = arith.constant 0 : index
    %c0_36 = arith.constant 0 : index
    %78 = vector.load %arg1[%c7, %c0_35, %c0_36] : memref<40x2x192xf32, #tpu.memory_space<vmem>>, vector<1x2x192xf32>
    %79 = vector.shape_cast %78 : vector<1x2x192xf32> to vector<2x192xf32>
    %c7_37 = arith.constant 7 : index
    %c0_38 = arith.constant 0 : index
    %c0_39 = arith.constant 0 : index
    %80 = vector.load %arg2[%c7_37, %c0_38, %c0_39] : memref<40x40x192xbf16, #tpu.memory_space<vmem>>, vector<1x40x192xbf16>
    %81 = vector.shape_cast %80 : vector<1x40x192xbf16> to vector<40x192xbf16>
    %82 = arith.extf %81 : vector<40x192xbf16> to vector<40x192xf32>
    %83 = vector.shape_cast %79 : vector<2x192xf32> to vector<2x1x192xf32>
    %84 = vector.shape_cast %82 : vector<40x192xf32> to vector<1x40x192xf32>
    %85 = vector.broadcast %83 : vector<2x1x192xf32> to vector<2x40x192xf32>
    %86 = vector.broadcast %84 : vector<1x40x192xf32> to vector<2x40x192xf32>
    %87 = arith.mulf %85, %86 : vector<2x40x192xf32>
    %88 = arith.addf %77, %87 : vector<2x40x192xf32>
    %c8 = arith.constant 8 : index
    %c0_40 = arith.constant 0 : index
    %c0_41 = arith.constant 0 : index
    %89 = vector.load %arg1[%c8, %c0_40, %c0_41] : memref<40x2x192xf32, #tpu.memory_space<vmem>>, vector<1x2x192xf32>
    %90 = vector.shape_cast %89 : vector<1x2x192xf32> to vector<2x192xf32>
    %c8_42 = arith.constant 8 : index
    %c0_43 = arith.constant 0 : index
    %c0_44 = arith.constant 0 : index
    %91 = vector.load %arg2[%c8_42, %c0_43, %c0_44] : memref<40x40x192xbf16, #tpu.memory_space<vmem>>, vector<1x40x192xbf16>
    %92 = vector.shape_cast %91 : vector<1x40x192xbf16> to vector<40x192xbf16>
    %93 = arith.extf %92 : vector<40x192xbf16> to vector<40x192xf32>
    %94 = vector.shape_cast %90 : vector<2x192xf32> to vector<2x1x192xf32>
    %95 = vector.shape_cast %93 : vector<40x192xf32> to vector<1x40x192xf32>
    %96 = vector.broadcast %94 : vector<2x1x192xf32> to vector<2x40x192xf32>
    %97 = vector.broadcast %95 : vector<1x40x192xf32> to vector<2x40x192xf32>
    %98 = arith.mulf %96, %97 : vector<2x40x192xf32>
    %99 = arith.addf %88, %98 : vector<2x40x192xf32>
    %c9 = arith.constant 9 : index
    %c0_45 = arith.constant 0 : index
    %c0_46 = arith.constant 0 : index
    %100 = vector.load %arg1[%c9, %c0_45, %c0_46] : memref<40x2x192xf32, #tpu.memory_space<vmem>>, vector<1x2x192xf32>
    %101 = vector.shape_cast %100 : vector<1x2x192xf32> to vector<2x192xf32>
    %c9_47 = arith.constant 9 : index
    %c0_48 = arith.constant 0 : index
    %c0_49 = arith.constant 0 : index
    %102 = vector.load %arg2[%c9_47, %c0_48, %c0_49] : memref<40x40x192xbf16, #tpu.memory_space<vmem>>, vector<1x40x192xbf16>
    %103 = vector.shape_cast %102 : vector<1x40x192xbf16> to vector<40x192xbf16>
    %104 = arith.extf %103 : vector<40x192xbf16> to vector<40x192xf32>
    %105 = vector.shape_cast %101 : vector<2x192xf32> to vector<2x1x192xf32>
    %106 = vector.shape_cast %104 : vector<40x192xf32> to vector<1x40x192xf32>
    %107 = vector.broadcast %105 : vector<2x1x192xf32> to vector<2x40x192xf32>
    %108 = vector.broadcast %106 : vector<1x40x192xf32> to vector<2x40x192xf32>
    %109 = arith.mulf %107, %108 : vector<2x40x192xf32>
    %110 = arith.addf %99, %109 : vector<2x40x192xf32>
    %c10 = arith.constant 10 : index
    %c0_50 = arith.constant 0 : index
    %c0_51 = arith.constant 0 : index
    %111 = vector.load %arg1[%c10, %c0_50, %c0_51] : memref<40x2x192xf32, #tpu.memory_space<vmem>>, vector<1x2x192xf32>
    %112 = vector.shape_cast %111 : vector<1x2x192xf32> to vector<2x192xf32>
    %c10_52 = arith.constant 10 : index
    %c0_53 = arith.constant 0 : index
    %c0_54 = arith.constant 0 : index
    %113 = vector.load %arg2[%c10_52, %c0_53, %c0_54] : memref<40x40x192xbf16, #tpu.memory_space<vmem>>, vector<1x40x192xbf16>
    %114 = vector.shape_cast %113 : vector<1x40x192xbf16> to vector<40x192xbf16>
    %115 = arith.extf %114 : vector<40x192xbf16> to vector<40x192xf32>
    %116 = vector.shape_cast %112 : vector<2x192xf32> to vector<2x1x192xf32>
    %117 = vector.shape_cast %115 : vector<40x192xf32> to vector<1x40x192xf32>
    %118 = vector.broadcast %116 : vector<2x1x192xf32> to vector<2x40x192xf32>
    %119 = vector.broadcast %117 : vector<1x40x192xf32> to vector<2x40x192xf32>
    %120 = arith.mulf %118, %119 : vector<2x40x192xf32>
    %121 = arith.addf %110, %120 : vector<2x40x192xf32>
    %c11 = arith.constant 11 : index
    %c0_55 = arith.constant 0 : index
    %c0_56 = arith.constant 0 : index
    %122 = vector.load %arg1[%c11, %c0_55, %c0_56] : memref<40x2x192xf32, #tpu.memory_space<vmem>>, vector<1x2x192xf32>
    %123 = vector.shape_cast %122 : vector<1x2x192xf32> to vector<2x192xf32>
    %c11_57 = arith.constant 11 : index
    %c0_58 = arith.constant 0 : index
    %c0_59 = arith.constant 0 : index
    %124 = vector.load %arg2[%c11_57, %c0_58, %c0_59] : memref<40x40x192xbf16, #tpu.memory_space<vmem>>, vector<1x40x192xbf16>
    %125 = vector.shape_cast %124 : vector<1x40x192xbf16> to vector<40x192xbf16>
    %126 = arith.extf %125 : vector<40x192xbf16> to vector<40x192xf32>
    %127 = vector.shape_cast %123 : vector<2x192xf32> to vector<2x1x192xf32>
    %128 = vector.shape_cast %126 : vector<40x192xf32> to vector<1x40x192xf32>
    %129 = vector.broadcast %127 : vector<2x1x192xf32> to vector<2x40x192xf32>
    %130 = vector.broadcast %128 : vector<1x40x192xf32> to vector<2x40x192xf32>
    %131 = arith.mulf %129, %130 : vector<2x40x192xf32>
    %132 = arith.addf %121, %131 : vector<2x40x192xf32>
    %c12 = arith.constant 12 : index
    %c0_60 = arith.constant 0 : index
    %c0_61 = arith.constant 0 : index
    %133 = vector.load %arg1[%c12, %c0_60, %c0_61] : memref<40x2x192xf32, #tpu.memory_space<vmem>>, vector<1x2x192xf32>
    %134 = vector.shape_cast %133 : vector<1x2x192xf32> to vector<2x192xf32>
    %c12_62 = arith.constant 12 : index
    %c0_63 = arith.constant 0 : index
    %c0_64 = arith.constant 0 : index
    %135 = vector.load %arg2[%c12_62, %c0_63, %c0_64] : memref<40x40x192xbf16, #tpu.memory_space<vmem>>, vector<1x40x192xbf16>
    %136 = vector.shape_cast %135 : vector<1x40x192xbf16> to vector<40x192xbf16>
    %137 = arith.extf %136 : vector<40x192xbf16> to vector<40x192xf32>
    %138 = vector.shape_cast %134 : vector<2x192xf32> to vector<2x1x192xf32>
    %139 = vector.shape_cast %137 : vector<40x192xf32> to vector<1x40x192xf32>
    %140 = vector.broadcast %138 : vector<2x1x192xf32> to vector<2x40x192xf32>
    %141 = vector.broadcast %139 : vector<1x40x192xf32> to vector<2x40x192xf32>
    %142 = arith.mulf %140, %141 : vector<2x40x192xf32>
    %143 = arith.addf %132, %142 : vector<2x40x192xf32>
    %c13 = arith.constant 13 : index
    %c0_65 = arith.constant 0 : index
    %c0_66 = arith.constant 0 : index
    %144 = vector.load %arg1[%c13, %c0_65, %c0_66] : memref<40x2x192xf32, #tpu.memory_space<vmem>>, vector<1x2x192xf32>
    %145 = vector.shape_cast %144 : vector<1x2x192xf32> to vector<2x192xf32>
    %c13_67 = arith.constant 13 : index
    %c0_68 = arith.constant 0 : index
    %c0_69 = arith.constant 0 : index
    %146 = vector.load %arg2[%c13_67, %c0_68, %c0_69] : memref<40x40x192xbf16, #tpu.memory_space<vmem>>, vector<1x40x192xbf16>
    %147 = vector.shape_cast %146 : vector<1x40x192xbf16> to vector<40x192xbf16>
    %148 = arith.extf %147 : vector<40x192xbf16> to vector<40x192xf32>
    %149 = vector.shape_cast %145 : vector<2x192xf32> to vector<2x1x192xf32>
    %150 = vector.shape_cast %148 : vector<40x192xf32> to vector<1x40x192xf32>
    %151 = vector.broadcast %149 : vector<2x1x192xf32> to vector<2x40x192xf32>
    %152 = vector.broadcast %150 : vector<1x40x192xf32> to vector<2x40x192xf32>
    %153 = arith.mulf %151, %152 : vector<2x40x192xf32>
    %154 = arith.addf %143, %153 : vector<2x40x192xf32>
    %c14 = arith.constant 14 : index
    %c0_70 = arith.constant 0 : index
    %c0_71 = arith.constant 0 : index
    %155 = vector.load %arg1[%c14, %c0_70, %c0_71] : memref<40x2x192xf32, #tpu.memory_space<vmem>>, vector<1x2x192xf32>
    %156 = vector.shape_cast %155 : vector<1x2x192xf32> to vector<2x192xf32>
    %c14_72 = arith.constant 14 : index
    %c0_73 = arith.constant 0 : index
    %c0_74 = arith.constant 0 : index
    %157 = vector.load %arg2[%c14_72, %c0_73, %c0_74] : memref<40x40x192xbf16, #tpu.memory_space<vmem>>, vector<1x40x192xbf16>
    %158 = vector.shape_cast %157 : vector<1x40x192xbf16> to vector<40x192xbf16>
    %159 = arith.extf %158 : vector<40x192xbf16> to vector<40x192xf32>
    %160 = vector.shape_cast %156 : vector<2x192xf32> to vector<2x1x192xf32>
    %161 = vector.shape_cast %159 : vector<40x192xf32> to vector<1x40x192xf32>
    %162 = vector.broadcast %160 : vector<2x1x192xf32> to vector<2x40x192xf32>
    %163 = vector.broadcast %161 : vector<1x40x192xf32> to vector<2x40x192xf32>
    %164 = arith.mulf %162, %163 : vector<2x40x192xf32>
    %165 = arith.addf %154, %164 : vector<2x40x192xf32>
    %c15 = arith.constant 15 : index
    %c0_75 = arith.constant 0 : index
    %c0_76 = arith.constant 0 : index
    %166 = vector.load %arg1[%c15, %c0_75, %c0_76] : memref<40x2x192xf32, #tpu.memory_space<vmem>>, vector<1x2x192xf32>
    %167 = vector.shape_cast %166 : vector<1x2x192xf32> to vector<2x192xf32>
    %c15_77 = arith.constant 15 : index
    %c0_78 = arith.constant 0 : index
    %c0_79 = arith.constant 0 : index
    %168 = vector.load %arg2[%c15_77, %c0_78, %c0_79] : memref<40x40x192xbf16, #tpu.memory_space<vmem>>, vector<1x40x192xbf16>
    %169 = vector.shape_cast %168 : vector<1x40x192xbf16> to vector<40x192xbf16>
    %170 = arith.extf %169 : vector<40x192xbf16> to vector<40x192xf32>
    %171 = vector.shape_cast %167 : vector<2x192xf32> to vector<2x1x192xf32>
    %172 = vector.shape_cast %170 : vector<40x192xf32> to vector<1x40x192xf32>
    %173 = vector.broadcast %171 : vector<2x1x192xf32> to vector<2x40x192xf32>
    %174 = vector.broadcast %172 : vector<1x40x192xf32> to vector<2x40x192xf32>
    %175 = arith.mulf %173, %174 : vector<2x40x192xf32>
    %176 = arith.addf %165, %175 : vector<2x40x192xf32>
    %c16 = arith.constant 16 : index
    %c0_80 = arith.constant 0 : index
    %c0_81 = arith.constant 0 : index
    %177 = vector.load %arg1[%c16, %c0_80, %c0_81] : memref<40x2x192xf32, #tpu.memory_space<vmem>>, vector<1x2x192xf32>
    %178 = vector.shape_cast %177 : vector<1x2x192xf32> to vector<2x192xf32>
    %c16_82 = arith.constant 16 : index
    %c0_83 = arith.constant 0 : index
    %c0_84 = arith.constant 0 : index
    %179 = vector.load %arg2[%c16_82, %c0_83, %c0_84] : memref<40x40x192xbf16, #tpu.memory_space<vmem>>, vector<1x40x192xbf16>
    %180 = vector.shape_cast %179 : vector<1x40x192xbf16> to vector<40x192xbf16>
    %181 = arith.extf %180 : vector<40x192xbf16> to vector<40x192xf32>
    %182 = vector.shape_cast %178 : vector<2x192xf32> to vector<2x1x192xf32>
    %183 = vector.shape_cast %181 : vector<40x192xf32> to vector<1x40x192xf32>
    %184 = vector.broadcast %182 : vector<2x1x192xf32> to vector<2x40x192xf32>
    %185 = vector.broadcast %183 : vector<1x40x192xf32> to vector<2x40x192xf32>
    %186 = arith.mulf %184, %185 : vector<2x40x192xf32>
    %187 = arith.addf %176, %186 : vector<2x40x192xf32>
    %c17 = arith.constant 17 : index
    %c0_85 = arith.constant 0 : index
    %c0_86 = arith.constant 0 : index
    %188 = vector.load %arg1[%c17, %c0_85, %c0_86] : memref<40x2x192xf32, #tpu.memory_space<vmem>>, vector<1x2x192xf32>
    %189 = vector.shape_cast %188 : vector<1x2x192xf32> to vector<2x192xf32>
    %c17_87 = arith.constant 17 : index
    %c0_88 = arith.constant 0 : index
    %c0_89 = arith.constant 0 : index
    %190 = vector.load %arg2[%c17_87, %c0_88, %c0_89] : memref<40x40x192xbf16, #tpu.memory_space<vmem>>, vector<1x40x192xbf16>
    %191 = vector.shape_cast %190 : vector<1x40x192xbf16> to vector<40x192xbf16>
    %192 = arith.extf %191 : vector<40x192xbf16> to vector<40x192xf32>
    %193 = vector.shape_cast %189 : vector<2x192xf32> to vector<2x1x192xf32>
    %194 = vector.shape_cast %192 : vector<40x192xf32> to vector<1x40x192xf32>
    %195 = vector.broadcast %193 : vector<2x1x192xf32> to vector<2x40x192xf32>
    %196 = vector.broadcast %194 : vector<1x40x192xf32> to vector<2x40x192xf32>
    %197 = arith.mulf %195, %196 : vector<2x40x192xf32>
    %198 = arith.addf %187, %197 : vector<2x40x192xf32>
    %c18 = arith.constant 18 : index
    %c0_90 = arith.constant 0 : index
    %c0_91 = arith.constant 0 : index
    %199 = vector.load %arg1[%c18, %c0_90, %c0_91] : memref<40x2x192xf32, #tpu.memory_space<vmem>>, vector<1x2x192xf32>
    %200 = vector.shape_cast %199 : vector<1x2x192xf32> to vector<2x192xf32>
    %c18_92 = arith.constant 18 : index
    %c0_93 = arith.constant 0 : index
    %c0_94 = arith.constant 0 : index
    %201 = vector.load %arg2[%c18_92, %c0_93, %c0_94] : memref<40x40x192xbf16, #tpu.memory_space<vmem>>, vector<1x40x192xbf16>
    %202 = vector.shape_cast %201 : vector<1x40x192xbf16> to vector<40x192xbf16>
    %203 = arith.extf %202 : vector<40x192xbf16> to vector<40x192xf32>
    %204 = vector.shape_cast %200 : vector<2x192xf32> to vector<2x1x192xf32>
    %205 = vector.shape_cast %203 : vector<40x192xf32> to vector<1x40x192xf32>
    %206 = vector.broadcast %204 : vector<2x1x192xf32> to vector<2x40x192xf32>
    %207 = vector.broadcast %205 : vector<1x40x192xf32> to vector<2x40x192xf32>
    %208 = arith.mulf %206, %207 : vector<2x40x192xf32>
    %209 = arith.addf %198, %208 : vector<2x40x192xf32>
    %c19 = arith.constant 19 : index
    %c0_95 = arith.constant 0 : index
    %c0_96 = arith.constant 0 : index
    %210 = vector.load %arg1[%c19, %c0_95, %c0_96] : memref<40x2x192xf32, #tpu.memory_space<vmem>>, vector<1x2x192xf32>
    %211 = vector.shape_cast %210 : vector<1x2x192xf32> to vector<2x192xf32>
    %c19_97 = arith.constant 19 : index
    %c0_98 = arith.constant 0 : index
    %c0_99 = arith.constant 0 : index
    %212 = vector.load %arg2[%c19_97, %c0_98, %c0_99] : memref<40x40x192xbf16, #tpu.memory_space<vmem>>, vector<1x40x192xbf16>
    %213 = vector.shape_cast %212 : vector<1x40x192xbf16> to vector<40x192xbf16>
    %214 = arith.extf %213 : vector<40x192xbf16> to vector<40x192xf32>
    %215 = vector.shape_cast %211 : vector<2x192xf32> to vector<2x1x192xf32>
    %216 = vector.shape_cast %214 : vector<40x192xf32> to vector<1x40x192xf32>
    %217 = vector.broadcast %215 : vector<2x1x192xf32> to vector<2x40x192xf32>
    %218 = vector.broadcast %216 : vector<1x40x192xf32> to vector<2x40x192xf32>
    %219 = arith.mulf %217, %218 : vector<2x40x192xf32>
    %220 = arith.addf %209, %219 : vector<2x40x192xf32>
    %c20 = arith.constant 20 : index
    %c0_100 = arith.constant 0 : index
    %c0_101 = arith.constant 0 : index
    %221 = vector.load %arg1[%c20, %c0_100, %c0_101] : memref<40x2x192xf32, #tpu.memory_space<vmem>>, vector<1x2x192xf32>
    %222 = vector.shape_cast %221 : vector<1x2x192xf32> to vector<2x192xf32>
    %c20_102 = arith.constant 20 : index
    %c0_103 = arith.constant 0 : index
    %c0_104 = arith.constant 0 : index
    %223 = vector.load %arg2[%c20_102, %c0_103, %c0_104] : memref<40x40x192xbf16, #tpu.memory_space<vmem>>, vector<1x40x192xbf16>
    %224 = vector.shape_cast %223 : vector<1x40x192xbf16> to vector<40x192xbf16>
    %225 = arith.extf %224 : vector<40x192xbf16> to vector<40x192xf32>
    %226 = vector.shape_cast %222 : vector<2x192xf32> to vector<2x1x192xf32>
    %227 = vector.shape_cast %225 : vector<40x192xf32> to vector<1x40x192xf32>
    %228 = vector.broadcast %226 : vector<2x1x192xf32> to vector<2x40x192xf32>
    %229 = vector.broadcast %227 : vector<1x40x192xf32> to vector<2x40x192xf32>
    %230 = arith.mulf %228, %229 : vector<2x40x192xf32>
    %231 = arith.addf %220, %230 : vector<2x40x192xf32>
    %c21 = arith.constant 21 : index
    %c0_105 = arith.constant 0 : index
    %c0_106 = arith.constant 0 : index
    %232 = vector.load %arg1[%c21, %c0_105, %c0_106] : memref<40x2x192xf32, #tpu.memory_space<vmem>>, vector<1x2x192xf32>
    %233 = vector.shape_cast %232 : vector<1x2x192xf32> to vector<2x192xf32>
    %c21_107 = arith.constant 21 : index
    %c0_108 = arith.constant 0 : index
    %c0_109 = arith.constant 0 : index
    %234 = vector.load %arg2[%c21_107, %c0_108, %c0_109] : memref<40x40x192xbf16, #tpu.memory_space<vmem>>, vector<1x40x192xbf16>
    %235 = vector.shape_cast %234 : vector<1x40x192xbf16> to vector<40x192xbf16>
    %236 = arith.extf %235 : vector<40x192xbf16> to vector<40x192xf32>
    %237 = vector.shape_cast %233 : vector<2x192xf32> to vector<2x1x192xf32>
    %238 = vector.shape_cast %236 : vector<40x192xf32> to vector<1x40x192xf32>
    %239 = vector.broadcast %237 : vector<2x1x192xf32> to vector<2x40x192xf32>
    %240 = vector.broadcast %238 : vector<1x40x192xf32> to vector<2x40x192xf32>
    %241 = arith.mulf %239, %240 : vector<2x40x192xf32>
    %242 = arith.addf %231, %241 : vector<2x40x192xf32>
    %c22 = arith.constant 22 : index
    %c0_110 = arith.constant 0 : index
    %c0_111 = arith.constant 0 : index
    %243 = vector.load %arg1[%c22, %c0_110, %c0_111] : memref<40x2x192xf32, #tpu.memory_space<vmem>>, vector<1x2x192xf32>
    %244 = vector.shape_cast %243 : vector<1x2x192xf32> to vector<2x192xf32>
    %c22_112 = arith.constant 22 : index
    %c0_113 = arith.constant 0 : index
    %c0_114 = arith.constant 0 : index
    %245 = vector.load %arg2[%c22_112, %c0_113, %c0_114] : memref<40x40x192xbf16, #tpu.memory_space<vmem>>, vector<1x40x192xbf16>
    %246 = vector.shape_cast %245 : vector<1x40x192xbf16> to vector<40x192xbf16>
    %247 = arith.extf %246 : vector<40x192xbf16> to vector<40x192xf32>
    %248 = vector.shape_cast %244 : vector<2x192xf32> to vector<2x1x192xf32>
    %249 = vector.shape_cast %247 : vector<40x192xf32> to vector<1x40x192xf32>
    %250 = vector.broadcast %248 : vector<2x1x192xf32> to vector<2x40x192xf32>
    %251 = vector.broadcast %249 : vector<1x40x192xf32> to vector<2x40x192xf32>
    %252 = arith.mulf %250, %251 : vector<2x40x192xf32>
    %253 = arith.addf %242, %252 : vector<2x40x192xf32>
    %c23 = arith.constant 23 : index
    %c0_115 = arith.constant 0 : index
    %c0_116 = arith.constant 0 : index
    %254 = vector.load %arg1[%c23, %c0_115, %c0_116] : memref<40x2x192xf32, #tpu.memory_space<vmem>>, vector<1x2x192xf32>
    %255 = vector.shape_cast %254 : vector<1x2x192xf32> to vector<2x192xf32>
    %c23_117 = arith.constant 23 : index
    %c0_118 = arith.constant 0 : index
    %c0_119 = arith.constant 0 : index
    %256 = vector.load %arg2[%c23_117, %c0_118, %c0_119] : memref<40x40x192xbf16, #tpu.memory_space<vmem>>, vector<1x40x192xbf16>
    %257 = vector.shape_cast %256 : vector<1x40x192xbf16> to vector<40x192xbf16>
    %258 = arith.extf %257 : vector<40x192xbf16> to vector<40x192xf32>
    %259 = vector.shape_cast %255 : vector<2x192xf32> to vector<2x1x192xf32>
    %260 = vector.shape_cast %258 : vector<40x192xf32> to vector<1x40x192xf32>
    %261 = vector.broadcast %259 : vector<2x1x192xf32> to vector<2x40x192xf32>
    %262 = vector.broadcast %260 : vector<1x40x192xf32> to vector<2x40x192xf32>
    %263 = arith.mulf %261, %262 : vector<2x40x192xf32>
    %264 = arith.addf %253, %263 : vector<2x40x192xf32>
    %c24 = arith.constant 24 : index
    %c0_120 = arith.constant 0 : index
    %c0_121 = arith.constant 0 : index
    %265 = vector.load %arg1[%c24, %c0_120, %c0_121] : memref<40x2x192xf32, #tpu.memory_space<vmem>>, vector<1x2x192xf32>
    %266 = vector.shape_cast %265 : vector<1x2x192xf32> to vector<2x192xf32>
    %c24_122 = arith.constant 24 : index
    %c0_123 = arith.constant 0 : index
    %c0_124 = arith.constant 0 : index
    %267 = vector.load %arg2[%c24_122, %c0_123, %c0_124] : memref<40x40x192xbf16, #tpu.memory_space<vmem>>, vector<1x40x192xbf16>
    %268 = vector.shape_cast %267 : vector<1x40x192xbf16> to vector<40x192xbf16>
    %269 = arith.extf %268 : vector<40x192xbf16> to vector<40x192xf32>
    %270 = vector.shape_cast %266 : vector<2x192xf32> to vector<2x1x192xf32>
    %271 = vector.shape_cast %269 : vector<40x192xf32> to vector<1x40x192xf32>
    %272 = vector.broadcast %270 : vector<2x1x192xf32> to vector<2x40x192xf32>
    %273 = vector.broadcast %271 : vector<1x40x192xf32> to vector<2x40x192xf32>
    %274 = arith.mulf %272, %273 : vector<2x40x192xf32>
    %275 = arith.addf %264, %274 : vector<2x40x192xf32>
    %c25 = arith.constant 25 : index
    %c0_125 = arith.constant 0 : index
    %c0_126 = arith.constant 0 : index
    %276 = vector.load %arg1[%c25, %c0_125, %c0_126] : memref<40x2x192xf32, #tpu.memory_space<vmem>>, vector<1x2x192xf32>
    %277 = vector.shape_cast %276 : vector<1x2x192xf32> to vector<2x192xf32>
    %c25_127 = arith.constant 25 : index
    %c0_128 = arith.constant 0 : index
    %c0_129 = arith.constant 0 : index
    %278 = vector.load %arg2[%c25_127, %c0_128, %c0_129] : memref<40x40x192xbf16, #tpu.memory_space<vmem>>, vector<1x40x192xbf16>
    %279 = vector.shape_cast %278 : vector<1x40x192xbf16> to vector<40x192xbf16>
    %280 = arith.extf %279 : vector<40x192xbf16> to vector<40x192xf32>
    %281 = vector.shape_cast %277 : vector<2x192xf32> to vector<2x1x192xf32>
    %282 = vector.shape_cast %280 : vector<40x192xf32> to vector<1x40x192xf32>
    %283 = vector.broadcast %281 : vector<2x1x192xf32> to vector<2x40x192xf32>
    %284 = vector.broadcast %282 : vector<1x40x192xf32> to vector<2x40x192xf32>
    %285 = arith.mulf %283, %284 : vector<2x40x192xf32>
    %286 = arith.addf %275, %285 : vector<2x40x192xf32>
    %c26 = arith.constant 26 : index
    %c0_130 = arith.constant 0 : index
    %c0_131 = arith.constant 0 : index
    %287 = vector.load %arg1[%c26, %c0_130, %c0_131] : memref<40x2x192xf32, #tpu.memory_space<vmem>>, vector<1x2x192xf32>
    %288 = vector.shape_cast %287 : vector<1x2x192xf32> to vector<2x192xf32>
    %c26_132 = arith.constant 26 : index
    %c0_133 = arith.constant 0 : index
    %c0_134 = arith.constant 0 : index
    %289 = vector.load %arg2[%c26_132, %c0_133, %c0_134] : memref<40x40x192xbf16, #tpu.memory_space<vmem>>, vector<1x40x192xbf16>
    %290 = vector.shape_cast %289 : vector<1x40x192xbf16> to vector<40x192xbf16>
    %291 = arith.extf %290 : vector<40x192xbf16> to vector<40x192xf32>
    %292 = vector.shape_cast %288 : vector<2x192xf32> to vector<2x1x192xf32>
    %293 = vector.shape_cast %291 : vector<40x192xf32> to vector<1x40x192xf32>
    %294 = vector.broadcast %292 : vector<2x1x192xf32> to vector<2x40x192xf32>
    %295 = vector.broadcast %293 : vector<1x40x192xf32> to vector<2x40x192xf32>
    %296 = arith.mulf %294, %295 : vector<2x40x192xf32>
    %297 = arith.addf %286, %296 : vector<2x40x192xf32>
    %c27 = arith.constant 27 : index
    %c0_135 = arith.constant 0 : index
    %c0_136 = arith.constant 0 : index
    %298 = vector.load %arg1[%c27, %c0_135, %c0_136] : memref<40x2x192xf32, #tpu.memory_space<vmem>>, vector<1x2x192xf32>
    %299 = vector.shape_cast %298 : vector<1x2x192xf32> to vector<2x192xf32>
    %c27_137 = arith.constant 27 : index
    %c0_138 = arith.constant 0 : index
    %c0_139 = arith.constant 0 : index
    %300 = vector.load %arg2[%c27_137, %c0_138, %c0_139] : memref<40x40x192xbf16, #tpu.memory_space<vmem>>, vector<1x40x192xbf16>
    %301 = vector.shape_cast %300 : vector<1x40x192xbf16> to vector<40x192xbf16>
    %302 = arith.extf %301 : vector<40x192xbf16> to vector<40x192xf32>
    %303 = vector.shape_cast %299 : vector<2x192xf32> to vector<2x1x192xf32>
    %304 = vector.shape_cast %302 : vector<40x192xf32> to vector<1x40x192xf32>
    %305 = vector.broadcast %303 : vector<2x1x192xf32> to vector<2x40x192xf32>
    %306 = vector.broadcast %304 : vector<1x40x192xf32> to vector<2x40x192xf32>
    %307 = arith.mulf %305, %306 : vector<2x40x192xf32>
    %308 = arith.addf %297, %307 : vector<2x40x192xf32>
    %c28 = arith.constant 28 : index
    %c0_140 = arith.constant 0 : index
    %c0_141 = arith.constant 0 : index
    %309 = vector.load %arg1[%c28, %c0_140, %c0_141] : memref<40x2x192xf32, #tpu.memory_space<vmem>>, vector<1x2x192xf32>
    %310 = vector.shape_cast %309 : vector<1x2x192xf32> to vector<2x192xf32>
    %c28_142 = arith.constant 28 : index
    %c0_143 = arith.constant 0 : index
    %c0_144 = arith.constant 0 : index
    %311 = vector.load %arg2[%c28_142, %c0_143, %c0_144] : memref<40x40x192xbf16, #tpu.memory_space<vmem>>, vector<1x40x192xbf16>
    %312 = vector.shape_cast %311 : vector<1x40x192xbf16> to vector<40x192xbf16>
    %313 = arith.extf %312 : vector<40x192xbf16> to vector<40x192xf32>
    %314 = vector.shape_cast %310 : vector<2x192xf32> to vector<2x1x192xf32>
    %315 = vector.shape_cast %313 : vector<40x192xf32> to vector<1x40x192xf32>
    %316 = vector.broadcast %314 : vector<2x1x192xf32> to vector<2x40x192xf32>
    %317 = vector.broadcast %315 : vector<1x40x192xf32> to vector<2x40x192xf32>
    %318 = arith.mulf %316, %317 : vector<2x40x192xf32>
    %319 = arith.addf %308, %318 : vector<2x40x192xf32>
    %c29 = arith.constant 29 : index
    %c0_145 = arith.constant 0 : index
    %c0_146 = arith.constant 0 : index
    %320 = vector.load %arg1[%c29, %c0_145, %c0_146] : memref<40x2x192xf32, #tpu.memory_space<vmem>>, vector<1x2x192xf32>
    %321 = vector.shape_cast %320 : vector<1x2x192xf32> to vector<2x192xf32>
    %c29_147 = arith.constant 29 : index
    %c0_148 = arith.constant 0 : index
    %c0_149 = arith.constant 0 : index
    %322 = vector.load %arg2[%c29_147, %c0_148, %c0_149] : memref<40x40x192xbf16, #tpu.memory_space<vmem>>, vector<1x40x192xbf16>
    %323 = vector.shape_cast %322 : vector<1x40x192xbf16> to vector<40x192xbf16>
    %324 = arith.extf %323 : vector<40x192xbf16> to vector<40x192xf32>
    %325 = vector.shape_cast %321 : vector<2x192xf32> to vector<2x1x192xf32>
    %326 = vector.shape_cast %324 : vector<40x192xf32> to vector<1x40x192xf32>
    %327 = vector.broadcast %325 : vector<2x1x192xf32> to vector<2x40x192xf32>
    %328 = vector.broadcast %326 : vector<1x40x192xf32> to vector<2x40x192xf32>
    %329 = arith.mulf %327, %328 : vector<2x40x192xf32>
    %330 = arith.addf %319, %329 : vector<2x40x192xf32>
    %c30 = arith.constant 30 : index
    %c0_150 = arith.constant 0 : index
    %c0_151 = arith.constant 0 : index
    %331 = vector.load %arg1[%c30, %c0_150, %c0_151] : memref<40x2x192xf32, #tpu.memory_space<vmem>>, vector<1x2x192xf32>
    %332 = vector.shape_cast %331 : vector<1x2x192xf32> to vector<2x192xf32>
    %c30_152 = arith.constant 30 : index
    %c0_153 = arith.constant 0 : index
    %c0_154 = arith.constant 0 : index
    %333 = vector.load %arg2[%c30_152, %c0_153, %c0_154] : memref<40x40x192xbf16, #tpu.memory_space<vmem>>, vector<1x40x192xbf16>
    %334 = vector.shape_cast %333 : vector<1x40x192xbf16> to vector<40x192xbf16>
    %335 = arith.extf %334 : vector<40x192xbf16> to vector<40x192xf32>
    %336 = vector.shape_cast %332 : vector<2x192xf32> to vector<2x1x192xf32>
    %337 = vector.shape_cast %335 : vector<40x192xf32> to vector<1x40x192xf32>
    %338 = vector.broadcast %336 : vector<2x1x192xf32> to vector<2x40x192xf32>
    %339 = vector.broadcast %337 : vector<1x40x192xf32> to vector<2x40x192xf32>
    %340 = arith.mulf %338, %339 : vector<2x40x192xf32>
    %341 = arith.addf %330, %340 : vector<2x40x192xf32>
    %c31 = arith.constant 31 : index
    %c0_155 = arith.constant 0 : index
    %c0_156 = arith.constant 0 : index
    %342 = vector.load %arg1[%c31, %c0_155, %c0_156] : memref<40x2x192xf32, #tpu.memory_space<vmem>>, vector<1x2x192xf32>
    %343 = vector.shape_cast %342 : vector<1x2x192xf32> to vector<2x192xf32>
    %c31_157 = arith.constant 31 : index
    %c0_158 = arith.constant 0 : index
    %c0_159 = arith.constant 0 : index
    %344 = vector.load %arg2[%c31_157, %c0_158, %c0_159] : memref<40x40x192xbf16, #tpu.memory_space<vmem>>, vector<1x40x192xbf16>
    %345 = vector.shape_cast %344 : vector<1x40x192xbf16> to vector<40x192xbf16>
    %346 = arith.extf %345 : vector<40x192xbf16> to vector<40x192xf32>
    %347 = vector.shape_cast %343 : vector<2x192xf32> to vector<2x1x192xf32>
    %348 = vector.shape_cast %346 : vector<40x192xf32> to vector<1x40x192xf32>
    %349 = vector.broadcast %347 : vector<2x1x192xf32> to vector<2x40x192xf32>
    %350 = vector.broadcast %348 : vector<1x40x192xf32> to vector<2x40x192xf32>
    %351 = arith.mulf %349, %350 : vector<2x40x192xf32>
    %352 = arith.addf %341, %351 : vector<2x40x192xf32>
    %c32 = arith.constant 32 : index
    %c0_160 = arith.constant 0 : index
    %c0_161 = arith.constant 0 : index
    %353 = vector.load %arg1[%c32, %c0_160, %c0_161] : memref<40x2x192xf32, #tpu.memory_space<vmem>>, vector<1x2x192xf32>
    %354 = vector.shape_cast %353 : vector<1x2x192xf32> to vector<2x192xf32>
    %c32_162 = arith.constant 32 : index
    %c0_163 = arith.constant 0 : index
    %c0_164 = arith.constant 0 : index
    %355 = vector.load %arg2[%c32_162, %c0_163, %c0_164] : memref<40x40x192xbf16, #tpu.memory_space<vmem>>, vector<1x40x192xbf16>
    %356 = vector.shape_cast %355 : vector<1x40x192xbf16> to vector<40x192xbf16>
    %357 = arith.extf %356 : vector<40x192xbf16> to vector<40x192xf32>
    %358 = vector.shape_cast %354 : vector<2x192xf32> to vector<2x1x192xf32>
    %359 = vector.shape_cast %357 : vector<40x192xf32> to vector<1x40x192xf32>
    %360 = vector.broadcast %358 : vector<2x1x192xf32> to vector<2x40x192xf32>
    %361 = vector.broadcast %359 : vector<1x40x192xf32> to vector<2x40x192xf32>
    %362 = arith.mulf %360, %361 : vector<2x40x192xf32>
    %363 = arith.addf %352, %362 : vector<2x40x192xf32>
    %c33 = arith.constant 33 : index
    %c0_165 = arith.constant 0 : index
    %c0_166 = arith.constant 0 : index
    %364 = vector.load %arg1[%c33, %c0_165, %c0_166] : memref<40x2x192xf32, #tpu.memory_space<vmem>>, vector<1x2x192xf32>
    %365 = vector.shape_cast %364 : vector<1x2x192xf32> to vector<2x192xf32>
    %c33_167 = arith.constant 33 : index
    %c0_168 = arith.constant 0 : index
    %c0_169 = arith.constant 0 : index
    %366 = vector.load %arg2[%c33_167, %c0_168, %c0_169] : memref<40x40x192xbf16, #tpu.memory_space<vmem>>, vector<1x40x192xbf16>
    %367 = vector.shape_cast %366 : vector<1x40x192xbf16> to vector<40x192xbf16>
    %368 = arith.extf %367 : vector<40x192xbf16> to vector<40x192xf32>
    %369 = vector.shape_cast %365 : vector<2x192xf32> to vector<2x1x192xf32>
    %370 = vector.shape_cast %368 : vector<40x192xf32> to vector<1x40x192xf32>
    %371 = vector.broadcast %369 : vector<2x1x192xf32> to vector<2x40x192xf32>
    %372 = vector.broadcast %370 : vector<1x40x192xf32> to vector<2x40x192xf32>
    %373 = arith.mulf %371, %372 : vector<2x40x192xf32>
    %374 = arith.addf %363, %373 : vector<2x40x192xf32>
    %c34 = arith.constant 34 : index
    %c0_170 = arith.constant 0 : index
    %c0_171 = arith.constant 0 : index
    %375 = vector.load %arg1[%c34, %c0_170, %c0_171] : memref<40x2x192xf32, #tpu.memory_space<vmem>>, vector<1x2x192xf32>
    %376 = vector.shape_cast %375 : vector<1x2x192xf32> to vector<2x192xf32>
    %c34_172 = arith.constant 34 : index
    %c0_173 = arith.constant 0 : index
    %c0_174 = arith.constant 0 : index
    %377 = vector.load %arg2[%c34_172, %c0_173, %c0_174] : memref<40x40x192xbf16, #tpu.memory_space<vmem>>, vector<1x40x192xbf16>
    %378 = vector.shape_cast %377 : vector<1x40x192xbf16> to vector<40x192xbf16>
    %379 = arith.extf %378 : vector<40x192xbf16> to vector<40x192xf32>
    %380 = vector.shape_cast %376 : vector<2x192xf32> to vector<2x1x192xf32>
    %381 = vector.shape_cast %379 : vector<40x192xf32> to vector<1x40x192xf32>
    %382 = vector.broadcast %380 : vector<2x1x192xf32> to vector<2x40x192xf32>
    %383 = vector.broadcast %381 : vector<1x40x192xf32> to vector<2x40x192xf32>
    %384 = arith.mulf %382, %383 : vector<2x40x192xf32>
    %385 = arith.addf %374, %384 : vector<2x40x192xf32>
    %c35 = arith.constant 35 : index
    %c0_175 = arith.constant 0 : index
    %c0_176 = arith.constant 0 : index
    %386 = vector.load %arg1[%c35, %c0_175, %c0_176] : memref<40x2x192xf32, #tpu.memory_space<vmem>>, vector<1x2x192xf32>
    %387 = vector.shape_cast %386 : vector<1x2x192xf32> to vector<2x192xf32>
    %c35_177 = arith.constant 35 : index
    %c0_178 = arith.constant 0 : index
    %c0_179 = arith.constant 0 : index
    %388 = vector.load %arg2[%c35_177, %c0_178, %c0_179] : memref<40x40x192xbf16, #tpu.memory_space<vmem>>, vector<1x40x192xbf16>
    %389 = vector.shape_cast %388 : vector<1x40x192xbf16> to vector<40x192xbf16>
    %390 = arith.extf %389 : vector<40x192xbf16> to vector<40x192xf32>
    %391 = vector.shape_cast %387 : vector<2x192xf32> to vector<2x1x192xf32>
    %392 = vector.shape_cast %390 : vector<40x192xf32> to vector<1x40x192xf32>
    %393 = vector.broadcast %391 : vector<2x1x192xf32> to vector<2x40x192xf32>
    %394 = vector.broadcast %392 : vector<1x40x192xf32> to vector<2x40x192xf32>
    %395 = arith.mulf %393, %394 : vector<2x40x192xf32>
    %396 = arith.addf %385, %395 : vector<2x40x192xf32>
    %c36 = arith.constant 36 : index
    %c0_180 = arith.constant 0 : index
    %c0_181 = arith.constant 0 : index
    %397 = vector.load %arg1[%c36, %c0_180, %c0_181] : memref<40x2x192xf32, #tpu.memory_space<vmem>>, vector<1x2x192xf32>
    %398 = vector.shape_cast %397 : vector<1x2x192xf32> to vector<2x192xf32>
    %c36_182 = arith.constant 36 : index
    %c0_183 = arith.constant 0 : index
    %c0_184 = arith.constant 0 : index
    %399 = vector.load %arg2[%c36_182, %c0_183, %c0_184] : memref<40x40x192xbf16, #tpu.memory_space<vmem>>, vector<1x40x192xbf16>
    %400 = vector.shape_cast %399 : vector<1x40x192xbf16> to vector<40x192xbf16>
    %401 = arith.extf %400 : vector<40x192xbf16> to vector<40x192xf32>
    %402 = vector.shape_cast %398 : vector<2x192xf32> to vector<2x1x192xf32>
    %403 = vector.shape_cast %401 : vector<40x192xf32> to vector<1x40x192xf32>
    %404 = vector.broadcast %402 : vector<2x1x192xf32> to vector<2x40x192xf32>
    %405 = vector.broadcast %403 : vector<1x40x192xf32> to vector<2x40x192xf32>
    %406 = arith.mulf %404, %405 : vector<2x40x192xf32>
    %407 = arith.addf %396, %406 : vector<2x40x192xf32>
    %c37 = arith.constant 37 : index
    %c0_185 = arith.constant 0 : index
    %c0_186 = arith.constant 0 : index
    %408 = vector.load %arg1[%c37, %c0_185, %c0_186] : memref<40x2x192xf32, #tpu.memory_space<vmem>>, vector<1x2x192xf32>
    %409 = vector.shape_cast %408 : vector<1x2x192xf32> to vector<2x192xf32>
    %c37_187 = arith.constant 37 : index
    %c0_188 = arith.constant 0 : index
    %c0_189 = arith.constant 0 : index
    %410 = vector.load %arg2[%c37_187, %c0_188, %c0_189] : memref<40x40x192xbf16, #tpu.memory_space<vmem>>, vector<1x40x192xbf16>
    %411 = vector.shape_cast %410 : vector<1x40x192xbf16> to vector<40x192xbf16>
    %412 = arith.extf %411 : vector<40x192xbf16> to vector<40x192xf32>
    %413 = vector.shape_cast %409 : vector<2x192xf32> to vector<2x1x192xf32>
    %414 = vector.shape_cast %412 : vector<40x192xf32> to vector<1x40x192xf32>
    %415 = vector.broadcast %413 : vector<2x1x192xf32> to vector<2x40x192xf32>
    %416 = vector.broadcast %414 : vector<1x40x192xf32> to vector<2x40x192xf32>
    %417 = arith.mulf %415, %416 : vector<2x40x192xf32>
    %418 = arith.addf %407, %417 : vector<2x40x192xf32>
    %c38 = arith.constant 38 : index
    %c0_190 = arith.constant 0 : index
    %c0_191 = arith.constant 0 : index
    %419 = vector.load %arg1[%c38, %c0_190, %c0_191] : memref<40x2x192xf32, #tpu.memory_space<vmem>>, vector<1x2x192xf32>
    %420 = vector.shape_cast %419 : vector<1x2x192xf32> to vector<2x192xf32>
    %c38_192 = arith.constant 38 : index
    %c0_193 = arith.constant 0 : index
    %c0_194 = arith.constant 0 : index
    %421 = vector.load %arg2[%c38_192, %c0_193, %c0_194] : memref<40x40x192xbf16, #tpu.memory_space<vmem>>, vector<1x40x192xbf16>
    %422 = vector.shape_cast %421 : vector<1x40x192xbf16> to vector<40x192xbf16>
    %423 = arith.extf %422 : vector<40x192xbf16> to vector<40x192xf32>
    %424 = vector.shape_cast %420 : vector<2x192xf32> to vector<2x1x192xf32>
    %425 = vector.shape_cast %423 : vector<40x192xf32> to vector<1x40x192xf32>
    %426 = vector.broadcast %424 : vector<2x1x192xf32> to vector<2x40x192xf32>
    %427 = vector.broadcast %425 : vector<1x40x192xf32> to vector<2x40x192xf32>
    %428 = arith.mulf %426, %427 : vector<2x40x192xf32>
    %429 = arith.addf %418, %428 : vector<2x40x192xf32>
    %c39 = arith.constant 39 : index
    %c0_195 = arith.constant 0 : index
    %c0_196 = arith.constant 0 : index
    %430 = vector.load %arg1[%c39, %c0_195, %c0_196] : memref<40x2x192xf32, #tpu.memory_space<vmem>>, vector<1x2x192xf32>
    %431 = vector.shape_cast %430 : vector<1x2x192xf32> to vector<2x192xf32>
    %c39_197 = arith.constant 39 : index
    %c0_198 = arith.constant 0 : index
    %c0_199 = arith.constant 0 : index
    %432 = vector.load %arg2[%c39_197, %c0_198, %c0_199] : memref<40x40x192xbf16, #tpu.memory_space<vmem>>, vector<1x40x192xbf16>
    %433 = vector.shape_cast %432 : vector<1x40x192xbf16> to vector<40x192xbf16>
    %434 = arith.extf %433 : vector<40x192xbf16> to vector<40x192xf32>
    %435 = vector.shape_cast %431 : vector<2x192xf32> to vector<2x1x192xf32>
    %436 = vector.shape_cast %434 : vector<40x192xf32> to vector<1x40x192xf32>
    %437 = vector.broadcast %435 : vector<2x1x192xf32> to vector<2x40x192xf32>
    %438 = vector.broadcast %436 : vector<1x40x192xf32> to vector<2x40x192xf32>
    %439 = arith.mulf %437, %438 : vector<2x40x192xf32>
    %440 = arith.addf %429, %439 : vector<2x40x192xf32>
    %c0_200 = arith.constant 0 : index
    %c0_201 = arith.constant 0 : index
    %c0_202 = arith.constant 0 : index
    %441 = vector.load %arg3[%c0_200, %c0_201, %c0_202] : memref<2x40x192xf32, #tpu.memory_space<vmem>>, vector<2x40x192xf32>
    tpu.vector_store %arg3[%c0_200, %c0_201, %c0_202], %440 {strides = array<i32>} : memref<2x40x192xf32, #tpu.memory_space<vmem>>, vector<2x40x192xf32>,
    return
  }
  func.func @transform_0(%arg0: i32) -> (i32, i32, i32) {
    %c0_i32 = arith.constant 0 : i32
    %c0_i32_0 = arith.constant 0 : i32
    %c0_i32_1 = arith.constant 0 : i32
    return %c0_i32, %c0_i32_0, %arg0 : i32, i32, i32
  }
  func.func @transform_1(%arg0: i32) -> (i32, i32, i32) {
    %c0_i32 = arith.constant 0 : i32
    %c0_i32_0 = arith.constant 0 : i32
    %c0_i32_1 = arith.constant 0 : i32
    return %c0_i32, %c0_i32_0, %arg0 : i32, i32, i32
  }
  func.func @transform_2(%arg0: i32) -> (i32, i32, i32) {
    %c0_i32 = arith.constant 0 : i32
    %c0_i32_0 = arith.constant 0 : i32
    %c0_i32_1 = arith.constant 0 : i32
    return %c0_i32, %c0_i32_0, %arg0 : i32, i32, i32
  }
}

module attributes {stable_mosaic.version = 11 : i64} {
  func.func @kernel(%arg0: i32, %arg1: memref<20x1792xf32, #tpu.memory_space<vmem>>, %arg2: memref<20x1792xbf16, #tpu.memory_space<vmem>>, %arg3: memref<20x20xbf16, #tpu.memory_space<vmem>>, %arg4: memref<20x1xf32, #tpu.memory_space<vmem>>, %arg5: memref<20x20xbf16, #tpu.memory_space<vmem>>, %arg6: memref<20x1xf32, #tpu.memory_space<vmem>>, %arg7: memref<20x20xbf16, #tpu.memory_space<vmem>>, %arg8: memref<20x1xf32, #tpu.memory_space<vmem>>, %arg9: memref<20x1792xbf16, #tpu.memory_space<vmem>>) attributes {dimension_semantics = [#tpu.dimension_semantics<parallel>], iteration_bounds = array<i64: 1>, scalar_prefetch = 0 : i64, scratch_operands = 0 : i64, tpu.core_type = #tpu.core_type<tc>, window_params = [{transform_indices = @transform_0, window_bounds = array<i64: 20, 1792>}, {transform_indices = @transform_1, window_bounds = array<i64: 20, 1792>}, {pipeline_mode = #tpu.pipeline_mode<synchronous>, transform_indices = @transform_2, window_bounds = array<i64: 20, 20>}, {pipeline_mode = #tpu.pipeline_mode<synchronous>, transform_indices = @transform_3, window_bounds = array<i64: 20, 1>}, {pipeline_mode = #tpu.pipeline_mode<synchronous>, transform_indices = @transform_4, window_bounds = array<i64: 20, 20>}, {pipeline_mode = #tpu.pipeline_mode<synchronous>, transform_indices = @transform_5, window_bounds = array<i64: 20, 1>}, {pipeline_mode = #tpu.pipeline_mode<synchronous>, transform_indices = @transform_6, window_bounds = array<i64: 20, 20>}, {pipeline_mode = #tpu.pipeline_mode<synchronous>, transform_indices = @transform_7, window_bounds = array<i64: 20, 1>}, {transform_indices = @transform_8, window_bounds = array<i64: 20, 1792>}]} {
    %c0 = arith.constant 0 : index
    %c0_0 = arith.constant 0 : index
    %0 = vector.load %arg1[%c0, %c0_0] : memref<20x1792xf32, #tpu.memory_space<vmem>>, vector<20x1792xf32>
    %1 = arith.truncf %0 : vector<20x1792xf32> to vector<20x1792xbf16>
    %c0_1 = arith.constant 0 : index
    %c0_2 = arith.constant 0 : index
    %2 = vector.load %arg2[%c0_1, %c0_2] : memref<20x1792xbf16, #tpu.memory_space<vmem>>, vector<20x1792xbf16>
    %c0_3 = arith.constant 0 : index
    %c0_4 = arith.constant 0 : index
    %3 = vector.load %arg3[%c0_3, %c0_4] : memref<20x20xbf16, #tpu.memory_space<vmem>>, vector<20x20xbf16>
    %cst = arith.constant dense<0.000000e+00> : vector<20x1792xf32>
    %4 = tpu.matmul %3, %1, %cst {dimension_numbers = #tpu.dot_dimension_numbers<[1], [0], [0], [1], [0, 0, 1, 1], [], []>} : vector<20x20xbf16>, vector<20x1792xbf16>, vector<20x1792xf32> -> vector<20x1792xf32>
    %c0_5 = arith.constant 0 : index
    %c0_6 = arith.constant 0 : index
    %5 = vector.load %arg4[%c0_5, %c0_6] : memref<20x1xf32, #tpu.memory_space<vmem>>, vector<20x1xf32>
    %6 = vector.broadcast %5 : vector<20x1xf32> to vector<20x1792xf32>
    %7 = arith.addf %4, %6 : vector<20x1792xf32>
    %cst_7 = arith.constant 5.000000e-01 : f32
    %8 = vector.broadcast %cst_7 : f32 to vector<20x1792xf32>
    %9 = arith.mulf %8, %7 : vector<20x1792xf32>
    %cst_8 = arith.constant 0.707106769 : f32
    %10 = vector.broadcast %cst_8 : f32 to vector<20x1792xf32>
    %11 = arith.mulf %7, %10 : vector<20x1792xf32>
    %12 = math.erf %11 : vector<20x1792xf32>
    %cst_9 = arith.constant 1.000000e+00 : f32
    %13 = vector.broadcast %cst_9 : f32 to vector<20x1792xf32>
    %14 = arith.addf %13, %12 : vector<20x1792xf32>
    %15 = arith.mulf %9, %14 : vector<20x1792xf32>
    %16 = arith.truncf %15 : vector<20x1792xf32> to vector<20x1792xbf16>
    %c0_10 = arith.constant 0 : index
    %c0_11 = arith.constant 0 : index
    %17 = vector.load %arg5[%c0_10, %c0_11] : memref<20x20xbf16, #tpu.memory_space<vmem>>, vector<20x20xbf16>
    %cst_12 = arith.constant dense<0.000000e+00> : vector<20x1792xf32>
    %18 = tpu.matmul %17, %16, %cst_12 {dimension_numbers = #tpu.dot_dimension_numbers<[1], [0], [0], [1], [0, 0, 1, 1], [], []>} : vector<20x20xbf16>, vector<20x1792xbf16>, vector<20x1792xf32> -> vector<20x1792xf32>
    %c0_13 = arith.constant 0 : index
    %c0_14 = arith.constant 0 : index
    %19 = vector.load %arg6[%c0_13, %c0_14] : memref<20x1xf32, #tpu.memory_space<vmem>>, vector<20x1xf32>
    %20 = vector.broadcast %19 : vector<20x1xf32> to vector<20x1792xf32>
    %21 = arith.addf %18, %20 : vector<20x1792xf32>
    %c0_15 = arith.constant 0 : index
    %c0_16 = arith.constant 0 : index
    %22 = vector.load %arg7[%c0_15, %c0_16] : memref<20x20xbf16, #tpu.memory_space<vmem>>, vector<20x20xbf16>
    %cst_17 = arith.constant dense<0.000000e+00> : vector<20x1792xf32>
    %23 = tpu.matmul %22, %2, %cst_17 {dimension_numbers = #tpu.dot_dimension_numbers<[1], [0], [0], [1], [0, 0, 1, 1], [], []>} : vector<20x20xbf16>, vector<20x1792xbf16>, vector<20x1792xf32> -> vector<20x1792xf32>
    %24 = arith.addf %21, %23 : vector<20x1792xf32>
    %c0_18 = arith.constant 0 : index
    %c0_19 = arith.constant 0 : index
    %25 = vector.load %arg8[%c0_18, %c0_19] : memref<20x1xf32, #tpu.memory_space<vmem>>, vector<20x1xf32>
    %26 = vector.broadcast %25 : vector<20x1xf32> to vector<20x1792xf32>
    %27 = arith.addf %24, %26 : vector<20x1792xf32>
    %cst_20 = arith.constant 5.000000e-01 : f32
    %28 = vector.broadcast %cst_20 : f32 to vector<20x1792xf32>
    %29 = arith.mulf %28, %27 : vector<20x1792xf32>
    %cst_21 = arith.constant 0.707106769 : f32
    %30 = vector.broadcast %cst_21 : f32 to vector<20x1792xf32>
    %31 = arith.mulf %27, %30 : vector<20x1792xf32>
    %32 = math.erf %31 : vector<20x1792xf32>
    %cst_22 = arith.constant 1.000000e+00 : f32
    %33 = vector.broadcast %cst_22 : f32 to vector<20x1792xf32>
    %34 = arith.addf %33, %32 : vector<20x1792xf32>
    %35 = arith.mulf %29, %34 : vector<20x1792xf32>
    %36 = arith.truncf %35 : vector<20x1792xf32> to vector<20x1792xbf16>
    %c0_23 = arith.constant 0 : index
    %c0_24 = arith.constant 0 : index
    %37 = vector.load %arg9[%c0_23, %c0_24] : memref<20x1792xbf16, #tpu.memory_space<vmem>>, vector<20x1792xbf16>
    tpu.vector_store %arg9[%c0_23, %c0_24], %36 {strides = array<i32>} : memref<20x1792xbf16, #tpu.memory_space<vmem>>, vector<20x1792xbf16>,
    return
  }
  func.func @transform_0(%arg0: i32) -> (i32, i32) {
    %c0_i32 = arith.constant 0 : i32
    %c0_i32_0 = arith.constant 0 : i32
    return %c0_i32, %arg0 : i32, i32
  }
  func.func @transform_1(%arg0: i32) -> (i32, i32) {
    %c0_i32 = arith.constant 0 : i32
    %c0_i32_0 = arith.constant 0 : i32
    return %c0_i32, %arg0 : i32, i32
  }
  func.func @transform_2(%arg0: i32) -> (i32, i32) {
    %c0_i32 = arith.constant 0 : i32
    %c0_i32_0 = arith.constant 0 : i32
    %c0_i32_1 = arith.constant 0 : i32
    return %c0_i32, %c0_i32_0 : i32, i32
  }
  func.func @transform_3(%arg0: i32) -> (i32, i32) {
    %c0_i32 = arith.constant 0 : i32
    %c0_i32_0 = arith.constant 0 : i32
    %c0_i32_1 = arith.constant 0 : i32
    return %c0_i32, %c0_i32_0 : i32, i32
  }
  func.func @transform_4(%arg0: i32) -> (i32, i32) {
    %c0_i32 = arith.constant 0 : i32
    %c0_i32_0 = arith.constant 0 : i32
    %c0_i32_1 = arith.constant 0 : i32
    return %c0_i32, %c0_i32_0 : i32, i32
  }
  func.func @transform_5(%arg0: i32) -> (i32, i32) {
    %c0_i32 = arith.constant 0 : i32
    %c0_i32_0 = arith.constant 0 : i32
    %c0_i32_1 = arith.constant 0 : i32
    return %c0_i32, %c0_i32_0 : i32, i32
  }
  func.func @transform_6(%arg0: i32) -> (i32, i32) {
    %c0_i32 = arith.constant 0 : i32
    %c0_i32_0 = arith.constant 0 : i32
    %c0_i32_1 = arith.constant 0 : i32
    return %c0_i32, %c0_i32_0 : i32, i32
  }
  func.func @transform_7(%arg0: i32) -> (i32, i32) {
    %c0_i32 = arith.constant 0 : i32
    %c0_i32_0 = arith.constant 0 : i32
    %c0_i32_1 = arith.constant 0 : i32
    return %c0_i32, %c0_i32_0 : i32, i32
  }
  func.func @transform_8(%arg0: i32) -> (i32, i32) {
    %c0_i32 = arith.constant 0 : i32
    %c0_i32_0 = arith.constant 0 : i32
    return %c0_i32, %arg0 : i32, i32
  }
}

module attributes {stable_mosaic.version = 11 : i64} {
  func.func @kernel(%arg0: i32, %arg1: memref<20x1792xf32, #tpu.memory_space<vmem>>, %arg2: memref<20x1792xbf16, #tpu.memory_space<vmem>>, %arg3: memref<20x20xbf16, #tpu.memory_space<vmem>>, %arg4: memref<20x1xf32, #tpu.memory_space<vmem>>, %arg5: memref<20x20xbf16, #tpu.memory_space<vmem>>, %arg6: memref<20x1xf32, #tpu.memory_space<vmem>>, %arg7: memref<20x20xbf16, #tpu.memory_space<vmem>>, %arg8: memref<20x1xf32, #tpu.memory_space<vmem>>, %arg9: memref<20x1792xbf16, #tpu.memory_space<vmem>>) attributes {dimension_semantics = [#tpu.dimension_semantics<parallel>], iteration_bounds = array<i64: 1>, scalar_prefetch = 0 : i64, scratch_operands = 0 : i64, tpu.core_type = #tpu.core_type<tc>, window_params = [{transform_indices = @transform_0, window_bounds = array<i64: 20, 1792>}, {transform_indices = @transform_1, window_bounds = array<i64: 20, 1792>}, {pipeline_mode = #tpu.pipeline_mode<synchronous>, transform_indices = @transform_2, window_bounds = array<i64: 20, 20>}, {pipeline_mode = #tpu.pipeline_mode<synchronous>, transform_indices = @transform_3, window_bounds = array<i64: 20, 1>}, {pipeline_mode = #tpu.pipeline_mode<synchronous>, transform_indices = @transform_4, window_bounds = array<i64: 20, 20>}, {pipeline_mode = #tpu.pipeline_mode<synchronous>, transform_indices = @transform_5, window_bounds = array<i64: 20, 1>}, {pipeline_mode = #tpu.pipeline_mode<synchronous>, transform_indices = @transform_6, window_bounds = array<i64: 20, 20>}, {pipeline_mode = #tpu.pipeline_mode<synchronous>, transform_indices = @transform_7, window_bounds = array<i64: 20, 1>}, {transform_indices = @transform_8, window_bounds = array<i64: 20, 1792>}]} {
    %c0 = arith.constant 0 : index
    %c0_0 = arith.constant 0 : index
    %0 = vector.load %arg1[%c0, %c0_0] : memref<20x1792xf32, #tpu.memory_space<vmem>>, vector<20x1792xf32>
    %1 = arith.truncf %0 : vector<20x1792xf32> to vector<20x1792xbf16>
    %c0_1 = arith.constant 0 : index
    %c0_2 = arith.constant 0 : index
    %2 = vector.load %arg2[%c0_1, %c0_2] : memref<20x1792xbf16, #tpu.memory_space<vmem>>, vector<20x1792xbf16>
    %c0_3 = arith.constant 0 : index
    %c0_4 = arith.constant 0 : index
    %3 = vector.load %arg3[%c0_3, %c0_4] : memref<20x20xbf16, #tpu.memory_space<vmem>>, vector<20x20xbf16>
    %cst = arith.constant dense<0.000000e+00> : vector<20x1792xf32>
    %4 = tpu.matmul %3, %1, %cst {dimension_numbers = #tpu.dot_dimension_numbers<[1], [0], [0], [1], [0, 0, 1, 1], [], []>} : vector<20x20xbf16>, vector<20x1792xbf16>, vector<20x1792xf32> -> vector<20x1792xf32>
    %c0_5 = arith.constant 0 : index
    %c0_6 = arith.constant 0 : index
    %5 = vector.load %arg4[%c0_5, %c0_6] : memref<20x1xf32, #tpu.memory_space<vmem>>, vector<20x1xf32>
    %6 = vector.broadcast %5 : vector<20x1xf32> to vector<20x1792xf32>
    %7 = arith.addf %4, %6 : vector<20x1792xf32>
    %cst_7 = arith.constant 5.000000e-01 : f32
    %8 = vector.broadcast %cst_7 : f32 to vector<20x1792xf32>
    %9 = arith.mulf %8, %7 : vector<20x1792xf32>
    %cst_8 = arith.constant 0.707106769 : f32
    %10 = vector.broadcast %cst_8 : f32 to vector<20x1792xf32>
    %11 = arith.mulf %7, %10 : vector<20x1792xf32>
    %12 = math.erf %11 : vector<20x1792xf32>
    %cst_9 = arith.constant 1.000000e+00 : f32
    %13 = vector.broadcast %cst_9 : f32 to vector<20x1792xf32>
    %14 = arith.addf %13, %12 : vector<20x1792xf32>
    %15 = arith.mulf %9, %14 : vector<20x1792xf32>
    %16 = arith.truncf %15 : vector<20x1792xf32> to vector<20x1792xbf16>
    %c0_10 = arith.constant 0 : index
    %c0_11 = arith.constant 0 : index
    %17 = vector.load %arg5[%c0_10, %c0_11] : memref<20x20xbf16, #tpu.memory_space<vmem>>, vector<20x20xbf16>
    %cst_12 = arith.constant dense<0.000000e+00> : vector<20x1792xf32>
    %18 = tpu.matmul %17, %16, %cst_12 {dimension_numbers = #tpu.dot_dimension_numbers<[1], [0], [0], [1], [0, 0, 1, 1], [], []>} : vector<20x20xbf16>, vector<20x1792xbf16>, vector<20x1792xf32> -> vector<20x1792xf32>
    %c0_13 = arith.constant 0 : index
    %c0_14 = arith.constant 0 : index
    %19 = vector.load %arg6[%c0_13, %c0_14] : memref<20x1xf32, #tpu.memory_space<vmem>>, vector<20x1xf32>
    %20 = vector.broadcast %19 : vector<20x1xf32> to vector<20x1792xf32>
    %21 = arith.addf %18, %20 : vector<20x1792xf32>
    %c0_15 = arith.constant 0 : index
    %c0_16 = arith.constant 0 : index
    %22 = vector.load %arg7[%c0_15, %c0_16] : memref<20x20xbf16, #tpu.memory_space<vmem>>, vector<20x20xbf16>
    %cst_17 = arith.constant dense<0.000000e+00> : vector<20x1792xf32>
    %23 = tpu.matmul %22, %2, %cst_17 {dimension_numbers = #tpu.dot_dimension_numbers<[1], [0], [0], [1], [0, 0, 1, 1], [], []>} : vector<20x20xbf16>, vector<20x1792xbf16>, vector<20x1792xf32> -> vector<20x1792xf32>
    %24 = arith.addf %21, %23 : vector<20x1792xf32>
    %c0_18 = arith.constant 0 : index
    %c0_19 = arith.constant 0 : index
    %25 = vector.load %arg8[%c0_18, %c0_19] : memref<20x1xf32, #tpu.memory_space<vmem>>, vector<20x1xf32>
    %26 = vector.broadcast %25 : vector<20x1xf32> to vector<20x1792xf32>
    %27 = arith.addf %24, %26 : vector<20x1792xf32>
    %28 = arith.truncf %27 : vector<20x1792xf32> to vector<20x1792xbf16>
    %c0_20 = arith.constant 0 : index
    %c0_21 = arith.constant 0 : index
    %29 = vector.load %arg9[%c0_20, %c0_21] : memref<20x1792xbf16, #tpu.memory_space<vmem>>, vector<20x1792xbf16>
    tpu.vector_store %arg9[%c0_20, %c0_21], %28 {strides = array<i32>} : memref<20x1792xbf16, #tpu.memory_space<vmem>>, vector<20x1792xbf16>,
    return
  }
  func.func @transform_0(%arg0: i32) -> (i32, i32) {
    %c0_i32 = arith.constant 0 : i32
    %c0_i32_0 = arith.constant 0 : i32
    return %c0_i32, %arg0 : i32, i32
  }
  func.func @transform_1(%arg0: i32) -> (i32, i32) {
    %c0_i32 = arith.constant 0 : i32
    %c0_i32_0 = arith.constant 0 : i32
    return %c0_i32, %arg0 : i32, i32
  }
  func.func @transform_2(%arg0: i32) -> (i32, i32) {
    %c0_i32 = arith.constant 0 : i32
    %c0_i32_0 = arith.constant 0 : i32
    %c0_i32_1 = arith.constant 0 : i32
    return %c0_i32, %c0_i32_0 : i32, i32
  }
  func.func @transform_3(%arg0: i32) -> (i32, i32) {
    %c0_i32 = arith.constant 0 : i32
    %c0_i32_0 = arith.constant 0 : i32
    %c0_i32_1 = arith.constant 0 : i32
    return %c0_i32, %c0_i32_0 : i32, i32
  }
  func.func @transform_4(%arg0: i32) -> (i32, i32) {
    %c0_i32 = arith.constant 0 : i32
    %c0_i32_0 = arith.constant 0 : i32
    %c0_i32_1 = arith.constant 0 : i32
    return %c0_i32, %c0_i32_0 : i32, i32
  }
  func.func @transform_5(%arg0: i32) -> (i32, i32) {
    %c0_i32 = arith.constant 0 : i32
    %c0_i32_0 = arith.constant 0 : i32
    %c0_i32_1 = arith.constant 0 : i32
    return %c0_i32, %c0_i32_0 : i32, i32
  }
  func.func @transform_6(%arg0: i32) -> (i32, i32) {
    %c0_i32 = arith.constant 0 : i32
    %c0_i32_0 = arith.constant 0 : i32
    %c0_i32_1 = arith.constant 0 : i32
    return %c0_i32, %c0_i32_0 : i32, i32
  }
  func.func @transform_7(%arg0: i32) -> (i32, i32) {
    %c0_i32 = arith.constant 0 : i32
    %c0_i32_0 = arith.constant 0 : i32
    %c0_i32_1 = arith.constant 0 : i32
    return %c0_i32, %c0_i32_0 : i32, i32
  }
  func.func @transform_8(%arg0: i32) -> (i32, i32) {
    %c0_i32 = arith.constant 0 : i32
    %c0_i32_0 = arith.constant 0 : i32
    return %c0_i32, %arg0 : i32, i32
  }
}

module attributes {stable_mosaic.version = 11 : i64} {
  func.func @mlp_kernel(%arg0: i32, %arg1: memref<20x1024xbf16, #tpu.memory_space<vmem>>, %arg2: memref<80x20xbf16, #tpu.memory_space<vmem>>, %arg3: memref<80x1xf32, #tpu.memory_space<vmem>>, %arg4: memref<3x80xbf16, #tpu.memory_space<vmem>>, %arg5: memref<3x1xf32, #tpu.memory_space<vmem>>, %arg6: memref<3x1024xf32, #tpu.memory_space<vmem>>) attributes {dimension_semantics = [#tpu.dimension_semantics<parallel>], iteration_bounds = array<i64: 1>, scalar_prefetch = 0 : i64, scratch_operands = 0 : i64, tpu.core_type = #tpu.core_type<tc>, window_params = [{transform_indices = @transform_0, window_bounds = array<i64: 20, 1024>}, {pipeline_mode = #tpu.pipeline_mode<synchronous>, transform_indices = @transform_1, window_bounds = array<i64: 80, 20>}, {pipeline_mode = #tpu.pipeline_mode<synchronous>, transform_indices = @transform_2, window_bounds = array<i64: 80, 1>}, {pipeline_mode = #tpu.pipeline_mode<synchronous>, transform_indices = @transform_3, window_bounds = array<i64: 3, 80>}, {pipeline_mode = #tpu.pipeline_mode<synchronous>, transform_indices = @transform_4, window_bounds = array<i64: 3, 1>}, {transform_indices = @transform_5, window_bounds = array<i64: 3, 1024>}]} {
    %c0 = arith.constant 0 : index
    %c0_0 = arith.constant 0 : index
    %0 = vector.load %arg1[%c0, %c0_0] : memref<20x1024xbf16, #tpu.memory_space<vmem>>, vector<20x1024xbf16>
    %c0_1 = arith.constant 0 : index
    %c0_2 = arith.constant 0 : index
    %1 = vector.load %arg2[%c0_1, %c0_2] : memref<80x20xbf16, #tpu.memory_space<vmem>>, vector<80x20xbf16>
    %cst = arith.constant dense<0.000000e+00> : vector<80x1024xf32>
    %2 = tpu.matmul %1, %0, %cst {dimension_numbers = #tpu.dot_dimension_numbers<[1], [0], [0], [1], [0, 0, 1, 1], [], []>} : vector<80x20xbf16>, vector<20x1024xbf16>, vector<80x1024xf32> -> vector<80x1024xf32>
    %c0_3 = arith.constant 0 : index
    %c0_4 = arith.constant 0 : index
    %3 = vector.load %arg3[%c0_3, %c0_4] : memref<80x1xf32, #tpu.memory_space<vmem>>, vector<80x1xf32>
    %4 = vector.broadcast %3 : vector<80x1xf32> to vector<80x1024xf32>
    %5 = arith.addf %2, %4 : vector<80x1024xf32>
    %cst_5 = arith.constant 5.000000e-01 : f32
    %6 = vector.broadcast %cst_5 : f32 to vector<80x1024xf32>
    %7 = arith.mulf %6, %5 : vector<80x1024xf32>
    %cst_6 = arith.constant 0.707106769 : f32
    %8 = vector.broadcast %cst_6 : f32 to vector<80x1024xf32>
    %9 = arith.mulf %5, %8 : vector<80x1024xf32>
    %10 = math.erf %9 : vector<80x1024xf32>
    %cst_7 = arith.constant 1.000000e+00 : f32
    %11 = vector.broadcast %cst_7 : f32 to vector<80x1024xf32>
    %12 = arith.addf %11, %10 : vector<80x1024xf32>
    %13 = arith.mulf %7, %12 : vector<80x1024xf32>
    %14 = arith.truncf %13 : vector<80x1024xf32> to vector<80x1024xbf16>
    %c0_8 = arith.constant 0 : index
    %c0_9 = arith.constant 0 : index
    %15 = vector.load %arg4[%c0_8, %c0_9] : memref<3x80xbf16, #tpu.memory_space<vmem>>, vector<3x80xbf16>
    %cst_10 = arith.constant dense<0.000000e+00> : vector<3x1024xf32>
    %16 = tpu.matmul %15, %14, %cst_10 {dimension_numbers = #tpu.dot_dimension_numbers<[1], [0], [0], [1], [0, 0, 1, 1], [], []>} : vector<3x80xbf16>, vector<80x1024xbf16>, vector<3x1024xf32> -> vector<3x1024xf32>
    %c0_11 = arith.constant 0 : index
    %c0_12 = arith.constant 0 : index
    %17 = vector.load %arg5[%c0_11, %c0_12] : memref<3x1xf32, #tpu.memory_space<vmem>>, vector<3x1xf32>
    %18 = vector.broadcast %17 : vector<3x1xf32> to vector<3x1024xf32>
    %19 = arith.addf %16, %18 : vector<3x1024xf32>
    %c0_13 = arith.constant 0 : index
    %c0_14 = arith.constant 0 : index
    %20 = vector.load %arg6[%c0_13, %c0_14] : memref<3x1024xf32, #tpu.memory_space<vmem>>, vector<3x1024xf32>
    tpu.vector_store %arg6[%c0_13, %c0_14], %19 {strides = array<i32>} : memref<3x1024xf32, #tpu.memory_space<vmem>>, vector<3x1024xf32>,
    return
  }
  func.func @transform_0(%arg0: i32) -> (i32, i32) {
    %c0_i32 = arith.constant 0 : i32
    %c0_i32_0 = arith.constant 0 : i32
    return %c0_i32, %arg0 : i32, i32
  }
  func.func @transform_1(%arg0: i32) -> (i32, i32) {
    %c0_i32 = arith.constant 0 : i32
    %c0_i32_0 = arith.constant 0 : i32
    %c0_i32_1 = arith.constant 0 : i32
    return %c0_i32, %c0_i32_0 : i32, i32
  }
  func.func @transform_2(%arg0: i32) -> (i32, i32) {
    %c0_i32 = arith.constant 0 : i32
    %c0_i32_0 = arith.constant 0 : i32
    %c0_i32_1 = arith.constant 0 : i32
    return %c0_i32, %c0_i32_0 : i32, i32
  }
  func.func @transform_3(%arg0: i32) -> (i32, i32) {
    %c0_i32 = arith.constant 0 : i32
    %c0_i32_0 = arith.constant 0 : i32
    %c0_i32_1 = arith.constant 0 : i32
    return %c0_i32, %c0_i32_0 : i32, i32
  }
  func.func @transform_4(%arg0: i32) -> (i32, i32) {
    %c0_i32 = arith.constant 0 : i32
    %c0_i32_0 = arith.constant 0 : i32
    %c0_i32_1 = arith.constant 0 : i32
    return %c0_i32, %c0_i32_0 : i32, i32
  }
  func.func @transform_5(%arg0: i32) -> (i32, i32) {
    %c0_i32 = arith.constant 0 : i32
    %c0_i32_0 = arith.constant 0 : i32
    return %c0_i32, %arg0 : i32, i32
  }
}

</mosaic_0001>

<bundles_post_ra>
// kernel: _lambda_.10
= control target key start
LH: loop header
LB: loop body
LE: loop exit
PB: predicated region body
PF: predicated region fallthrough
CT: control target
= control target key end

     0   :  { %8 = vsyncpa [#allocation3], 0  ;;  %s688_s0 = inlined_call_operand.hbm [shape: f32[6,1024], index: 0, kind: input, shape index: {}]   ;;  %s689_s1 = inlined_call_operand.hbm [shape: bf16[20,6], index: 1, kind: input, shape index: {}]   ;;  %s690_s2 = inlined_call_operand.hbm [shape: f32[20,1], index: 2, kind: input, shape index: {}]   ;;  %s691_s3 = inlined_call_operand.hbm [shape: bf16[20,1024], index: 3, kind: output, shape index: {}]  }
   0x1   :  { %9 = vsyncpa [#allocation6], 0 }
   0x2   :  { %10 = vsyncpa [#allocation4], 0  ;;  %s593_s12 = smov [#allocation5]   ;;  %s499_s16 = scalar_lea.hbm %s689_s1, 192 }
   0x3   :  { %s26_s13 = sshll.u32 %s593_s12, 4  ;;  %p500_p0 = scmp.ne.s32.totalorder %s689_s1, %s499_s16  ;;  %s27_s13 = int_to_ptr.vmem [resolvable:$true] %s26_s13 }
   0x4   :  { %p503_p1 = scmp.lt.u32.totalorder %s499_s16, %s689_s1 }
   0x6   :  { %p505_p2 = pnand %p503_p1, %p500_p0 }
   0x8   :  { %508 = shalt.err (!%p505_p2)
}
   0x9   :  { %s509_s21 = scalar_lea.vmem %s27_s13, 192  ;;  %p514_p4 = scmp.lt.s32.totalorder %s27_s13, %s27_s13 }
   0xa   :  { %p510_p3 = scmp.ne.s32.totalorder %s27_s13, %s509_s21  ;;  %p515_p5 = scmp.lt.s32.totalorder %s509_s21, %s509_s21 }
   0xc   :  { %p516_p6 = por %p515_p5, %p514_p4 }
   0xe   :  { %p517_p7 = pnand %p516_p6, %p510_p3 }
  0x10   :  { %520 = shalt.err (!%p517_p7)
}
  0x11   :  { %s594_s22 = smov 64   ;;  %s595_s23 = smov 4  }
  0x12   :  { %32 = dma.hbm_to_vmem [thread:$0]  %s689_s1, 192, %s27_s13, [#allocation6], %s594_s22, %s594_s22, %s595_s23  }
  0x13   :  { %s596_s26 = smov [#allocation2]   ;;  %s597_s28 = smov [#allocation7]  }
  0x14   :  { %s17_s27 = sshll.u32 %s596_s26, 4  ;;  %s38_s29 = sshll.u32 %s597_s28, 4  ;;  %s18_s27 = int_to_ptr.vmem [resolvable:$true] %s17_s27  ;;  %s39_s29 = int_to_ptr.vmem [resolvable:$true] %s38_s29 }
  0x15   :  { %s521_s5 = scalar_lea.hbm %s688_s0, 1024 }
  0x16   :  { %p522_p8 = scmp.ne.s32.totalorder %s688_s0, %s521_s5  ;;  %p525_p9 = scmp.lt.u32.totalorder %s521_s5, %s688_s0 }
  0x18   :  { %p527_p10 = pnand %p525_p9, %p522_p8 }
  0x1a   :  { %530 = shalt.err (!%p527_p10)
}
  0x1b   :  { %s531_s1 = scalar_lea.vmem %s18_s27, 1024  ;;  %p536_p12 = scmp.lt.s32.totalorder %s18_s27, %s18_s27 }
  0x1c   :  { %p532_p11 = scmp.ne.s32.totalorder %s18_s27, %s531_s1  ;;  %p537_p13 = scmp.lt.s32.totalorder %s531_s1, %s531_s1 }
  0x1e   :  { %p538_p0 = por %p537_p13, %p536_p12 }
  0x20   :  { %p539_p1 = pnand %p538_p0, %p532_p11 }
  0x22   :  { %542 = shalt.err (!%p539_p1)
}
  0x23   :  { %20 = dma.hbm_to_vmem [thread:$0]  %s688_s0, 1024, %s18_s27, [#allocation3]  }
  0x24   :  { %s543_s14 = scalar_lea.hbm %s690_s2, 384 }
  0x25   :  { %p544_p2 = scmp.ne.s32.totalorder %s690_s2, %s543_s14  ;;  %p547_p3 = scmp.lt.u32.totalorder %s543_s14, %s690_s2 }
  0x27   :  { %p549_p4 = pnand %p547_p3, %p544_p2 }
  0x29   :  { %552 = shalt.err (!%p549_p4)
}
  0x2a   :  { %s553_s19 = scalar_lea.vmem %s39_s29, 384  ;;  %p558_p6 = scmp.lt.s32.totalorder %s39_s29, %s39_s29 }
  0x2b   :  { %p554_p5 = scmp.ne.s32.totalorder %s39_s29, %s553_s19  ;;  %p559_p7 = scmp.lt.s32.totalorder %s553_s19, %s553_s19 }
  0x2d   :  { %p560_p8 = por %p559_p7, %p558_p6 }
  0x2f   :  { %p561_p9 = pnand %p560_p8, %p554_p5 }
  0x31   :  { %564 = shalt.err (!%p561_p9)
}
  0x32   :  { %s598_s0 = smov 128   ;;  %s599_s20 = smov 8  }
  0x33   :  { %44 = dma.hbm_to_vmem [thread:$0]  %s690_s2, 384, %s39_s29, [#allocation6], %s598_s0, %s598_s0, %s599_s20  }
  0x34   :  { %587 = dma.done.wait [#allocation3], 1024  }
  0x35   :  { %588 = vsyncadd [#allocation3], 4294966272 }
  0x36   :  { %589 = dma.done.wait [#allocation6], 576  }
  0x37   :  { %590 = vsyncadd [#allocation6], 4294966720  ;;  %v600_v0 = vmov 0   ;;  %vm107_vm0 = vcmask 1042432   ;;  %v56_v1 = vld [vmem:[#allocation2 + $0x8] sm:$0x3f] }
  0x38   :  { %164 = vmatprep.mubr.bf16.mxu0 %v600_v0  ;;  %215 = vmatprep.mubr.bf16.mxu1 %v600_v0  ;;  %v58_v2 = vld [vmem:[#allocation2 + $0x18] sm:$0x3f]  ;;  %v55_v3 = vld [vmem:[#allocation2] sm:$0x3f]  ;;  %v64_v4 = vpack.c.bf16 %v56_v1, %v56_v1  ;;  %v57_v7 = vld [vmem:[#allocation2 + $0x10] sm:$0x3f] }
  0x39   :  { %495 = vset.pattern.permute.xlu0 %v600_v0  ;;  %496 = vset.pattern.permute.xlu1 %v600_v0  ;;  %v66_v5 = vpack.c.bf16 %v58_v2, %v58_v2  ;;  %v63_v6 = vpack.c.bf16 %v55_v3, %v55_v3  ;;  %v65_v8 = vpack.c.bf16 %v57_v7, %v57_v7  ;;  %v497_v9 = vld [vmem:[#allocation5] sm:$0xff]   ;;  %v60_v10 = vld [vmem:[#allocation2 + $0x28] sm:$0x3f]  ;;  %v62_v11 = vld [vmem:[#allocation2 + $0x38] sm:$0x3f]  ;;  %vm100_vm1 = vcmask 48128  }
  0x3a   :  { %448 = vmatprep.subr.msk.bf16.mxu0 %vm107_vm0, %v64_v4  ;;  %v68_v13 = vpack.c.bf16 %v60_v10, %v60_v10  ;;  %v70_v14 = vpack.c.bf16 %v62_v11, %v62_v11  ;;  %v59_v15 = vld [vmem:[#allocation2 + $0x20] sm:$0x3f]  ;;  %v61_v16 = vld [vmem:[#allocation2 + $0x30] sm:$0x3f]  ;;  %v76_v21 = vld [vmem:[#allocation7 + $0x10] sm:$0xf] }
  0x3b   :  { %451 = vmatprep.subr.msk.bf16.mxu1 %vm107_vm0, %v66_v5  ;;  %v109_v12 = vsel %vm107_vm0, %v63_v6, 0  ;;  %v74_v17 = vld [vmem:[#allocation7] sm:$0xff]  ;;  %v115_v18 = vsel %vm107_vm0, %v65_v8, 0  ;;  %v67_v19 = vpack.c.bf16 %v59_v15, %v59_v15  ;;  %v69_v20 = vpack.c.bf16 %v61_v16, %v61_v16  ;;  %89 = vperm.xlu1 %496, %v76_v21   ;;  %v75_v24 = vld [vmem:[#allocation7 + $0x8] sm:$0xff]  ;;  %s601_s2 = smov [#allocation8]  }
  0x3c   :  { %133 = vmatpush1.bf16.msra.mxu0 %v109_v12  ;;  %79 = vperm.xlu0 %495, %v74_v17   ;;  %v498_v25 = vld [vmem:[#allocation5 + $0x8] ss:$0 sps:$4 sm:$0x33]   ;;  %s433_s23 = sshll.u32 %s601_s2, 4  ;;  %s434_s23 = int_to_ptr.vmem [resolvable:$true] %s433_s23 }
  0x3d   :  { %184 = vmatpush1.bf16.msra.mxu1 %v115_v18  ;;  %454 = vmatprep.subr.msk.bf16.mxu0 %vm107_vm0, %v68_v13  ;;  %v121_v22 = vsel %vm107_vm0, %v67_v19, 0  ;;  %v127_v23 = vsel %vm107_vm0, %v69_v20, 0  ;;  %s565_s24 = scalar_lea.vmem %s434_s23, 1536  ;;  %p570_p11 = scmp.lt.s32.totalorder %s434_s23, %s434_s23 }
  0x3e   :  { %457 = vmatprep.subr.msk.bf16.mxu1 %vm107_vm0, %v70_v14  ;;  %p566_p10 = scmp.ne.s32.totalorder %s434_s23, %s565_s24  ;;  %p571_p12 = scmp.lt.s32.totalorder %s565_s24, %s565_s24 }
  0x3f   :  { %449 = vmatmul.mubr.msk.bf16.vlgmr.msra.gmra.mrb[0].mxu0 %vm100_vm1, %v497_v9 }
  0x40   :  { %452 = vmatmul.mubr.msk.bf16.vlgmr.msra.gmra.mrb[0].mxu1 %vm100_vm1, %v497_v9  ;;  %235 = vmatpush1.bf16.msra.mxu0 %v121_v22  ;;  %p572_p13 = por %p571_p12, %p570_p11 }
  0x41   :  { %286 = vmatpush1.bf16.msra.mxu1 %v127_v23  ;;  %174 = vmatprep.mubr.bf16.mxu0 %v600_v0 }
  0x42   :  { %225 = vmatprep.mubr.bf16.mxu1 %v600_v0  ;;  %84 = vperm.xlu0 %495, %v75_v24   ;;  %p573_p0 = pnand %p572_p13, %p566_p10 }
  0x47   :  { %450 = vmatmul.mubr.msk.bf16.gmra.mrb[4].mxu0 %vm100_vm1, %v498_v25 }
  0x48   :  { %453 = vmatmul.mubr.msk.bf16.gmra.mrb[4].mxu1 %vm100_vm1, %v498_v25  ;;  %266 = vmatprep.mubr.bf16.mxu0 %v600_v0 }
  0x49   :  { %317 = vmatprep.mubr.bf16.mxu1 %v600_v0 }
  0x4f   :  { %455 = vmatmul.mubr.msk.bf16.vlgmr.msra.gmra.mrb[8].mxu0 %vm100_vm1, %v497_v9 }
  0x50   :  { %458 = vmatmul.mubr.msk.bf16.vlgmr.msra.gmra.mrb[8].mxu1 %vm100_vm1, %v497_v9  ;;  %276 = vmatprep.mubr.bf16.mxu0 %v600_v0 }
  0x51   :  { %327 = vmatprep.mubr.bf16.mxu1 %v600_v0 }
  0x57   :  { %456 = vmatmul.mubr.msk.bf16.gmra.mrb[12].mxu0 %vm100_vm1, %v498_v25 }
  0x58   :  { %459 = vmatmul.mubr.msk.bf16.gmra.mrb[12].mxu1 %vm100_vm1, %v498_v25 }
  0xba   :  { %v90_v47 = vpop.permute.xlu1 %89 }
  0xbb   :  { %v80_v26 = vpop.permute.xlu0 %79 }
  0xc1   :  { %v85_v28 = vpop.permute.xlu0 %84 }
 0x112   :  { %v166_v27 = vpop.f32.mrb[0].mxu0 }
 0x113   :  { %v167_v29 = vadd.f32 %v166_v27, %v80_v26  ;;  %v217_v30 = vpop.f32.mrb[0].mxu1  ;;  %v168_v31 = vpop.f32.mrb[1].mxu0 }
 0x114   :  { %v218_v32 = vadd.f32 %v217_v30, %v80_v26  ;;  %v169_v33 = vadd.f32 %v168_v31, %v80_v26  ;;  %v219_v34 = vpop.f32.mrb[1].mxu1  ;;  %v170_v35 = vpop.f32.mrb[2].mxu0 }
 0x115   :  { %v220_v36 = vadd.f32 %v219_v34, %v80_v26  ;;  %v171_v37 = vadd.f32 %v170_v35, %v85_v28  ;;  %v221_v38 = vpop.f32.mrb[2].mxu1  ;;  %v172_v39 = vpop.f32.mrb[3].mxu0 }
 0x116   :  { %v472_v40 = vpack.c.bf16 %v169_v33, %v167_v29  ;;  %v222_v41 = vadd.f32 %v221_v38, %v85_v28  ;;  %v173_v42 = vadd.f32 %v172_v39, %v85_v28  ;;  %v223_v43 = vpop.f32.mrb[3].mxu1 }
 0x117   :  { %v473_v44 = vpack.c.bf16 %v220_v36, %v218_v32  ;;  %v224_v45 = vadd.f32 %v223_v43, %v85_v28 }
 0x118   :  { %416 = vst [vmem:[#allocation8] sm:$0xff] %v472_v40  ;;  %v476_v46 = vpack.c.bf16 %v173_v42, %v171_v37 }
 0x119   :  { %417 = vst [vmem:[#allocation8 + $0x8] sm:$0xff] %v473_v44  ;;  %v477_v48 = vpack.c.bf16 %v224_v45, %v222_v41 }
 0x11a   :  { %420 = vst [vmem:[#allocation8 + $0x20] sm:$0xff] %v476_v46  ;;  %v176_v49 = vpop.f32.mrb[4].mxu0 }
 0x11b   :  { %421 = vst [vmem:[#allocation8 + $0x28] sm:$0xff] %v477_v48  ;;  %v227_v50 = vpop.f32.mrb[4].mxu1  ;;  %v177_v51 = vadd.f32 %v176_v49, %v90_v47  ;;  %v178_v52 = vpop.f32.mrb[5].mxu0 }
 0x11c   :  { %v179_v53 = vadd.f32 %v178_v52, %v90_v47  ;;  %v228_v54 = vadd.f32 %v227_v50, %v90_v47  ;;  %v229_v55 = vpop.f32.mrb[5].mxu1  ;;  %v180_v56 = vpop.f32.mrb[6].mxu0 }
 0x11d   :  { %v230_v57 = vadd.f32 %v229_v55, %v90_v47  ;;  %v231_v58 = vpop.f32.mrb[6].mxu1  ;;  %v181_v59 = vpop.f32.mrb[7].mxu0 }
 0x11e   :  { %v480_v60 = vpack.c.bf16 %v179_v53, %v177_v51  ;;  %v232_v61 = vpop.f32.mrb[7].mxu1 }
 0x11f   :  { %v481_v62 = vpack.c.bf16 %v230_v57, %v228_v54 }
 0x120   :  { %424 = vst [vmem:[#allocation8 + $0x40] sm:$0x33] %v480_v60 }
 0x121   :  { %425 = vst [vmem:[#allocation8 + $0x48] sm:$0x33] %v481_v62 }
 0x122   :  { %v268_v63 = vpop.f32.mrb[8].mxu0 }
 0x123   :  { %v269_v0 = vadd.f32 %v268_v63, %v80_v26  ;;  %v319_v1 = vpop.f32.mrb[8].mxu1  ;;  %v270_v2 = vpop.f32.mrb[9].mxu0 }
 0x124   :  { %v320_v3 = vadd.f32 %v319_v1, %v80_v26  ;;  %v271_v4 = vadd.f32 %v270_v2, %v80_v26  ;;  %v321_v5 = vpop.f32.mrb[9].mxu1  ;;  %v272_v6 = vpop.f32.mrb[10].mxu0 }
 0x125   :  { %v322_v7 = vadd.f32 %v321_v5, %v80_v26  ;;  %v273_v8 = vadd.f32 %v272_v6, %v85_v28  ;;  %v323_v9 = vpop.f32.mrb[10].mxu1  ;;  %v274_v10 = vpop.f32.mrb[11].mxu0 }
 0x126   :  { %v474_v11 = vpack.c.bf16 %v271_v4, %v269_v0  ;;  %v324_v12 = vadd.f32 %v323_v9, %v85_v28  ;;  %v275_v13 = vadd.f32 %v274_v10, %v85_v28  ;;  %v325_v14 = vpop.f32.mrb[11].mxu1 }
 0x127   :  { %v475_v15 = vpack.c.bf16 %v322_v7, %v320_v3  ;;  %v326_v16 = vadd.f32 %v325_v14, %v85_v28 }
 0x128   :  { %418 = vst [vmem:[#allocation8 + $0x10] sm:$0xff] %v474_v11  ;;  %v478_v17 = vpack.c.bf16 %v275_v13, %v273_v8 }
 0x129   :  { %419 = vst [vmem:[#allocation8 + $0x18] sm:$0xff] %v475_v15  ;;  %v479_v18 = vpack.c.bf16 %v326_v16, %v324_v12 }
 0x12a   :  { %422 = vst [vmem:[#allocation8 + $0x30] sm:$0xff] %v478_v17  ;;  %v278_v19 = vpop.f32.mrb[12].mxu0 }
 0x12b   :  { %423 = vst [vmem:[#allocation8 + $0x38] sm:$0xff] %v479_v18  ;;  %v279_v20 = vadd.f32 %v278_v19, %v90_v47  ;;  %v329_v21 = vpop.f32.mrb[12].mxu1  ;;  %v280_v22 = vpop.f32.mrb[13].mxu0 }
 0x12c   :  { %v330_v23 = vadd.f32 %v329_v21, %v90_v47  ;;  %v281_v24 = vadd.f32 %v280_v22, %v90_v47  ;;  %v331_v25 = vpop.f32.mrb[13].mxu1  ;;  %v282_v26 = vpop.f32.mrb[14].mxu0 }
 0x12d   :  { %v332_v27 = vadd.f32 %v331_v25, %v90_v47  ;;  %v333_v29 = vpop.f32.mrb[14].mxu1  ;;  %v283_v30 = vpop.f32.mrb[15].mxu0 }
 0x12e   :  { %v482_v28 = vpack.c.bf16 %v281_v24, %v279_v20  ;;  %v334_v31 = vpop.f32.mrb[15].mxu1 }
 0x12f   :  { %v483_v32 = vpack.c.bf16 %v332_v27, %v330_v23 }
 0x130   :  { %426 = vst [vmem:[#allocation8 + $0x50] sm:$0x33] %v482_v28 }
 0x131   :  { %427 = vst [vmem:[#allocation8 + $0x58] sm:$0x33] %v483_v32 }
 0x132   :  { %576 = shalt.err (!%p573_p0)
}
 0x133   :  { %s577_s27 = scalar_lea.hbm %s691_s3, 1536 }
 0x134   :  { %p578_p1 = scmp.ne.s32.totalorder %s691_s3, %s577_s27  ;;  %p581_p2 = scmp.lt.u32.totalorder %s577_s27, %s691_s3 }
 0x136   :  { %p583_p3 = pnand %p581_p2, %p578_p1 }
 0x138   :  { %586 = shalt.err (!%p583_p3)
}
 0x139   :  { %s602_s5 = smov 512   ;;  %s603_s6 = smov 32  }
 0x13a   :  { %439 = dma.vmem_to_hbm [thread:$0]  %s434_s23, 1536, %s691_s3, [#allocation4], %s602_s5, %s602_s5, %s603_s6  }
 0x13b   :  { %591 = dma.done.wait [#allocation4], 1536  }
 0x13c   :  { %592 = vsyncadd [#allocation4], 4294965760 }
 0x13d   :  { %443 = vsyncpa [#allocation3], 1 }
 0x13e   :  { %444 = vsyncpa [#allocation6], 1 }
 0x13f   :  { %445 = vsyncpa [#allocation4], 1 }

// kernel: _lambda_.11
= control target key start
LH: loop header
LB: loop body
LE: loop exit
PB: predicated region body
PF: predicated region fallthrough
CT: control target
= control target key end

     0   :  { %7 = vsyncpa [#allocation3], 0  ;;  %s5585_s0 = inlined_call_operand.hbm [shape: f32[40,2,192], index: 0, kind: input, shape index: {}]   ;;  %s5586_s1 = inlined_call_operand.hbm [shape: bf16[40,40,192], index: 1, kind: input, shape index: {}]   ;;  %s5587_s2 = inlined_call_operand.hbm [shape: f32[2,40,192], index: 2, kind: output, shape index: {}]  }
   0x1   :  { %8 = vsyncpa [#allocation6], 0 }
   0x2   :  { %9 = vsyncpa [#allocation4], 0  ;;  %s3678_s9 = smov [#allocation2]   ;;  %s3606_s13 = scalar_lea.hbm %s5585_s0, 2560 }
   0x3   :  { %s15_s10 = sshll.u32 %s3678_s9, 4  ;;  %p3607_p0 = scmp.ne.s32.totalorder %s5585_s0, %s3606_s13  ;;  %s16_s10 = int_to_ptr.vmem [resolvable:$true] %s15_s10 }
   0x4   :  { %p3610_p1 = scmp.lt.u32.totalorder %s3606_s13, %s5585_s0 }
   0x6   :  { %p3612_p2 = pnand %p3610_p1, %p3607_p0 }
   0x8   :  { %3615 = shalt.err (!%p3612_p2)
}
   0x9   :  { %s3616_s18 = scalar_lea.vmem %s16_s10, 2560  ;;  %p3621_p4 = scmp.lt.s32.totalorder %s16_s10, %s16_s10 }
   0xa   :  { %p3617_p3 = scmp.ne.s32.totalorder %s16_s10, %s3616_s18  ;;  %p3622_p5 = scmp.lt.s32.totalorder %s3616_s18, %s3616_s18 }
   0xc   :  { %p3623_p6 = por %p3622_p5, %p3621_p4 }
   0xe   :  { %p3624_p7 = pnand %p3623_p6, %p3617_p3 }
  0x10   :  { %3627 = shalt.err (!%p3624_p7)
}
  0x11   :  { %s3679_s19 = smov 64   ;;  %s3680_s20 = smov 4  }
  0x12   :  { %21 = dma.hbm_to_vmem [thread:$0]  %s5585_s0, 2560, %s16_s10, [#allocation3], %s3679_s19, %s3679_s19, %s3680_s20  }
  0x13   :  { %s3681_s23 = smov [#allocation5]   ;;  %s3628_s27 = scalar_lea.hbm %s5586_s1, 25600 }
  0x14   :  { %s27_s24 = sshll.u32 %s3681_s23, 4  ;;  %p3629_p8 = scmp.ne.s32.totalorder %s5586_s1, %s3628_s27  ;;  %s28_s24 = int_to_ptr.vmem [resolvable:$true] %s27_s24 }
  0x15   :  { %p3632_p9 = scmp.lt.u32.totalorder %s3628_s27, %s5586_s1 }
  0x17   :  { %p3634_p10 = pnand %p3632_p9, %p3629_p8 }
  0x19   :  { %3637 = shalt.err (!%p3634_p10)
}
  0x1a   :  { %s3638_s4 = scalar_lea.vmem %s28_s24, 25600  ;;  %p3643_p12 = scmp.lt.s32.totalorder %s28_s24, %s28_s24 }
  0x1b   :  { %p3639_p11 = scmp.ne.s32.totalorder %s28_s24, %s3638_s4  ;;  %p3644_p13 = scmp.lt.s32.totalorder %s3638_s4, %s3638_s4 }
  0x1d   :  { %p3645_p0 = por %p3644_p13, %p3643_p12 }
  0x1f   :  { %p3646_p1 = pnand %p3645_p0, %p3639_p11 }
  0x21   :  { %3649 = shalt.err (!%p3646_p1)
}
  0x22   :  { %s3682_s0 = smov 128   ;;  %s3683_s5 = smov 8  }
  0x23   :  { %33 = dma.hbm_to_vmem [thread:$0]  %s5586_s1, 25600, %s28_s24, [#allocation6], %s3682_s0, %s3682_s0, %s3683_s5  }
  0x24   :  { %3672 = dma.done.wait [#allocation3], 2560  }
  0x25   :  { %3673 = vsyncadd [#allocation3], 4294964736 }
  0x26   :  { %3674 = dma.done.wait [#allocation6], 25600  }
  0x27   :  { %3675 = vsyncadd [#allocation6], 4294941696  ;;  %v65_v0 = vlaneseq  ;;  %v3557_v4 = vld.sshfl [vmem:[#allocation2] sm:$0x33 pattern:$0x75316420] }
  0x28   :  { %v41_v5 = vld [vmem:[#allocation5] sm:$0xff]  ;;  %v42_v6 = vld [vmem:[#allocation5 + $0x8] sm:$0xff]  ;;  %v43_v7 = vld [vmem:[#allocation5 + $0x10] sm:$0xff]  ;;  %v64_v18 = vcombine.high %v3557_v4, %v3557_v4  ;;  %vm3519_vm0 = vcmask 523264   ;;  %s3684_s1 = smov [#allocation7]  }
  0x29   :  { %v66_v1 = vshrl.u32 %v65_v0, 7  ;;  %v44_v8 = vld [vmem:[#allocation5 + $0x18] sm:$0xff]  ;;  %v45_v9 = vld [vmem:[#allocation5 + $0x20] sm:$0xff]  ;;  %v46_v10 = vunpack.c.l.bf16 %v41_v5  ;;  %v47_v11 = vunpack.c.h.bf16 %v41_v5  ;;  %v48_v12 = vunpack.c.l.bf16 %v42_v6  ;;  %v3730_v15 = vld [vmem:[#allocation5 + $0x28] sm:$0xff]  ;;  %s3544_s8 = sshll.u32 %s3684_s1, 4  ;;  %s5560_s8 = int_to_ptr.vmem [resolvable:$true] %s3544_s8 }
  0x2a   :  { %v49_v13 = vunpack.c.h.bf16 %v42_v6  ;;  %v50_v14 = vunpack.c.l.bf16 %v43_v7  ;;  %v51_v16 = vunpack.c.h.bf16 %v43_v7  ;;  %v52_v17 = vunpack.c.l.bf16 %v44_v8  ;;  %v3733_v20 = vld [vmem:[#allocation5 + $0x30] sm:$0xff]  ;;  %v130_v41 = vld [vmem:[#allocation5 + $0x38] sm:$0xff]  ;;  %v3558_v46 = vld.sshfl [vmem:[#allocation2 + $0x4] sm:$0x33 pattern:$0x75316420]  ;;  %p3655_p3 = scmp.lt.s32.totalorder %s5560_s8, %s5560_s8 }
  0x2b   :  { %v3726_v2 = vsub.s32 0, %v66_v1  ;;  %v3728_v3 = vsub.s32 1, %v66_v1  ;;  %v53_v21 = vunpack.c.h.bf16 %v44_v8  ;;  %v54_v22 = vunpack.c.l.bf16 %v45_v9  ;;  %v131_v47 = vld [vmem:[#allocation5 + $0x40] sm:$0xff]  ;;  %v132_v52 = vld [vmem:[#allocation5 + $0x48] sm:$0xff]  ;;  %v3755_v53 = vld [vmem:[#allocation5 + $0x50] sm:$0xff]  ;;  %s3650_s9 = scalar_lea.vmem %s5560_s8, 2560 }
  0x2c   :  { %v55_v23 = vunpack.c.h.bf16 %v45_v9  ;;  %v133_v27 = vunpack.c.l.bf16 %v3730_v15  ;;  %v134_v28 = vunpack.c.h.bf16 %v3730_v15  ;;  %v135_v32 = vunpack.c.l.bf16 %v3733_v20  ;;  %v3758_v58 = vld [vmem:[#allocation5 + $0x58] sm:$0xff]  ;;  %p3651_p2 = scmp.ne.s32.totalorder %s5560_s8, %s3650_s9  ;;  %p3656_p4 = scmp.lt.s32.totalorder %s3650_s9, %s3650_s9 }
  0x2d   :  { %5652 = vst [vmem:[#allocation11_spill] sm:$0xff] %v3728_v3  ;;  %v68_v19 = vrot.slane %v3557_v4, %v3726_v2  ;;  %v72_v24 = vrot.slane %v3557_v4, %v3728_v3  ;;  %v76_v25 = vrot.slane %v64_v18, %v3726_v2  ;;  %v80_v26 = vrot.slane %v64_v18, %v3728_v3 }
  0x2e   :  { %v136_v55 = vunpack.c.h.bf16 %v3733_v20  ;;  %v137_v56 = vunpack.c.l.bf16 %v130_v41  ;;  %v138_v57 = vunpack.c.h.bf16 %v130_v41  ;;  %v139_v59 = vunpack.c.l.bf16 %v131_v47  ;;  %p3657_p5 = por %p3656_p4, %p3655_p3 }
  0x2f   :  { %v3740_v29 = vmul.f32 %v68_v19, %v46_v10  ;;  %v3742_v30 = vmul.f32 %v72_v24, %v47_v11  ;;  %v3744_v31 = vmul.f32 %v68_v19, %v48_v12  ;;  %v88_v33 = vmul.f32 %v72_v24, %v49_v13 }
  0x30   :  { %v89_v34 = vmul.f32 %v68_v19, %v50_v14  ;;  %v90_v35 = vmul.f32 %v72_v24, %v51_v16  ;;  %v91_v36 = vmul.f32 %v68_v19, %v52_v17  ;;  %v92_v37 = vmul.f32 %v72_v24, %v53_v21  ;;  %p3658_p6 = pnand %p3657_p5, %p3651_p2 }
  0x31   :  { %v93_v38 = vmul.f32 %v68_v19, %v54_v22  ;;  %v94_v39 = vmul.f32 %v72_v24, %v55_v23  ;;  %v95_v40 = vmul.f32 %v76_v25, %v46_v10  ;;  %v3747_v42 = vmul.f32 %v80_v26, %v47_v11 }
  0x32   :  { %v3749_v43 = vmul.f32 %v76_v25, %v48_v12  ;;  %v3751_v44 = vmul.f32 %v80_v26, %v49_v13  ;;  %v3753_v45 = vmul.f32 %v76_v25, %v50_v14  ;;  %v100_v48 = vmul.f32 %v80_v26, %v51_v16 }
  0x33   :  { %v101_v49 = vmul.f32 %v76_v25, %v52_v17  ;;  %v102_v50 = vmul.f32 %v80_v26, %v53_v21  ;;  %v103_v51 = vmul.f32 %v76_v25, %v54_v22  ;;  %v104_v54 = vmul.f32 %v80_v26, %v55_v23 }
  0x34   :  { %v151_v60 = vcombine.high %v3558_v46, %v3558_v46  ;;  %v155_v61 = vrot.slane %v3558_v46, %v3726_v2  ;;  %v159_v62 = vrot.slane %v3558_v46, %v3728_v3  ;;  %v140_v63 = vunpack.c.h.bf16 %v131_v47 }
  0x35   :  { %v141_v0 = vunpack.c.l.bf16 %v132_v52  ;;  %v142_v1 = vunpack.c.h.bf16 %v132_v52  ;;  %v220_v4 = vunpack.c.l.bf16 %v3755_v53  ;;  %v221_v7 = vunpack.c.h.bf16 %v3755_v53 }
  0x36   :  { %v163_v5 = vrot.slane %v151_v60, %v3726_v2  ;;  %v167_v6 = vrot.slane %v151_v60, %v3728_v3  ;;  %v222_v8 = vunpack.c.l.bf16 %v3758_v58  ;;  %v172_v9 = vmul.f32 %v155_v61, %v133_v27 }
  0x37   :  { %v173_v10 = vmul.f32 %v159_v62, %v134_v28  ;;  %v174_v11 = vmul.f32 %v155_v61, %v135_v32  ;;  %v175_v13 = vmul.f32 %v159_v62, %v136_v55  ;;  %v176_v14 = vmul.f32 %v155_v61, %v137_v56 }
  0x38   :  { %v177_v15 = vmul.f32 %v159_v62, %v138_v57  ;;  %v178_v16 = vmul.f32 %v155_v61, %v139_v59  ;;  %v179_v17 = vmul.f32 %v159_v62, %v140_v63  ;;  %v180_v18 = vmul.f32 %v155_v61, %v141_v0 }
  0x39   :  { %v181_v19 = vmul.f32 %v159_v62, %v142_v1  ;;  %v182_v20 = vmul.f32 %v163_v5, %v133_v27  ;;  %v183_v21 = vmul.f32 %v167_v6, %v134_v28  ;;  %v184_v22 = vmul.f32 %v163_v5, %v135_v32  ;;  %v3813_v62 = vld [vmem:[#allocation5 + $0x78] sm:$0xff] }
  0x3a   :  { %v185_v23 = vmul.f32 %v167_v6, %v136_v55  ;;  %v186_v24 = vmul.f32 %v163_v5, %v137_v56  ;;  %v187_v25 = vmul.f32 %v167_v6, %v138_v57  ;;  %v188_v26 = vmul.f32 %v163_v5, %v139_v59  ;;  %v218_v59 = vld [vmem:[#allocation5 + $0x68] sm:$0xff] }
  0x3b   :  { %v189_v41 = vmul.f32 %v167_v6, %v140_v63  ;;  %v190_v46 = vmul.f32 %v163_v5, %v141_v0  ;;  %v191_v47 = vmul.f32 %v167_v6, %v142_v1  ;;  %v3769_v52 = vadd.f32 %v172_v9, %v3740_v29  ;;  %v3815_v1 = vld [vmem:[#allocation5 + $0x80] sm:$0xff]  ;;  %v3819_v6 = vld [vmem:[#allocation5 + $0x88] sm:$0xff] }
  0x3c   :  { %v3772_v60 = vadd.f32 %v173_v10, %v3742_v30  ;;  %v3775_v12 = vadd.f32 %v174_v11, %v3744_v31  ;;  %v3777_v61 = vadd.f32 %v175_v13, %v88_v33  ;;  %v3779_v27 = vadd.f32 %v176_v14, %v89_v34  ;;  %v217_v30 = vld [vmem:[#allocation5 + $0x60] sm:$0xff] }
  0x3d   :  { %v3781_v28 = vadd.f32 %v177_v15, %v90_v35  ;;  %v3783_v32 = vadd.f32 %v178_v16, %v91_v36  ;;  %v3785_v55 = vadd.f32 %v179_v17, %v92_v37  ;;  %v3787_v56 = vadd.f32 %v180_v18, %v93_v38  ;;  %v3559_v36 = vld.sshfl [vmem:[#allocation2 + $0x8] sm:$0x33 pattern:$0x75316420] }
  0x3e   :  { %v3789_v29 = vadd.f32 %v181_v19, %v94_v39  ;;  %v3791_v57 = vadd.f32 %v182_v20, %v95_v40  ;;  %v3794_v31 = vadd.f32 %v183_v21, %v3747_v42  ;;  %v3797_v33 = vadd.f32 %v184_v22, %v3749_v43  ;;  %v219_v42 = vld [vmem:[#allocation5 + $0x70] sm:$0xff] }
  0x3f   :  { %v3800_v34 = vadd.f32 %v185_v23, %v3751_v44  ;;  %v3803_v35 = vadd.f32 %v186_v24, %v3753_v45  ;;  %v3805_v37 = vadd.f32 %v187_v25, %v100_v48  ;;  %v3807_v38 = vadd.f32 %v188_v26, %v101_v49 }
  0x40   :  { %v3809_v39 = vadd.f32 %v189_v41, %v102_v50  ;;  %v3811_v40 = vadd.f32 %v190_v46, %v103_v51  ;;  %v211_v43 = vadd.f32 %v191_v47, %v104_v54  ;;  %v224_v63 = vunpack.c.l.bf16 %v217_v30 }
  0x41   :  { %v225_v0 = vunpack.c.h.bf16 %v217_v30  ;;  %v226_v44 = vunpack.c.l.bf16 %v218_v59  ;;  %v227_v45 = vunpack.c.h.bf16 %v218_v59  ;;  %v238_v5 = vcombine.high %v3559_v36, %v3559_v36 }
  0x42   :  { %v242_v48 = vrot.slane %v3559_v36, %v3726_v2  ;;  %v246_v49 = vrot.slane %v3559_v36, %v3728_v3  ;;  %v228_v50 = vunpack.c.l.bf16 %v219_v42  ;;  %v229_v51 = vunpack.c.h.bf16 %v219_v42 }
  0x43   :  { %v307_v9 = vunpack.c.l.bf16 %v3813_v62  ;;  %v308_v10 = vunpack.c.h.bf16 %v3813_v62  ;;  %v250_v54 = vrot.slane %v238_v5, %v3726_v2  ;;  %v254_v11 = vrot.slane %v238_v5, %v3728_v3 }
  0x44   :  { %v309_v13 = vunpack.c.l.bf16 %v3815_v1  ;;  %v259_v15 = vmul.f32 %v242_v48, %v220_v4  ;;  %v260_v16 = vmul.f32 %v246_v49, %v221_v7  ;;  %v261_v17 = vmul.f32 %v242_v48, %v222_v8 }
  0x45   :  { %v5653_v19 = vunpack.c.h.bf16 %v3758_v58  ;;  %v263_v21 = vmul.f32 %v242_v48, %v224_v63  ;;  %v264_v22 = vmul.f32 %v246_v49, %v225_v0  ;;  %v265_v23 = vmul.f32 %v242_v48, %v226_v44 }
  0x46   :  { %v266_v24 = vmul.f32 %v246_v49, %v227_v45  ;;  %v267_v25 = vmul.f32 %v242_v48, %v228_v50  ;;  %v268_v26 = vmul.f32 %v246_v49, %v229_v51  ;;  %v269_v41 = vmul.f32 %v250_v54, %v220_v4 }
  0x47   :  { %v262_v20 = vmul.f32 %v246_v49, %v5653_v19  ;;  %v270_v46 = vmul.f32 %v254_v11, %v221_v7  ;;  %v271_v47 = vmul.f32 %v250_v54, %v222_v8  ;;  %v5654_v30 = vmov %v5653_v19 }
  0x48   :  { %v272_v59 = vmul.f32 %v254_v11, %v5654_v30  ;;  %v273_v36 = vmul.f32 %v250_v54, %v224_v63  ;;  %v274_v42 = vmul.f32 %v254_v11, %v225_v0  ;;  %v275_v5 = vmul.f32 %v250_v54, %v226_v44 }
  0x49   :  { %v276_v19 = vmul.f32 %v254_v11, %v227_v45  ;;  %v277_v18 = vmul.f32 %v250_v54, %v228_v50  ;;  %v278_v14 = vmul.f32 %v254_v11, %v229_v51  ;;  %v279_v48 = vadd.f32 %v259_v15, %v3769_v52  ;;  %v3560_v45 = vld.sshfl [vmem:[#allocation2 + $0xc] sm:$0x33 pattern:$0x75316420]  ;;  %v306_v50 = vld [vmem:[#allocation5 + $0x98] sm:$0xff] }
  0x4a   :  { %v280_v49 = vadd.f32 %v260_v16, %v3772_v60  ;;  %v281_v4 = vadd.f32 %v261_v17, %v3775_v12  ;;  %v282_v53 = vadd.f32 %v262_v20, %v3777_v61  ;;  %v283_v7 = vadd.f32 %v263_v21, %v3779_v27  ;;  %v305_v60 = vld [vmem:[#allocation5 + $0x90] sm:$0xff]  ;;  %v3866_v11 = vld [vmem:[#allocation5 + $0xa8] sm:$0xff] }
  0x4b   :  { %v284_v8 = vadd.f32 %v264_v22, %v3781_v28  ;;  %v285_v58 = vadd.f32 %v265_v23, %v3783_v32  ;;  %v286_v63 = vadd.f32 %v266_v24, %v3785_v55  ;;  %v287_v0 = vadd.f32 %v267_v25, %v3787_v56  ;;  %5656 = vst [vmem:[#allocation13_spill] sm:$0xff] %v3866_v11  ;;  %v391_v11 = vld [vmem:[#allocation5 + $0xb0] sm:$0xff] }
  0x4c   :  { %v288_v44 = vadd.f32 %v268_v26, %v3789_v29  ;;  %v289_v52 = vadd.f32 %v269_v41, %v3791_v57  ;;  %v290_v12 = vadd.f32 %v270_v46, %v3794_v31  ;;  %v291_v61 = vadd.f32 %v271_v47, %v3797_v33  ;;  %v3863_v57 = vld [vmem:[#allocation5 + $0xa0] sm:$0xff] }
  0x4d   :  { %v292_v27 = vadd.f32 %v272_v59, %v3800_v34  ;;  %v293_v28 = vadd.f32 %v273_v36, %v3803_v35  ;;  %v294_v32 = vadd.f32 %v274_v42, %v3805_v37  ;;  %v295_v55 = vadd.f32 %v275_v5, %v3807_v38  ;;  %5655 = vst [vmem:[#allocation12_spill] sm:$0xff] %v3863_v57 }
  0x4e   :  { %v296_v56 = vadd.f32 %v276_v19, %v3809_v39  ;;  %v297_v29 = vadd.f32 %v277_v18, %v3811_v40  ;;  %v298_v51 = vadd.f32 %v278_v14, %v211_v43  ;;  %v312_v31 = vunpack.c.h.bf16 %v3819_v6 }
  0x4f   :  { %v313_v54 = vunpack.c.l.bf16 %v305_v60  ;;  %v325_v33 = vcombine.high %v3560_v45, %v3560_v45  ;;  %v314_v34 = vunpack.c.h.bf16 %v305_v60  ;;  %v315_v35 = vunpack.c.l.bf16 %v306_v50 }
  0x50   :  { %v329_v15 = vrot.slane %v3560_v45, %v3726_v2  ;;  %v333_v37 = vrot.slane %v3560_v45, %v3728_v3  ;;  %v316_v38 = vunpack.c.h.bf16 %v306_v50  ;;  %v5657_v22 = vunpack.c.h.bf16 %v3815_v1 }
  0x51   :  { %v337_v39 = vrot.slane %v325_v33, %v3726_v2  ;;  %v341_v40 = vrot.slane %v325_v33, %v3728_v3  ;;  %v5658_v24 = vunpack.c.l.bf16 %v3819_v6 }
  0x52   :  { %v346_v43 = vmul.f32 %v329_v15, %v307_v9  ;;  %v347_v20 = vmul.f32 %v333_v37, %v308_v10  ;;  %v348_v21 = vmul.f32 %v329_v15, %v309_v13  ;;  %v349_v23 = vmul.f32 %v333_v37, %v5657_v22 }
  0x53   :  { %v350_v25 = vmul.f32 %v329_v15, %v5658_v24  ;;  %v351_v26 = vmul.f32 %v333_v37, %v312_v31  ;;  %v352_v41 = vmul.f32 %v329_v15, %v313_v54  ;;  %v353_v46 = vmul.f32 %v333_v37, %v314_v34 }
  0x54   :  { %v354_v47 = vmul.f32 %v329_v15, %v315_v35  ;;  %v355_v30 = vmul.f32 %v333_v37, %v316_v38  ;;  %v356_v59 = vmul.f32 %v337_v39, %v307_v9  ;;  %v357_v36 = vmul.f32 %v341_v40, %v308_v10 }
  0x55   :  { %v358_v42 = vmul.f32 %v337_v39, %v309_v13  ;;  %v5659_v5 = vmov %v5657_v22  ;;  %v5660_v45 = vmov %v5658_v24  ;;  %v361_v50 = vmul.f32 %v341_v40, %v312_v31  ;;  %v392_v31 = vld [vmem:[#allocation5 + $0xb8] sm:$0xff] }
  0x56   :  { %v359_v19 = vmul.f32 %v341_v40, %v5659_v5  ;;  %v360_v60 = vmul.f32 %v337_v39, %v5660_v45  ;;  %v362_v33 = vmul.f32 %v337_v39, %v313_v54  ;;  %v363_v22 = vmul.f32 %v341_v40, %v314_v34  ;;  %v3561_v45 = vld.sshfl [vmem:[#allocation2 + $0x10] sm:$0x33 pattern:$0x75316420] }
  0x57   :  { %v364_v15 = vmul.f32 %v337_v39, %v315_v35  ;;  %v365_v37 = vmul.f32 %v341_v40, %v316_v38  ;;  %v366_v24 = vadd.f32 %v346_v43, %v279_v48  ;;  %v367_v18 = vadd.f32 %v347_v20, %v280_v49  ;;  %v393_v48 = vld [vmem:[#allocation5 + $0xc0] sm:$0xff]  ;;  %v5665_v20 = vld [vmem:[#allocation13_spill] sm:$0xff] }
  0x58   :  { %v368_v9 = vadd.f32 %v348_v21, %v281_v4  ;;  %v369_v17 = vadd.f32 %v349_v23, %v282_v53  ;;  %v370_v62 = vadd.f32 %v350_v25, %v283_v7  ;;  %v371_v10 = vadd.f32 %v351_v26, %v284_v8  ;;  %v3896_v8 = vld [vmem:[#allocation5 + $0xc8] sm:$0xff] }
  0x59   :  { %v372_v14 = vadd.f32 %v352_v41, %v285_v58  ;;  %v373_v16 = vadd.f32 %v353_v46, %v286_v63  ;;  %v374_v13 = vadd.f32 %v354_v47, %v287_v0  ;;  %v375_v1 = vadd.f32 %v355_v30, %v288_v44  ;;  %5661 = vst [vmem:[#allocation14_spill] sm:$0xff] %v3896_v8 }
  0x5a   :  { %v376_v5 = vadd.f32 %v356_v59, %v289_v52  ;;  %v377_v57 = vadd.f32 %v357_v36, %v290_v12  ;;  %v378_v6 = vadd.f32 %v358_v42, %v291_v61  ;;  %v379_v54 = vadd.f32 %v359_v19, %v292_v27  ;;  %v3899_v52 = vld [vmem:[#allocation5 + $0xd0] sm:$0xff] }
  0x5b   :  { %v380_v34 = vadd.f32 %v360_v60, %v293_v28  ;;  %v381_v35 = vadd.f32 %v361_v50, %v294_v32  ;;  %v382_v38 = vadd.f32 %v362_v33, %v295_v55  ;;  %v383_v49 = vadd.f32 %v363_v22, %v296_v56 }
  0x5c   :  { %v384_v4 = vadd.f32 %v364_v15, %v297_v29  ;;  %v385_v53 = vadd.f32 %v365_v37, %v298_v51  ;;  %v398_v7 = vunpack.c.l.bf16 %v391_v11  ;;  %v399_v58 = vunpack.c.h.bf16 %v391_v11  ;;  %v5662_v51 = vld [vmem:[#allocation12_spill] sm:$0xff] }
  0x5d   :  { %v400_v63 = vunpack.c.l.bf16 %v392_v31  ;;  %v412_v0 = vcombine.high %v3561_v45, %v3561_v45  ;;  %v416_v44 = vrot.slane %v3561_v45, %v3726_v2  ;;  %v401_v12 = vunpack.c.h.bf16 %v392_v31 }
  0x5e   :  { %v402_v61 = vunpack.c.l.bf16 %v393_v48  ;;  %v403_v27 = vunpack.c.h.bf16 %v393_v48  ;;  %v420_v28 = vrot.slane %v3561_v45, %v3728_v3  ;;  %v5663_v11 = vunpack.c.l.bf16 %v5662_v51 }
  0x5f   :  { %v424_v32 = vrot.slane %v412_v0, %v3726_v2  ;;  %v428_v55 = vrot.slane %v412_v0, %v3728_v3  ;;  %v5664_v40 = vunpack.c.h.bf16 %v5662_v51  ;;  %v5666_v21 = vunpack.c.l.bf16 %v5665_v20  ;;  %v478_v3 = vld [vmem:[#allocation5 + $0xd8] sm:$0xff] }
  0x60   :  { %v433_v39 = vmul.f32 %v416_v44, %v5663_v11  ;;  %v5667_v26 = vunpack.c.h.bf16 %v5665_v20  ;;  %v437_v46 = vmul.f32 %v416_v44, %v398_v7  ;;  %v438_v47 = vmul.f32 %v420_v28, %v399_v58 }
  0x61   :  { %v434_v43 = vmul.f32 %v420_v28, %v5664_v40  ;;  %v435_v23 = vmul.f32 %v416_v44, %v5666_v21  ;;  %v439_v30 = vmul.f32 %v416_v44, %v400_v63  ;;  %v440_v59 = vmul.f32 %v420_v28, %v401_v12 }
  0x62   :  { %v436_v41 = vmul.f32 %v420_v28, %v5667_v26  ;;  %v441_v36 = vmul.f32 %v416_v44, %v402_v61  ;;  %v442_v42 = vmul.f32 %v420_v28, %v403_v27  ;;  %v5668_v19 = vmov %v5663_v11 }
  0x63   :  { %v443_v60 = vmul.f32 %v424_v32, %v5668_v19  ;;  %v5669_v50 = vmov %v5664_v40  ;;  %v5670_v22 = vmov %v5666_v21  ;;  %v5671_v37 = vmov %v5667_v26 }
  0x64   :  { %v444_v33 = vmul.f32 %v428_v55, %v5669_v50  ;;  %v445_v15 = vmul.f32 %v424_v32, %v5670_v22  ;;  %v446_v45 = vmul.f32 %v428_v55, %v5671_v37  ;;  %v447_v31 = vmul.f32 %v424_v32, %v398_v7 }
  0x65   :  { %v448_v48 = vmul.f32 %v428_v55, %v399_v58  ;;  %v449_v0 = vmul.f32 %v424_v32, %v400_v63  ;;  %v450_v11 = vmul.f32 %v428_v55, %v401_v12  ;;  %v451_v40 = vmul.f32 %v424_v32, %v402_v61  ;;  %v5672_v61 = vld [vmem:[#allocation11_spill] sm:$0xff] }
  0x66   :  { %v452_v21 = vmul.f32 %v428_v55, %v403_v27  ;;  %v453_v44 = vadd.f32 %v433_v39, %v366_v24  ;;  %v454_v28 = vadd.f32 %v434_v43, %v367_v18  ;;  %v455_v26 = vadd.f32 %v435_v23, %v368_v9  ;;  %v3562_v24 = vld.sshfl [vmem:[#allocation2 + $0x14] sm:$0x33 pattern:$0x75316420]  ;;  %v479_v18 = vld [vmem:[#allocation5 + $0xe0] sm:$0xff]  ;;  %v5673_v39 = vld [vmem:[#allocation14_spill] sm:$0xff] }
  0x67   :  { %v456_v25 = vadd.f32 %v436_v41, %v369_v17  ;;  %v457_v19 = vadd.f32 %v437_v46, %v370_v62  ;;  %v458_v29 = vadd.f32 %v438_v47, %v371_v10  ;;  %v459_v51 = vadd.f32 %v439_v30, %v372_v14  ;;  %v480_v14 = vld [vmem:[#allocation5 + $0xe8] sm:$0xff] }
  0x68   :  { %v460_v50 = vadd.f32 %v440_v59, %v373_v16  ;;  %v461_v56 = vadd.f32 %v441_v36, %v374_v13  ;;  %v462_v8 = vadd.f32 %v442_v42, %v375_v1  ;;  %v463_v22 = vadd.f32 %v443_v60, %v376_v5  ;;  %v3931_v16 = vld [vmem:[#allocation5 + $0xf0] sm:$0xff] }
  0x69   :  { %v3923_v20 = vadd.f32 %v444_v33, %v377_v57  ;;  %v3925_v7 = vadd.f32 %v445_v15, %v378_v6  ;;  %v3927_v58 = vadd.f32 %v446_v45, %v379_v54  ;;  %v3929_v63 = vadd.f32 %v447_v31, %v380_v34  ;;  %v3934_v6 = vld [vmem:[#allocation5 + $0xf8] sm:$0xff] }
  0x6a   :  { %v468_v9 = vadd.f32 %v448_v48, %v381_v35  ;;  %v469_v17 = vadd.f32 %v449_v0, %v382_v38  ;;  %v470_v62 = vadd.f32 %v450_v11, %v383_v49  ;;  %v471_v10 = vadd.f32 %v451_v40, %v384_v4 }
  0x6b   :  { %v472_v13 = vadd.f32 %v452_v21, %v385_v53  ;;  %v484_v1 = vunpack.c.h.bf16 %v3899_v52  ;;  %v485_v57 = vunpack.c.l.bf16 %v478_v3  ;;  %v486_v5 = vunpack.c.h.bf16 %v478_v3 }
  0x6c   :  { %v487_v54 = vunpack.c.l.bf16 %v479_v18  ;;  %v499_v12 = vcombine.high %v3562_v24, %v3562_v24  ;;  %v503_v34 = vrot.slane %v3562_v24, %v3726_v2  ;;  %v507_v27 = vrot.slane %v3562_v24, %v5672_v61 }
  0x6d   :  { %v488_v35 = vunpack.c.h.bf16 %v479_v18  ;;  %v489_v38 = vunpack.c.l.bf16 %v480_v14  ;;  %v490_v49 = vunpack.c.h.bf16 %v480_v14  ;;  %v568_v4 = vunpack.c.l.bf16 %v3931_v16 }
  0x6e   :  { %v511_v32 = vrot.slane %v499_v12, %v3726_v2  ;;  %v515_v53 = vrot.slane %v499_v12, %v5672_v61  ;;  %v569_v55 = vunpack.c.h.bf16 %v3931_v16  ;;  %v570_v3 = vunpack.c.l.bf16 %v3934_v6 }
  0x6f   :  { %v5674_v43 = vunpack.c.l.bf16 %v5673_v39  ;;  %v5675_v41 = vunpack.c.h.bf16 %v5673_v39  ;;  %v5676_v47 = vunpack.c.l.bf16 %v3899_v52  ;;  %v523_v36 = vmul.f32 %v507_v27, %v484_v1 }
  0x70   :  { %v524_v42 = vmul.f32 %v503_v34, %v485_v57  ;;  %v525_v60 = vmul.f32 %v507_v27, %v486_v5  ;;  %v526_v33 = vmul.f32 %v503_v34, %v487_v54  ;;  %v527_v15 = vmul.f32 %v507_v27, %v488_v35 }
  0x71   :  { %v520_v23 = vmul.f32 %v503_v34, %v5674_v43  ;;  %v521_v46 = vmul.f32 %v507_v27, %v5675_v41  ;;  %v522_v30 = vmul.f32 %v503_v34, %v5676_v47  ;;  %v528_v37 = vmul.f32 %v503_v34, %v489_v38 }
  0x72   :  { %v529_v45 = vmul.f32 %v507_v27, %v490_v49  ;;  %v5677_v31 = vmov %v5674_v43  ;;  %v5678_v0 = vmov %v5675_v41  ;;  %v5679_v40 = vmov %v5676_v47 }
  0x73   :  { %v530_v48 = vmul.f32 %v511_v32, %v5677_v31  ;;  %v531_v11 = vmul.f32 %v515_v53, %v5678_v0  ;;  %v532_v21 = vmul.f32 %v511_v32, %v5679_v40  ;;  %v533_v24 = vmul.f32 %v515_v53, %v484_v1 }
  0x74   :  { %v534_v18 = vmul.f32 %v511_v32, %v485_v57  ;;  %v535_v14 = vmul.f32 %v515_v53, %v486_v5  ;;  %v536_v12 = vmul.f32 %v511_v32, %v487_v54  ;;  %v537_v43 = vmul.f32 %v515_v53, %v488_v35  ;;  %v566_v54 = vld [vmem:[#allocation5 + $0x108] sm:$0xff]  ;;  %v3998_v35 = vld [vmem:[#allocation5 + $0x118] sm:$0xff] }
  0x75   :  { %v538_v41 = vmul.f32 %v511_v32, %v489_v38  ;;  %v539_v47 = vmul.f32 %v515_v53, %v490_v49  ;;  %v3956_v59 = vadd.f32 %v520_v23, %v453_v44  ;;  %v3958_v34 = vadd.f32 %v521_v46, %v454_v28  ;;  %v565_v28 = vld [vmem:[#allocation5 + $0x100] sm:$0xff]  ;;  %v4004_v23 = vld [vmem:[#allocation5 + $0x128] sm:$0xff] }
  0x76   :  { %v3960_v27 = vadd.f32 %v522_v30, %v455_v26  ;;  %v3962_v31 = vadd.f32 %v523_v36, %v456_v25  ;;  %v3964_v39 = vadd.f32 %v524_v42, %v457_v19  ;;  %v3966_v0 = vadd.f32 %v525_v60, %v458_v29  ;;  %v4000_v32 = vld [vmem:[#allocation5 + $0x120] sm:$0xff] }
  0x77   :  { %v3968_v52 = vadd.f32 %v526_v33, %v459_v51  ;;  %v3970_v1 = vadd.f32 %v527_v15, %v460_v50  ;;  %v3972_v57 = vadd.f32 %v528_v37, %v461_v56  ;;  %v3974_v5 = vadd.f32 %v529_v45, %v462_v8  ;;  %v3563_v56 = vld.sshfl [vmem:[#allocation2 + $0x18] sm:$0x33 pattern:$0x75316420] }
  0x78   :  { %v3976_v44 = vadd.f32 %v530_v48, %v463_v22  ;;  %v3979_v26 = vadd.f32 %v531_v11, %v3923_v20  ;;  %v3982_v25 = vadd.f32 %v532_v21, %v3925_v7  ;;  %v3985_v29 = vadd.f32 %v533_v24, %v3927_v58  ;;  %v567_v20 = vld [vmem:[#allocation5 + $0x110] sm:$0xff] }
  0x79   :  { %v3988_v19 = vadd.f32 %v534_v18, %v3929_v63  ;;  %v3990_v51 = vadd.f32 %v535_v14, %v468_v9  ;;  %v3992_v8 = vadd.f32 %v536_v12, %v469_v17  ;;  %v3994_v50 = vadd.f32 %v537_v43, %v470_v62 }
  0x7a   :  { %v3996_v22 = vadd.f32 %v538_v41, %v471_v10  ;;  %v559_v7 = vadd.f32 %v539_v47, %v472_v13  ;;  %v572_v38 = vunpack.c.l.bf16 %v565_v28  ;;  %v573_v49 = vunpack.c.h.bf16 %v565_v28 }
  0x7b   :  { %v574_v58 = vunpack.c.l.bf16 %v566_v54  ;;  %v575_v63 = vunpack.c.h.bf16 %v566_v54  ;;  %v586_v53 = vcombine.high %v3563_v56, %v3563_v56  ;;  %v590_v9 = vrot.slane %v3563_v56, %v3726_v2 }
  0x7c   :  { %v594_v17 = vrot.slane %v3563_v56, %v5672_v61  ;;  %v576_v62 = vunpack.c.l.bf16 %v567_v20  ;;  %v577_v10 = vunpack.c.h.bf16 %v567_v20  ;;  %v655_v46 = vunpack.c.l.bf16 %v3998_v35 }
  0x7d   :  { %v656_v30 = vunpack.c.h.bf16 %v3998_v35  ;;  %v598_v13 = vrot.slane %v586_v53, %v3726_v2  ;;  %v602_v36 = vrot.slane %v586_v53, %v5672_v61  ;;  %v657_v42 = vunpack.c.l.bf16 %v4000_v32 }
  0x7e   :  { %v607_v33 = vmul.f32 %v590_v9, %v568_v4  ;;  %v608_v15 = vmul.f32 %v594_v17, %v569_v55  ;;  %v609_v37 = vmul.f32 %v590_v9, %v570_v3  ;;  %v5680_v48 = vunpack.c.h.bf16 %v3934_v6 }
  0x7f   :  { %v611_v40 = vmul.f32 %v590_v9, %v572_v38  ;;  %v612_v21 = vmul.f32 %v594_v17, %v573_v49  ;;  %v613_v24 = vmul.f32 %v590_v9, %v574_v58  ;;  %v614_v18 = vmul.f32 %v594_v17, %v575_v63 }
  0x80   :  { %v610_v11 = vmul.f32 %v594_v17, %v5680_v48  ;;  %v615_v14 = vmul.f32 %v590_v9, %v576_v62  ;;  %v616_v12 = vmul.f32 %v594_v17, %v577_v10  ;;  %v617_v43 = vmul.f32 %v598_v13, %v568_v4 }
  0x81   :  { %v618_v41 = vmul.f32 %v602_v36, %v569_v55  ;;  %v619_v47 = vmul.f32 %v598_v13, %v570_v3  ;;  %v5681_v28 = vmov %v5680_v48  ;;  %v621_v56 = vmul.f32 %v598_v13, %v572_v38 }
  0x82   :  { %v620_v54 = vmul.f32 %v602_v36, %v5681_v28  ;;  %v622_v20 = vmul.f32 %v602_v36, %v573_v49  ;;  %v623_v53 = vmul.f32 %v598_v13, %v574_v58  ;;  %v624_v48 = vmul.f32 %v602_v36, %v575_v63  ;;  %v3564_v63 = vld.sshfl [vmem:[#allocation2 + $0x1c] sm:$0x33 pattern:$0x75316420] }
  0x83   :  { %v625_v45 = vmul.f32 %v598_v13, %v576_v62  ;;  %v626_v60 = vmul.f32 %v602_v36, %v577_v10  ;;  %v627_v9 = vadd.f32 %v607_v33, %v3956_v59  ;;  %v628_v17 = vadd.f32 %v608_v15, %v3958_v34  ;;  %v653_v34 = vld [vmem:[#allocation5 + $0x130] sm:$0xff]  ;;  %v654_v62 = vld [vmem:[#allocation5 + $0x138] sm:$0xff]  ;;  %v4051_v36 = vld [vmem:[#allocation5 + $0x148] sm:$0xff] }
  0x84   :  { %v629_v4 = vadd.f32 %v609_v37, %v3960_v27  ;;  %v630_v16 = vadd.f32 %v610_v11, %v3962_v31  ;;  %v631_v55 = vadd.f32 %v611_v40, %v3964_v39  ;;  %v632_v3 = vadd.f32 %v612_v21, %v3966_v0  ;;  %5683 = vst [vmem:[#allocation13_spill] sm:$0xff] %v4051_v36  ;;  %v739_v36 = vld [vmem:[#allocation5 + $0x150] sm:$0xff] }
  0x85   :  { %v633_v6 = vadd.f32 %v613_v24, %v3968_v52  ;;  %v634_v38 = vadd.f32 %v614_v18, %v3970_v1  ;;  %v635_v49 = vadd.f32 %v615_v14, %v3972_v57  ;;  %v636_v58 = vadd.f32 %v616_v12, %v3974_v5 }
  0x86   :  { %v637_v59 = vadd.f32 %v617_v43, %v3976_v44  ;;  %v638_v27 = vadd.f32 %v618_v41, %v3979_v26  ;;  %v639_v31 = vadd.f32 %v619_v47, %v3982_v25  ;;  %v640_v39 = vadd.f32 %v620_v54, %v3985_v29  ;;  %v4048_v44 = vld [vmem:[#allocation5 + $0x140] sm:$0xff] }
  0x87   :  { %v641_v0 = vadd.f32 %v621_v56, %v3988_v19  ;;  %v642_v52 = vadd.f32 %v622_v20, %v3990_v51  ;;  %v643_v1 = vadd.f32 %v623_v53, %v3992_v8  ;;  %v644_v57 = vadd.f32 %v624_v48, %v3994_v50  ;;  %5682 = vst [vmem:[#allocation12_spill] sm:$0xff] %v4048_v44 }
  0x88   :  { %v645_v5 = vadd.f32 %v625_v45, %v3996_v22  ;;  %v646_v10 = vadd.f32 %v626_v60, %v559_v7  ;;  %v660_v26 = vunpack.c.h.bf16 %v4004_v23  ;;  %v661_v13 = vunpack.c.l.bf16 %v653_v34 }
  0x89   :  { %v673_v25 = vcombine.high %v3564_v63, %v3564_v63  ;;  %v662_v29 = vunpack.c.h.bf16 %v653_v34  ;;  %v663_v19 = vunpack.c.l.bf16 %v654_v62  ;;  %v677_v33 = vrot.slane %v3564_v63, %v3726_v2 }
  0x8a   :  { %v681_v51 = vrot.slane %v3564_v63, %v5672_v61  ;;  %v664_v8 = vunpack.c.h.bf16 %v654_v62  ;;  %v5684_v21 = vunpack.c.h.bf16 %v4000_v32  ;;  %v5685_v18 = vunpack.c.l.bf16 %v4004_v23 }
  0x8b   :  { %v685_v50 = vrot.slane %v673_v25, %v3726_v2  ;;  %v689_v22 = vrot.slane %v673_v25, %v5672_v61  ;;  %v694_v7 = vmul.f32 %v677_v33, %v655_v46  ;;  %v696_v40 = vmul.f32 %v677_v33, %v657_v42 }
  0x8c   :  { %v695_v11 = vmul.f32 %v681_v51, %v656_v30  ;;  %v697_v24 = vmul.f32 %v681_v51, %v5684_v21  ;;  %v698_v14 = vmul.f32 %v677_v33, %v5685_v18  ;;  %v699_v12 = vmul.f32 %v681_v51, %v660_v26 }
  0x8d   :  { %v700_v43 = vmul.f32 %v677_v33, %v661_v13  ;;  %v701_v41 = vmul.f32 %v681_v51, %v662_v29  ;;  %v702_v47 = vmul.f32 %v677_v33, %v663_v19  ;;  %v703_v28 = vmul.f32 %v681_v51, %v664_v8 }
  0x8e   :  { %v704_v54 = vmul.f32 %v685_v50, %v655_v46  ;;  %v705_v56 = vmul.f32 %v689_v22, %v656_v30  ;;  %v706_v20 = vmul.f32 %v685_v50, %v657_v42  ;;  %v5686_v53 = vmov %v5684_v21 }
  0x8f   :  { %v707_v48 = vmul.f32 %v689_v22, %v5686_v53  ;;  %v5687_v63 = vmov %v5685_v18  ;;  %v709_v62 = vmul.f32 %v689_v22, %v660_v26  ;;  %v710_v25 = vmul.f32 %v685_v50, %v661_v13  ;;  %v740_v26 = vld [vmem:[#allocation5 + $0x158] sm:$0xff] }
  0x90   :  { %v708_v34 = vmul.f32 %v685_v50, %v5687_v63  ;;  %v711_v21 = vmul.f32 %v689_v22, %v662_v29  ;;  %v712_v33 = vmul.f32 %v685_v50, %v663_v19  ;;  %v713_v51 = vmul.f32 %v689_v22, %v664_v8  ;;  %v3565_v63 = vld.sshfl [vmem:[#allocation2 + $0x20] sm:$0x33 pattern:$0x75316420] }
  0x91   :  { %v714_v18 = vadd.f32 %v694_v7, %v627_v9  ;;  %v715_v45 = vadd.f32 %v695_v11, %v628_v17  ;;  %v716_v46 = vadd.f32 %v696_v40, %v629_v4  ;;  %v717_v37 = vadd.f32 %v697_v24, %v630_v16  ;;  %v741_v9 = vld [vmem:[#allocation5 + $0x160] sm:$0xff]  ;;  %v5692_v11 = vld [vmem:[#allocation13_spill] sm:$0xff] }
  0x92   :  { %v718_v35 = vadd.f32 %v698_v14, %v631_v55  ;;  %v719_v30 = vadd.f32 %v699_v12, %v632_v3  ;;  %v720_v60 = vadd.f32 %v700_v43, %v633_v6  ;;  %v721_v15 = vadd.f32 %v701_v41, %v634_v38  ;;  %v4081_v3 = vld [vmem:[#allocation5 + $0x168] sm:$0xff] }
  0x93   :  { %v722_v42 = vadd.f32 %v702_v47, %v635_v49  ;;  %v723_v32 = vadd.f32 %v703_v28, %v636_v58  ;;  %v724_v53 = vadd.f32 %v704_v54, %v637_v59  ;;  %v725_v44 = vadd.f32 %v705_v56, %v638_v27  ;;  %5688 = vst [vmem:[#allocation14_spill] sm:$0xff] %v4081_v3  ;;  %v4084_v59 = vld [vmem:[#allocation5 + $0x170] sm:$0xff] }
  0x94   :  { %v726_v23 = vadd.f32 %v706_v20, %v639_v31  ;;  %v727_v13 = vadd.f32 %v707_v48, %v640_v39  ;;  %v728_v29 = vadd.f32 %v708_v34, %v641_v0  ;;  %v729_v19 = vadd.f32 %v709_v62, %v642_v52 }
  0x95   :  { %v730_v8 = vadd.f32 %v710_v25, %v643_v1  ;;  %v731_v17 = vadd.f32 %v711_v21, %v644_v57  ;;  %v732_v4 = vadd.f32 %v712_v33, %v645_v5  ;;  %v733_v16 = vadd.f32 %v713_v51, %v646_v10  ;;  %v5689_v10 = vld [vmem:[#allocation12_spill] sm:$0xff] }
  0x96   :  { %v746_v55 = vunpack.c.l.bf16 %v739_v36  ;;  %v747_v6 = vunpack.c.h.bf16 %v739_v36  ;;  %v748_v38 = vunpack.c.l.bf16 %v740_v26  ;;  %v760_v49 = vcombine.high %v3565_v63, %v3565_v63 }
  0x97   :  { %v764_v58 = vrot.slane %v3565_v63, %v3726_v2  ;;  %v749_v27 = vunpack.c.h.bf16 %v740_v26  ;;  %v750_v31 = vunpack.c.l.bf16 %v741_v9  ;;  %v751_v39 = vunpack.c.h.bf16 %v741_v9 }
  0x98   :  { %v768_v0 = vrot.slane %v3565_v63, %v5672_v61  ;;  %v772_v52 = vrot.slane %v760_v49, %v3726_v2  ;;  %v776_v1 = vrot.slane %v760_v49, %v5672_v61  ;;  %v5690_v36 = vunpack.c.l.bf16 %v5689_v10  ;;  %v826_v61 = vld [vmem:[#allocation5 + $0x178] sm:$0xff] }
  0x99   :  { %v5691_v22 = vunpack.c.h.bf16 %v5689_v10  ;;  %v5693_v40 = vunpack.c.l.bf16 %v5692_v11  ;;  %v5694_v12 = vunpack.c.h.bf16 %v5692_v11  ;;  %v785_v41 = vmul.f32 %v764_v58, %v746_v55 }
  0x9a   :  { %v781_v50 = vmul.f32 %v764_v58, %v5690_v36  ;;  %v786_v47 = vmul.f32 %v768_v0, %v747_v6  ;;  %v787_v28 = vmul.f32 %v764_v58, %v748_v38  ;;  %v788_v54 = vmul.f32 %v768_v0, %v749_v27 }
  0x9b   :  { %v782_v7 = vmul.f32 %v768_v0, %v5691_v22  ;;  %v783_v24 = vmul.f32 %v764_v58, %v5693_v40  ;;  %v784_v43 = vmul.f32 %v768_v0, %v5694_v12  ;;  %v789_v56 = vmul.f32 %v764_v58, %v750_v31 }
  0x9c   :  { %v790_v20 = vmul.f32 %v768_v0, %v751_v39  ;;  %v5695_v48 = vmov %v5690_v36  ;;  %v5696_v62 = vmov %v5691_v22  ;;  %v5697_v21 = vmov %v5693_v40 }
  0x9d   :  { %v791_v34 = vmul.f32 %v772_v52, %v5695_v48  ;;  %v792_v25 = vmul.f32 %v776_v1, %v5696_v62  ;;  %v793_v33 = vmul.f32 %v772_v52, %v5697_v21  ;;  %v5698_v51 = vmov %v5694_v12 }
  0x9e   :  { %v794_v63 = vmul.f32 %v776_v1, %v5698_v51  ;;  %v795_v26 = vmul.f32 %v772_v52, %v746_v55  ;;  %v796_v9 = vmul.f32 %v776_v1, %v747_v6  ;;  %v797_v49 = vmul.f32 %v772_v52, %v748_v38 }
  0x9f   :  { %v798_v36 = vmul.f32 %v776_v1, %v749_v27  ;;  %v799_v22 = vmul.f32 %v772_v52, %v750_v31  ;;  %v800_v40 = vmul.f32 %v776_v1, %v751_v39  ;;  %v801_v58 = vadd.f32 %v781_v50, %v714_v18  ;;  %v3566_v18 = vld.sshfl [vmem:[#allocation2 + $0x24] sm:$0x33 pattern:$0x75316420]  ;;  %v5700_v50 = vld [vmem:[#allocation14_spill] sm:$0xff] }
  0xa0   :  { %v802_v0 = vadd.f32 %v782_v7, %v715_v45  ;;  %v803_v12 = vadd.f32 %v783_v24, %v716_v46  ;;  %v804_v14 = vadd.f32 %v784_v43, %v717_v37  ;;  %v805_v48 = vadd.f32 %v785_v41, %v718_v35  ;;  %v827_v45 = vld [vmem:[#allocation5 + $0x180] sm:$0xff] }
  0xa1   :  { %v806_v5 = vadd.f32 %v786_v47, %v719_v30  ;;  %v807_v10 = vadd.f32 %v787_v28, %v720_v60  ;;  %v808_v62 = vadd.f32 %v788_v54, %v721_v15  ;;  %v809_v57 = vadd.f32 %v789_v56, %v722_v42  ;;  %v828_v60 = vld [vmem:[#allocation5 + $0x188] sm:$0xff]  ;;  %v4116_v15 = vld [vmem:[#allocation5 + $0x190] sm:$0xff]  ;;  %v5699_v31 = vld [vmem:[#allocation11_spill] sm:$0xff] }
  0xa2   :  { %v810_v3 = vadd.f32 %v790_v20, %v723_v32  ;;  %v811_v21 = vadd.f32 %v791_v34, %v724_v53  ;;  %v4108_v11 = vadd.f32 %v792_v25, %v725_v44  ;;  %v4110_v55 = vadd.f32 %v793_v33, %v726_v23  ;;  %v4119_v23 = vld [vmem:[#allocation5 + $0x198] sm:$0xff] }
  0xa3   :  { %v4112_v6 = vadd.f32 %v794_v63, %v727_v13  ;;  %v4114_v38 = vadd.f32 %v795_v26, %v728_v29  ;;  %v816_v46 = vadd.f32 %v796_v9, %v729_v19  ;;  %v817_v37 = vadd.f32 %v797_v49, %v730_v8 }
  0xa4   :  { %v818_v35 = vadd.f32 %v798_v36, %v731_v17  ;;  %v819_v30 = vadd.f32 %v799_v22, %v732_v4  ;;  %v820_v42 = vadd.f32 %v800_v40, %v733_v16  ;;  %v832_v32 = vunpack.c.h.bf16 %v4084_v59 }
  0xa5   :  { %v833_v44 = vunpack.c.l.bf16 %v826_v61  ;;  %v834_v53 = vunpack.c.h.bf16 %v826_v61  ;;  %v835_v13 = vunpack.c.l.bf16 %v827_v45  ;;  %v847_v27 = vcombine.high %v3566_v18, %v3566_v18 }
  0xa6   :  { %v851_v29 = vrot.slane %v3566_v18, %v3726_v2  ;;  %v855_v39 = vrot.slane %v3566_v18, %v5699_v31  ;;  %v836_v19 = vunpack.c.h.bf16 %v827_v45  ;;  %v837_v8 = vunpack.c.l.bf16 %v828_v60 }
  0xa7   :  { %v838_v17 = vunpack.c.h.bf16 %v828_v60  ;;  %v916_v4 = vunpack.c.l.bf16 %v4116_v15  ;;  %v859_v52 = vrot.slane %v847_v27, %v3726_v2  ;;  %v863_v16 = vrot.slane %v847_v27, %v5699_v31 }
  0xa8   :  { %v917_v1 = vunpack.c.h.bf16 %v4116_v15  ;;  %v918_v61 = vunpack.c.l.bf16 %v4119_v23  ;;  %v5701_v7 = vunpack.c.l.bf16 %v5700_v50  ;;  %v5702_v43 = vunpack.c.h.bf16 %v5700_v50 }
  0xa9   :  { %v5703_v47 = vunpack.c.l.bf16 %v4084_v59  ;;  %v871_v56 = vmul.f32 %v855_v39, %v832_v32  ;;  %v872_v20 = vmul.f32 %v851_v29, %v833_v44  ;;  %v873_v34 = vmul.f32 %v855_v39, %v834_v53 }
  0xaa   :  { %v868_v24 = vmul.f32 %v851_v29, %v5701_v7  ;;  %v869_v41 = vmul.f32 %v855_v39, %v5702_v43  ;;  %v874_v25 = vmul.f32 %v851_v29, %v835_v13  ;;  %v875_v33 = vmul.f32 %v855_v39, %v836_v19 }
  0xab   :  { %v870_v28 = vmul.f32 %v851_v29, %v5703_v47  ;;  %v876_v51 = vmul.f32 %v851_v29, %v837_v8  ;;  %v877_v63 = vmul.f32 %v855_v39, %v838_v17  ;;  %v5704_v26 = vmov %v5701_v7 }
  0xac   :  { %v878_v9 = vmul.f32 %v859_v52, %v5704_v26  ;;  %v5705_v49 = vmov %v5702_v43  ;;  %v5706_v22 = vmov %v5703_v47  ;;  %v881_v18 = vmul.f32 %v863_v16, %v832_v32 }
  0xad   :  { %v879_v36 = vmul.f32 %v863_v16, %v5705_v49  ;;  %v880_v40 = vmul.f32 %v859_v52, %v5706_v22  ;;  %v882_v45 = vmul.f32 %v859_v52, %v833_v44  ;;  %v883_v60 = vmul.f32 %v863_v16, %v834_v53 }
  0xae   :  { %v884_v27 = vmul.f32 %v859_v52, %v835_v13  ;;  %v885_v7 = vmul.f32 %v863_v16, %v836_v19  ;;  %v886_v43 = vmul.f32 %v859_v52, %v837_v8  ;;  %v887_v47 = vmul.f32 %v863_v16, %v838_v17  ;;  %v914_v13 = vld [vmem:[#allocation5 + $0x1a8] sm:$0xff]  ;;  %v4183_v19 = vld [vmem:[#allocation5 + $0x1b8] sm:$0xff]  ;;  %v4185_v52 = vld [vmem:[#allocation5 + $0x1c0] sm:$0xff] }
  0xaf   :  { %v4141_v54 = vadd.f32 %v868_v24, %v801_v58  ;;  %v4143_v29 = vadd.f32 %v869_v41, %v802_v0  ;;  %v4145_v39 = vadd.f32 %v870_v28, %v803_v12  ;;  %v4147_v26 = vadd.f32 %v871_v56, %v804_v14  ;;  %v913_v0 = vld [vmem:[#allocation5 + $0x1a0] sm:$0xff]  ;;  %v4189_v24 = vld [vmem:[#allocation5 + $0x1c8] sm:$0xff] }
  0xb0   :  { %v4149_v50 = vadd.f32 %v872_v20, %v805_v48  ;;  %v4151_v49 = vadd.f32 %v873_v34, %v806_v5  ;;  %v4153_v59 = vadd.f32 %v874_v25, %v807_v10  ;;  %v4155_v32 = vadd.f32 %v875_v33, %v808_v62 }
  0xb1   :  { %v4157_v44 = vadd.f32 %v876_v51, %v809_v57  ;;  %v4159_v53 = vadd.f32 %v877_v63, %v810_v3  ;;  %v4161_v58 = vadd.f32 %v878_v9, %v811_v21  ;;  %v4164_v12 = vadd.f32 %v879_v36, %v4108_v11  ;;  %v3567_v57 = vld.sshfl [vmem:[#allocation2 + $0x28] sm:$0x33 pattern:$0x75316420]  ;;  %v915_v11 = vld [vmem:[#allocation5 + $0x1b0] sm:$0xff] }
  0xb2   :  { %v4167_v14 = vadd.f32 %v880_v40, %v4110_v55  ;;  %v4170_v5 = vadd.f32 %v881_v18, %v4112_v6  ;;  %v4173_v48 = vadd.f32 %v882_v45, %v4114_v38  ;;  %v4175_v10 = vadd.f32 %v883_v60, %v816_v46 }
  0xb3   :  { %v4177_v3 = vadd.f32 %v884_v27, %v817_v37  ;;  %v4179_v62 = vadd.f32 %v885_v7, %v818_v35  ;;  %v4181_v21 = vadd.f32 %v886_v43, %v819_v30  ;;  %v907_v55 = vadd.f32 %v887_v47, %v820_v42 }
  0xb4   :  { %v920_v8 = vunpack.c.l.bf16 %v913_v0  ;;  %v921_v17 = vunpack.c.h.bf16 %v913_v0  ;;  %v922_v6 = vunpack.c.l.bf16 %v914_v13  ;;  %v923_v38 = vunpack.c.h.bf16 %v914_v13 }
  0xb5   :  { %v934_v16 = vcombine.high %v3567_v57, %v3567_v57  ;;  %v938_v46 = vrot.slane %v3567_v57, %v3726_v2  ;;  %v942_v37 = vrot.slane %v3567_v57, %v5699_v31  ;;  %v924_v35 = vunpack.c.l.bf16 %v915_v11 }
  0xb6   :  { %v925_v30 = vunpack.c.h.bf16 %v915_v11  ;;  %v1003_v41 = vunpack.c.l.bf16 %v4183_v19  ;;  %v1004_v28 = vunpack.c.h.bf16 %v4183_v19  ;;  %v1005_v20 = vunpack.c.l.bf16 %v4185_v52 }
  0xb7   :  { %v946_v42 = vrot.slane %v934_v16, %v3726_v2  ;;  %v950_v56 = vrot.slane %v934_v16, %v5699_v31  ;;  %v955_v25 = vmul.f32 %v938_v46, %v916_v4  ;;  %v956_v33 = vmul.f32 %v942_v37, %v917_v1 }
  0xb8   :  { %v957_v51 = vmul.f32 %v938_v46, %v918_v61  ;;  %v5707_v9 = vunpack.c.h.bf16 %v4119_v23  ;;  %v959_v22 = vmul.f32 %v938_v46, %v920_v8  ;;  %v960_v40 = vmul.f32 %v942_v37, %v921_v17 }
  0xb9   :  { %v961_v18 = vmul.f32 %v938_v46, %v922_v6  ;;  %v962_v45 = vmul.f32 %v942_v37, %v923_v38  ;;  %v963_v60 = vmul.f32 %v938_v46, %v924_v35  ;;  %v964_v27 = vmul.f32 %v942_v37, %v925_v30 }
  0xba   :  { %v958_v36 = vmul.f32 %v942_v37, %v5707_v9  ;;  %v965_v7 = vmul.f32 %v946_v42, %v916_v4  ;;  %v966_v43 = vmul.f32 %v950_v56, %v917_v1  ;;  %v967_v47 = vmul.f32 %v946_v42, %v918_v61 }
  0xbb   :  { %v5708_v0 = vmov %v5707_v9  ;;  %v969_v57 = vmul.f32 %v946_v42, %v920_v8  ;;  %v970_v11 = vmul.f32 %v950_v56, %v921_v17  ;;  %v971_v16 = vmul.f32 %v946_v42, %v922_v6 }
  0xbc   :  { %v968_v13 = vmul.f32 %v950_v56, %v5708_v0  ;;  %v972_v9 = vmul.f32 %v950_v56, %v923_v38  ;;  %v973_v63 = vmul.f32 %v946_v42, %v924_v35  ;;  %v974_v34 = vmul.f32 %v950_v56, %v925_v30  ;;  %v3568_v38 = vld.sshfl [vmem:[#allocation2 + $0x2c] sm:$0x33 pattern:$0x75316420]  ;;  %v1002_v35 = vld [vmem:[#allocation5 + $0x1d8] sm:$0xff] }
  0xbd   :  { %v975_v46 = vadd.f32 %v955_v25, %v4141_v54  ;;  %v976_v37 = vadd.f32 %v956_v33, %v4143_v29  ;;  %v977_v4 = vadd.f32 %v957_v51, %v4145_v39  ;;  %v978_v15 = vadd.f32 %v958_v36, %v4147_v26  ;;  %v1001_v29 = vld [vmem:[#allocation5 + $0x1d0] sm:$0xff]  ;;  %v4236_v56 = vld [vmem:[#allocation5 + $0x1e8] sm:$0xff] }
  0xbe   :  { %v979_v1 = vadd.f32 %v959_v22, %v4149_v50  ;;  %v980_v61 = vadd.f32 %v960_v40, %v4151_v49  ;;  %v981_v23 = vadd.f32 %v961_v18, %v4153_v59  ;;  %v982_v8 = vadd.f32 %v962_v45, %v4155_v32  ;;  %5710 = vst [vmem:[#allocation13_spill] sm:$0xff] %v4236_v56  ;;  %v1087_v56 = vld [vmem:[#allocation5 + $0x1f0] sm:$0xff] }
  0xbf   :  { %v983_v17 = vadd.f32 %v963_v60, %v4157_v44  ;;  %v984_v6 = vadd.f32 %v964_v27, %v4159_v53  ;;  %v985_v54 = vadd.f32 %v965_v7, %v4161_v58  ;;  %v986_v39 = vadd.f32 %v966_v43, %v4164_v12  ;;  %v4233_v58 = vld [vmem:[#allocation5 + $0x1e0] sm:$0xff] }
  0xc0   :  { %v987_v26 = vadd.f32 %v967_v47, %v4167_v14  ;;  %v988_v50 = vadd.f32 %v968_v13, %v4170_v5  ;;  %v989_v49 = vadd.f32 %v969_v57, %v4173_v48  ;;  %v990_v59 = vadd.f32 %v970_v11, %v4175_v10  ;;  %5709 = vst [vmem:[#allocation12_spill] sm:$0xff] %v4233_v58 }
  0xc1   :  { %v991_v32 = vadd.f32 %v971_v16, %v4177_v3  ;;  %v992_v44 = vadd.f32 %v972_v9, %v4179_v62  ;;  %v993_v53 = vadd.f32 %v973_v63, %v4181_v21  ;;  %v994_v30 = vadd.f32 %v974_v34, %v907_v55 }
  0xc2   :  { %v1008_v12 = vunpack.c.h.bf16 %v4189_v24  ;;  %v1009_v42 = vunpack.c.l.bf16 %v1001_v29  ;;  %v1021_v14 = vcombine.high %v3568_v38, %v3568_v38  ;;  %v1010_v5 = vunpack.c.h.bf16 %v1001_v29 }
  0xc3   :  { %v1011_v48 = vunpack.c.l.bf16 %v1002_v35  ;;  %v1025_v25 = vrot.slane %v3568_v38, %v3726_v2  ;;  %v1029_v10 = vrot.slane %v3568_v38, %v5699_v31  ;;  %v1012_v3 = vunpack.c.h.bf16 %v1002_v35 }
  0xc4   :  { %v1033_v62 = vrot.slane %v1021_v14, %v3726_v2  ;;  %v1037_v21 = vrot.slane %v1021_v14, %v5699_v31  ;;  %v5711_v40 = vunpack.c.h.bf16 %v4185_v52  ;;  %v5712_v45 = vunpack.c.l.bf16 %v4189_v24 }
  0xc5   :  { %v1042_v55 = vmul.f32 %v1025_v25, %v1003_v41  ;;  %v1043_v36 = vmul.f32 %v1029_v10, %v1004_v28  ;;  %v1044_v22 = vmul.f32 %v1025_v25, %v1005_v20  ;;  %v1047_v27 = vmul.f32 %v1029_v10, %v1008_v12 }
  0xc6   :  { %v1045_v18 = vmul.f32 %v1029_v10, %v5711_v40  ;;  %v1046_v60 = vmul.f32 %v1025_v25, %v5712_v45  ;;  %v1048_v7 = vmul.f32 %v1025_v25, %v1009_v42  ;;  %v1049_v43 = vmul.f32 %v1029_v10, %v1010_v5 }
  0xc7   :  { %v1050_v47 = vmul.f32 %v1025_v25, %v1011_v48  ;;  %v1051_v0 = vmul.f32 %v1029_v10, %v1012_v3  ;;  %v1052_v13 = vmul.f32 %v1033_v62, %v1003_v41  ;;  %v1053_v57 = vmul.f32 %v1037_v21, %v1004_v28 }
  0xc8   :  { %v1054_v11 = vmul.f32 %v1033_v62, %v1005_v20  ;;  %v5713_v16 = vmov %v5711_v40  ;;  %v5714_v38 = vmov %v5712_v45  ;;  %v1057_v35 = vmul.f32 %v1037_v21, %v1008_v12  ;;  %v1088_v12 = vld [vmem:[#allocation5 + $0x1f8] sm:$0xff] }
  0xc9   :  { %v1055_v9 = vmul.f32 %v1037_v21, %v5713_v16  ;;  %v1056_v29 = vmul.f32 %v1033_v62, %v5714_v38  ;;  %v1058_v14 = vmul.f32 %v1033_v62, %v1009_v42  ;;  %v1059_v40 = vmul.f32 %v1037_v21, %v1010_v5  ;;  %v3569_v38 = vld.sshfl [vmem:[#allocation2 + $0x30] sm:$0x33 pattern:$0x75316420] }
  0xca   :  { %v1060_v25 = vmul.f32 %v1033_v62, %v1011_v48  ;;  %v1061_v10 = vmul.f32 %v1037_v21, %v1012_v3  ;;  %v1062_v45 = vadd.f32 %v1042_v55, %v975_v46  ;;  %v1063_v63 = vadd.f32 %v1043_v36, %v976_v37  ;;  %v1089_v46 = vld [vmem:[#allocation5 + $0x200] sm:$0xff]  ;;  %v5719_v36 = vld [vmem:[#allocation13_spill] sm:$0xff] }
  0xcb   :  { %v1064_v41 = vadd.f32 %v1044_v22, %v977_v4  ;;  %v1065_v51 = vadd.f32 %v1045_v18, %v978_v15  ;;  %v1066_v19 = vadd.f32 %v1046_v60, %v979_v1  ;;  %v1067_v28 = vadd.f32 %v1047_v27, %v980_v61  ;;  %v4266_v61 = vld [vmem:[#allocation5 + $0x208] sm:$0xff] }
  0xcc   :  { %v1068_v34 = vadd.f32 %v1048_v7, %v981_v23  ;;  %v1069_v33 = vadd.f32 %v1049_v43, %v982_v8  ;;  %v1070_v20 = vadd.f32 %v1050_v47, %v983_v17  ;;  %v1071_v52 = vadd.f32 %v1051_v0, %v984_v6  ;;  %5715 = vst [vmem:[#allocation14_spill] sm:$0xff] %v4266_v61 }
  0xcd   :  { %v1072_v16 = vadd.f32 %v1052_v13, %v985_v54  ;;  %v1073_v58 = vadd.f32 %v1053_v57, %v986_v39  ;;  %v1074_v24 = vadd.f32 %v1054_v11, %v987_v26  ;;  %v1075_v42 = vadd.f32 %v1055_v9, %v988_v50  ;;  %v4269_v54 = vld [vmem:[#allocation5 + $0x210] sm:$0xff] }
  0xce   :  { %v1076_v5 = vadd.f32 %v1056_v29, %v989_v49  ;;  %v1077_v48 = vadd.f32 %v1057_v35, %v990_v59  ;;  %v1078_v3 = vadd.f32 %v1058_v14, %v991_v32  ;;  %v1079_v37 = vadd.f32 %v1059_v40, %v992_v44 }
  0xcf   :  { %v1080_v4 = vadd.f32 %v1060_v25, %v993_v53  ;;  %v1081_v15 = vadd.f32 %v1061_v10, %v994_v30  ;;  %v1094_v1 = vunpack.c.l.bf16 %v1087_v56  ;;  %v1095_v23 = vunpack.c.h.bf16 %v1087_v56  ;;  %v5716_v30 = vld [vmem:[#allocation12_spill] sm:$0xff] }
  0xd0   :  { %v1096_v8 = vunpack.c.l.bf16 %v1088_v12  ;;  %v1108_v17 = vcombine.high %v3569_v38, %v3569_v38  ;;  %v1112_v6 = vrot.slane %v3569_v38, %v3726_v2  ;;  %v1097_v39 = vunpack.c.h.bf16 %v1088_v12 }
  0xd1   :  { %v1098_v26 = vunpack.c.l.bf16 %v1089_v46  ;;  %v1099_v50 = vunpack.c.h.bf16 %v1089_v46  ;;  %v1116_v49 = vrot.slane %v3569_v38, %v5699_v31  ;;  %v5717_v56 = vunpack.c.l.bf16 %v5716_v30 }
  0xd2   :  { %v1120_v59 = vrot.slane %v1108_v17, %v3726_v2  ;;  %v1124_v32 = vrot.slane %v1108_v17, %v5699_v31  ;;  %v5718_v21 = vunpack.c.h.bf16 %v5716_v30  ;;  %v5720_v22 = vunpack.c.l.bf16 %v5719_v36  ;;  %v1174_v31 = vld [vmem:[#allocation5 + $0x218] sm:$0xff] }
  0xd3   :  { %v1129_v62 = vmul.f32 %v1112_v6, %v5717_v56  ;;  %v5721_v27 = vunpack.c.h.bf16 %v5719_v36  ;;  %v1133_v43 = vmul.f32 %v1112_v6, %v1094_v1  ;;  %v1134_v47 = vmul.f32 %v1116_v49, %v1095_v23 }
  0xd4   :  { %v1130_v55 = vmul.f32 %v1116_v49, %v5718_v21  ;;  %v1131_v18 = vmul.f32 %v1112_v6, %v5720_v22  ;;  %v1135_v0 = vmul.f32 %v1112_v6, %v1096_v8  ;;  %v1136_v13 = vmul.f32 %v1116_v49, %v1097_v39 }
  0xd5   :  { %v1132_v7 = vmul.f32 %v1116_v49, %v5721_v27  ;;  %v1137_v57 = vmul.f32 %v1112_v6, %v1098_v26  ;;  %v1138_v11 = vmul.f32 %v1116_v49, %v1099_v50  ;;  %v5722_v9 = vmov %v5717_v56 }
  0xd6   :  { %v1139_v29 = vmul.f32 %v1120_v59, %v5722_v9  ;;  %v5723_v35 = vmov %v5718_v21  ;;  %v5724_v40 = vmov %v5720_v22  ;;  %v5725_v10 = vmov %v5721_v27 }
  0xd7   :  { %v1140_v14 = vmul.f32 %v1124_v32, %v5723_v35  ;;  %v1141_v25 = vmul.f32 %v1120_v59, %v5724_v40  ;;  %v1142_v38 = vmul.f32 %v1124_v32, %v5725_v10  ;;  %v1143_v12 = vmul.f32 %v1120_v59, %v1094_v1 }
  0xd8   :  { %v1144_v46 = vmul.f32 %v1124_v32, %v1095_v23  ;;  %v1145_v17 = vmul.f32 %v1120_v59, %v1096_v8  ;;  %v1146_v56 = vmul.f32 %v1124_v32, %v1097_v39  ;;  %v1147_v21 = vmul.f32 %v1120_v59, %v1098_v26  ;;  %v5726_v26 = vld [vmem:[#allocation11_spill] sm:$0xff] }
  0xd9   :  { %v1148_v22 = vmul.f32 %v1124_v32, %v1099_v50  ;;  %v1149_v6 = vadd.f32 %v1129_v62, %v1062_v45  ;;  %v1150_v49 = vadd.f32 %v1130_v55, %v1063_v63  ;;  %v1151_v27 = vadd.f32 %v1131_v18, %v1064_v41  ;;  %v3570_v45 = vld.sshfl [vmem:[#allocation2 + $0x34] sm:$0x33 pattern:$0x75316420]  ;;  %v1175_v63 = vld [vmem:[#allocation5 + $0x220] sm:$0xff]  ;;  %v5727_v62 = vld [vmem:[#allocation14_spill] sm:$0xff] }
  0xda   :  { %v1152_v60 = vadd.f32 %v1132_v7, %v1065_v51  ;;  %v1153_v9 = vadd.f32 %v1133_v43, %v1066_v19  ;;  %v1154_v53 = vadd.f32 %v1134_v47, %v1067_v28  ;;  %v1155_v30 = vadd.f32 %v1135_v0, %v1068_v34  ;;  %v1176_v34 = vld [vmem:[#allocation5 + $0x228] sm:$0xff] }
  0xdb   :  { %v1156_v35 = vadd.f32 %v1136_v13, %v1069_v33  ;;  %v1157_v44 = vadd.f32 %v1137_v57, %v1070_v20  ;;  %v1158_v61 = vadd.f32 %v1138_v11, %v1071_v52  ;;  %v1159_v40 = vadd.f32 %v1139_v29, %v1072_v16  ;;  %v4301_v33 = vld [vmem:[#allocation5 + $0x230] sm:$0xff] }
  0xdc   :  { %v4293_v36 = vadd.f32 %v1140_v14, %v1073_v58  ;;  %v4295_v1 = vadd.f32 %v1141_v25, %v1074_v24  ;;  %v4297_v23 = vadd.f32 %v1142_v38, %v1075_v42  ;;  %v4299_v8 = vadd.f32 %v1143_v12, %v1076_v5  ;;  %v4304_v24 = vld [vmem:[#allocation5 + $0x238] sm:$0xff] }
  0xdd   :  { %v1164_v41 = vadd.f32 %v1144_v46, %v1077_v48  ;;  %v1165_v51 = vadd.f32 %v1145_v17, %v1078_v3  ;;  %v1166_v19 = vadd.f32 %v1146_v56, %v1079_v37  ;;  %v1167_v28 = vadd.f32 %v1147_v21, %v1080_v4 }
  0xde   :  { %v1168_v20 = vadd.f32 %v1148_v22, %v1081_v15  ;;  %v1180_v52 = vunpack.c.h.bf16 %v4269_v54  ;;  %v1181_v58 = vunpack.c.l.bf16 %v1174_v31  ;;  %v1182_v16 = vunpack.c.h.bf16 %v1174_v31 }
  0xdf   :  { %v1183_v42 = vunpack.c.l.bf16 %v1175_v63  ;;  %v1195_v39 = vcombine.high %v3570_v45, %v3570_v45  ;;  %v1199_v5 = vrot.slane %v3570_v45, %v3726_v2  ;;  %v1203_v50 = vrot.slane %v3570_v45, %v5726_v26 }
  0xe0   :  { %v1184_v48 = vunpack.c.h.bf16 %v1175_v63  ;;  %v1185_v3 = vunpack.c.l.bf16 %v1176_v34  ;;  %v1186_v37 = vunpack.c.h.bf16 %v1176_v34  ;;  %v1264_v4 = vunpack.c.l.bf16 %v4301_v33 }
  0xe1   :  { %v1207_v59 = vrot.slane %v1195_v39, %v3726_v2  ;;  %v1211_v15 = vrot.slane %v1195_v39, %v5726_v26  ;;  %v1265_v32 = vunpack.c.h.bf16 %v4301_v33  ;;  %v1266_v31 = vunpack.c.l.bf16 %v4304_v24 }
  0xe2   :  { %v5728_v55 = vunpack.c.l.bf16 %v5727_v62  ;;  %v5729_v7 = vunpack.c.h.bf16 %v5727_v62  ;;  %v5730_v47 = vunpack.c.l.bf16 %v4269_v54  ;;  %v1219_v57 = vmul.f32 %v1203_v50, %v1180_v52 }
  0xe3   :  { %v1220_v11 = vmul.f32 %v1199_v5, %v1181_v58  ;;  %v1221_v29 = vmul.f32 %v1203_v50, %v1182_v16  ;;  %v1222_v14 = vmul.f32 %v1199_v5, %v1183_v42  ;;  %v1223_v25 = vmul.f32 %v1203_v50, %v1184_v48 }
  0xe4   :  { %v1216_v18 = vmul.f32 %v1199_v5, %v5728_v55  ;;  %v1217_v43 = vmul.f32 %v1203_v50, %v5729_v7  ;;  %v1218_v0 = vmul.f32 %v1199_v5, %v5730_v47  ;;  %v1224_v10 = vmul.f32 %v1199_v5, %v1185_v3 }
  0xe5   :  { %v1225_v38 = vmul.f32 %v1203_v50, %v1186_v37  ;;  %v5731_v12 = vmov %v5728_v55  ;;  %v5732_v17 = vmov %v5729_v7  ;;  %v5733_v21 = vmov %v5730_v47 }
  0xe6   :  { %v1226_v46 = vmul.f32 %v1207_v59, %v5731_v12  ;;  %v1227_v56 = vmul.f32 %v1211_v15, %v5732_v17  ;;  %v1228_v22 = vmul.f32 %v1207_v59, %v5733_v21  ;;  %v1229_v45 = vmul.f32 %v1211_v15, %v1180_v52 }
  0xe7   :  { %v1230_v63 = vmul.f32 %v1207_v59, %v1181_v58  ;;  %v1231_v34 = vmul.f32 %v1211_v15, %v1182_v16  ;;  %v1232_v39 = vmul.f32 %v1207_v59, %v1183_v42  ;;  %v1233_v55 = vmul.f32 %v1211_v15, %v1184_v48  ;;  %v1262_v42 = vld [vmem:[#allocation5 + $0x248] sm:$0xff]  ;;  %v4368_v48 = vld [vmem:[#allocation5 + $0x258] sm:$0xff] }
  0xe8   :  { %v1234_v7 = vmul.f32 %v1207_v59, %v1185_v3  ;;  %v1235_v47 = vmul.f32 %v1211_v15, %v1186_v37  ;;  %v4326_v13 = vadd.f32 %v1216_v18, %v1149_v6  ;;  %v4328_v5 = vadd.f32 %v1217_v43, %v1150_v49  ;;  %v1261_v49 = vld [vmem:[#allocation5 + $0x240] sm:$0xff]  ;;  %v4374_v18 = vld [vmem:[#allocation5 + $0x268] sm:$0xff] }
  0xe9   :  { %v4330_v50 = vadd.f32 %v1218_v0, %v1151_v27  ;;  %v4332_v12 = vadd.f32 %v1219_v57, %v1152_v60  ;;  %v4334_v62 = vadd.f32 %v1220_v11, %v1153_v9  ;;  %v4336_v17 = vadd.f32 %v1221_v29, %v1154_v53  ;;  %v4370_v59 = vld [vmem:[#allocation5 + $0x260] sm:$0xff] }
  0xea   :  { %v4338_v54 = vadd.f32 %v1222_v14, %v1155_v30  ;;  %v4340_v52 = vadd.f32 %v1223_v25, %v1156_v35  ;;  %v4342_v58 = vadd.f32 %v1224_v10, %v1157_v44  ;;  %v4344_v16 = vadd.f32 %v1225_v38, %v1158_v61  ;;  %v3571_v44 = vld.sshfl [vmem:[#allocation2 + $0x38] sm:$0x33 pattern:$0x75316420] }
  0xeb   :  { %v4346_v6 = vadd.f32 %v1226_v46, %v1159_v40  ;;  %v4349_v27 = vadd.f32 %v1227_v56, %v4293_v36  ;;  %v4352_v60 = vadd.f32 %v1228_v22, %v4295_v1  ;;  %v4355_v53 = vadd.f32 %v1229_v45, %v4297_v23  ;;  %v1263_v36 = vld [vmem:[#allocation5 + $0x250] sm:$0xff] }
  0xec   :  { %v4358_v9 = vadd.f32 %v1230_v63, %v4299_v8  ;;  %v4360_v30 = vadd.f32 %v1231_v34, %v1164_v41  ;;  %v4362_v61 = vadd.f32 %v1232_v39, %v1165_v51  ;;  %v4364_v35 = vadd.f32 %v1233_v55, %v1166_v19 }
  0xed   :  { %v4366_v40 = vadd.f32 %v1234_v7, %v1167_v28  ;;  %v1255_v1 = vadd.f32 %v1235_v47, %v1168_v20  ;;  %v1268_v3 = vunpack.c.l.bf16 %v1261_v49  ;;  %v1269_v37 = vunpack.c.h.bf16 %v1261_v49 }
  0xee   :  { %v1270_v23 = vunpack.c.l.bf16 %v1262_v42  ;;  %v1271_v8 = vunpack.c.h.bf16 %v1262_v42  ;;  %v1282_v15 = vcombine.high %v3571_v44, %v3571_v44  ;;  %v1286_v41 = vrot.slane %v3571_v44, %v3726_v2 }
  0xef   :  { %v1290_v51 = vrot.slane %v3571_v44, %v5726_v26  ;;  %v1272_v19 = vunpack.c.l.bf16 %v1263_v36  ;;  %v1273_v28 = vunpack.c.h.bf16 %v1263_v36  ;;  %v1351_v43 = vunpack.c.l.bf16 %v4368_v48 }
  0xf0   :  { %v1352_v0 = vunpack.c.h.bf16 %v4368_v48  ;;  %v1294_v20 = vrot.slane %v1282_v15, %v3726_v2  ;;  %v1298_v57 = vrot.slane %v1282_v15, %v5726_v26  ;;  %v1353_v11 = vunpack.c.l.bf16 %v4370_v59 }
  0xf1   :  { %v1303_v14 = vmul.f32 %v1286_v41, %v1264_v4  ;;  %v1304_v25 = vmul.f32 %v1290_v51, %v1265_v32  ;;  %v1305_v10 = vmul.f32 %v1286_v41, %v1266_v31  ;;  %v5734_v46 = vunpack.c.h.bf16 %v4304_v24 }
  0xf2   :  { %v1307_v21 = vmul.f32 %v1286_v41, %v1268_v3  ;;  %v1308_v22 = vmul.f32 %v1290_v51, %v1269_v37  ;;  %v1309_v45 = vmul.f32 %v1286_v41, %v1270_v23  ;;  %v1310_v63 = vmul.f32 %v1290_v51, %v1271_v8 }
  0xf3   :  { %v1306_v56 = vmul.f32 %v1290_v51, %v5734_v46  ;;  %v1311_v34 = vmul.f32 %v1286_v41, %v1272_v19  ;;  %v1312_v39 = vmul.f32 %v1290_v51, %v1273_v28  ;;  %v1313_v55 = vmul.f32 %v1294_v20, %v1264_v4 }
  0xf4   :  { %v1314_v7 = vmul.f32 %v1298_v57, %v1265_v32  ;;  %v1315_v47 = vmul.f32 %v1294_v20, %v1266_v31  ;;  %v5735_v49 = vmov %v5734_v46  ;;  %v1317_v44 = vmul.f32 %v1294_v20, %v1268_v3 }
  0xf5   :  { %v1316_v42 = vmul.f32 %v1298_v57, %v5735_v49  ;;  %v1318_v36 = vmul.f32 %v1298_v57, %v1269_v37  ;;  %v1319_v15 = vmul.f32 %v1294_v20, %v1270_v23  ;;  %v1320_v46 = vmul.f32 %v1298_v57, %v1271_v8  ;;  %v3572_v8 = vld.sshfl [vmem:[#allocation2 + $0x3c] sm:$0x33 pattern:$0x75316420] }
  0xf6   :  { %v1321_v38 = vmul.f32 %v1294_v20, %v1272_v19  ;;  %v1322_v29 = vmul.f32 %v1298_v57, %v1273_v28  ;;  %v1323_v41 = vadd.f32 %v1303_v14, %v4326_v13  ;;  %v1324_v51 = vadd.f32 %v1304_v25, %v4328_v5  ;;  %v1349_v5 = vld [vmem:[#allocation5 + $0x270] sm:$0xff]  ;;  %v1350_v19 = vld [vmem:[#allocation5 + $0x278] sm:$0xff]  ;;  %v4421_v57 = vld [vmem:[#allocation5 + $0x288] sm:$0xff] }
  0xf7   :  { %v1325_v4 = vadd.f32 %v1305_v10, %v4330_v50  ;;  %v1326_v33 = vadd.f32 %v1306_v56, %v4332_v12  ;;  %v1327_v32 = vadd.f32 %v1307_v21, %v4334_v62  ;;  %v1328_v31 = vadd.f32 %v1308_v22, %v4336_v17  ;;  %5737 = vst [vmem:[#allocation13_spill] sm:$0xff] %v4421_v57  ;;  %v1435_v57 = vld [vmem:[#allocation5 + $0x290] sm:$0xff] }
  0xf8   :  { %v1329_v24 = vadd.f32 %v1309_v45, %v4338_v54  ;;  %v1330_v3 = vadd.f32 %v1310_v63, %v4340_v52  ;;  %v1331_v37 = vadd.f32 %v1311_v34, %v4342_v58  ;;  %v1332_v23 = vadd.f32 %v1312_v39, %v4344_v16 }
  0xf9   :  { %v1333_v13 = vadd.f32 %v1313_v55, %v4346_v6  ;;  %v1334_v50 = vadd.f32 %v1314_v7, %v4349_v27  ;;  %v1335_v12 = vadd.f32 %v1315_v47, %v4352_v60  ;;  %v1336_v62 = vadd.f32 %v1316_v42, %v4355_v53  ;;  %v4418_v6 = vld [vmem:[#allocation5 + $0x280] sm:$0xff] }
  0xfa   :  { %v1337_v17 = vadd.f32 %v1317_v44, %v4358_v9  ;;  %v1338_v54 = vadd.f32 %v1318_v36, %v4360_v30  ;;  %v1339_v52 = vadd.f32 %v1319_v15, %v4362_v61  ;;  %v1340_v58 = vadd.f32 %v1320_v46, %v4364_v35  ;;  %5736 = vst [vmem:[#allocation12_spill] sm:$0xff] %v4418_v6 }
  0xfb   :  { %v1341_v16 = vadd.f32 %v1321_v38, %v4366_v40  ;;  %v1342_v28 = vadd.f32 %v1322_v29, %v1255_v1  ;;  %v1356_v27 = vunpack.c.h.bf16 %v4374_v18  ;;  %v1357_v20 = vunpack.c.l.bf16 %v1349_v5 }
  0xfc   :  { %v1369_v60 = vcombine.high %v3572_v8, %v3572_v8  ;;  %v1358_v53 = vunpack.c.h.bf16 %v1349_v5  ;;  %v1359_v9 = vunpack.c.l.bf16 %v1350_v19  ;;  %v1373_v14 = vrot.slane %v3572_v8, %v3726_v2 }
  0xfd   :  { %v1377_v30 = vrot.slane %v3572_v8, %v5726_v26  ;;  %v1360_v61 = vunpack.c.h.bf16 %v1350_v19  ;;  %v5738_v22 = vunpack.c.h.bf16 %v4370_v59  ;;  %v5739_v63 = vunpack.c.l.bf16 %v4374_v18 }
  0xfe   :  { %v1381_v35 = vrot.slane %v1369_v60, %v3726_v2  ;;  %v1385_v40 = vrot.slane %v1369_v60, %v5726_v26  ;;  %v1390_v1 = vmul.f32 %v1373_v14, %v1351_v43  ;;  %v1392_v21 = vmul.f32 %v1373_v14, %v1353_v11 }
  0xff   :  { %v1391_v56 = vmul.f32 %v1377_v30, %v1352_v0  ;;  %v1393_v45 = vmul.f32 %v1377_v30, %v5738_v22  ;;  %v1394_v34 = vmul.f32 %v1373_v14, %v5739_v63  ;;  %v1395_v39 = vmul.f32 %v1377_v30, %v1356_v27 }
 0x100   :  { %v1396_v55 = vmul.f32 %v1373_v14, %v1357_v20  ;;  %v1397_v7 = vmul.f32 %v1377_v30, %v1358_v53  ;;  %v1398_v47 = vmul.f32 %v1373_v14, %v1359_v9  ;;  %v1399_v49 = vmul.f32 %v1377_v30, %v1360_v61 }
 0x101   :  { %v1400_v42 = vmul.f32 %v1381_v35, %v1351_v43  ;;  %v1401_v44 = vmul.f32 %v1385_v40, %v1352_v0  ;;  %v1402_v36 = vmul.f32 %v1381_v35, %v1353_v11  ;;  %v5740_v15 = vmov %v5738_v22 }
 0x102   :  { %v1403_v46 = vmul.f32 %v1385_v40, %v5740_v15  ;;  %v5741_v8 = vmov %v5739_v63  ;;  %v1405_v19 = vmul.f32 %v1385_v40, %v1356_v27  ;;  %v1406_v60 = vmul.f32 %v1381_v35, %v1357_v20  ;;  %v1436_v27 = vld [vmem:[#allocation5 + $0x298] sm:$0xff] }
 0x103   :  { %v1404_v5 = vmul.f32 %v1381_v35, %v5741_v8  ;;  %v1407_v22 = vmul.f32 %v1385_v40, %v1358_v53  ;;  %v1408_v14 = vmul.f32 %v1381_v35, %v1359_v9  ;;  %v1409_v30 = vmul.f32 %v1385_v40, %v1360_v61  ;;  %v3573_v8 = vld.sshfl [vmem:[#allocation2 + $0x40] sm:$0x33 pattern:$0x75316420] }
 0x104   :  { %v1410_v63 = vadd.f32 %v1390_v1, %v1323_v41  ;;  %v1411_v38 = vadd.f32 %v1391_v56, %v1324_v51  ;;  %v1412_v43 = vadd.f32 %v1392_v21, %v1325_v4  ;;  %v1413_v10 = vadd.f32 %v1393_v45, %v1326_v33  ;;  %v1437_v41 = vld [vmem:[#allocation5 + $0x2a0] sm:$0xff]  ;;  %v5746_v56 = vld [vmem:[#allocation13_spill] sm:$0xff] }
 0x105   :  { %v1414_v48 = vadd.f32 %v1394_v34, %v1327_v32  ;;  %v1415_v0 = vadd.f32 %v1395_v39, %v1328_v31  ;;  %v1416_v29 = vadd.f32 %v1396_v55, %v1329_v24  ;;  %v1417_v25 = vadd.f32 %v1397_v7, %v1330_v3  ;;  %v4451_v31 = vld [vmem:[#allocation5 + $0x2a8] sm:$0xff] }
 0x106   :  { %v1418_v11 = vadd.f32 %v1398_v47, %v1331_v37  ;;  %v1419_v59 = vadd.f32 %v1399_v49, %v1332_v23  ;;  %v1420_v15 = vadd.f32 %v1400_v42, %v1333_v13  ;;  %v1421_v6 = vadd.f32 %v1401_v44, %v1334_v50  ;;  %5742 = vst [vmem:[#allocation14_spill] sm:$0xff] %v4451_v31  ;;  %v4454_v13 = vld [vmem:[#allocation5 + $0x2b0] sm:$0xff] }
 0x107   :  { %v1422_v18 = vadd.f32 %v1402_v36, %v1335_v12  ;;  %v1423_v20 = vadd.f32 %v1403_v46, %v1336_v62  ;;  %v1424_v53 = vadd.f32 %v1404_v5, %v1337_v17  ;;  %v1425_v9 = vadd.f32 %v1405_v19, %v1338_v54 }
 0x108   :  { %v1426_v61 = vadd.f32 %v1406_v60, %v1339_v52  ;;  %v1427_v51 = vadd.f32 %v1407_v22, %v1340_v58  ;;  %v1428_v4 = vadd.f32 %v1408_v14, %v1341_v16  ;;  %v1429_v33 = vadd.f32 %v1409_v30, %v1342_v28  ;;  %v5743_v28 = vld [vmem:[#allocation12_spill] sm:$0xff] }
 0x109   :  { %v1442_v32 = vunpack.c.l.bf16 %v1435_v57  ;;  %v1443_v24 = vunpack.c.h.bf16 %v1435_v57  ;;  %v1444_v3 = vunpack.c.l.bf16 %v1436_v27  ;;  %v1456_v37 = vcombine.high %v3573_v8, %v3573_v8 }
 0x10a   :  { %v1460_v23 = vrot.slane %v3573_v8, %v3726_v2  ;;  %v1445_v50 = vunpack.c.h.bf16 %v1436_v27  ;;  %v1446_v12 = vunpack.c.l.bf16 %v1437_v41  ;;  %v1447_v62 = vunpack.c.h.bf16 %v1437_v41 }
 0x10b   :  { %v1464_v17 = vrot.slane %v3573_v8, %v5726_v26  ;;  %v1468_v54 = vrot.slane %v1456_v37, %v3726_v2  ;;  %v1472_v52 = vrot.slane %v1456_v37, %v5726_v26  ;;  %v5744_v57 = vunpack.c.l.bf16 %v5743_v28  ;;  %v1522_v26 = vld [vmem:[#allocation5 + $0x2b8] sm:$0xff] }
 0x10c   :  { %v5745_v40 = vunpack.c.h.bf16 %v5743_v28  ;;  %v5747_v21 = vunpack.c.l.bf16 %v5746_v56  ;;  %v5748_v39 = vunpack.c.h.bf16 %v5746_v56  ;;  %v1481_v7 = vmul.f32 %v1460_v23, %v1442_v32 }
 0x10d   :  { %v1477_v35 = vmul.f32 %v1460_v23, %v5744_v57  ;;  %v1482_v47 = vmul.f32 %v1464_v17, %v1443_v24  ;;  %v1483_v49 = vmul.f32 %v1460_v23, %v1444_v3  ;;  %v1484_v42 = vmul.f32 %v1464_v17, %v1445_v50 }
 0x10e   :  { %v1478_v1 = vmul.f32 %v1464_v17, %v5745_v40  ;;  %v1479_v45 = vmul.f32 %v1460_v23, %v5747_v21  ;;  %v1480_v55 = vmul.f32 %v1464_v17, %v5748_v39  ;;  %v1485_v44 = vmul.f32 %v1460_v23, %v1446_v12 }
 0x10f   :  { %v1486_v36 = vmul.f32 %v1464_v17, %v1447_v62  ;;  %v5749_v46 = vmov %v5744_v57  ;;  %v5750_v19 = vmov %v5745_v40  ;;  %v5751_v22 = vmov %v5747_v21 }
 0x110   :  { %v1487_v5 = vmul.f32 %v1468_v54, %v5749_v46  ;;  %v1488_v60 = vmul.f32 %v1472_v52, %v5750_v19  ;;  %v1489_v14 = vmul.f32 %v1468_v54, %v5751_v22  ;;  %v5752_v30 = vmov %v5748_v39 }
 0x111   :  { %v1490_v8 = vmul.f32 %v1472_v52, %v5752_v30  ;;  %v1491_v27 = vmul.f32 %v1468_v54, %v1442_v32  ;;  %v1492_v41 = vmul.f32 %v1472_v52, %v1443_v24  ;;  %v1493_v37 = vmul.f32 %v1468_v54, %v1444_v3 }
 0x112   :  { %v1494_v57 = vmul.f32 %v1472_v52, %v1445_v50  ;;  %v1495_v40 = vmul.f32 %v1468_v54, %v1446_v12  ;;  %v1496_v21 = vmul.f32 %v1472_v52, %v1447_v62  ;;  %v1497_v23 = vadd.f32 %v1477_v35, %v1410_v63  ;;  %v3574_v63 = vld.sshfl [vmem:[#allocation2 + $0x44] sm:$0x33 pattern:$0x75316420]  ;;  %v5754_v35 = vld [vmem:[#allocation14_spill] sm:$0xff] }
 0x113   :  { %v1498_v17 = vadd.f32 %v1478_v1, %v1411_v38  ;;  %v1499_v39 = vadd.f32 %v1479_v45, %v1412_v43  ;;  %v1500_v34 = vadd.f32 %v1480_v55, %v1413_v10  ;;  %v1501_v46 = vadd.f32 %v1481_v7, %v1414_v48  ;;  %v1523_v38 = vld [vmem:[#allocation5 + $0x2c0] sm:$0xff] }
 0x114   :  { %v1502_v16 = vadd.f32 %v1482_v47, %v1415_v0  ;;  %v1503_v28 = vadd.f32 %v1483_v49, %v1416_v29  ;;  %v1504_v19 = vadd.f32 %v1484_v42, %v1417_v25  ;;  %v1505_v58 = vadd.f32 %v1485_v44, %v1418_v11  ;;  %v1524_v29 = vld [vmem:[#allocation5 + $0x2c8] sm:$0xff]  ;;  %v4486_v25 = vld [vmem:[#allocation5 + $0x2d0] sm:$0xff]  ;;  %v5753_v12 = vld [vmem:[#allocation11_spill] sm:$0xff] }
 0x115   :  { %v1506_v31 = vadd.f32 %v1486_v36, %v1419_v59  ;;  %v1507_v22 = vadd.f32 %v1487_v5, %v1420_v15  ;;  %v4478_v56 = vadd.f32 %v1488_v60, %v1421_v6  ;;  %v4480_v32 = vadd.f32 %v1489_v14, %v1422_v18  ;;  %v4489_v18 = vld [vmem:[#allocation5 + $0x2d8] sm:$0xff] }
 0x116   :  { %v4482_v24 = vadd.f32 %v1490_v8, %v1423_v20  ;;  %v4484_v3 = vadd.f32 %v1491_v27, %v1424_v53  ;;  %v1512_v43 = vadd.f32 %v1492_v41, %v1425_v9  ;;  %v1513_v10 = vadd.f32 %v1493_v37, %v1426_v61 }
 0x117   :  { %v1514_v48 = vadd.f32 %v1494_v57, %v1427_v51  ;;  %v1515_v0 = vadd.f32 %v1495_v40, %v1428_v4  ;;  %v1516_v11 = vadd.f32 %v1496_v21, %v1429_v33  ;;  %v1528_v59 = vunpack.c.h.bf16 %v4454_v13 }
 0x118   :  { %v1529_v6 = vunpack.c.l.bf16 %v1522_v26  ;;  %v1530_v15 = vunpack.c.h.bf16 %v1522_v26  ;;  %v1531_v20 = vunpack.c.l.bf16 %v1523_v38  ;;  %v1543_v50 = vcombine.high %v3574_v63, %v3574_v63 }
 0x119   :  { %v1547_v53 = vrot.slane %v3574_v63, %v3726_v2  ;;  %v1551_v62 = vrot.slane %v3574_v63, %v5753_v12  ;;  %v1532_v9 = vunpack.c.h.bf16 %v1523_v38  ;;  %v1533_v61 = vunpack.c.l.bf16 %v1524_v29 }
 0x11a   :  { %v1534_v51 = vunpack.c.h.bf16 %v1524_v29  ;;  %v1612_v4 = vunpack.c.l.bf16 %v4486_v25  ;;  %v1555_v54 = vrot.slane %v1543_v50, %v3726_v2  ;;  %v1559_v33 = vrot.slane %v1543_v50, %v5753_v12 }
 0x11b   :  { %v1613_v52 = vunpack.c.h.bf16 %v4486_v25  ;;  %v1614_v26 = vunpack.c.l.bf16 %v4489_v18  ;;  %v5755_v1 = vunpack.c.l.bf16 %v5754_v35  ;;  %v5756_v55 = vunpack.c.h.bf16 %v5754_v35 }
 0x11c   :  { %v5757_v47 = vunpack.c.l.bf16 %v4454_v13  ;;  %v1567_v44 = vmul.f32 %v1551_v62, %v1528_v59  ;;  %v1568_v36 = vmul.f32 %v1547_v53, %v1529_v6  ;;  %v1569_v5 = vmul.f32 %v1551_v62, %v1530_v15 }
 0x11d   :  { %v1564_v45 = vmul.f32 %v1547_v53, %v5755_v1  ;;  %v1565_v7 = vmul.f32 %v1551_v62, %v5756_v55  ;;  %v1570_v60 = vmul.f32 %v1547_v53, %v1531_v20  ;;  %v1571_v14 = vmul.f32 %v1551_v62, %v1532_v9 }
 0x11e   :  { %v1566_v49 = vmul.f32 %v1547_v53, %v5757_v47  ;;  %v1572_v30 = vmul.f32 %v1547_v53, %v1533_v61  ;;  %v1573_v8 = vmul.f32 %v1551_v62, %v1534_v51  ;;  %v5758_v27 = vmov %v5755_v1 }
 0x11f   :  { %v1574_v41 = vmul.f32 %v1555_v54, %v5758_v27  ;;  %v5759_v37 = vmov %v5756_v55  ;;  %v5760_v40 = vmov %v5757_v47  ;;  %v1577_v63 = vmul.f32 %v1559_v33, %v1528_v59 }
 0x120   :  { %v1575_v57 = vmul.f32 %v1559_v33, %v5759_v37  ;;  %v1576_v21 = vmul.f32 %v1555_v54, %v5760_v40  ;;  %v1578_v38 = vmul.f32 %v1555_v54, %v1529_v6  ;;  %v1579_v29 = vmul.f32 %v1559_v33, %v1530_v15 }
 0x121   :  { %v1580_v50 = vmul.f32 %v1555_v54, %v1531_v20  ;;  %v1581_v1 = vmul.f32 %v1559_v33, %v1532_v9  ;;  %v1582_v55 = vmul.f32 %v1555_v54, %v1533_v61  ;;  %v1583_v47 = vmul.f32 %v1559_v33, %v1534_v51  ;;  %v1610_v20 = vld [vmem:[#allocation5 + $0x2e8] sm:$0xff]  ;;  %v4553_v9 = vld [vmem:[#allocation5 + $0x2f8] sm:$0xff]  ;;  %v4555_v54 = vld [vmem:[#allocation5 + $0x300] sm:$0xff] }
 0x122   :  { %v4511_v42 = vadd.f32 %v1564_v45, %v1497_v23  ;;  %v4513_v53 = vadd.f32 %v1565_v7, %v1498_v17  ;;  %v4515_v62 = vadd.f32 %v1566_v49, %v1499_v39  ;;  %v4517_v27 = vadd.f32 %v1567_v44, %v1500_v34  ;;  %v1609_v17 = vld [vmem:[#allocation5 + $0x2e0] sm:$0xff]  ;;  %v4559_v45 = vld [vmem:[#allocation5 + $0x308] sm:$0xff] }
 0x123   :  { %v4519_v35 = vadd.f32 %v1568_v36, %v1501_v46  ;;  %v4521_v37 = vadd.f32 %v1569_v5, %v1502_v16  ;;  %v4523_v13 = vadd.f32 %v1570_v60, %v1503_v28  ;;  %v4525_v59 = vadd.f32 %v1571_v14, %v1504_v19 }
 0x124   :  { %v4527_v6 = vadd.f32 %v1572_v30, %v1505_v58  ;;  %v4529_v15 = vadd.f32 %v1573_v8, %v1506_v31  ;;  %v4531_v23 = vadd.f32 %v1574_v41, %v1507_v22  ;;  %v4534_v39 = vadd.f32 %v1575_v57, %v4478_v56  ;;  %v3575_v58 = vld.sshfl [vmem:[#allocation2 + $0x48] sm:$0x33 pattern:$0x75316420]  ;;  %v1611_v56 = vld [vmem:[#allocation5 + $0x2f0] sm:$0xff] }
 0x125   :  { %v4537_v34 = vadd.f32 %v1576_v21, %v4480_v32  ;;  %v4540_v16 = vadd.f32 %v1577_v63, %v4482_v24  ;;  %v4543_v46 = vadd.f32 %v1578_v38, %v4484_v3  ;;  %v4545_v28 = vadd.f32 %v1579_v29, %v1512_v43 }
 0x126   :  { %v4547_v31 = vadd.f32 %v1580_v50, %v1513_v10  ;;  %v4549_v19 = vadd.f32 %v1581_v1, %v1514_v48  ;;  %v4551_v22 = vadd.f32 %v1582_v55, %v1515_v0  ;;  %v1603_v32 = vadd.f32 %v1583_v47, %v1516_v11 }
 0x127   :  { %v1616_v61 = vunpack.c.l.bf16 %v1609_v17  ;;  %v1617_v51 = vunpack.c.h.bf16 %v1609_v17  ;;  %v1618_v24 = vunpack.c.l.bf16 %v1610_v20  ;;  %v1619_v3 = vunpack.c.h.bf16 %v1610_v20 }
 0x128   :  { %v1630_v33 = vcombine.high %v3575_v58, %v3575_v58  ;;  %v1634_v43 = vrot.slane %v3575_v58, %v3726_v2  ;;  %v1638_v10 = vrot.slane %v3575_v58, %v5753_v12  ;;  %v1620_v48 = vunpack.c.l.bf16 %v1611_v56 }
 0x129   :  { %v1621_v0 = vunpack.c.h.bf16 %v1611_v56  ;;  %v1699_v7 = vunpack.c.l.bf16 %v4553_v9  ;;  %v1700_v49 = vunpack.c.h.bf16 %v4553_v9  ;;  %v1701_v36 = vunpack.c.l.bf16 %v4555_v54 }
 0x12a   :  { %v1642_v11 = vrot.slane %v1630_v33, %v3726_v2  ;;  %v1646_v44 = vrot.slane %v1630_v33, %v5753_v12  ;;  %v1651_v60 = vmul.f32 %v1634_v43, %v1612_v4  ;;  %v1652_v14 = vmul.f32 %v1638_v10, %v1613_v52 }
 0x12b   :  { %v1653_v30 = vmul.f32 %v1634_v43, %v1614_v26  ;;  %v5761_v41 = vunpack.c.h.bf16 %v4489_v18  ;;  %v1655_v40 = vmul.f32 %v1634_v43, %v1616_v61  ;;  %v1656_v21 = vmul.f32 %v1638_v10, %v1617_v51 }
 0x12c   :  { %v1657_v63 = vmul.f32 %v1634_v43, %v1618_v24  ;;  %v1658_v38 = vmul.f32 %v1638_v10, %v1619_v3  ;;  %v1659_v29 = vmul.f32 %v1634_v43, %v1620_v48  ;;  %v1660_v50 = vmul.f32 %v1638_v10, %v1621_v0 }
 0x12d   :  { %v1654_v57 = vmul.f32 %v1638_v10, %v5761_v41  ;;  %v1661_v1 = vmul.f32 %v1642_v11, %v1612_v4  ;;  %v1662_v55 = vmul.f32 %v1646_v44, %v1613_v52  ;;  %v1663_v47 = vmul.f32 %v1642_v11, %v1614_v26 }
 0x12e   :  { %v5762_v17 = vmov %v5761_v41  ;;  %v1665_v58 = vmul.f32 %v1642_v11, %v1616_v61  ;;  %v1666_v56 = vmul.f32 %v1646_v44, %v1617_v51  ;;  %v1667_v33 = vmul.f32 %v1642_v11, %v1618_v24 }
 0x12f   :  { %v1664_v20 = vmul.f32 %v1646_v44, %v5762_v17  ;;  %v1668_v41 = vmul.f32 %v1646_v44, %v1619_v3  ;;  %v1669_v8 = vmul.f32 %v1642_v11, %v1620_v48  ;;  %v1670_v5 = vmul.f32 %v1646_v44, %v1621_v0  ;;  %v3576_v3 = vld.sshfl [vmem:[#allocation2 + $0x4c] sm:$0x33 pattern:$0x75316420]  ;;  %v1698_v48 = vld [vmem:[#allocation5 + $0x318] sm:$0xff] }
 0x130   :  { %v1671_v43 = vadd.f32 %v1651_v60, %v4511_v42  ;;  %v1672_v10 = vadd.f32 %v1652_v14, %v4513_v53  ;;  %v1673_v4 = vadd.f32 %v1653_v30, %v4515_v62  ;;  %v1674_v25 = vadd.f32 %v1654_v57, %v4517_v27  ;;  %v1697_v53 = vld [vmem:[#allocation5 + $0x310] sm:$0xff]  ;;  %v4606_v44 = vld [vmem:[#allocation5 + $0x328] sm:$0xff] }
 0x131   :  { %v1675_v52 = vadd.f32 %v1655_v40, %v4519_v35  ;;  %v1676_v26 = vadd.f32 %v1656_v21, %v4521_v37  ;;  %v1677_v18 = vadd.f32 %v1657_v63, %v4523_v13  ;;  %v1678_v61 = vadd.f32 %v1658_v38, %v4525_v59  ;;  %5764 = vst [vmem:[#allocation13_spill] sm:$0xff] %v4606_v44  ;;  %v1783_v44 = vld [vmem:[#allocation5 + $0x330] sm:$0xff] }
 0x132   :  { %v1679_v51 = vadd.f32 %v1659_v29, %v4527_v6  ;;  %v1680_v24 = vadd.f32 %v1660_v50, %v4529_v15  ;;  %v1681_v42 = vadd.f32 %v1661_v1, %v4531_v23  ;;  %v1682_v62 = vadd.f32 %v1662_v55, %v4534_v39  ;;  %v4603_v23 = vld [vmem:[#allocation5 + $0x320] sm:$0xff] }
 0x133   :  { %v1683_v27 = vadd.f32 %v1663_v47, %v4537_v34  ;;  %v1684_v35 = vadd.f32 %v1664_v20, %v4540_v16  ;;  %v1685_v37 = vadd.f32 %v1665_v58, %v4543_v46  ;;  %v1686_v13 = vadd.f32 %v1666_v56, %v4545_v28  ;;  %5763 = vst [vmem:[#allocation12_spill] sm:$0xff] %v4603_v23 }
 0x134   :  { %v1687_v59 = vadd.f32 %v1667_v33, %v4547_v31  ;;  %v1688_v6 = vadd.f32 %v1668_v41, %v4549_v19  ;;  %v1689_v15 = vadd.f32 %v1669_v8, %v4551_v22  ;;  %v1690_v0 = vadd.f32 %v1670_v5, %v1603_v32 }
 0x135   :  { %v1704_v39 = vunpack.c.h.bf16 %v4559_v45  ;;  %v1705_v11 = vunpack.c.l.bf16 %v1697_v53  ;;  %v1717_v34 = vcombine.high %v3576_v3, %v3576_v3  ;;  %v1706_v16 = vunpack.c.h.bf16 %v1697_v53 }
 0x136   :  { %v1707_v46 = vunpack.c.l.bf16 %v1698_v48  ;;  %v1721_v60 = vrot.slane %v3576_v3, %v3726_v2  ;;  %v1725_v28 = vrot.slane %v3576_v3, %v5753_v12  ;;  %v1708_v31 = vunpack.c.h.bf16 %v1698_v48 }
 0x137   :  { %v1729_v19 = vrot.slane %v1717_v34, %v3726_v2  ;;  %v1733_v22 = vrot.slane %v1717_v34, %v5753_v12  ;;  %v5765_v21 = vunpack.c.h.bf16 %v4555_v54  ;;  %v5766_v38 = vunpack.c.l.bf16 %v4559_v45 }
 0x138   :  { %v1738_v32 = vmul.f32 %v1721_v60, %v1699_v7  ;;  %v1739_v57 = vmul.f32 %v1725_v28, %v1700_v49  ;;  %v1740_v40 = vmul.f32 %v1721_v60, %v1701_v36  ;;  %v1743_v50 = vmul.f32 %v1725_v28, %v1704_v39 }
 0x139   :  { %v1741_v63 = vmul.f32 %v1725_v28, %v5765_v21  ;;  %v1742_v29 = vmul.f32 %v1721_v60, %v5766_v38  ;;  %v1744_v1 = vmul.f32 %v1721_v60, %v1705_v11  ;;  %v1745_v55 = vmul.f32 %v1725_v28, %v1706_v16 }
 0x13a   :  { %v1746_v47 = vmul.f32 %v1721_v60, %v1707_v46  ;;  %v1747_v17 = vmul.f32 %v1725_v28, %v1708_v31  ;;  %v1748_v20 = vmul.f32 %v1729_v19, %v1699_v7  ;;  %v1749_v58 = vmul.f32 %v1733_v22, %v1700_v49 }
 0x13b   :  { %v1750_v56 = vmul.f32 %v1729_v19, %v1701_v36  ;;  %v5767_v33 = vmov %v5765_v21  ;;  %v5768_v3 = vmov %v5766_v38  ;;  %v1753_v48 = vmul.f32 %v1733_v22, %v1704_v39  ;;  %v1784_v39 = vld [vmem:[#allocation5 + $0x338] sm:$0xff] }
 0x13c   :  { %v1751_v41 = vmul.f32 %v1733_v22, %v5767_v33  ;;  %v1752_v53 = vmul.f32 %v1729_v19, %v5768_v3  ;;  %v1754_v34 = vmul.f32 %v1729_v19, %v1705_v11  ;;  %v1755_v21 = vmul.f32 %v1733_v22, %v1706_v16  ;;  %v3577_v3 = vld.sshfl [vmem:[#allocation2 + $0x50] sm:$0x33 pattern:$0x75316420] }
 0x13d   :  { %v1756_v60 = vmul.f32 %v1729_v19, %v1707_v46  ;;  %v1757_v28 = vmul.f32 %v1733_v22, %v1708_v31  ;;  %v1758_v38 = vadd.f32 %v1738_v32, %v1671_v43  ;;  %v1759_v8 = vadd.f32 %v1739_v57, %v1672_v10  ;;  %v1785_v43 = vld [vmem:[#allocation5 + $0x340] sm:$0xff]  ;;  %v5773_v57 = vld [vmem:[#allocation13_spill] sm:$0xff] }
 0x13e   :  { %v1760_v7 = vadd.f32 %v1740_v40, %v1673_v4  ;;  %v1761_v30 = vadd.f32 %v1741_v63, %v1674_v25  ;;  %v1762_v9 = vadd.f32 %v1742_v29, %v1675_v52  ;;  %v1763_v49 = vadd.f32 %v1743_v50, %v1676_v26  ;;  %v4636_v26 = vld [vmem:[#allocation5 + $0x348] sm:$0xff] }
 0x13f   :  { %v1764_v5 = vadd.f32 %v1744_v1, %v1677_v18  ;;  %v1765_v14 = vadd.f32 %v1745_v55, %v1678_v61  ;;  %v1766_v36 = vadd.f32 %v1746_v47, %v1679_v51  ;;  %v1767_v54 = vadd.f32 %v1747_v17, %v1680_v24  ;;  %5769 = vst [vmem:[#allocation14_spill] sm:$0xff] %v4636_v26 }
 0x140   :  { %v1768_v33 = vadd.f32 %v1748_v20, %v1681_v42  ;;  %v1769_v23 = vadd.f32 %v1749_v58, %v1682_v62  ;;  %v1770_v45 = vadd.f32 %v1750_v56, %v1683_v27  ;;  %v1771_v11 = vadd.f32 %v1751_v41, %v1684_v35  ;;  %v4639_v42 = vld [vmem:[#allocation5 + $0x350] sm:$0xff] }
 0x141   :  { %v1772_v16 = vadd.f32 %v1752_v53, %v1685_v37  ;;  %v1773_v46 = vadd.f32 %v1753_v48, %v1686_v13  ;;  %v1774_v31 = vadd.f32 %v1754_v34, %v1687_v59  ;;  %v1775_v10 = vadd.f32 %v1755_v21, %v1688_v6 }
 0x142   :  { %v1776_v4 = vadd.f32 %v1756_v60, %v1689_v15  ;;  %v1777_v25 = vadd.f32 %v1757_v28, %v1690_v0  ;;  %v1790_v52 = vunpack.c.l.bf16 %v1783_v44  ;;  %v1791_v18 = vunpack.c.h.bf16 %v1783_v44  ;;  %v5770_v0 = vld [vmem:[#allocation12_spill] sm:$0xff] }
 0x143   :  { %v1792_v61 = vunpack.c.l.bf16 %v1784_v39  ;;  %v1804_v51 = vcombine.high %v3577_v3, %v3577_v3  ;;  %v1808_v24 = vrot.slane %v3577_v3, %v3726_v2  ;;  %v1793_v62 = vunpack.c.h.bf16 %v1784_v39 }
 0x144   :  { %v1794_v27 = vunpack.c.l.bf16 %v1785_v43  ;;  %v1795_v35 = vunpack.c.h.bf16 %v1785_v43  ;;  %v1812_v37 = vrot.slane %v3577_v3, %v5753_v12  ;;  %v5771_v44 = vunpack.c.l.bf16 %v5770_v0 }
 0x145   :  { %v1816_v13 = vrot.slane %v1804_v51, %v3726_v2  ;;  %v1820_v59 = vrot.slane %v1804_v51, %v5753_v12  ;;  %v5772_v22 = vunpack.c.h.bf16 %v5770_v0  ;;  %v5774_v40 = vunpack.c.l.bf16 %v5773_v57  ;;  %v1870_v12 = vld [vmem:[#allocation5 + $0x358] sm:$0xff] }
 0x146   :  { %v1825_v19 = vmul.f32 %v1808_v24, %v5771_v44  ;;  %v5775_v50 = vunpack.c.h.bf16 %v5773_v57  ;;  %v1829_v55 = vmul.f32 %v1808_v24, %v1790_v52  ;;  %v1830_v47 = vmul.f32 %v1812_v37, %v1791_v18 }
 0x147   :  { %v1826_v32 = vmul.f32 %v1812_v37, %v5772_v22  ;;  %v1827_v63 = vmul.f32 %v1808_v24, %v5774_v40  ;;  %v1831_v17 = vmul.f32 %v1808_v24, %v1792_v61  ;;  %v1832_v20 = vmul.f32 %v1812_v37, %v1793_v62 }
 0x148   :  { %v1828_v1 = vmul.f32 %v1812_v37, %v5775_v50  ;;  %v1833_v58 = vmul.f32 %v1808_v24, %v1794_v27  ;;  %v1834_v56 = vmul.f32 %v1812_v37, %v1795_v35  ;;  %v5776_v41 = vmov %v5771_v44 }
 0x149   :  { %v1835_v53 = vmul.f32 %v1816_v13, %v5776_v41  ;;  %v5777_v48 = vmov %v5772_v22  ;;  %v5778_v21 = vmov %v5774_v40  ;;  %v5779_v28 = vmov %v5775_v50 }
 0x14a   :  { %v1836_v34 = vmul.f32 %v1820_v59, %v5777_v48  ;;  %v1837_v60 = vmul.f32 %v1816_v13, %v5778_v21  ;;  %v1838_v3 = vmul.f32 %v1820_v59, %v5779_v28  ;;  %v1839_v39 = vmul.f32 %v1816_v13, %v1790_v52 }
 0x14b   :  { %v1840_v43 = vmul.f32 %v1820_v59, %v1791_v18  ;;  %v1841_v51 = vmul.f32 %v1816_v13, %v1792_v61  ;;  %v1842_v44 = vmul.f32 %v1820_v59, %v1793_v62  ;;  %v1843_v22 = vmul.f32 %v1816_v13, %v1794_v27  ;;  %v5780_v27 = vld [vmem:[#allocation11_spill] sm:$0xff] }
 0x14c   :  { %v1844_v40 = vmul.f32 %v1820_v59, %v1795_v35  ;;  %v1845_v24 = vadd.f32 %v1825_v19, %v1758_v38  ;;  %v1846_v37 = vadd.f32 %v1826_v32, %v1759_v8  ;;  %v1847_v50 = vadd.f32 %v1827_v63, %v1760_v7  ;;  %v3578_v38 = vld.sshfl [vmem:[#allocation2 + $0x54] sm:$0x33 pattern:$0x75316420]  ;;  %v1871_v8 = vld [vmem:[#allocation5 + $0x360] sm:$0xff]  ;;  %v5781_v19 = vld [vmem:[#allocation14_spill] sm:$0xff] }
 0x14d   :  { %v1848_v29 = vadd.f32 %v1828_v1, %v1761_v30  ;;  %v1849_v41 = vadd.f32 %v1829_v55, %v1762_v9  ;;  %v1850_v15 = vadd.f32 %v1830_v47, %v1763_v49  ;;  %v1851_v0 = vadd.f32 %v1831_v17, %v1764_v5  ;;  %v1872_v5 = vld [vmem:[#allocation5 + $0x368] sm:$0xff] }
 0x14e   :  { %v1852_v48 = vadd.f32 %v1832_v20, %v1765_v14  ;;  %v1853_v6 = vadd.f32 %v1833_v58, %v1766_v36  ;;  %v1854_v26 = vadd.f32 %v1834_v56, %v1767_v54  ;;  %v1855_v21 = vadd.f32 %v1835_v53, %v1768_v33  ;;  %v4671_v14 = vld [vmem:[#allocation5 + $0x370] sm:$0xff] }
 0x14f   :  { %v4663_v57 = vadd.f32 %v1836_v34, %v1769_v23  ;;  %v4665_v52 = vadd.f32 %v1837_v60, %v1770_v45  ;;  %v4667_v18 = vadd.f32 %v1838_v3, %v1771_v11  ;;  %v4669_v61 = vadd.f32 %v1839_v39, %v1772_v16  ;;  %v4674_v45 = vld [vmem:[#allocation5 + $0x378] sm:$0xff] }
 0x150   :  { %v1860_v7 = vadd.f32 %v1840_v43, %v1773_v46  ;;  %v1861_v30 = vadd.f32 %v1841_v51, %v1774_v31  ;;  %v1862_v9 = vadd.f32 %v1842_v44, %v1775_v10  ;;  %v1863_v49 = vadd.f32 %v1843_v22, %v1776_v4 }
 0x151   :  { %v1864_v36 = vadd.f32 %v1844_v40, %v1777_v25  ;;  %v1876_v54 = vunpack.c.h.bf16 %v4639_v42  ;;  %v1877_v23 = vunpack.c.l.bf16 %v1870_v12  ;;  %v1878_v33 = vunpack.c.h.bf16 %v1870_v12 }
 0x152   :  { %v1879_v11 = vunpack.c.l.bf16 %v1871_v8  ;;  %v1891_v62 = vcombine.high %v3578_v38, %v3578_v38  ;;  %v1895_v16 = vrot.slane %v3578_v38, %v3726_v2  ;;  %v1899_v35 = vrot.slane %v3578_v38, %v5780_v27 }
 0x153   :  { %v1880_v46 = vunpack.c.h.bf16 %v1871_v8  ;;  %v1881_v31 = vunpack.c.l.bf16 %v1872_v5  ;;  %v1882_v10 = vunpack.c.h.bf16 %v1872_v5  ;;  %v1960_v4 = vunpack.c.l.bf16 %v4671_v14 }
 0x154   :  { %v1903_v13 = vrot.slane %v1891_v62, %v3726_v2  ;;  %v1907_v25 = vrot.slane %v1891_v62, %v5780_v27  ;;  %v1961_v59 = vunpack.c.h.bf16 %v4671_v14  ;;  %v1962_v12 = vunpack.c.l.bf16 %v4674_v45 }
 0x155   :  { %v5782_v32 = vunpack.c.l.bf16 %v5781_v19  ;;  %v5783_v1 = vunpack.c.h.bf16 %v5781_v19  ;;  %v5784_v47 = vunpack.c.l.bf16 %v4639_v42  ;;  %v1915_v58 = vmul.f32 %v1899_v35, %v1876_v54 }
 0x156   :  { %v1916_v56 = vmul.f32 %v1895_v16, %v1877_v23  ;;  %v1917_v53 = vmul.f32 %v1899_v35, %v1878_v33  ;;  %v1918_v34 = vmul.f32 %v1895_v16, %v1879_v11  ;;  %v1919_v60 = vmul.f32 %v1899_v35, %v1880_v46 }
 0x157   :  { %v1912_v63 = vmul.f32 %v1895_v16, %v5782_v32  ;;  %v1913_v55 = vmul.f32 %v1899_v35, %v5783_v1  ;;  %v1914_v17 = vmul.f32 %v1895_v16, %v5784_v47  ;;  %v1920_v28 = vmul.f32 %v1895_v16, %v1881_v31 }
 0x158   :  { %v1921_v3 = vmul.f32 %v1899_v35, %v1882_v10  ;;  %v5785_v39 = vmov %v5782_v32  ;;  %v5786_v51 = vmov %v5783_v1  ;;  %v5787_v22 = vmov %v5784_v47 }
 0x159   :  { %v1922_v43 = vmul.f32 %v1903_v13, %v5785_v39  ;;  %v1923_v44 = vmul.f32 %v1907_v25, %v5786_v51  ;;  %v1924_v40 = vmul.f32 %v1903_v13, %v5787_v22  ;;  %v1925_v38 = vmul.f32 %v1907_v25, %v1876_v54 }
 0x15a   :  { %v1926_v8 = vmul.f32 %v1903_v13, %v1877_v23  ;;  %v1927_v5 = vmul.f32 %v1907_v25, %v1878_v33  ;;  %v1928_v62 = vmul.f32 %v1903_v13, %v1879_v11  ;;  %v1929_v32 = vmul.f32 %v1907_v25, %v1880_v46  ;;  %v1958_v11 = vld [vmem:[#allocation5 + $0x388] sm:$0xff]  ;;  %v4738_v46 = vld [vmem:[#allocation5 + $0x398] sm:$0xff] }
 0x15b   :  { %v1930_v1 = vmul.f32 %v1903_v13, %v1881_v31  ;;  %v1931_v47 = vmul.f32 %v1907_v25, %v1882_v10  ;;  %v4696_v20 = vadd.f32 %v1912_v63, %v1845_v24  ;;  %v4698_v16 = vadd.f32 %v1913_v55, %v1846_v37  ;;  %v1957_v37 = vld [vmem:[#allocation5 + $0x380] sm:$0xff]  ;;  %v4744_v63 = vld [vmem:[#allocation5 + $0x3a8] sm:$0xff] }
 0x15c   :  { %v4700_v35 = vadd.f32 %v1914_v17, %v1847_v50  ;;  %v4702_v39 = vadd.f32 %v1915_v58, %v1848_v29  ;;  %v4704_v19 = vadd.f32 %v1916_v56, %v1849_v41  ;;  %v4706_v51 = vadd.f32 %v1917_v53, %v1850_v15  ;;  %v4740_v13 = vld [vmem:[#allocation5 + $0x3a0] sm:$0xff] }
 0x15d   :  { %v4708_v42 = vadd.f32 %v1918_v34, %v1851_v0  ;;  %v4710_v54 = vadd.f32 %v1919_v60, %v1852_v48  ;;  %v4712_v23 = vadd.f32 %v1920_v28, %v1853_v6  ;;  %v4714_v33 = vadd.f32 %v1921_v3, %v1854_v26  ;;  %v3579_v6 = vld.sshfl [vmem:[#allocation2 + $0x58] sm:$0x33 pattern:$0x75316420] }
 0x15e   :  { %v4716_v24 = vadd.f32 %v1922_v43, %v1855_v21  ;;  %v4719_v50 = vadd.f32 %v1923_v44, %v4663_v57  ;;  %v4722_v29 = vadd.f32 %v1924_v40, %v4665_v52  ;;  %v4725_v15 = vadd.f32 %v1925_v38, %v4667_v18  ;;  %v1959_v57 = vld [vmem:[#allocation5 + $0x390] sm:$0xff] }
 0x15f   :  { %v4728_v41 = vadd.f32 %v1926_v8, %v4669_v61  ;;  %v4730_v0 = vadd.f32 %v1927_v5, %v1860_v7  ;;  %v4732_v26 = vadd.f32 %v1928_v62, %v1861_v30  ;;  %v4734_v48 = vadd.f32 %v1929_v32, %v1862_v9 }
 0x160   :  { %v4736_v21 = vadd.f32 %v1930_v1, %v1863_v49  ;;  %v1951_v52 = vadd.f32 %v1931_v47, %v1864_v36  ;;  %v1964_v31 = vunpack.c.l.bf16 %v1957_v37  ;;  %v1965_v10 = vunpack.c.h.bf16 %v1957_v37 }
 0x161   :  { %v1966_v18 = vunpack.c.l.bf16 %v1958_v11  ;;  %v1967_v61 = vunpack.c.h.bf16 %v1958_v11  ;;  %v1978_v25 = vcombine.high %v3579_v6, %v3579_v6  ;;  %v1982_v7 = vrot.slane %v3579_v6, %v3726_v2 }
 0x162   :  { %v1986_v30 = vrot.slane %v3579_v6, %v5780_v27  ;;  %v1968_v9 = vunpack.c.l.bf16 %v1959_v57  ;;  %v1969_v49 = vunpack.c.h.bf16 %v1959_v57  ;;  %v2047_v55 = vunpack.c.l.bf16 %v4738_v46 }
 0x163   :  { %v2048_v17 = vunpack.c.h.bf16 %v4738_v46  ;;  %v1990_v36 = vrot.slane %v1978_v25, %v3726_v2  ;;  %v1994_v58 = vrot.slane %v1978_v25, %v5780_v27  ;;  %v2049_v56 = vunpack.c.l.bf16 %v4740_v13 }
 0x164   :  { %v1999_v34 = vmul.f32 %v1982_v7, %v1960_v4  ;;  %v2000_v60 = vmul.f32 %v1986_v30, %v1961_v59  ;;  %v2001_v28 = vmul.f32 %v1982_v7, %v1962_v12  ;;  %v5788_v43 = vunpack.c.h.bf16 %v4674_v45 }
 0x165   :  { %v2003_v22 = vmul.f32 %v1982_v7, %v1964_v31  ;;  %v2004_v40 = vmul.f32 %v1986_v30, %v1965_v10  ;;  %v2005_v38 = vmul.f32 %v1982_v7, %v1966_v18  ;;  %v2006_v8 = vmul.f32 %v1986_v30, %v1967_v61 }
 0x166   :  { %v2002_v44 = vmul.f32 %v1986_v30, %v5788_v43  ;;  %v2007_v5 = vmul.f32 %v1982_v7, %v1968_v9  ;;  %v2008_v62 = vmul.f32 %v1986_v30, %v1969_v49  ;;  %v2009_v32 = vmul.f32 %v1990_v36, %v1960_v4 }
 0x167   :  { %v2010_v1 = vmul.f32 %v1994_v58, %v1961_v59  ;;  %v2011_v47 = vmul.f32 %v1990_v36, %v1962_v12  ;;  %v5789_v37 = vmov %v5788_v43  ;;  %v2013_v6 = vmul.f32 %v1990_v36, %v1964_v31 }
 0x168   :  { %v2012_v11 = vmul.f32 %v1994_v58, %v5789_v37  ;;  %v2014_v57 = vmul.f32 %v1994_v58, %v1965_v10  ;;  %v2015_v25 = vmul.f32 %v1990_v36, %v1966_v18  ;;  %v2016_v43 = vmul.f32 %v1994_v58, %v1967_v61  ;;  %v3580_v61 = vld.sshfl [vmem:[#allocation2 + $0x5c] sm:$0x33 pattern:$0x75316420] }
 0x169   :  { %v2017_v3 = vmul.f32 %v1990_v36, %v1968_v9  ;;  %v2018_v53 = vmul.f32 %v1994_v58, %v1969_v49  ;;  %v2019_v7 = vadd.f32 %v1999_v34, %v4696_v20  ;;  %v2020_v30 = vadd.f32 %v2000_v60, %v4698_v16  ;;  %v2045_v16 = vld [vmem:[#allocation5 + $0x3b0] sm:$0xff]  ;;  %v2046_v9 = vld [vmem:[#allocation5 + $0x3b8] sm:$0xff]  ;;  %v4791_v58 = vld [vmem:[#allocation5 + $0x3c8] sm:$0xff] }
 0x16a   :  { %v2021_v4 = vadd.f32 %v2001_v28, %v4700_v35  ;;  %v2022_v14 = vadd.f32 %v2002_v44, %v4702_v39  ;;  %v2023_v59 = vadd.f32 %v2003_v22, %v4704_v19  ;;  %v2024_v12 = vadd.f32 %v2004_v40, %v4706_v51  ;;  %5791 = vst [vmem:[#allocation13_spill] sm:$0xff] %v4791_v58  ;;  %v2131_v58 = vld [vmem:[#allocation5 + $0x3d0] sm:$0xff] }
 0x16b   :  { %v2025_v45 = vadd.f32 %v2005_v38, %v4708_v42  ;;  %v2026_v31 = vadd.f32 %v2006_v8, %v4710_v54  ;;  %v2027_v10 = vadd.f32 %v2007_v5, %v4712_v23  ;;  %v2028_v18 = vadd.f32 %v2008_v62, %v4714_v33 }
 0x16c   :  { %v2029_v20 = vadd.f32 %v2009_v32, %v4716_v24  ;;  %v2030_v35 = vadd.f32 %v2010_v1, %v4719_v50  ;;  %v2031_v39 = vadd.f32 %v2011_v47, %v4722_v29  ;;  %v2032_v19 = vadd.f32 %v2012_v11, %v4725_v15  ;;  %v4788_v24 = vld [vmem:[#allocation5 + $0x3c0] sm:$0xff] }
 0x16d   :  { %v2033_v51 = vadd.f32 %v2013_v6, %v4728_v41  ;;  %v2034_v42 = vadd.f32 %v2014_v57, %v4730_v0  ;;  %v2035_v54 = vadd.f32 %v2015_v25, %v4732_v26  ;;  %v2036_v23 = vadd.f32 %v2016_v43, %v4734_v48  ;;  %5790 = vst [vmem:[#allocation12_spill] sm:$0xff] %v4788_v24 }
 0x16e   :  { %v2037_v33 = vadd.f32 %v2017_v3, %v4736_v21  ;;  %v2038_v49 = vadd.f32 %v2018_v53, %v1951_v52  ;;  %v2052_v50 = vunpack.c.h.bf16 %v4744_v63  ;;  %v2053_v36 = vunpack.c.l.bf16 %v2045_v16 }
 0x16f   :  { %v2065_v29 = vcombine.high %v3580_v61, %v3580_v61  ;;  %v2054_v15 = vunpack.c.h.bf16 %v2045_v16  ;;  %v2055_v41 = vunpack.c.l.bf16 %v2046_v9  ;;  %v2069_v34 = vrot.slane %v3580_v61, %v3726_v2 }
 0x170   :  { %v2073_v0 = vrot.slane %v3580_v61, %v5780_v27  ;;  %v2056_v26 = vunpack.c.h.bf16 %v2046_v9  ;;  %v5792_v40 = vunpack.c.h.bf16 %v4740_v13  ;;  %v5793_v8 = vunpack.c.l.bf16 %v4744_v63 }
 0x171   :  { %v2077_v48 = vrot.slane %v2065_v29, %v3726_v2  ;;  %v2081_v21 = vrot.slane %v2065_v29, %v5780_v27  ;;  %v2086_v52 = vmul.f32 %v2069_v34, %v2047_v55  ;;  %v2088_v22 = vmul.f32 %v2069_v34, %v2049_v56 }
 0x172   :  { %v2087_v44 = vmul.f32 %v2073_v0, %v2048_v17  ;;  %v2089_v38 = vmul.f32 %v2073_v0, %v5792_v40  ;;  %v2090_v5 = vmul.f32 %v2069_v34, %v5793_v8  ;;  %v2091_v62 = vmul.f32 %v2073_v0, %v2052_v50 }
 0x173   :  { %v2092_v32 = vmul.f32 %v2069_v34, %v2053_v36  ;;  %v2093_v1 = vmul.f32 %v2073_v0, %v2054_v15  ;;  %v2094_v47 = vmul.f32 %v2069_v34, %v2055_v41  ;;  %v2095_v37 = vmul.f32 %v2073_v0, %v2056_v26 }
 0x174   :  { %v2096_v11 = vmul.f32 %v2077_v48, %v2047_v55  ;;  %v2097_v6 = vmul.f32 %v2081_v21, %v2048_v17  ;;  %v2098_v57 = vmul.f32 %v2077_v48, %v2049_v56  ;;  %v5794_v25 = vmov %v5792_v40 }
 0x175   :  { %v2099_v43 = vmul.f32 %v2081_v21, %v5794_v25  ;;  %v5795_v61 = vmov %v5793_v8  ;;  %v2101_v9 = vmul.f32 %v2081_v21, %v2052_v50  ;;  %v2102_v29 = vmul.f32 %v2077_v48, %v2053_v36  ;;  %v2132_v50 = vld [vmem:[#allocation5 + $0x3d8] sm:$0xff] }
 0x176   :  { %v2100_v16 = vmul.f32 %v2077_v48, %v5795_v61  ;;  %v2103_v40 = vmul.f32 %v2081_v21, %v2054_v15  ;;  %v2104_v34 = vmul.f32 %v2077_v48, %v2055_v41  ;;  %v2105_v0 = vmul.f32 %v2081_v21, %v2056_v26  ;;  %v3581_v61 = vld.sshfl [vmem:[#allocation2 + $0x60] sm:$0x33 pattern:$0x75316420] }
 0x177   :  { %v2106_v8 = vadd.f32 %v2086_v52, %v2019_v7  ;;  %v2107_v3 = vadd.f32 %v2087_v44, %v2020_v30  ;;  %v2108_v55 = vadd.f32 %v2088_v22, %v2021_v4  ;;  %v2109_v28 = vadd.f32 %v2089_v38, %v2022_v14  ;;  %v2133_v7 = vld [vmem:[#allocation5 + $0x3e0] sm:$0xff]  ;;  %v5800_v44 = vld [vmem:[#allocation13_spill] sm:$0xff] }
 0x178   :  { %v2110_v46 = vadd.f32 %v2090_v5, %v2023_v59  ;;  %v2111_v17 = vadd.f32 %v2091_v62, %v2024_v12  ;;  %v2112_v53 = vadd.f32 %v2092_v32, %v2025_v45  ;;  %v2113_v60 = vadd.f32 %v2093_v1, %v2026_v31  ;;  %v4821_v12 = vld [vmem:[#allocation5 + $0x3e8] sm:$0xff] }
 0x179   :  { %v2114_v56 = vadd.f32 %v2094_v47, %v2027_v10  ;;  %v2115_v13 = vadd.f32 %v2095_v37, %v2028_v18  ;;  %v2116_v25 = vadd.f32 %v2096_v11, %v2029_v20  ;;  %v2117_v24 = vadd.f32 %v2097_v6, %v2030_v35  ;;  %5796 = vst [vmem:[#allocation14_spill] sm:$0xff] %v4821_v12  ;;  %v4824_v20 = vld [vmem:[#allocation5 + $0x3f0] sm:$0xff] }
 0x17a   :  { %v2118_v63 = vadd.f32 %v2098_v57, %v2031_v39  ;;  %v2119_v36 = vadd.f32 %v2099_v43, %v2032_v19  ;;  %v2120_v15 = vadd.f32 %v2100_v16, %v2033_v51  ;;  %v2121_v41 = vadd.f32 %v2101_v9, %v2034_v42 }
 0x17b   :  { %v2122_v26 = vadd.f32 %v2102_v29, %v2035_v54  ;;  %v2123_v30 = vadd.f32 %v2103_v40, %v2036_v23  ;;  %v2124_v4 = vadd.f32 %v2104_v34, %v2037_v33  ;;  %v2125_v14 = vadd.f32 %v2105_v0, %v2038_v49  ;;  %v5797_v49 = vld [vmem:[#allocation12_spill] sm:$0xff] }
 0x17c   :  { %v2138_v59 = vunpack.c.l.bf16 %v2131_v58  ;;  %v2139_v45 = vunpack.c.h.bf16 %v2131_v58  ;;  %v2140_v31 = vunpack.c.l.bf16 %v2132_v50  ;;  %v2152_v10 = vcombine.high %v3581_v61, %v3581_v61 }
 0x17d   :  { %v2156_v18 = vrot.slane %v3581_v61, %v3726_v2  ;;  %v2141_v35 = vunpack.c.h.bf16 %v2132_v50  ;;  %v2142_v39 = vunpack.c.l.bf16 %v2133_v7  ;;  %v2143_v19 = vunpack.c.h.bf16 %v2133_v7 }
 0x17e   :  { %v2160_v51 = vrot.slane %v3581_v61, %v5780_v27  ;;  %v2164_v42 = vrot.slane %v2152_v10, %v3726_v2  ;;  %v2168_v54 = vrot.slane %v2152_v10, %v5780_v27  ;;  %v5798_v58 = vunpack.c.l.bf16 %v5797_v49  ;;  %v2218_v27 = vld [vmem:[#allocation5 + $0x3f8] sm:$0xff] }
 0x17f   :  { %v5799_v21 = vunpack.c.h.bf16 %v5797_v49  ;;  %v5801_v22 = vunpack.c.l.bf16 %v5800_v44  ;;  %v5802_v62 = vunpack.c.h.bf16 %v5800_v44  ;;  %v2177_v1 = vmul.f32 %v2156_v18, %v2138_v59 }
 0x180   :  { %v2173_v48 = vmul.f32 %v2156_v18, %v5798_v58  ;;  %v2178_v47 = vmul.f32 %v2160_v51, %v2139_v45  ;;  %v2179_v37 = vmul.f32 %v2156_v18, %v2140_v31  ;;  %v2180_v11 = vmul.f32 %v2160_v51, %v2141_v35 }
 0x181   :  { %v2174_v52 = vmul.f32 %v2160_v51, %v5799_v21  ;;  %v2175_v38 = vmul.f32 %v2156_v18, %v5801_v22  ;;  %v2176_v32 = vmul.f32 %v2160_v51, %v5802_v62  ;;  %v2181_v6 = vmul.f32 %v2156_v18, %v2142_v39 }
 0x182   :  { %v2182_v57 = vmul.f32 %v2160_v51, %v2143_v19  ;;  %v5803_v43 = vmov %v5798_v58  ;;  %v5804_v9 = vmov %v5799_v21  ;;  %v5805_v40 = vmov %v5801_v22 }
 0x183   :  { %v2183_v16 = vmul.f32 %v2164_v42, %v5803_v43  ;;  %v2184_v29 = vmul.f32 %v2168_v54, %v5804_v9  ;;  %v2185_v34 = vmul.f32 %v2164_v42, %v5805_v40  ;;  %v5806_v0 = vmov %v5802_v62 }
 0x184   :  { %v2186_v61 = vmul.f32 %v2168_v54, %v5806_v0  ;;  %v2187_v50 = vmul.f32 %v2164_v42, %v2138_v59  ;;  %v2188_v7 = vmul.f32 %v2168_v54, %v2139_v45  ;;  %v2189_v10 = vmul.f32 %v2164_v42, %v2140_v31 }
 0x185   :  { %v2190_v58 = vmul.f32 %v2168_v54, %v2141_v35  ;;  %v2191_v21 = vmul.f32 %v2164_v42, %v2142_v39  ;;  %v2192_v22 = vmul.f32 %v2168_v54, %v2143_v19  ;;  %v2193_v18 = vadd.f32 %v2173_v48, %v2106_v8  ;;  %v3582_v8 = vld.sshfl [vmem:[#allocation2 + $0x64] sm:$0x33 pattern:$0x75316420]  ;;  %v5808_v48 = vld [vmem:[#allocation14_spill] sm:$0xff] }
 0x186   :  { %v2194_v51 = vadd.f32 %v2174_v52, %v2107_v3  ;;  %v2195_v62 = vadd.f32 %v2175_v38, %v2108_v55  ;;  %v2196_v5 = vadd.f32 %v2176_v32, %v2109_v28  ;;  %v2197_v43 = vadd.f32 %v2177_v1, %v2110_v46  ;;  %v2219_v3 = vld [vmem:[#allocation5 + $0x400] sm:$0xff] }
 0x187   :  { %v2198_v33 = vadd.f32 %v2178_v47, %v2111_v17  ;;  %v2199_v49 = vadd.f32 %v2179_v37, %v2112_v53  ;;  %v2200_v9 = vadd.f32 %v2180_v11, %v2113_v60  ;;  %v2201_v23 = vadd.f32 %v2181_v6, %v2114_v56  ;;  %v2220_v53 = vld [vmem:[#allocation5 + $0x408] sm:$0xff]  ;;  %v4856_v60 = vld [vmem:[#allocation5 + $0x410] sm:$0xff]  ;;  %v5807_v39 = vld [vmem:[#allocation11_spill] sm:$0xff] }
 0x188   :  { %v2202_v12 = vadd.f32 %v2182_v57, %v2115_v13  ;;  %v2203_v40 = vadd.f32 %v2183_v16, %v2116_v25  ;;  %v4848_v44 = vadd.f32 %v2184_v29, %v2117_v24  ;;  %v4850_v59 = vadd.f32 %v2185_v34, %v2118_v63  ;;  %v4859_v63 = vld [vmem:[#allocation5 + $0x418] sm:$0xff] }
 0x189   :  { %v4852_v45 = vadd.f32 %v2186_v61, %v2119_v36  ;;  %v4854_v31 = vadd.f32 %v2187_v50, %v2120_v15  ;;  %v2208_v55 = vadd.f32 %v2188_v7, %v2121_v41  ;;  %v2209_v28 = vadd.f32 %v2189_v10, %v2122_v26 }
 0x18a   :  { %v2210_v46 = vadd.f32 %v2190_v58, %v2123_v30  ;;  %v2211_v17 = vadd.f32 %v2191_v21, %v2124_v4  ;;  %v2212_v56 = vadd.f32 %v2192_v22, %v2125_v14  ;;  %v2224_v13 = vunpack.c.h.bf16 %v4824_v20 }
 0x18b   :  { %v2225_v24 = vunpack.c.l.bf16 %v2218_v27  ;;  %v2226_v25 = vunpack.c.h.bf16 %v2218_v27  ;;  %v2227_v36 = vunpack.c.l.bf16 %v2219_v3  ;;  %v2239_v35 = vcombine.high %v3582_v8, %v3582_v8 }
 0x18c   :  { %v2243_v15 = vrot.slane %v3582_v8, %v3726_v2  ;;  %v2247_v19 = vrot.slane %v3582_v8, %v5807_v39  ;;  %v2228_v41 = vunpack.c.h.bf16 %v2219_v3  ;;  %v2229_v26 = vunpack.c.l.bf16 %v2220_v53 }
 0x18d   :  { %v2230_v30 = vunpack.c.h.bf16 %v2220_v53  ;;  %v2308_v4 = vunpack.c.l.bf16 %v4856_v60  ;;  %v2251_v42 = vrot.slane %v2239_v35, %v3726_v2  ;;  %v2255_v14 = vrot.slane %v2239_v35, %v5807_v39 }
 0x18e   :  { %v2309_v54 = vunpack.c.h.bf16 %v4856_v60  ;;  %v2310_v27 = vunpack.c.l.bf16 %v4859_v63  ;;  %v5809_v52 = vunpack.c.l.bf16 %v5808_v48  ;;  %v5810_v32 = vunpack.c.h.bf16 %v5808_v48 }
 0x18f   :  { %v5811_v47 = vunpack.c.l.bf16 %v4824_v20  ;;  %v2263_v6 = vmul.f32 %v2247_v19, %v2224_v13  ;;  %v2264_v57 = vmul.f32 %v2243_v15, %v2225_v24  ;;  %v2265_v16 = vmul.f32 %v2247_v19, %v2226_v25 }
 0x190   :  { %v2260_v38 = vmul.f32 %v2243_v15, %v5809_v52  ;;  %v2261_v1 = vmul.f32 %v2247_v19, %v5810_v32  ;;  %v2266_v29 = vmul.f32 %v2243_v15, %v2227_v36  ;;  %v2267_v34 = vmul.f32 %v2247_v19, %v2228_v41 }
 0x191   :  { %v2262_v37 = vmul.f32 %v2243_v15, %v5811_v47  ;;  %v2268_v0 = vmul.f32 %v2243_v15, %v2229_v26  ;;  %v2269_v61 = vmul.f32 %v2247_v19, %v2230_v30  ;;  %v5812_v50 = vmov %v5809_v52 }
 0x192   :  { %v2270_v7 = vmul.f32 %v2251_v42, %v5812_v50  ;;  %v5813_v10 = vmov %v5810_v32  ;;  %v5814_v21 = vmov %v5811_v47  ;;  %v2273_v8 = vmul.f32 %v2255_v14, %v2224_v13 }
 0x193   :  { %v2271_v58 = vmul.f32 %v2255_v14, %v5813_v10  ;;  %v2272_v22 = vmul.f32 %v2251_v42, %v5814_v21  ;;  %v2274_v3 = vmul.f32 %v2251_v42, %v2225_v24  ;;  %v2275_v53 = vmul.f32 %v2255_v14, %v2226_v25 }
 0x194   :  { %v2276_v35 = vmul.f32 %v2251_v42, %v2227_v36  ;;  %v2277_v52 = vmul.f32 %v2255_v14, %v2228_v41  ;;  %v2278_v32 = vmul.f32 %v2251_v42, %v2229_v26  ;;  %v2279_v47 = vmul.f32 %v2255_v14, %v2230_v30  ;;  %v2306_v36 = vld [vmem:[#allocation5 + $0x428] sm:$0xff]  ;;  %v4923_v41 = vld [vmem:[#allocation5 + $0x438] sm:$0xff]  ;;  %v4925_v42 = vld [vmem:[#allocation5 + $0x440] sm:$0xff] }
 0x195   :  { %v4881_v11 = vadd.f32 %v2260_v38, %v2193_v18  ;;  %v4883_v15 = vadd.f32 %v2261_v1, %v2194_v51  ;;  %v4885_v19 = vadd.f32 %v2262_v37, %v2195_v62  ;;  %v4887_v50 = vadd.f32 %v2263_v6, %v2196_v5  ;;  %v2305_v51 = vld [vmem:[#allocation5 + $0x420] sm:$0xff]  ;;  %v4929_v38 = vld [vmem:[#allocation5 + $0x448] sm:$0xff] }
 0x196   :  { %v4889_v48 = vadd.f32 %v2264_v57, %v2197_v43  ;;  %v4891_v10 = vadd.f32 %v2265_v16, %v2198_v33  ;;  %v4893_v20 = vadd.f32 %v2266_v29, %v2199_v49  ;;  %v4895_v13 = vadd.f32 %v2267_v34, %v2200_v9 }
 0x197   :  { %v4897_v24 = vadd.f32 %v2268_v0, %v2201_v23  ;;  %v4899_v25 = vadd.f32 %v2269_v61, %v2202_v12  ;;  %v4901_v18 = vadd.f32 %v2270_v7, %v2203_v40  ;;  %v4904_v62 = vadd.f32 %v2271_v58, %v4848_v44  ;;  %v3583_v23 = vld.sshfl [vmem:[#allocation2 + $0x68] sm:$0x33 pattern:$0x75316420]  ;;  %v2307_v44 = vld [vmem:[#allocation5 + $0x430] sm:$0xff] }
 0x198   :  { %v4907_v5 = vadd.f32 %v2272_v22, %v4850_v59  ;;  %v4910_v33 = vadd.f32 %v2273_v8, %v4852_v45  ;;  %v4913_v43 = vadd.f32 %v2274_v3, %v4854_v31  ;;  %v4915_v49 = vadd.f32 %v2275_v53, %v2208_v55 }
 0x199   :  { %v4917_v12 = vadd.f32 %v2276_v35, %v2209_v28  ;;  %v4919_v9 = vadd.f32 %v2277_v52, %v2210_v46  ;;  %v4921_v40 = vadd.f32 %v2278_v32, %v2211_v17  ;;  %v2299_v59 = vadd.f32 %v2279_v47, %v2212_v56 }
 0x19a   :  { %v2312_v26 = vunpack.c.l.bf16 %v2305_v51  ;;  %v2313_v30 = vunpack.c.h.bf16 %v2305_v51  ;;  %v2314_v45 = vunpack.c.l.bf16 %v2306_v36  ;;  %v2315_v31 = vunpack.c.h.bf16 %v2306_v36 }
 0x19b   :  { %v2326_v14 = vcombine.high %v3583_v23, %v3583_v23  ;;  %v2330_v55 = vrot.slane %v3583_v23, %v3726_v2  ;;  %v2334_v28 = vrot.slane %v3583_v23, %v5807_v39  ;;  %v2316_v46 = vunpack.c.l.bf16 %v2307_v44 }
 0x19c   :  { %v2317_v17 = vunpack.c.h.bf16 %v2307_v44  ;;  %v2395_v1 = vunpack.c.l.bf16 %v4923_v41  ;;  %v2396_v37 = vunpack.c.h.bf16 %v4923_v41  ;;  %v2397_v57 = vunpack.c.l.bf16 %v4925_v42 }
 0x19d   :  { %v2338_v56 = vrot.slane %v2326_v14, %v3726_v2  ;;  %v2342_v6 = vrot.slane %v2326_v14, %v5807_v39  ;;  %v2347_v29 = vmul.f32 %v2330_v55, %v2308_v4  ;;  %v2348_v34 = vmul.f32 %v2334_v28, %v2309_v54 }
 0x19e   :  { %v2349_v0 = vmul.f32 %v2330_v55, %v2310_v27  ;;  %v5815_v7 = vunpack.c.h.bf16 %v4859_v63  ;;  %v2351_v21 = vmul.f32 %v2330_v55, %v2312_v26  ;;  %v2352_v22 = vmul.f32 %v2334_v28, %v2313_v30 }
 0x19f   :  { %v2353_v8 = vmul.f32 %v2330_v55, %v2314_v45  ;;  %v2354_v3 = vmul.f32 %v2334_v28, %v2315_v31  ;;  %v2355_v53 = vmul.f32 %v2330_v55, %v2316_v46  ;;  %v2356_v35 = vmul.f32 %v2334_v28, %v2317_v17 }
 0x1a0   :  { %v2350_v58 = vmul.f32 %v2334_v28, %v5815_v7  ;;  %v2357_v52 = vmul.f32 %v2338_v56, %v2308_v4  ;;  %v2358_v32 = vmul.f32 %v2342_v6, %v2309_v54  ;;  %v2359_v47 = vmul.f32 %v2338_v56, %v2310_v27 }
 0x1a1   :  { %v5816_v51 = vmov %v5815_v7  ;;  %v2361_v23 = vmul.f32 %v2338_v56, %v2312_v26  ;;  %v2362_v44 = vmul.f32 %v2342_v6, %v2313_v30  ;;  %v2363_v14 = vmul.f32 %v2338_v56, %v2314_v45 }
 0x1a2   :  { %v2360_v36 = vmul.f32 %v2342_v6, %v5816_v51  ;;  %v2364_v7 = vmul.f32 %v2342_v6, %v2315_v31  ;;  %v2365_v61 = vmul.f32 %v2338_v56, %v2316_v46  ;;  %v2366_v16 = vmul.f32 %v2342_v6, %v2317_v17  ;;  %v3584_v31 = vld.sshfl [vmem:[#allocation2 + $0x6c] sm:$0x33 pattern:$0x75316420]  ;;  %v2394_v46 = vld [vmem:[#allocation5 + $0x458] sm:$0xff] }
 0x1a3   :  { %v2367_v55 = vadd.f32 %v2347_v29, %v4881_v11  ;;  %v2368_v28 = vadd.f32 %v2348_v34, %v4883_v15  ;;  %v2369_v4 = vadd.f32 %v2349_v0, %v4885_v19  ;;  %v2370_v60 = vadd.f32 %v2350_v58, %v4887_v50  ;;  %v2393_v15 = vld [vmem:[#allocation5 + $0x450] sm:$0xff]  ;;  %v4976_v6 = vld [vmem:[#allocation5 + $0x468] sm:$0xff] }
 0x1a4   :  { %v2371_v54 = vadd.f32 %v2351_v21, %v4889_v48  ;;  %v2372_v27 = vadd.f32 %v2352_v22, %v4891_v10  ;;  %v2373_v63 = vadd.f32 %v2353_v8, %v4893_v20  ;;  %v2374_v26 = vadd.f32 %v2354_v3, %v4895_v13  ;;  %5818 = vst [vmem:[#allocation13_spill] sm:$0xff] %v4976_v6  ;;  %v2479_v6 = vld [vmem:[#allocation5 + $0x470] sm:$0xff] }
 0x1a5   :  { %v2375_v30 = vadd.f32 %v2355_v53, %v4897_v24  ;;  %v2376_v45 = vadd.f32 %v2356_v35, %v4899_v25  ;;  %v2377_v11 = vadd.f32 %v2357_v52, %v4901_v18  ;;  %v2378_v19 = vadd.f32 %v2358_v32, %v4904_v62  ;;  %v4973_v18 = vld [vmem:[#allocation5 + $0x460] sm:$0xff] }
 0x1a6   :  { %v2379_v50 = vadd.f32 %v2359_v47, %v4907_v5  ;;  %v2380_v48 = vadd.f32 %v2360_v36, %v4910_v33  ;;  %v2381_v10 = vadd.f32 %v2361_v23, %v4913_v43  ;;  %v2382_v20 = vadd.f32 %v2362_v44, %v4915_v49  ;;  %5817 = vst [vmem:[#allocation12_spill] sm:$0xff] %v4973_v18 }
 0x1a7   :  { %v2383_v13 = vadd.f32 %v2363_v14, %v4917_v12  ;;  %v2384_v24 = vadd.f32 %v2364_v7, %v4919_v9  ;;  %v2385_v25 = vadd.f32 %v2365_v61, %v4921_v40  ;;  %v2386_v17 = vadd.f32 %v2366_v16, %v2299_v59 }
 0x1a8   :  { %v2400_v62 = vunpack.c.h.bf16 %v4929_v38  ;;  %v2401_v56 = vunpack.c.l.bf16 %v2393_v15  ;;  %v2413_v5 = vcombine.high %v3584_v31, %v3584_v31  ;;  %v2402_v33 = vunpack.c.h.bf16 %v2393_v15 }
 0x1a9   :  { %v2403_v43 = vunpack.c.l.bf16 %v2394_v46  ;;  %v2417_v29 = vrot.slane %v3584_v31, %v3726_v2  ;;  %v2421_v49 = vrot.slane %v3584_v31, %v5807_v39  ;;  %v2404_v12 = vunpack.c.h.bf16 %v2394_v46 }
 0x1aa   :  { %v2425_v9 = vrot.slane %v2413_v5, %v3726_v2  ;;  %v2429_v40 = vrot.slane %v2413_v5, %v5807_v39  ;;  %v5819_v22 = vunpack.c.h.bf16 %v4925_v42  ;;  %v5820_v3 = vunpack.c.l.bf16 %v4929_v38 }
 0x1ab   :  { %v2434_v59 = vmul.f32 %v2417_v29, %v2395_v1  ;;  %v2435_v58 = vmul.f32 %v2421_v49, %v2396_v37  ;;  %v2436_v21 = vmul.f32 %v2417_v29, %v2397_v57  ;;  %v2439_v35 = vmul.f32 %v2421_v49, %v2400_v62 }
 0x1ac   :  { %v2437_v8 = vmul.f32 %v2421_v49, %v5819_v22  ;;  %v2438_v53 = vmul.f32 %v2417_v29, %v5820_v3  ;;  %v2440_v52 = vmul.f32 %v2417_v29, %v2401_v56  ;;  %v2441_v32 = vmul.f32 %v2421_v49, %v2402_v33 }
 0x1ad   :  { %v2442_v47 = vmul.f32 %v2417_v29, %v2403_v43  ;;  %v2443_v51 = vmul.f32 %v2421_v49, %v2404_v12  ;;  %v2444_v36 = vmul.f32 %v2425_v9, %v2395_v1  ;;  %v2445_v23 = vmul.f32 %v2429_v40, %v2396_v37 }
 0x1ae   :  { %v2446_v44 = vmul.f32 %v2425_v9, %v2397_v57  ;;  %v5821_v14 = vmov %v5819_v22  ;;  %v5822_v31 = vmov %v5820_v3  ;;  %v2449_v46 = vmul.f32 %v2429_v40, %v2400_v62  ;;  %v2480_v62 = vld [vmem:[#allocation5 + $0x478] sm:$0xff] }
 0x1af   :  { %v2447_v7 = vmul.f32 %v2429_v40, %v5821_v14  ;;  %v2448_v15 = vmul.f32 %v2425_v9, %v5822_v31  ;;  %v2450_v5 = vmul.f32 %v2425_v9, %v2401_v56  ;;  %v2451_v22 = vmul.f32 %v2429_v40, %v2402_v33  ;;  %v3585_v31 = vld.sshfl [vmem:[#allocation2 + $0x70] sm:$0x33 pattern:$0x75316420] }
 0x1b0   :  { %v2452_v29 = vmul.f32 %v2425_v9, %v2403_v43  ;;  %v2453_v49 = vmul.f32 %v2429_v40, %v2404_v12  ;;  %v2454_v3 = vadd.f32 %v2434_v59, %v2367_v55  ;;  %v2455_v61 = vadd.f32 %v2435_v58, %v2368_v28  ;;  %v2481_v55 = vld [vmem:[#allocation5 + $0x480] sm:$0xff]  ;;  %v5827_v58 = vld [vmem:[#allocation13_spill] sm:$0xff] }
 0x1b1   :  { %v2456_v1 = vadd.f32 %v2436_v21, %v2369_v4  ;;  %v2457_v0 = vadd.f32 %v2437_v8, %v2370_v60  ;;  %v2458_v41 = vadd.f32 %v2438_v53, %v2371_v54  ;;  %v2459_v37 = vadd.f32 %v2439_v35, %v2372_v27  ;;  %v5006_v27 = vld [vmem:[#allocation5 + $0x488] sm:$0xff] }
 0x1b2   :  { %v2460_v16 = vadd.f32 %v2440_v52, %v2373_v63  ;;  %v2461_v34 = vadd.f32 %v2441_v32, %v2374_v26  ;;  %v2462_v57 = vadd.f32 %v2442_v47, %v2375_v30  ;;  %v2463_v42 = vadd.f32 %v2443_v51, %v2376_v45  ;;  %5823 = vst [vmem:[#allocation14_spill] sm:$0xff] %v5006_v27 }
 0x1b3   :  { %v2464_v14 = vadd.f32 %v2444_v36, %v2377_v11  ;;  %v2465_v18 = vadd.f32 %v2445_v23, %v2378_v19  ;;  %v2466_v38 = vadd.f32 %v2446_v44, %v2379_v50  ;;  %v2467_v56 = vadd.f32 %v2447_v7, %v2380_v48  ;;  %v5009_v11 = vld [vmem:[#allocation5 + $0x490] sm:$0xff] }
 0x1b4   :  { %v2468_v33 = vadd.f32 %v2448_v15, %v2381_v10  ;;  %v2469_v43 = vadd.f32 %v2449_v46, %v2382_v20  ;;  %v2470_v12 = vadd.f32 %v2450_v5, %v2383_v13  ;;  %v2471_v28 = vadd.f32 %v2451_v22, %v2384_v24 }
 0x1b5   :  { %v2472_v4 = vadd.f32 %v2452_v29, %v2385_v25  ;;  %v2473_v60 = vadd.f32 %v2453_v49, %v2386_v17  ;;  %v2486_v54 = vunpack.c.l.bf16 %v2479_v6  ;;  %v2487_v63 = vunpack.c.h.bf16 %v2479_v6  ;;  %v5824_v17 = vld [vmem:[#allocation12_spill] sm:$0xff] }
 0x1b6   :  { %v2488_v26 = vunpack.c.l.bf16 %v2480_v62  ;;  %v2500_v30 = vcombine.high %v3585_v31, %v3585_v31  ;;  %v2504_v45 = vrot.slane %v3585_v31, %v3726_v2  ;;  %v2489_v19 = vunpack.c.h.bf16 %v2480_v62 }
 0x1b7   :  { %v2490_v50 = vunpack.c.l.bf16 %v2481_v55  ;;  %v2491_v48 = vunpack.c.h.bf16 %v2481_v55  ;;  %v2508_v10 = vrot.slane %v3585_v31, %v5807_v39  ;;  %v5825_v6 = vunpack.c.l.bf16 %v5824_v17 }
 0x1b8   :  { %v2512_v20 = vrot.slane %v2500_v30, %v3726_v2  ;;  %v2516_v13 = vrot.slane %v2500_v30, %v5807_v39  ;;  %v5826_v40 = vunpack.c.h.bf16 %v5824_v17  ;;  %v5828_v21 = vunpack.c.l.bf16 %v5827_v58  ;;  %v2566_v39 = vld [vmem:[#allocation5 + $0x498] sm:$0xff] }
 0x1b9   :  { %v2521_v9 = vmul.f32 %v2504_v45, %v5825_v6  ;;  %v5829_v35 = vunpack.c.h.bf16 %v5827_v58  ;;  %v2525_v32 = vmul.f32 %v2504_v45, %v2486_v54  ;;  %v2526_v47 = vmul.f32 %v2508_v10, %v2487_v63 }
 0x1ba   :  { %v2522_v59 = vmul.f32 %v2508_v10, %v5826_v40  ;;  %v2523_v8 = vmul.f32 %v2504_v45, %v5828_v21  ;;  %v2527_v51 = vmul.f32 %v2504_v45, %v2488_v26  ;;  %v2528_v36 = vmul.f32 %v2508_v10, %v2489_v19 }
 0x1bb   :  { %v2524_v52 = vmul.f32 %v2508_v10, %v5829_v35  ;;  %v2529_v23 = vmul.f32 %v2504_v45, %v2490_v50  ;;  %v2530_v44 = vmul.f32 %v2508_v10, %v2491_v48  ;;  %v5830_v7 = vmov %v5825_v6 }
 0x1bc   :  { %v2531_v15 = vmul.f32 %v2512_v20, %v5830_v7  ;;  %v5831_v46 = vmov %v5826_v40  ;;  %v5832_v22 = vmov %v5828_v21  ;;  %v5833_v49 = vmov %v5829_v35 }
 0x1bd   :  { %v2532_v5 = vmul.f32 %v2516_v13, %v5831_v46  ;;  %v2533_v29 = vmul.f32 %v2512_v20, %v5832_v22  ;;  %v2534_v31 = vmul.f32 %v2516_v13, %v5833_v49  ;;  %v2535_v62 = vmul.f32 %v2512_v20, %v2486_v54 }
 0x1be   :  { %v2536_v55 = vmul.f32 %v2516_v13, %v2487_v63  ;;  %v2537_v30 = vmul.f32 %v2512_v20, %v2488_v26  ;;  %v2538_v6 = vmul.f32 %v2516_v13, %v2489_v19  ;;  %v2539_v40 = vmul.f32 %v2512_v20, %v2490_v50  ;;  %v5834_v50 = vld [vmem:[#allocation11_spill] sm:$0xff] }
 0x1bf   :  { %v2540_v21 = vmul.f32 %v2516_v13, %v2491_v48  ;;  %v2541_v45 = vadd.f32 %v2521_v9, %v2454_v3  ;;  %v2542_v10 = vadd.f32 %v2522_v59, %v2455_v61  ;;  %v2543_v35 = vadd.f32 %v2523_v8, %v2456_v1  ;;  %v3586_v3 = vld.sshfl [vmem:[#allocation2 + $0x74] sm:$0x33 pattern:$0x75316420]  ;;  %v2567_v61 = vld [vmem:[#allocation5 + $0x4a0] sm:$0xff]  ;;  %v5835_v9 = vld [vmem:[#allocation14_spill] sm:$0xff] }
 0x1c0   :  { %v2544_v53 = vadd.f32 %v2524_v52, %v2457_v0  ;;  %v2545_v7 = vadd.f32 %v2525_v32, %v2458_v41  ;;  %v2546_v25 = vadd.f32 %v2526_v47, %v2459_v37  ;;  %v2547_v17 = vadd.f32 %v2527_v51, %v2460_v16  ;;  %v2568_v16 = vld [vmem:[#allocation5 + $0x4a8] sm:$0xff] }
 0x1c1   :  { %v2548_v46 = vadd.f32 %v2528_v36, %v2461_v34  ;;  %v2549_v24 = vadd.f32 %v2529_v23, %v2462_v57  ;;  %v2550_v27 = vadd.f32 %v2530_v44, %v2463_v42  ;;  %v2551_v22 = vadd.f32 %v2531_v15, %v2464_v14  ;;  %v5041_v34 = vld [vmem:[#allocation5 + $0x4b0] sm:$0xff] }
 0x1c2   :  { %v5033_v58 = vadd.f32 %v2532_v5, %v2465_v18  ;;  %v5035_v54 = vadd.f32 %v2533_v29, %v2466_v38  ;;  %v5037_v63 = vadd.f32 %v2534_v31, %v2467_v56  ;;  %v5039_v26 = vadd.f32 %v2535_v62, %v2468_v33  ;;  %v5044_v38 = vld [vmem:[#allocation5 + $0x4b8] sm:$0xff] }
 0x1c3   :  { %v2556_v1 = vadd.f32 %v2536_v55, %v2469_v43  ;;  %v2557_v0 = vadd.f32 %v2537_v30, %v2470_v12  ;;  %v2558_v41 = vadd.f32 %v2538_v6, %v2471_v28  ;;  %v2559_v37 = vadd.f32 %v2539_v40, %v2472_v4 }
 0x1c4   :  { %v2560_v57 = vadd.f32 %v2540_v21, %v2473_v60  ;;  %v2572_v42 = vunpack.c.h.bf16 %v5009_v11  ;;  %v2573_v18 = vunpack.c.l.bf16 %v2566_v39  ;;  %v2574_v14 = vunpack.c.h.bf16 %v2566_v39 }
 0x1c5   :  { %v2575_v56 = vunpack.c.l.bf16 %v2567_v61  ;;  %v2587_v19 = vcombine.high %v3586_v3, %v3586_v3  ;;  %v2591_v33 = vrot.slane %v3586_v3, %v3726_v2  ;;  %v2595_v48 = vrot.slane %v3586_v3, %v5834_v50 }
 0x1c6   :  { %v2576_v43 = vunpack.c.h.bf16 %v2567_v61  ;;  %v2577_v12 = vunpack.c.l.bf16 %v2568_v16  ;;  %v2578_v28 = vunpack.c.h.bf16 %v2568_v16  ;;  %v2656_v4 = vunpack.c.l.bf16 %v5041_v34 }
 0x1c7   :  { %v2599_v20 = vrot.slane %v2587_v19, %v3726_v2  ;;  %v2603_v60 = vrot.slane %v2587_v19, %v5834_v50  ;;  %v2657_v13 = vunpack.c.h.bf16 %v5041_v34  ;;  %v2658_v39 = vunpack.c.l.bf16 %v5044_v38 }
 0x1c8   :  { %v5836_v59 = vunpack.c.l.bf16 %v5835_v9  ;;  %v5837_v52 = vunpack.c.h.bf16 %v5835_v9  ;;  %v5838_v47 = vunpack.c.l.bf16 %v5009_v11  ;;  %v2611_v23 = vmul.f32 %v2595_v48, %v2572_v42 }
 0x1c9   :  { %v2612_v44 = vmul.f32 %v2591_v33, %v2573_v18  ;;  %v2613_v15 = vmul.f32 %v2595_v48, %v2574_v14  ;;  %v2614_v5 = vmul.f32 %v2591_v33, %v2575_v56  ;;  %v2615_v29 = vmul.f32 %v2595_v48, %v2576_v43 }
 0x1ca   :  { %v2608_v8 = vmul.f32 %v2591_v33, %v5836_v59  ;;  %v2609_v32 = vmul.f32 %v2595_v48, %v5837_v52  ;;  %v2610_v51 = vmul.f32 %v2591_v33, %v5838_v47  ;;  %v2616_v49 = vmul.f32 %v2591_v33, %v2577_v12 }
 0x1cb   :  { %v2617_v31 = vmul.f32 %v2595_v48, %v2578_v28  ;;  %v5839_v62 = vmov %v5836_v59  ;;  %v5840_v30 = vmov %v5837_v52  ;;  %v5841_v40 = vmov %v5838_v47 }
 0x1cc   :  { %v2618_v55 = vmul.f32 %v2599_v20, %v5839_v62  ;;  %v2619_v6 = vmul.f32 %v2603_v60, %v5840_v30  ;;  %v2620_v21 = vmul.f32 %v2599_v20, %v5841_v40  ;;  %v2621_v3 = vmul.f32 %v2603_v60, %v2572_v42 }
 0x1cd   :  { %v2622_v61 = vmul.f32 %v2599_v20, %v2573_v18  ;;  %v2623_v16 = vmul.f32 %v2603_v60, %v2574_v14  ;;  %v2624_v19 = vmul.f32 %v2599_v20, %v2575_v56  ;;  %v2625_v59 = vmul.f32 %v2603_v60, %v2576_v43  ;;  %v2654_v56 = vld [vmem:[#allocation5 + $0x4c8] sm:$0xff]  ;;  %v5108_v43 = vld [vmem:[#allocation5 + $0x4d8] sm:$0xff] }
 0x1ce   :  { %v2626_v52 = vmul.f32 %v2599_v20, %v2577_v12  ;;  %v2627_v47 = vmul.f32 %v2603_v60, %v2578_v28  ;;  %v5066_v36 = vadd.f32 %v2608_v8, %v2541_v45  ;;  %v5068_v33 = vadd.f32 %v2609_v32, %v2542_v10  ;;  %v2653_v10 = vld [vmem:[#allocation5 + $0x4c0] sm:$0xff]  ;;  %v5114_v8 = vld [vmem:[#allocation5 + $0x4e8] sm:$0xff] }
 0x1cf   :  { %v5070_v48 = vadd.f32 %v2610_v51, %v2543_v35  ;;  %v5072_v62 = vadd.f32 %v2611_v23, %v2544_v53  ;;  %v5074_v9 = vadd.f32 %v2612_v44, %v2545_v7  ;;  %v5076_v30 = vadd.f32 %v2613_v15, %v2546_v25  ;;  %v5110_v20 = vld [vmem:[#allocation5 + $0x4e0] sm:$0xff] }
 0x1d0   :  { %v5078_v11 = vadd.f32 %v2614_v5, %v2547_v17  ;;  %v5080_v42 = vadd.f32 %v2615_v29, %v2548_v46  ;;  %v5082_v18 = vadd.f32 %v2616_v49, %v2549_v24  ;;  %v5084_v14 = vadd.f32 %v2617_v31, %v2550_v27  ;;  %v3587_v24 = vld.sshfl [vmem:[#allocation2 + $0x78] sm:$0x33 pattern:$0x75316420] }
 0x1d1   :  { %v5086_v45 = vadd.f32 %v2618_v55, %v2551_v22  ;;  %v5089_v35 = vadd.f32 %v2619_v6, %v5033_v58  ;;  %v5092_v53 = vadd.f32 %v2620_v21, %v5035_v54  ;;  %v5095_v25 = vadd.f32 %v2621_v3, %v5037_v63  ;;  %v2655_v58 = vld [vmem:[#allocation5 + $0x4d0] sm:$0xff] }
 0x1d2   :  { %v5098_v7 = vadd.f32 %v2622_v61, %v5039_v26  ;;  %v5100_v17 = vadd.f32 %v2623_v16, %v2556_v1  ;;  %v5102_v27 = vadd.f32 %v2624_v19, %v2557_v0  ;;  %v5104_v46 = vadd.f32 %v2625_v59, %v2558_v41 }
 0x1d3   :  { %v5106_v22 = vadd.f32 %v2626_v52, %v2559_v37  ;;  %v2647_v54 = vadd.f32 %v2627_v47, %v2560_v57  ;;  %v2660_v12 = vunpack.c.l.bf16 %v2653_v10  ;;  %v2661_v28 = vunpack.c.h.bf16 %v2653_v10 }
 0x1d4   :  { %v2662_v63 = vunpack.c.l.bf16 %v2654_v56  ;;  %v2663_v26 = vunpack.c.h.bf16 %v2654_v56  ;;  %v2674_v60 = vcombine.high %v3587_v24, %v3587_v24  ;;  %v2678_v1 = vrot.slane %v3587_v24, %v3726_v2 }
 0x1d5   :  { %v2682_v0 = vrot.slane %v3587_v24, %v5834_v50  ;;  %v2664_v41 = vunpack.c.l.bf16 %v2655_v58  ;;  %v2665_v37 = vunpack.c.h.bf16 %v2655_v58  ;;  %v2743_v32 = vunpack.c.l.bf16 %v5108_v43 }
 0x1d6   :  { %v2744_v51 = vunpack.c.h.bf16 %v5108_v43  ;;  %v2686_v57 = vrot.slane %v2674_v60, %v3726_v2  ;;  %v2690_v23 = vrot.slane %v2674_v60, %v5834_v50  ;;  %v2745_v44 = vunpack.c.l.bf16 %v5110_v20 }
 0x1d7   :  { %v2695_v5 = vmul.f32 %v2678_v1, %v2656_v4  ;;  %v2696_v29 = vmul.f32 %v2682_v0, %v2657_v13  ;;  %v2697_v49 = vmul.f32 %v2678_v1, %v2658_v39  ;;  %v5842_v55 = vunpack.c.h.bf16 %v5044_v38 }
 0x1d8   :  { %v2699_v40 = vmul.f32 %v2678_v1, %v2660_v12  ;;  %v2700_v21 = vmul.f32 %v2682_v0, %v2661_v28  ;;  %v2701_v3 = vmul.f32 %v2678_v1, %v2662_v63  ;;  %v2702_v61 = vmul.f32 %v2682_v0, %v2663_v26 }
 0x1d9   :  { %v2698_v6 = vmul.f32 %v2682_v0, %v5842_v55  ;;  %v2703_v16 = vmul.f32 %v2678_v1, %v2664_v41  ;;  %v2704_v19 = vmul.f32 %v2682_v0, %v2665_v37  ;;  %v2705_v59 = vmul.f32 %v2686_v57, %v2656_v4 }
 0x1da   :  { %v2706_v52 = vmul.f32 %v2690_v23, %v2657_v13  ;;  %v2707_v47 = vmul.f32 %v2686_v57, %v2658_v39  ;;  %v5843_v10 = vmov %v5842_v55  ;;  %v2709_v24 = vmul.f32 %v2686_v57, %v2660_v12 }
 0x1db   :  { %v2708_v56 = vmul.f32 %v2690_v23, %v5843_v10  ;;  %v2710_v58 = vmul.f32 %v2690_v23, %v2661_v28  ;;  %v2711_v60 = vmul.f32 %v2686_v57, %v2662_v63  ;;  %v2712_v55 = vmul.f32 %v2690_v23, %v2663_v26  ;;  %v3588_v26 = vld.sshfl [vmem:[#allocation2 + $0x7c] sm:$0x33 pattern:$0x75316420] }
 0x1dc   :  { %v2713_v31 = vmul.f32 %v2686_v57, %v2664_v41  ;;  %v2714_v15 = vmul.f32 %v2690_v23, %v2665_v37  ;;  %v2715_v1 = vadd.f32 %v2695_v5, %v5066_v36  ;;  %v2716_v0 = vadd.f32 %v2696_v29, %v5068_v33  ;;  %v2741_v33 = vld [vmem:[#allocation5 + $0x4f0] sm:$0xff]  ;;  %v2742_v41 = vld [vmem:[#allocation5 + $0x4f8] sm:$0xff]  ;;  %v5161_v23 = vld [vmem:[#allocation5 + $0x508] sm:$0xff] }
 0x1dd   :  { %v2717_v4 = vadd.f32 %v2697_v49, %v5070_v48  ;;  %v2718_v34 = vadd.f32 %v2698_v6, %v5072_v62  ;;  %v2719_v13 = vadd.f32 %v2699_v40, %v5074_v9  ;;  %v2720_v39 = vadd.f32 %v2700_v21, %v5076_v30  ;;  %5845 = vst [vmem:[#allocation13_spill] sm:$0xff] %v5161_v23  ;;  %v2827_v23 = vld [vmem:[#allocation5 + $0x510] sm:$0xff] }
 0x1de   :  { %v2721_v38 = vadd.f32 %v2701_v3, %v5078_v11  ;;  %v2722_v12 = vadd.f32 %v2702_v61, %v5080_v42  ;;  %v2723_v28 = vadd.f32 %v2703_v16, %v5082_v18  ;;  %v2724_v63 = vadd.f32 %v2704_v19, %v5084_v14 }
 0x1df   :  { %v2725_v36 = vadd.f32 %v2705_v59, %v5086_v45  ;;  %v2726_v48 = vadd.f32 %v2706_v52, %v5089_v35  ;;  %v2727_v62 = vadd.f32 %v2707_v47, %v5092_v53  ;;  %v2728_v9 = vadd.f32 %v2708_v56, %v5095_v25  ;;  %v5158_v45 = vld [vmem:[#allocation5 + $0x500] sm:$0xff] }
 0x1e0   :  { %v2729_v30 = vadd.f32 %v2709_v24, %v5098_v7  ;;  %v2730_v11 = vadd.f32 %v2710_v58, %v5100_v17  ;;  %v2731_v42 = vadd.f32 %v2711_v60, %v5102_v27  ;;  %v2732_v18 = vadd.f32 %v2712_v55, %v5104_v46  ;;  %5844 = vst [vmem:[#allocation12_spill] sm:$0xff] %v5158_v45 }
 0x1e1   :  { %v2733_v14 = vadd.f32 %v2713_v31, %v5106_v22  ;;  %v2734_v37 = vadd.f32 %v2714_v15, %v2647_v54  ;;  %v2748_v35 = vunpack.c.h.bf16 %v5114_v8  ;;  %v2749_v57 = vunpack.c.l.bf16 %v2741_v33 }
 0x1e2   :  { %v2761_v53 = vcombine.high %v3588_v26, %v3588_v26  ;;  %v2750_v25 = vunpack.c.h.bf16 %v2741_v33  ;;  %v2751_v7 = vunpack.c.l.bf16 %v2742_v41  ;;  %v2765_v5 = vrot.slane %v3588_v26, %v3726_v2 }
 0x1e3   :  { %v2769_v17 = vrot.slane %v3588_v26, %v5834_v50  ;;  %v2752_v27 = vunpack.c.h.bf16 %v2742_v41  ;;  %v5846_v21 = vunpack.c.h.bf16 %v5110_v20  ;;  %v5847_v61 = vunpack.c.l.bf16 %v5114_v8 }
 0x1e4   :  { %v2773_v46 = vrot.slane %v2761_v53, %v3726_v2  ;;  %v2777_v22 = vrot.slane %v2761_v53, %v5834_v50  ;;  %v2782_v54 = vmul.f32 %v2765_v5, %v2743_v32  ;;  %v2784_v40 = vmul.f32 %v2765_v5, %v2745_v44 }
 0x1e5   :  { %v2783_v6 = vmul.f32 %v2769_v17, %v2744_v51  ;;  %v2785_v3 = vmul.f32 %v2769_v17, %v5846_v21  ;;  %v2786_v16 = vmul.f32 %v2765_v5, %v5847_v61  ;;  %v2787_v19 = vmul.f32 %v2769_v17, %v2748_v35 }
 0x1e6   :  { %v2788_v59 = vmul.f32 %v2765_v5, %v2749_v57  ;;  %v2789_v52 = vmul.f32 %v2769_v17, %v2750_v25  ;;  %v2790_v47 = vmul.f32 %v2765_v5, %v2751_v7  ;;  %v2791_v10 = vmul.f32 %v2769_v17, %v2752_v27 }
 0x1e7   :  { %v2792_v56 = vmul.f32 %v2773_v46, %v2743_v32  ;;  %v2793_v24 = vmul.f32 %v2777_v22, %v2744_v51  ;;  %v2794_v58 = vmul.f32 %v2773_v46, %v2745_v44  ;;  %v5848_v60 = vmov %v5846_v21 }
 0x1e8   :  { %v2795_v55 = vmul.f32 %v2777_v22, %v5848_v60  ;;  %v5849_v26 = vmov %v5847_v61  ;;  %v2797_v41 = vmul.f32 %v2777_v22, %v2748_v35  ;;  %v2798_v53 = vmul.f32 %v2773_v46, %v2749_v57  ;;  %v2828_v35 = vld [vmem:[#allocation5 + $0x518] sm:$0xff] }
 0x1e9   :  { %v2796_v33 = vmul.f32 %v2773_v46, %v5849_v26  ;;  %v2799_v21 = vmul.f32 %v2777_v22, %v2750_v25  ;;  %v2800_v5 = vmul.f32 %v2773_v46, %v2751_v7  ;;  %v2801_v17 = vmul.f32 %v2777_v22, %v2752_v27  ;;  %v3589_v26 = vld.sshfl [vmem:[#allocation2 + $0x80] sm:$0x33 pattern:$0x75316420] }
 0x1ea   :  { %v2802_v61 = vadd.f32 %v2782_v54, %v2715_v1  ;;  %v2803_v31 = vadd.f32 %v2783_v6, %v2716_v0  ;;  %v2804_v32 = vadd.f32 %v2784_v40, %v2717_v4  ;;  %v2805_v49 = vadd.f32 %v2785_v3, %v2718_v34  ;;  %v2829_v1 = vld [vmem:[#allocation5 + $0x520] sm:$0xff]  ;;  %v5854_v6 = vld [vmem:[#allocation13_spill] sm:$0xff] }
 0x1eb   :  { %v2806_v43 = vadd.f32 %v2786_v16, %v2719_v13  ;;  %v2807_v51 = vadd.f32 %v2787_v19, %v2720_v39  ;;  %v2808_v15 = vadd.f32 %v2788_v59, %v2721_v38  ;;  %v2809_v29 = vadd.f32 %v2789_v52, %v2722_v12  ;;  %v5191_v39 = vld [vmem:[#allocation5 + $0x528] sm:$0xff] }
 0x1ec   :  { %v2810_v44 = vadd.f32 %v2790_v47, %v2723_v28  ;;  %v2811_v20 = vadd.f32 %v2791_v10, %v2724_v63  ;;  %v2812_v60 = vadd.f32 %v2792_v56, %v2725_v36  ;;  %v2813_v45 = vadd.f32 %v2793_v24, %v2726_v48  ;;  %5850 = vst [vmem:[#allocation14_spill] sm:$0xff] %v5191_v39  ;;  %v5194_v36 = vld [vmem:[#allocation5 + $0x530] sm:$0xff] }
 0x1ed   :  { %v2814_v8 = vadd.f32 %v2794_v58, %v2727_v62  ;;  %v2815_v57 = vadd.f32 %v2795_v55, %v2728_v9  ;;  %v2816_v25 = vadd.f32 %v2796_v33, %v2729_v30  ;;  %v2817_v7 = vadd.f32 %v2797_v41, %v2730_v11 }
 0x1ee   :  { %v2818_v27 = vadd.f32 %v2798_v53, %v2731_v42  ;;  %v2819_v0 = vadd.f32 %v2799_v21, %v2732_v18  ;;  %v2820_v4 = vadd.f32 %v2800_v5, %v2733_v14  ;;  %v2821_v34 = vadd.f32 %v2801_v17, %v2734_v37  ;;  %v5851_v37 = vld [vmem:[#allocation12_spill] sm:$0xff] }
 0x1ef   :  { %v2834_v13 = vunpack.c.l.bf16 %v2827_v23  ;;  %v2835_v38 = vunpack.c.h.bf16 %v2827_v23  ;;  %v2836_v12 = vunpack.c.l.bf16 %v2828_v35  ;;  %v2848_v28 = vcombine.high %v3589_v26, %v3589_v26 }
 0x1f0   :  { %v2852_v63 = vrot.slane %v3589_v26, %v3726_v2  ;;  %v2837_v48 = vunpack.c.h.bf16 %v2828_v35  ;;  %v2838_v62 = vunpack.c.l.bf16 %v2829_v1  ;;  %v2839_v9 = vunpack.c.h.bf16 %v2829_v1 }
 0x1f1   :  { %v2856_v30 = vrot.slane %v3589_v26, %v5834_v50  ;;  %v2860_v11 = vrot.slane %v2848_v28, %v3726_v2  ;;  %v2864_v42 = vrot.slane %v2848_v28, %v5834_v50  ;;  %v5852_v23 = vunpack.c.l.bf16 %v5851_v37  ;;  %v2914_v50 = vld [vmem:[#allocation5 + $0x538] sm:$0xff] }
 0x1f2   :  { %v5853_v22 = vunpack.c.h.bf16 %v5851_v37  ;;  %v5855_v40 = vunpack.c.l.bf16 %v5854_v6  ;;  %v5856_v19 = vunpack.c.h.bf16 %v5854_v6  ;;  %v2873_v52 = vmul.f32 %v2852_v63, %v2834_v13 }
 0x1f3   :  { %v2869_v46 = vmul.f32 %v2852_v63, %v5852_v23  ;;  %v2874_v47 = vmul.f32 %v2856_v30, %v2835_v38  ;;  %v2875_v10 = vmul.f32 %v2852_v63, %v2836_v12  ;;  %v2876_v56 = vmul.f32 %v2856_v30, %v2837_v48 }
 0x1f4   :  { %v2870_v54 = vmul.f32 %v2856_v30, %v5853_v22  ;;  %v2871_v3 = vmul.f32 %v2852_v63, %v5855_v40  ;;  %v2872_v59 = vmul.f32 %v2856_v30, %v5856_v19  ;;  %v2877_v24 = vmul.f32 %v2852_v63, %v2838_v62 }
 0x1f5   :  { %v2878_v58 = vmul.f32 %v2856_v30, %v2839_v9  ;;  %v5857_v55 = vmov %v5852_v23  ;;  %v5858_v41 = vmov %v5853_v22  ;;  %v5859_v21 = vmov %v5855_v40 }
 0x1f6   :  { %v2879_v33 = vmul.f32 %v2860_v11, %v5857_v55  ;;  %v2880_v53 = vmul.f32 %v2864_v42, %v5858_v41  ;;  %v2881_v5 = vmul.f32 %v2860_v11, %v5859_v21  ;;  %v5860_v17 = vmov %v5856_v19 }
 0x1f7   :  { %v2882_v26 = vmul.f32 %v2864_v42, %v5860_v17  ;;  %v2883_v35 = vmul.f32 %v2860_v11, %v2834_v13  ;;  %v2884_v1 = vmul.f32 %v2864_v42, %v2835_v38  ;;  %v2885_v28 = vmul.f32 %v2860_v11, %v2836_v12 }
 0x1f8   :  { %v2886_v23 = vmul.f32 %v2864_v42, %v2837_v48  ;;  %v2887_v22 = vmul.f32 %v2860_v11, %v2838_v62  ;;  %v2888_v40 = vmul.f32 %v2864_v42, %v2839_v9  ;;  %v2889_v63 = vadd.f32 %v2869_v46, %v2802_v61  ;;  %v3590_v61 = vld.sshfl [vmem:[#allocation2 + $0x84] sm:$0x33 pattern:$0x75316420]  ;;  %v5862_v46 = vld [vmem:[#allocation14_spill] sm:$0xff] }
 0x1f9   :  { %v2890_v30 = vadd.f32 %v2870_v54, %v2803_v31  ;;  %v2891_v19 = vadd.f32 %v2871_v3, %v2804_v32  ;;  %v2892_v16 = vadd.f32 %v2872_v59, %v2805_v49  ;;  %v2893_v55 = vadd.f32 %v2873_v52, %v2806_v43  ;;  %v2915_v31 = vld [vmem:[#allocation5 + $0x540] sm:$0xff] }
 0x1fa   :  { %v2894_v14 = vadd.f32 %v2874_v47, %v2807_v51  ;;  %v2895_v37 = vadd.f32 %v2875_v10, %v2808_v15  ;;  %v2896_v41 = vadd.f32 %v2876_v56, %v2809_v29  ;;  %v2897_v18 = vadd.f32 %v2877_v24, %v2810_v44  ;;  %v2916_v15 = vld [vmem:[#allocation5 + $0x548] sm:$0xff]  ;;  %v5226_v29 = vld [vmem:[#allocation5 + $0x550] sm:$0xff]  ;;  %v5861_v62 = vld [vmem:[#allocation11_spill] sm:$0xff] }
 0x1fb   :  { %v2898_v39 = vadd.f32 %v2878_v58, %v2811_v20  ;;  %v2899_v21 = vadd.f32 %v2879_v33, %v2812_v60  ;;  %v5218_v6 = vadd.f32 %v2880_v53, %v2813_v45  ;;  %v5220_v13 = vadd.f32 %v2881_v5, %v2814_v8  ;;  %v5229_v8 = vld [vmem:[#allocation5 + $0x558] sm:$0xff] }
 0x1fc   :  { %v5222_v38 = vadd.f32 %v2882_v26, %v2815_v57  ;;  %v5224_v12 = vadd.f32 %v2883_v35, %v2816_v25  ;;  %v2904_v32 = vadd.f32 %v2884_v1, %v2817_v7  ;;  %v2905_v49 = vadd.f32 %v2885_v28, %v2818_v27 }
 0x1fd   :  { %v2906_v43 = vadd.f32 %v2886_v23, %v2819_v0  ;;  %v2907_v51 = vadd.f32 %v2887_v22, %v2820_v4  ;;  %v2908_v44 = vadd.f32 %v2888_v40, %v2821_v34  ;;  %v2920_v20 = vunpack.c.h.bf16 %v5194_v36 }
 0x1fe   :  { %v2921_v45 = vunpack.c.l.bf16 %v2914_v50  ;;  %v2922_v60 = vunpack.c.h.bf16 %v2914_v50  ;;  %v2923_v57 = vunpack.c.l.bf16 %v2915_v31  ;;  %v2935_v48 = vcombine.high %v3590_v61, %v3590_v61 }
 0x1ff   :  { %v2939_v25 = vrot.slane %v3590_v61, %v3726_v2  ;;  %v2943_v9 = vrot.slane %v3590_v61, %v5861_v62  ;;  %v2924_v7 = vunpack.c.h.bf16 %v2915_v31  ;;  %v2925_v27 = vunpack.c.l.bf16 %v2916_v15 }
 0x200   :  { %v2926_v0 = vunpack.c.h.bf16 %v2916_v15  ;;  %v3004_v4 = vunpack.c.l.bf16 %v5226_v29  ;;  %v2947_v11 = vrot.slane %v2935_v48, %v3726_v2  ;;  %v2951_v34 = vrot.slane %v2935_v48, %v5861_v62 }
 0x201   :  { %v3005_v42 = vunpack.c.h.bf16 %v5226_v29  ;;  %v3006_v50 = vunpack.c.l.bf16 %v5229_v8  ;;  %v5863_v54 = vunpack.c.l.bf16 %v5862_v46  ;;  %v5864_v59 = vunpack.c.h.bf16 %v5862_v46 }
 0x202   :  { %v5865_v47 = vunpack.c.l.bf16 %v5194_v36  ;;  %v2959_v24 = vmul.f32 %v2943_v9, %v2920_v20  ;;  %v2960_v58 = vmul.f32 %v2939_v25, %v2921_v45  ;;  %v2961_v33 = vmul.f32 %v2943_v9, %v2922_v60 }
 0x203   :  { %v2956_v3 = vmul.f32 %v2939_v25, %v5863_v54  ;;  %v2957_v52 = vmul.f32 %v2943_v9, %v5864_v59  ;;  %v2962_v53 = vmul.f32 %v2939_v25, %v2923_v57  ;;  %v2963_v5 = vmul.f32 %v2943_v9, %v2924_v7 }
 0x204   :  { %v2958_v10 = vmul.f32 %v2939_v25, %v5865_v47  ;;  %v2964_v17 = vmul.f32 %v2939_v25, %v2925_v27  ;;  %v2965_v26 = vmul.f32 %v2943_v9, %v2926_v0  ;;  %v5866_v35 = vmov %v5863_v54 }
 0x205   :  { %v2966_v1 = vmul.f32 %v2947_v11, %v5866_v35  ;;  %v5867_v28 = vmov %v5864_v59  ;;  %v5868_v22 = vmov %v5865_v47  ;;  %v2969_v61 = vmul.f32 %v2951_v34, %v2920_v20 }
 0x206   :  { %v2967_v23 = vmul.f32 %v2951_v34, %v5867_v28  ;;  %v2968_v40 = vmul.f32 %v2947_v11, %v5868_v22  ;;  %v2970_v31 = vmul.f32 %v2947_v11, %v2921_v45  ;;  %v2971_v15 = vmul.f32 %v2951_v34, %v2922_v60 }
 0x207   :  { %v2972_v48 = vmul.f32 %v2947_v11, %v2923_v57  ;;  %v2973_v54 = vmul.f32 %v2951_v34, %v2924_v7  ;;  %v2974_v59 = vmul.f32 %v2947_v11, %v2925_v27  ;;  %v2975_v47 = vmul.f32 %v2951_v34, %v2926_v0  ;;  %v3002_v57 = vld [vmem:[#allocation5 + $0x568] sm:$0xff]  ;;  %v5293_v7 = vld [vmem:[#allocation5 + $0x578] sm:$0xff]  ;;  %v5295_v11 = vld [vmem:[#allocation5 + $0x580] sm:$0xff] }
 0x208   :  { %v5251_v56 = vadd.f32 %v2956_v3, %v2889_v63  ;;  %v5253_v25 = vadd.f32 %v2957_v52, %v2890_v30  ;;  %v5255_v9 = vadd.f32 %v2958_v10, %v2891_v19  ;;  %v5257_v35 = vadd.f32 %v2959_v24, %v2892_v16  ;;  %v3001_v30 = vld [vmem:[#allocation5 + $0x560] sm:$0xff]  ;;  %v5299_v3 = vld [vmem:[#allocation5 + $0x588] sm:$0xff] }
 0x209   :  { %v5259_v46 = vadd.f32 %v2960_v58, %v2893_v55  ;;  %v5261_v28 = vadd.f32 %v2961_v33, %v2894_v14  ;;  %v5263_v36 = vadd.f32 %v2962_v53, %v2895_v37  ;;  %v5265_v20 = vadd.f32 %v2963_v5, %v2896_v41 }
 0x20a   :  { %v5267_v45 = vadd.f32 %v2964_v17, %v2897_v18  ;;  %v5269_v60 = vadd.f32 %v2965_v26, %v2898_v39  ;;  %v5271_v63 = vadd.f32 %v2966_v1, %v2899_v21  ;;  %v5274_v19 = vadd.f32 %v2967_v23, %v5218_v6  ;;  %v3591_v18 = vld.sshfl [vmem:[#allocation2 + $0x88] sm:$0x33 pattern:$0x75316420]  ;;  %v3003_v6 = vld [vmem:[#allocation5 + $0x570] sm:$0xff] }
 0x20b   :  { %v5277_v16 = vadd.f32 %v2968_v40, %v5220_v13  ;;  %v5280_v14 = vadd.f32 %v2969_v61, %v5222_v38  ;;  %v5283_v55 = vadd.f32 %v2970_v31, %v5224_v12  ;;  %v5285_v37 = vadd.f32 %v2971_v15, %v2904_v32 }
 0x20c   :  { %v5287_v39 = vadd.f32 %v2972_v48, %v2905_v49  ;;  %v5289_v41 = vadd.f32 %v2973_v54, %v2906_v43  ;;  %v5291_v21 = vadd.f32 %v2974_v59, %v2907_v51  ;;  %v2995_v13 = vadd.f32 %v2975_v47, %v2908_v44 }
 0x20d   :  { %v3008_v27 = vunpack.c.l.bf16 %v3001_v30  ;;  %v3009_v0 = vunpack.c.h.bf16 %v3001_v30  ;;  %v3010_v38 = vunpack.c.l.bf16 %v3002_v57  ;;  %v3011_v12 = vunpack.c.h.bf16 %v3002_v57 }
 0x20e   :  { %v3022_v34 = vcombine.high %v3591_v18, %v3591_v18  ;;  %v3026_v32 = vrot.slane %v3591_v18, %v3726_v2  ;;  %v3030_v49 = vrot.slane %v3591_v18, %v5861_v62  ;;  %v3012_v43 = vunpack.c.l.bf16 %v3003_v6 }
 0x20f   :  { %v3013_v51 = vunpack.c.h.bf16 %v3003_v6  ;;  %v3091_v52 = vunpack.c.l.bf16 %v5293_v7  ;;  %v3092_v10 = vunpack.c.h.bf16 %v5293_v7  ;;  %v3093_v58 = vunpack.c.l.bf16 %v5295_v11 }
 0x210   :  { %v3034_v44 = vrot.slane %v3022_v34, %v3726_v2  ;;  %v3038_v24 = vrot.slane %v3022_v34, %v5861_v62  ;;  %v3043_v53 = vmul.f32 %v3026_v32, %v3004_v4  ;;  %v3044_v5 = vmul.f32 %v3030_v49, %v3005_v42 }
 0x211   :  { %v3045_v17 = vmul.f32 %v3026_v32, %v3006_v50  ;;  %v5869_v1 = vunpack.c.h.bf16 %v5229_v8  ;;  %v3047_v22 = vmul.f32 %v3026_v32, %v3008_v27  ;;  %v3048_v40 = vmul.f32 %v3030_v49, %v3009_v0 }
 0x212   :  { %v3049_v61 = vmul.f32 %v3026_v32, %v3010_v38  ;;  %v3050_v31 = vmul.f32 %v3030_v49, %v3011_v12  ;;  %v3051_v15 = vmul.f32 %v3026_v32, %v3012_v43  ;;  %v3052_v48 = vmul.f32 %v3030_v49, %v3013_v51 }
 0x213   :  { %v3046_v23 = vmul.f32 %v3030_v49, %v5869_v1  ;;  %v3053_v54 = vmul.f32 %v3034_v44, %v3004_v4  ;;  %v3054_v59 = vmul.f32 %v3038_v24, %v3005_v42  ;;  %v3055_v47 = vmul.f32 %v3034_v44, %v3006_v50 }
 0x214   :  { %v5870_v30 = vmov %v5869_v1  ;;  %v3057_v18 = vmul.f32 %v3034_v44, %v3008_v27  ;;  %v3058_v6 = vmul.f32 %v3038_v24, %v3009_v0  ;;  %v3059_v34 = vmul.f32 %v3034_v44, %v3010_v38 }
 0x215   :  { %v3056_v57 = vmul.f32 %v3038_v24, %v5870_v30  ;;  %v3060_v1 = vmul.f32 %v3038_v24, %v3011_v12  ;;  %v3061_v26 = vmul.f32 %v3034_v44, %v3012_v43  ;;  %v3062_v33 = vmul.f32 %v3038_v24, %v3013_v51  ;;  %v3592_v12 = vld.sshfl [vmem:[#allocation2 + $0x8c] sm:$0x33 pattern:$0x75316420]  ;;  %v3090_v43 = vld [vmem:[#allocation5 + $0x598] sm:$0xff] }
 0x216   :  { %v3063_v32 = vadd.f32 %v3043_v53, %v5251_v56  ;;  %v3064_v49 = vadd.f32 %v3044_v5, %v5253_v25  ;;  %v3065_v4 = vadd.f32 %v3045_v17, %v5255_v9  ;;  %v3066_v29 = vadd.f32 %v3046_v23, %v5257_v35  ;;  %v3089_v25 = vld [vmem:[#allocation5 + $0x590] sm:$0xff]  ;;  %v5346_v24 = vld [vmem:[#allocation5 + $0x5a8] sm:$0xff] }
 0x217   :  { %v3067_v42 = vadd.f32 %v3047_v22, %v5259_v46  ;;  %v3068_v50 = vadd.f32 %v3048_v40, %v5261_v28  ;;  %v3069_v8 = vadd.f32 %v3049_v61, %v5263_v36  ;;  %v3070_v27 = vadd.f32 %v3050_v31, %v5265_v20  ;;  %5872 = vst [vmem:[#allocation13_spill] sm:$0xff] %v5346_v24  ;;  %v3175_v24 = vld [vmem:[#allocation5 + $0x5b0] sm:$0xff] }
 0x218   :  { %v3071_v0 = vadd.f32 %v3051_v15, %v5267_v45  ;;  %v3072_v38 = vadd.f32 %v3052_v48, %v5269_v60  ;;  %v3073_v56 = vadd.f32 %v3053_v54, %v5271_v63  ;;  %v3074_v9 = vadd.f32 %v3054_v59, %v5274_v19  ;;  %v5343_v63 = vld [vmem:[#allocation5 + $0x5a0] sm:$0xff] }
 0x219   :  { %v3075_v35 = vadd.f32 %v3055_v47, %v5277_v16  ;;  %v3076_v46 = vadd.f32 %v3056_v57, %v5280_v14  ;;  %v3077_v28 = vadd.f32 %v3057_v18, %v5283_v55  ;;  %v3078_v36 = vadd.f32 %v3058_v6, %v5285_v37  ;;  %5871 = vst [vmem:[#allocation12_spill] sm:$0xff] %v5343_v63 }
 0x21a   :  { %v3079_v20 = vadd.f32 %v3059_v34, %v5287_v39  ;;  %v3080_v45 = vadd.f32 %v3060_v1, %v5289_v41  ;;  %v3081_v60 = vadd.f32 %v3061_v26, %v5291_v21  ;;  %v3082_v51 = vadd.f32 %v3062_v33, %v2995_v13 }
 0x21b   :  { %v3096_v19 = vunpack.c.h.bf16 %v5299_v3  ;;  %v3097_v44 = vunpack.c.l.bf16 %v3089_v25  ;;  %v3109_v16 = vcombine.high %v3592_v12, %v3592_v12  ;;  %v3098_v14 = vunpack.c.h.bf16 %v3089_v25 }
 0x21c   :  { %v3099_v55 = vunpack.c.l.bf16 %v3090_v43  ;;  %v3113_v53 = vrot.slane %v3592_v12, %v3726_v2  ;;  %v3117_v37 = vrot.slane %v3592_v12, %v5861_v62  ;;  %v3100_v39 = vunpack.c.h.bf16 %v3090_v43 }
 0x21d   :  { %v3121_v41 = vrot.slane %v3109_v16, %v3726_v2  ;;  %v3125_v21 = vrot.slane %v3109_v16, %v5861_v62  ;;  %v5873_v40 = vunpack.c.h.bf16 %v5295_v11  ;;  %v5874_v31 = vunpack.c.l.bf16 %v5299_v3 }
 0x21e   :  { %v3130_v13 = vmul.f32 %v3113_v53, %v3091_v52  ;;  %v3131_v23 = vmul.f32 %v3117_v37, %v3092_v10  ;;  %v3132_v22 = vmul.f32 %v3113_v53, %v3093_v58  ;;  %v3135_v48 = vmul.f32 %v3117_v37, %v3096_v19 }
 0x21f   :  { %v3133_v61 = vmul.f32 %v3117_v37, %v5873_v40  ;;  %v3134_v15 = vmul.f32 %v3113_v53, %v5874_v31  ;;  %v3136_v54 = vmul.f32 %v3113_v53, %v3097_v44  ;;  %v3137_v59 = vmul.f32 %v3117_v37, %v3098_v14 }
 0x220   :  { %v3138_v47 = vmul.f32 %v3113_v53, %v3099_v55  ;;  %v3139_v30 = vmul.f32 %v3117_v37, %v3100_v39  ;;  %v3140_v57 = vmul.f32 %v3121_v41, %v3091_v52  ;;  %v3141_v18 = vmul.f32 %v3125_v21, %v3092_v10 }
 0x221   :  { %v3142_v6 = vmul.f32 %v3121_v41, %v3093_v58  ;;  %v5875_v34 = vmov %v5873_v40  ;;  %v5876_v12 = vmov %v5874_v31  ;;  %v3145_v43 = vmul.f32 %v3125_v21, %v3096_v19  ;;  %v3176_v19 = vld [vmem:[#allocation5 + $0x5b8] sm:$0xff] }
 0x222   :  { %v3143_v1 = vmul.f32 %v3125_v21, %v5875_v34  ;;  %v3144_v25 = vmul.f32 %v3121_v41, %v5876_v12  ;;  %v3146_v16 = vmul.f32 %v3121_v41, %v3097_v44  ;;  %v3147_v40 = vmul.f32 %v3125_v21, %v3098_v14  ;;  %v3593_v12 = vld.sshfl [vmem:[#allocation2 + $0x90] sm:$0x33 pattern:$0x75316420] }
 0x223   :  { %v3148_v53 = vmul.f32 %v3121_v41, %v3099_v55  ;;  %v3149_v37 = vmul.f32 %v3125_v21, %v3100_v39  ;;  %v3150_v31 = vadd.f32 %v3130_v13, %v3063_v32  ;;  %v3151_v26 = vadd.f32 %v3131_v23, %v3064_v49  ;;  %v3177_v32 = vld [vmem:[#allocation5 + $0x5c0] sm:$0xff]  ;;  %v5881_v23 = vld [vmem:[#allocation13_spill] sm:$0xff] }
 0x224   :  { %v3152_v52 = vadd.f32 %v3132_v22, %v3065_v4  ;;  %v3153_v17 = vadd.f32 %v3133_v61, %v3066_v29  ;;  %v3154_v7 = vadd.f32 %v3134_v15, %v3067_v42  ;;  %v3155_v10 = vadd.f32 %v3135_v48, %v3068_v50  ;;  %v5376_v50 = vld [vmem:[#allocation5 + $0x5c8] sm:$0xff] }
 0x225   :  { %v3156_v33 = vadd.f32 %v3136_v54, %v3069_v8  ;;  %v3157_v5 = vadd.f32 %v3137_v59, %v3070_v27  ;;  %v3158_v58 = vadd.f32 %v3138_v47, %v3071_v0  ;;  %v3159_v11 = vadd.f32 %v3139_v30, %v3072_v38  ;;  %5877 = vst [vmem:[#allocation14_spill] sm:$0xff] %v5376_v50 }
 0x226   :  { %v3160_v34 = vadd.f32 %v3140_v57, %v3073_v56  ;;  %v3161_v63 = vadd.f32 %v3141_v18, %v3074_v9  ;;  %v3162_v3 = vadd.f32 %v3142_v6, %v3075_v35  ;;  %v3163_v44 = vadd.f32 %v3143_v1, %v3076_v46  ;;  %v5379_v56 = vld [vmem:[#allocation5 + $0x5d0] sm:$0xff] }
 0x227   :  { %v3164_v14 = vadd.f32 %v3144_v25, %v3077_v28  ;;  %v3165_v55 = vadd.f32 %v3145_v43, %v3078_v36  ;;  %v3166_v39 = vadd.f32 %v3146_v16, %v3079_v20  ;;  %v3167_v49 = vadd.f32 %v3147_v40, %v3080_v45 }
 0x228   :  { %v3168_v4 = vadd.f32 %v3148_v53, %v3081_v60  ;;  %v3169_v29 = vadd.f32 %v3149_v37, %v3082_v51  ;;  %v3182_v42 = vunpack.c.l.bf16 %v3175_v24  ;;  %v3183_v8 = vunpack.c.h.bf16 %v3175_v24  ;;  %v5878_v51 = vld [vmem:[#allocation12_spill] sm:$0xff] }
 0x229   :  { %v3184_v27 = vunpack.c.l.bf16 %v3176_v19  ;;  %v3196_v0 = vcombine.high %v3593_v12, %v3593_v12  ;;  %v3200_v38 = vrot.slane %v3593_v12, %v3726_v2  ;;  %v3185_v9 = vunpack.c.h.bf16 %v3176_v19 }
 0x22a   :  { %v3186_v35 = vunpack.c.l.bf16 %v3177_v32  ;;  %v3187_v46 = vunpack.c.h.bf16 %v3177_v32  ;;  %v3204_v28 = vrot.slane %v3593_v12, %v5861_v62  ;;  %v5879_v24 = vunpack.c.l.bf16 %v5878_v51 }
 0x22b   :  { %v3208_v36 = vrot.slane %v3196_v0, %v3726_v2  ;;  %v3212_v20 = vrot.slane %v3196_v0, %v5861_v62  ;;  %v5880_v21 = vunpack.c.h.bf16 %v5878_v51  ;;  %v5882_v22 = vunpack.c.l.bf16 %v5881_v23  ;;  %v3262_v62 = vld [vmem:[#allocation5 + $0x5d8] sm:$0xff] }
 0x22c   :  { %v3217_v41 = vmul.f32 %v3200_v38, %v5879_v24  ;;  %v5883_v48 = vunpack.c.h.bf16 %v5881_v23  ;;  %v3221_v59 = vmul.f32 %v3200_v38, %v3182_v42  ;;  %v3222_v47 = vmul.f32 %v3204_v28, %v3183_v8 }
 0x22d   :  { %v3218_v13 = vmul.f32 %v3204_v28, %v5880_v21  ;;  %v3219_v61 = vmul.f32 %v3200_v38, %v5882_v22  ;;  %v3223_v30 = vmul.f32 %v3200_v38, %v3184_v27  ;;  %v3224_v57 = vmul.f32 %v3204_v28, %v3185_v9 }
 0x22e   :  { %v3220_v54 = vmul.f32 %v3204_v28, %v5883_v48  ;;  %v3225_v18 = vmul.f32 %v3200_v38, %v3186_v35  ;;  %v3226_v6 = vmul.f32 %v3204_v28, %v3187_v46  ;;  %v5884_v1 = vmov %v5879_v24 }
 0x22f   :  { %v3227_v25 = vmul.f32 %v3208_v36, %v5884_v1  ;;  %v5885_v43 = vmov %v5880_v21  ;;  %v5886_v40 = vmov %v5882_v22  ;;  %v5887_v37 = vmov %v5883_v48 }
 0x230   :  { %v3228_v16 = vmul.f32 %v3212_v20, %v5885_v43  ;;  %v3229_v53 = vmul.f32 %v3208_v36, %v5886_v40  ;;  %v3230_v12 = vmul.f32 %v3212_v20, %v5887_v37  ;;  %v3231_v19 = vmul.f32 %v3208_v36, %v3182_v42 }
 0x231   :  { %v3232_v32 = vmul.f32 %v3212_v20, %v3183_v8  ;;  %v3233_v0 = vmul.f32 %v3208_v36, %v3184_v27  ;;  %v3234_v24 = vmul.f32 %v3212_v20, %v3185_v9  ;;  %v3235_v21 = vmul.f32 %v3208_v36, %v3186_v35  ;;  %v5888_v35 = vld [vmem:[#allocation11_spill] sm:$0xff] }
 0x232   :  { %v3236_v22 = vmul.f32 %v3212_v20, %v3187_v46  ;;  %v3237_v38 = vadd.f32 %v3217_v41, %v3150_v31  ;;  %v3238_v28 = vadd.f32 %v3218_v13, %v3151_v26  ;;  %v3239_v48 = vadd.f32 %v3219_v61, %v3152_v52  ;;  %v3594_v31 = vld.sshfl [vmem:[#allocation2 + $0x94] sm:$0x33 pattern:$0x75316420]  ;;  %v3263_v26 = vld [vmem:[#allocation5 + $0x5e0] sm:$0xff]  ;;  %v5889_v41 = vld [vmem:[#allocation14_spill] sm:$0xff] }
 0x233   :  { %v3240_v15 = vadd.f32 %v3220_v54, %v3153_v17  ;;  %v3241_v1 = vadd.f32 %v3221_v59, %v3154_v7  ;;  %v3242_v60 = vadd.f32 %v3222_v47, %v3155_v10  ;;  %v3243_v51 = vadd.f32 %v3223_v30, %v3156_v33  ;;  %v3264_v33 = vld [vmem:[#allocation5 + $0x5e8] sm:$0xff] }
 0x234   :  { %v3244_v43 = vadd.f32 %v3224_v57, %v3157_v5  ;;  %v3245_v45 = vadd.f32 %v3225_v18, %v3158_v58  ;;  %v3246_v50 = vadd.f32 %v3226_v6, %v3159_v11  ;;  %v3247_v40 = vadd.f32 %v3227_v25, %v3160_v34  ;;  %v5411_v5 = vld [vmem:[#allocation5 + $0x5f0] sm:$0xff] }
 0x235   :  { %v5403_v23 = vadd.f32 %v3228_v16, %v3161_v63  ;;  %v5405_v42 = vadd.f32 %v3229_v53, %v3162_v3  ;;  %v5407_v8 = vadd.f32 %v3230_v12, %v3163_v44  ;;  %v5409_v27 = vadd.f32 %v3231_v19, %v3164_v14  ;;  %v5414_v3 = vld [vmem:[#allocation5 + $0x5f8] sm:$0xff] }
 0x236   :  { %v3252_v52 = vadd.f32 %v3232_v32, %v3165_v55  ;;  %v3253_v17 = vadd.f32 %v3233_v0, %v3166_v39  ;;  %v3254_v7 = vadd.f32 %v3234_v24, %v3167_v49  ;;  %v3255_v10 = vadd.f32 %v3235_v21, %v3168_v4 }
 0x237   :  { %v3256_v58 = vadd.f32 %v3236_v22, %v3169_v29  ;;  %v3268_v11 = vunpack.c.h.bf16 %v5379_v56  ;;  %v3269_v63 = vunpack.c.l.bf16 %v3262_v62  ;;  %v3270_v34 = vunpack.c.h.bf16 %v3262_v62 }
 0x238   :  { %v3271_v44 = vunpack.c.l.bf16 %v3263_v26  ;;  %v3283_v9 = vcombine.high %v3594_v31, %v3594_v31  ;;  %v3287_v14 = vrot.slane %v3594_v31, %v3726_v2  ;;  %v3291_v46 = vrot.slane %v3594_v31, %v5888_v35 }
 0x239   :  { %v3272_v55 = vunpack.c.h.bf16 %v3263_v26  ;;  %v3273_v39 = vunpack.c.l.bf16 %v3264_v33  ;;  %v3274_v49 = vunpack.c.h.bf16 %v3264_v33  ;;  %v3352_v4 = vunpack.c.l.bf16 %v5411_v5 }
 0x23a   :  { %v3295_v36 = vrot.slane %v3283_v9, %v3726_v2  ;;  %v3299_v29 = vrot.slane %v3283_v9, %v5888_v35  ;;  %v3353_v20 = vunpack.c.h.bf16 %v5411_v5  ;;  %v3354_v62 = vunpack.c.l.bf16 %v5414_v3 }
 0x23b   :  { %v5890_v13 = vunpack.c.l.bf16 %v5889_v41  ;;  %v5891_v54 = vunpack.c.h.bf16 %v5889_v41  ;;  %v5892_v47 = vunpack.c.l.bf16 %v5379_v56  ;;  %v3307_v18 = vmul.f32 %v3291_v46, %v3268_v11 }
 0x23c   :  { %v3308_v6 = vmul.f32 %v3287_v14, %v3269_v63  ;;  %v3309_v25 = vmul.f32 %v3291_v46, %v3270_v34  ;;  %v3310_v16 = vmul.f32 %v3287_v14, %v3271_v44  ;;  %v3311_v53 = vmul.f32 %v3291_v46, %v3272_v55 }
 0x23d   :  { %v3304_v61 = vmul.f32 %v3287_v14, %v5890_v13  ;;  %v3305_v59 = vmul.f32 %v3291_v46, %v5891_v54  ;;  %v3306_v30 = vmul.f32 %v3287_v14, %v5892_v47  ;;  %v3312_v37 = vmul.f32 %v3287_v14, %v3273_v39 }
 0x23e   :  { %v3313_v12 = vmul.f32 %v3291_v46, %v3274_v49  ;;  %v5893_v19 = vmov %v5890_v13  ;;  %v5894_v0 = vmov %v5891_v54  ;;  %v5895_v21 = vmov %v5892_v47 }
 0x23f   :  { %v3314_v32 = vmul.f32 %v3295_v36, %v5893_v19  ;;  %v3315_v24 = vmul.f32 %v3299_v29, %v5894_v0  ;;  %v3316_v22 = vmul.f32 %v3295_v36, %v5895_v21  ;;  %v3317_v31 = vmul.f32 %v3299_v29, %v3268_v11 }
 0x240   :  { %v3318_v26 = vmul.f32 %v3295_v36, %v3269_v63  ;;  %v3319_v33 = vmul.f32 %v3299_v29, %v3270_v34  ;;  %v3320_v9 = vmul.f32 %v3295_v36, %v3271_v44  ;;  %v3321_v13 = vmul.f32 %v3299_v29, %v3272_v55  ;;  %v3350_v44 = vld [vmem:[#allocation5 + $0x608] sm:$0xff]  ;;  %v5478_v55 = vld [vmem:[#allocation5 + $0x618] sm:$0xff] }
 0x241   :  { %v3322_v54 = vmul.f32 %v3295_v36, %v3273_v39  ;;  %v3323_v47 = vmul.f32 %v3299_v29, %v3274_v49  ;;  %v5436_v57 = vadd.f32 %v3304_v61, %v3237_v38  ;;  %v5438_v14 = vadd.f32 %v3305_v59, %v3238_v28  ;;  %v3349_v28 = vld [vmem:[#allocation5 + $0x600] sm:$0xff] }
 0x242   :  { %v5440_v46 = vadd.f32 %v3306_v30, %v3239_v48  ;;  %v5442_v19 = vadd.f32 %v3307_v18, %v3240_v15  ;;  %v5444_v41 = vadd.f32 %v3308_v6, %v3241_v1  ;;  %v5446_v0 = vadd.f32 %v3309_v25, %v3242_v60  ;;  %v5482_v36 = vld [vmem:[#allocation5 + $0x620] sm:$0xff] }
 0x243   :  { %v5448_v56 = vadd.f32 %v3310_v16, %v3243_v51  ;;  %v5450_v11 = vadd.f32 %v3311_v53, %v3244_v43  ;;  %v5452_v63 = vadd.f32 %v3312_v37, %v3245_v45  ;;  %v5454_v34 = vadd.f32 %v3313_v12, %v3246_v50  ;;  %v3595_v45 = vld.sshfl [vmem:[#allocation2 + $0x98] sm:$0x33 pattern:$0x75316420] }
 0x244   :  { %v5456_v38 = vadd.f32 %v3314_v32, %v3247_v40  ;;  %v5459_v48 = vadd.f32 %v3315_v24, %v5403_v23  ;;  %v5462_v15 = vadd.f32 %v3316_v22, %v5405_v42  ;;  %v5465_v60 = vadd.f32 %v3317_v31, %v5407_v8  ;;  %v3351_v23 = vld [vmem:[#allocation5 + $0x610] sm:$0xff] }
 0x245   :  { %v5468_v1 = vadd.f32 %v3318_v26, %v5409_v27  ;;  %v5470_v51 = vadd.f32 %v3319_v33, %v3252_v52  ;;  %v5472_v50 = vadd.f32 %v3320_v9, %v3253_v17  ;;  %v5474_v43 = vadd.f32 %v3321_v13, %v3254_v7  ;;  %v5486_v7 = vld [vmem:[#allocation5 + $0x628] sm:$0xff] }
 0x246   :  { %v5476_v40 = vadd.f32 %v3322_v54, %v3255_v10  ;;  %v5480_v42 = vadd.f32 %v3323_v47, %v3256_v58  ;;  %v3356_v39 = vunpack.c.l.bf16 %v3349_v28  ;;  %v3357_v8 = vunpack.c.h.bf16 %v3349_v28 }
 0x247   :  { %v3358_v49 = vunpack.c.l.bf16 %v3350_v44  ;;  %v3359_v27 = vunpack.c.h.bf16 %v3350_v44  ;;  %v3370_v29 = vcombine.high %v3595_v45, %v3595_v45  ;;  %v3374_v52 = vrot.slane %v3595_v45, %v3726_v2 }
 0x248   :  { %v3378_v17 = vrot.slane %v3595_v45, %v5888_v35  ;;  %v3360_v10 = vunpack.c.l.bf16 %v3351_v23  ;;  %v3361_v61 = vunpack.c.h.bf16 %v3351_v23  ;;  %v3439_v59 = vunpack.c.l.bf16 %v5478_v55 }
 0x249   :  { %v3440_v58 = vunpack.c.h.bf16 %v5478_v55  ;;  %v3382_v30 = vrot.slane %v3370_v29, %v3726_v2  ;;  %v3386_v18 = vrot.slane %v3370_v29, %v5888_v35  ;;  %v3441_v6 = vunpack.c.l.bf16 %v5482_v36 }
 0x24a   :  { %v3391_v16 = vmul.f32 %v3374_v52, %v3352_v4  ;;  %v3392_v53 = vmul.f32 %v3378_v17, %v3353_v20  ;;  %v3393_v37 = vmul.f32 %v3374_v52, %v3354_v62  ;;  %v5896_v32 = vunpack.c.h.bf16 %v5414_v3 }
 0x24b   :  { %v3395_v21 = vmul.f32 %v3374_v52, %v3356_v39  ;;  %v3396_v22 = vmul.f32 %v3378_v17, %v3357_v8  ;;  %v3397_v31 = vmul.f32 %v3374_v52, %v3358_v49  ;;  %v3398_v26 = vmul.f32 %v3378_v17, %v3359_v27 }
 0x24c   :  { %v3394_v24 = vmul.f32 %v3378_v17, %v5896_v32  ;;  %v3399_v33 = vmul.f32 %v3374_v52, %v3360_v10  ;;  %v3400_v9 = vmul.f32 %v3378_v17, %v3361_v61  ;;  %v3401_v13 = vmul.f32 %v3382_v30, %v3352_v4 }
 0x24d   :  { %v3402_v54 = vmul.f32 %v3386_v18, %v3353_v20  ;;  %v3403_v47 = vmul.f32 %v3382_v30, %v3354_v62  ;;  %v5897_v28 = vmov %v5896_v32  ;;  %v3405_v45 = vmul.f32 %v3382_v30, %v3356_v39 }
 0x24e   :  { %v3404_v44 = vmul.f32 %v3386_v18, %v5897_v28  ;;  %v3406_v23 = vmul.f32 %v3386_v18, %v3357_v8  ;;  %v3407_v29 = vmul.f32 %v3382_v30, %v3358_v49  ;;  %v3408_v32 = vmul.f32 %v3386_v18, %v3359_v27  ;;  %v3596_v27 = vld.sshfl [vmem:[#allocation2 + $0x9c] sm:$0x33 pattern:$0x75316420] }
 0x24f   :  { %v3409_v12 = vmul.f32 %v3382_v30, %v3360_v10  ;;  %v3410_v25 = vmul.f32 %v3386_v18, %v3361_v61  ;;  %v3411_v52 = vadd.f32 %v3391_v16, %v5436_v57  ;;  %v3412_v17 = vadd.f32 %v3392_v53, %v5438_v14  ;;  %v3437_v14 = vld [vmem:[#allocation5 + $0x630] sm:$0xff]  ;;  %v3438_v10 = vld [vmem:[#allocation5 + $0x638] sm:$0xff] }
 0x250   :  { %v3413_v4 = vadd.f32 %v3393_v37, %v5440_v46  ;;  %v3414_v5 = vadd.f32 %v3394_v24, %v5442_v19  ;;  %v3415_v20 = vadd.f32 %v3395_v21, %v5444_v41  ;;  %v3416_v62 = vadd.f32 %v3396_v22, %v5446_v0 }
 0x251   :  { %v3417_v3 = vadd.f32 %v3397_v31, %v5448_v56  ;;  %v3418_v39 = vadd.f32 %v3398_v26, %v5450_v11  ;;  %v3419_v8 = vadd.f32 %v3399_v33, %v5452_v63  ;;  %v3420_v49 = vadd.f32 %v3400_v9, %v5454_v34 }
 0x252   :  { %v3421_v57 = vadd.f32 %v3401_v13, %v5456_v38  ;;  %v3422_v46 = vadd.f32 %v3402_v54, %v5459_v48  ;;  %v3423_v19 = vadd.f32 %v3403_v47, %v5462_v15  ;;  %v3424_v41 = vadd.f32 %v3404_v44, %v5465_v60 }
 0x253   :  { %v3425_v0 = vadd.f32 %v3405_v45, %v5468_v1  ;;  %v3426_v56 = vadd.f32 %v3406_v23, %v5470_v51  ;;  %v3427_v11 = vadd.f32 %v3407_v29, %v5472_v50  ;;  %v3428_v63 = vadd.f32 %v3408_v32, %v5474_v43 }
 0x254   :  { %v3429_v34 = vadd.f32 %v3409_v12, %v5476_v40  ;;  %v3444_v38 = vunpack.c.h.bf16 %v5486_v7  ;;  %v3445_v61 = vunpack.c.l.bf16 %v3437_v14  ;;  %v3446_v30 = vunpack.c.h.bf16 %v3437_v14 }
 0x255   :  { %v3457_v48 = vcombine.high %v3596_v27, %v3596_v27  ;;  %v3447_v18 = vunpack.c.l.bf16 %v3438_v10  ;;  %v3448_v15 = vunpack.c.h.bf16 %v3438_v10  ;;  %v3461_v60 = vrot.slane %v3596_v27, %v3726_v2 }
 0x256   :  { %v3465_v1 = vrot.slane %v3596_v27, %v5888_v35  ;;  %v3430_v16 = vadd.f32 %v3410_v25, %v5480_v42  ;;  %v5898_v37 = vunpack.c.h.bf16 %v5482_v36  ;;  %v5899_v24 = vunpack.c.l.bf16 %v5486_v7 }
 0x257   :  { %v3469_v51 = vrot.slane %v3457_v48, %v3726_v2  ;;  %v3473_v50 = vrot.slane %v3457_v48, %v5888_v35  ;;  %v3478_v43 = vmul.f32 %v3461_v60, %v3439_v59  ;;  %v3480_v53 = vmul.f32 %v3461_v60, %v3441_v6 }
 0x258   :  { %v3479_v40 = vmul.f32 %v3465_v1, %v3440_v58  ;;  %v3481_v12 = vmul.f32 %v3465_v1, %v5898_v37  ;;  %v3482_v42 = vmul.f32 %v3461_v60, %v5899_v24  ;;  %v3483_v25 = vmul.f32 %v3465_v1, %v3444_v38 }
 0x259   :  { %v3484_v2 = vmul.f32 %v3461_v60, %v3445_v61  ;;  %v3485_v21 = vmul.f32 %v3465_v1, %v3446_v30  ;;  %v3486_v35 = vmul.f32 %v3461_v60, %v3447_v18  ;;  %v3487_v22 = vmul.f32 %v3465_v1, %v3448_v15 }
 0x25a   :  { %v3488_v31 = vmul.f32 %v3469_v51, %v3439_v59  ;;  %v3489_v26 = vmul.f32 %v3473_v50, %v3440_v58  ;;  %v3490_v33 = vmul.f32 %v3469_v51, %v3441_v6  ;;  %v5900_v9 = vmov %v5898_v37 }
 0x25b   :  { %v3491_v13 = vmul.f32 %v3473_v50, %v5900_v9  ;;  %v5901_v54 = vmov %v5899_v24  ;;  %v3493_v28 = vmul.f32 %v3473_v50, %v3444_v38  ;;  %v3494_v44 = vmul.f32 %v3469_v51, %v3445_v61 }
 0x25c   :  { %v3492_v47 = vmul.f32 %v3469_v51, %v5901_v54  ;;  %v3495_v45 = vmul.f32 %v3473_v50, %v3446_v30  ;;  %v3496_v23 = vmul.f32 %v3469_v51, %v3447_v18  ;;  %v3497_v29 = vmul.f32 %v3473_v50, %v3448_v15 }
 0x25d   :  { %v3498_v32 = vadd.f32 %v3478_v43, %v3411_v52  ;;  %v3499_v27 = vadd.f32 %v3479_v40, %v3412_v17  ;;  %v3500_v59 = vadd.f32 %v3480_v53, %v3413_v4  ;;  %v3501_v14 = vadd.f32 %v3481_v12, %v3414_v5 }
 0x25e   :  { %v3502_v55 = vadd.f32 %v3482_v42, %v3415_v20  ;;  %v3503_v58 = vadd.f32 %v3483_v25, %v3416_v62  ;;  %v3504_v6 = vadd.f32 %v3484_v2, %v3417_v3  ;;  %v3505_v10 = vadd.f32 %v3485_v21, %v3418_v39 }
 0x25f   :  { %v3506_v36 = vadd.f32 %v3486_v35, %v3419_v8  ;;  %v3507_v48 = vadd.f32 %v3487_v22, %v3420_v49  ;;  %v3508_v60 = vadd.f32 %v3488_v31, %v3421_v57  ;;  %v3509_v7 = vadd.f32 %v3489_v26, %v3422_v46  ;;  %3518 = vst [vmem:[#allocation7] sm:$0xff] %v3498_v32 }
 0x260   :  { %3521 = vst [vmem:[#allocation7 + $0x10] sm:$0xff] %v3500_v59  ;;  %3520 = vst.msk [vmem:[#allocation7 + $0x8] sm:$0xff] %vm3519_vm0, %v3499_v27  ;;  %v3510_v52 = vadd.f32 %v3490_v33, %v3423_v19  ;;  %v3511_v17 = vadd.f32 %v3491_v13, %v3424_v41  ;;  %v3512_v4 = vadd.f32 %v3492_v47, %v3425_v0 }
 0x261   :  { %3522 = vst.msk [vmem:[#allocation7 + $0x18] sm:$0xff] %vm3519_vm0, %v3501_v14  ;;  %v3513_v5 = vadd.f32 %v3493_v28, %v3426_v56  ;;  %3523 = vst [vmem:[#allocation7 + $0x20] sm:$0xff] %v3502_v55  ;;  %v3514_v20 = vadd.f32 %v3494_v44, %v3427_v11  ;;  %v3515_v62 = vadd.f32 %v3495_v45, %v3428_v63 }
 0x262   :  { %3525 = vst [vmem:[#allocation7 + $0x30] sm:$0xff] %v3504_v6  ;;  %3524 = vst.msk [vmem:[#allocation7 + $0x28] sm:$0xff] %vm3519_vm0, %v3503_v58  ;;  %v3516_v3 = vadd.f32 %v3496_v23, %v3429_v34  ;;  %v3517_v39 = vadd.f32 %v3497_v29, %v3430_v16 }
 0x263   :  { %3526 = vst.msk [vmem:[#allocation7 + $0x38] sm:$0xff] %vm3519_vm0, %v3505_v10  ;;  %3527 = vst [vmem:[#allocation7 + $0x40] sm:$0xff] %v3506_v36 }
 0x264   :  { %3529 = vst [vmem:[#allocation7 + $0x50] sm:$0xff] %v3508_v60  ;;  %3528 = vst.msk [vmem:[#allocation7 + $0x48] sm:$0xff] %vm3519_vm0, %v3507_v48 }
 0x265   :  { %3530 = vst.msk [vmem:[#allocation7 + $0x58] sm:$0xff] %vm3519_vm0, %v3509_v7  ;;  %3531 = vst [vmem:[#allocation7 + $0x60] sm:$0xff] %v3510_v52 }
 0x266   :  { %3533 = vst [vmem:[#allocation7 + $0x70] sm:$0xff] %v3512_v4  ;;  %3532 = vst.msk [vmem:[#allocation7 + $0x68] sm:$0xff] %vm3519_vm0, %v3511_v17 }
 0x267   :  { %3534 = vst.msk [vmem:[#allocation7 + $0x78] sm:$0xff] %vm3519_vm0, %v3513_v5  ;;  %3535 = vst [vmem:[#allocation7 + $0x80] sm:$0xff] %v3514_v20 }
 0x268   :  { %3537 = vst [vmem:[#allocation7 + $0x90] sm:$0xff] %v3516_v3  ;;  %3536 = vst.msk [vmem:[#allocation7 + $0x88] sm:$0xff] %vm3519_vm0, %v3515_v62 }
 0x269   :  { %3538 = vst.msk [vmem:[#allocation7 + $0x98] sm:$0xff] %vm3519_vm0, %v3517_v39 }
 0x26a   :  { %3661 = shalt.err (!%p3658_p6)
}
 0x26b   :  { %s3662_s12 = scalar_lea.hbm %s5587_s2, 2560 }
 0x26c   :  { %p3663_p7 = scmp.ne.s32.totalorder %s5587_s2, %s3662_s12  ;;  %p3666_p8 = scmp.lt.u32.totalorder %s3662_s12, %s5587_s2 }
 0x26e   :  { %p3668_p9 = pnand %p3666_p8, %p3663_p7 }
 0x270   :  { %3671 = shalt.err (!%p3668_p9)
}
 0x271   :  { %s3685_s17 = smov 256   ;;  %s3686_s18 = smov 16  }
 0x272   :  { %3550 = dma.vmem_to_hbm [thread:$0]  %s5560_s8, 2560, %s5587_s2, [#allocation4], %s3685_s17, %s3685_s17, %s3686_s18  }
 0x273   :  { %3676 = dma.done.wait [#allocation4], 2560  }
 0x274   :  { %3677 = vsyncadd [#allocation4], 4294964736 }
 0x275   :  { %3554 = vsyncpa [#allocation3], 1 }
 0x276   :  { %3555 = vsyncpa [#allocation6], 1 }
 0x277   :  { %3556 = vsyncpa [#allocation4], 1 }

// kernel: reverse.8
= control target key start
LH: loop header
LB: loop body
LE: loop exit
PB: predicated region body
PF: predicated region fallthrough
CT: control target
= control target key end

     0   :  { %s1160_s0 = inlined_call_operand.vmem [shape: f32[20,2,8,8,6], index: 0, kind: input, shape index: {}]   ;;  %s1161_s1 = inlined_call_operand.vmem [shape: f32[20,2,8,8,6], index: 1, kind: output, shape index: {}]  }
   0x1   :  { %v384_v0 = vld [vmem:[%s1160_s0 + $0x140] sm:$0xff]  ;;  %v406_v12 = vld [vmem:[%s1160_s0 + $0x148] sm:$0xff]  ;;  %v430_v24 = vld [vmem:[%s1160_s0 + $0x150] sm:$0xff] }
   0x2   :  { %v385_v1 = vld [vmem:[%s1160_s0 + $0x2c0] sm:$0xff]  ;;  %4 = vst [vmem:[%s1161_s1] sm:$0xff] %v384_v0  ;;  %v408_v13 = vld [vmem:[%s1160_s0 + $0x2c8] sm:$0xff]  ;;  %407 = vst [vmem:[%s1161_s1 + $0x8] sm:$0xff] %v406_v12 }
   0x3   :  { %v387_v2 = vld [vmem:[%s1160_s0 + $0x100] sm:$0xff]  ;;  %386 = vst [vmem:[%s1161_s1 + $0x180] sm:$0xff] %v385_v1  ;;  %v410_v14 = vld [vmem:[%s1160_s0 + $0x108] sm:$0xff]  ;;  %409 = vst [vmem:[%s1161_s1 + $0x188] sm:$0xff] %v408_v13 }
   0x4   :  { %388 = vst [vmem:[%s1161_s1 + $0x40] sm:$0xff] %v387_v2  ;;  %v389_v3 = vld [vmem:[%s1160_s0 + $0x280] sm:$0xff]  ;;  %411 = vst [vmem:[%s1161_s1 + $0x48] sm:$0xff] %v410_v14  ;;  %v412_v15 = vld [vmem:[%s1160_s0 + $0x288] sm:$0xff] }
   0x5   :  { %v391_v4 = vld [vmem:[%s1160_s0 + $0xc0] sm:$0xff]  ;;  %390 = vst [vmem:[%s1161_s1 + $0x1c0] sm:$0xff] %v389_v3  ;;  %v414_v16 = vld [vmem:[%s1160_s0 + $0xc8] sm:$0xff]  ;;  %413 = vst [vmem:[%s1161_s1 + $0x1c8] sm:$0xff] %v412_v15 }
   0x6   :  { %v393_v5 = vld [vmem:[%s1160_s0 + $0x240] sm:$0xff]  ;;  %392 = vst [vmem:[%s1161_s1 + $0x80] sm:$0xff] %v391_v4  ;;  %v416_v17 = vld [vmem:[%s1160_s0 + $0x248] sm:$0xff]  ;;  %415 = vst [vmem:[%s1161_s1 + $0x88] sm:$0xff] %v414_v16 }
   0x7   :  { %394 = vst [vmem:[%s1161_s1 + $0x200] sm:$0xff] %v393_v5  ;;  %v395_v6 = vld [vmem:[%s1160_s0 + $0x80] sm:$0xff]  ;;  %417 = vst [vmem:[%s1161_s1 + $0x208] sm:$0xff] %v416_v17  ;;  %v418_v18 = vld [vmem:[%s1160_s0 + $0x88] sm:$0xff] }
   0x8   :  { %v397_v7 = vld [vmem:[%s1160_s0 + $0x200] sm:$0xff]  ;;  %396 = vst [vmem:[%s1161_s1 + $0xc0] sm:$0xff] %v395_v6  ;;  %v420_v19 = vld [vmem:[%s1160_s0 + $0x208] sm:$0xff]  ;;  %419 = vst [vmem:[%s1161_s1 + $0xc8] sm:$0xff] %v418_v18 }
   0x9   :  { %v399_v8 = vld [vmem:[%s1160_s0 + $0x40] sm:$0xff]  ;;  %398 = vst [vmem:[%s1161_s1 + $0x240] sm:$0xff] %v397_v7  ;;  %v422_v20 = vld [vmem:[%s1160_s0 + $0x48] sm:$0xff]  ;;  %421 = vst [vmem:[%s1161_s1 + $0x248] sm:$0xff] %v420_v19 }
   0xa   :  { %400 = vst [vmem:[%s1161_s1 + $0x100] sm:$0xff] %v399_v8  ;;  %v401_v9 = vld [vmem:[%s1160_s0 + $0x1c0] sm:$0xff]  ;;  %423 = vst [vmem:[%s1161_s1 + $0x108] sm:$0xff] %v422_v20  ;;  %v424_v21 = vld [vmem:[%s1160_s0 + $0x1c8] sm:$0xff] }
   0xb   :  { %v41_v10 = vld [vmem:[%s1160_s0] sm:$0xff]  ;;  %402 = vst [vmem:[%s1161_s1 + $0x280] sm:$0xff] %v401_v9  ;;  %v426_v22 = vld [vmem:[%s1160_s0 + $0x8] sm:$0xff]  ;;  %425 = vst [vmem:[%s1161_s1 + $0x288] sm:$0xff] %v424_v21 }
   0xc   :  { %v404_v11 = vld [vmem:[%s1160_s0 + $0x180] sm:$0xff]  ;;  %403 = vst [vmem:[%s1161_s1 + $0x140] sm:$0xff] %v41_v10  ;;  %v428_v23 = vld [vmem:[%s1160_s0 + $0x188] sm:$0xff]  ;;  %427 = vst [vmem:[%s1161_s1 + $0x148] sm:$0xff] %v426_v22 }
   0xd   :  { %405 = vst [vmem:[%s1161_s1 + $0x2c0] sm:$0xff] %v404_v11  ;;  %429 = vst [vmem:[%s1161_s1 + $0x2c8] sm:$0xff] %v428_v23  ;;  %v432_v25 = vld [vmem:[%s1160_s0 + $0x2d0] sm:$0xff]  ;;  %v454_v36 = vld [vmem:[%s1160_s0 + $0x158] sm:$0xff] }
   0xe   :  { %v434_v26 = vld [vmem:[%s1160_s0 + $0x110] sm:$0xff]  ;;  %431 = vst [vmem:[%s1161_s1 + $0x10] sm:$0xff] %v430_v24  ;;  %433 = vst [vmem:[%s1161_s1 + $0x190] sm:$0xff] %v432_v25  ;;  %v456_v37 = vld [vmem:[%s1160_s0 + $0x2d8] sm:$0xff] }
   0xf   :  { %435 = vst [vmem:[%s1161_s1 + $0x50] sm:$0xff] %v434_v26  ;;  %v436_v27 = vld [vmem:[%s1160_s0 + $0x290] sm:$0xff]  ;;  %v458_v38 = vld [vmem:[%s1160_s0 + $0x118] sm:$0xff]  ;;  %455 = vst [vmem:[%s1161_s1 + $0x18] sm:$0xff] %v454_v36 }
  0x10   :  { %v438_v28 = vld [vmem:[%s1160_s0 + $0xd0] sm:$0xff]  ;;  %437 = vst [vmem:[%s1161_s1 + $0x1d0] sm:$0xff] %v436_v27  ;;  %457 = vst [vmem:[%s1161_s1 + $0x198] sm:$0xff] %v456_v37  ;;  %v460_v39 = vld [vmem:[%s1160_s0 + $0x298] sm:$0xff] }
  0x11   :  { %v440_v29 = vld [vmem:[%s1160_s0 + $0x250] sm:$0xff]  ;;  %439 = vst [vmem:[%s1161_s1 + $0x90] sm:$0xff] %v438_v28  ;;  %459 = vst [vmem:[%s1161_s1 + $0x58] sm:$0xff] %v458_v38  ;;  %v462_v40 = vld [vmem:[%s1160_s0 + $0xd8] sm:$0xff] }
  0x12   :  { %441 = vst [vmem:[%s1161_s1 + $0x210] sm:$0xff] %v440_v29  ;;  %v442_v30 = vld [vmem:[%s1160_s0 + $0x90] sm:$0xff]  ;;  %v464_v41 = vld [vmem:[%s1160_s0 + $0x258] sm:$0xff]  ;;  %461 = vst [vmem:[%s1161_s1 + $0x1d8] sm:$0xff] %v460_v39 }
  0x13   :  { %v444_v31 = vld [vmem:[%s1160_s0 + $0x210] sm:$0xff]  ;;  %443 = vst [vmem:[%s1161_s1 + $0xd0] sm:$0xff] %v442_v30  ;;  %463 = vst [vmem:[%s1161_s1 + $0x98] sm:$0xff] %v462_v40  ;;  %v466_v42 = vld [vmem:[%s1160_s0 + $0x98] sm:$0xff] }
  0x14   :  { %v446_v32 = vld [vmem:[%s1160_s0 + $0x50] sm:$0xff]  ;;  %445 = vst [vmem:[%s1161_s1 + $0x250] sm:$0xff] %v444_v31  ;;  %465 = vst [vmem:[%s1161_s1 + $0x218] sm:$0xff] %v464_v41  ;;  %v468_v43 = vld [vmem:[%s1160_s0 + $0x218] sm:$0xff] }
  0x15   :  { %447 = vst [vmem:[%s1161_s1 + $0x110] sm:$0xff] %v446_v32  ;;  %v448_v33 = vld [vmem:[%s1160_s0 + $0x1d0] sm:$0xff]  ;;  %v470_v44 = vld [vmem:[%s1160_s0 + $0x58] sm:$0xff]  ;;  %467 = vst [vmem:[%s1161_s1 + $0xd8] sm:$0xff] %v466_v42 }
  0x16   :  { %v450_v34 = vld [vmem:[%s1160_s0 + $0x10] sm:$0xff]  ;;  %449 = vst [vmem:[%s1161_s1 + $0x290] sm:$0xff] %v448_v33  ;;  %469 = vst [vmem:[%s1161_s1 + $0x258] sm:$0xff] %v468_v43  ;;  %v472_v45 = vld [vmem:[%s1160_s0 + $0x1d8] sm:$0xff] }
  0x17   :  { %v452_v35 = vld [vmem:[%s1160_s0 + $0x190] sm:$0xff]  ;;  %451 = vst [vmem:[%s1161_s1 + $0x150] sm:$0xff] %v450_v34  ;;  %471 = vst [vmem:[%s1161_s1 + $0x118] sm:$0xff] %v470_v44  ;;  %v474_v46 = vld [vmem:[%s1160_s0 + $0x18] sm:$0xff] }
  0x18   :  { %453 = vst [vmem:[%s1161_s1 + $0x2d0] sm:$0xff] %v452_v35  ;;  %v476_v47 = vld [vmem:[%s1160_s0 + $0x198] sm:$0xff]  ;;  %473 = vst [vmem:[%s1161_s1 + $0x298] sm:$0xff] %v472_v45  ;;  %v478_v48 = vld [vmem:[%s1160_s0 + $0x160] sm:$0xff] }
  0x19   :  { %475 = vst [vmem:[%s1161_s1 + $0x158] sm:$0xff] %v474_v46  ;;  %477 = vst [vmem:[%s1161_s1 + $0x2d8] sm:$0xff] %v476_v47  ;;  %v480_v49 = vld [vmem:[%s1160_s0 + $0x2e0] sm:$0xff]  ;;  %v502_v60 = vld [vmem:[%s1160_s0 + $0x168] sm:$0xff] }
  0x1a   :  { %v482_v50 = vld [vmem:[%s1160_s0 + $0x120] sm:$0xff]  ;;  %479 = vst [vmem:[%s1161_s1 + $0x20] sm:$0xff] %v478_v48  ;;  %481 = vst [vmem:[%s1161_s1 + $0x1a0] sm:$0xff] %v480_v49  ;;  %v504_v61 = vld [vmem:[%s1160_s0 + $0x2e8] sm:$0xff] }
  0x1b   :  { %483 = vst [vmem:[%s1161_s1 + $0x60] sm:$0xff] %v482_v50  ;;  %v484_v51 = vld [vmem:[%s1160_s0 + $0x2a0] sm:$0xff]  ;;  %v506_v62 = vld [vmem:[%s1160_s0 + $0x128] sm:$0xff]  ;;  %503 = vst [vmem:[%s1161_s1 + $0x28] sm:$0xff] %v502_v60 }
  0x1c   :  { %v486_v52 = vld [vmem:[%s1160_s0 + $0xe0] sm:$0xff]  ;;  %485 = vst [vmem:[%s1161_s1 + $0x1e0] sm:$0xff] %v484_v51  ;;  %505 = vst [vmem:[%s1161_s1 + $0x1a8] sm:$0xff] %v504_v61  ;;  %v508_v63 = vld [vmem:[%s1160_s0 + $0x2a8] sm:$0xff] }
  0x1d   :  { %v488_v53 = vld [vmem:[%s1160_s0 + $0x260] sm:$0xff]  ;;  %487 = vst [vmem:[%s1161_s1 + $0xa0] sm:$0xff] %v486_v52  ;;  %507 = vst [vmem:[%s1161_s1 + $0x68] sm:$0xff] %v506_v62  ;;  %v510_v0 = vld [vmem:[%s1160_s0 + $0xe8] sm:$0xff] }
  0x1e   :  { %489 = vst [vmem:[%s1161_s1 + $0x220] sm:$0xff] %v488_v53  ;;  %v490_v54 = vld [vmem:[%s1160_s0 + $0xa0] sm:$0xff]  ;;  %v512_v1 = vld [vmem:[%s1160_s0 + $0x268] sm:$0xff]  ;;  %509 = vst [vmem:[%s1161_s1 + $0x1e8] sm:$0xff] %v508_v63 }
  0x1f   :  { %v492_v55 = vld [vmem:[%s1160_s0 + $0x220] sm:$0xff]  ;;  %491 = vst [vmem:[%s1161_s1 + $0xe0] sm:$0xff] %v490_v54  ;;  %511 = vst [vmem:[%s1161_s1 + $0xa8] sm:$0xff] %v510_v0  ;;  %v514_v2 = vld [vmem:[%s1160_s0 + $0xa8] sm:$0xff] }
  0x20   :  { %v494_v56 = vld [vmem:[%s1160_s0 + $0x60] sm:$0xff]  ;;  %493 = vst [vmem:[%s1161_s1 + $0x260] sm:$0xff] %v492_v55  ;;  %513 = vst [vmem:[%s1161_s1 + $0x228] sm:$0xff] %v512_v1  ;;  %v516_v3 = vld [vmem:[%s1160_s0 + $0x228] sm:$0xff] }
  0x21   :  { %495 = vst [vmem:[%s1161_s1 + $0x120] sm:$0xff] %v494_v56  ;;  %v496_v57 = vld [vmem:[%s1160_s0 + $0x1e0] sm:$0xff]  ;;  %v518_v4 = vld [vmem:[%s1160_s0 + $0x68] sm:$0xff]  ;;  %515 = vst [vmem:[%s1161_s1 + $0xe8] sm:$0xff] %v514_v2 }
  0x22   :  { %v498_v58 = vld [vmem:[%s1160_s0 + $0x20] sm:$0xff]  ;;  %497 = vst [vmem:[%s1161_s1 + $0x2a0] sm:$0xff] %v496_v57  ;;  %517 = vst [vmem:[%s1161_s1 + $0x268] sm:$0xff] %v516_v3  ;;  %v520_v5 = vld [vmem:[%s1160_s0 + $0x1e8] sm:$0xff] }
  0x23   :  { %v500_v59 = vld [vmem:[%s1160_s0 + $0x1a0] sm:$0xff]  ;;  %499 = vst [vmem:[%s1161_s1 + $0x160] sm:$0xff] %v498_v58  ;;  %519 = vst [vmem:[%s1161_s1 + $0x128] sm:$0xff] %v518_v4  ;;  %v522_v6 = vld [vmem:[%s1160_s0 + $0x28] sm:$0xff] }
  0x24   :  { %501 = vst [vmem:[%s1161_s1 + $0x2e0] sm:$0xff] %v500_v59  ;;  %v524_v7 = vld [vmem:[%s1160_s0 + $0x1a8] sm:$0xff]  ;;  %521 = vst [vmem:[%s1161_s1 + $0x2a8] sm:$0xff] %v520_v5  ;;  %v526_v8 = vld [vmem:[%s1160_s0 + $0x170] sm:$0xff] }
  0x25   :  { %523 = vst [vmem:[%s1161_s1 + $0x168] sm:$0xff] %v522_v6  ;;  %525 = vst [vmem:[%s1161_s1 + $0x2e8] sm:$0xff] %v524_v7  ;;  %v528_v9 = vld [vmem:[%s1160_s0 + $0x2f0] sm:$0xff]  ;;  %v550_v20 = vld [vmem:[%s1160_s0 + $0x178] sm:$0xff] }
  0x26   :  { %v530_v10 = vld [vmem:[%s1160_s0 + $0x130] sm:$0xff]  ;;  %527 = vst [vmem:[%s1161_s1 + $0x30] sm:$0xff] %v526_v8  ;;  %529 = vst [vmem:[%s1161_s1 + $0x1b0] sm:$0xff] %v528_v9  ;;  %v552_v21 = vld [vmem:[%s1160_s0 + $0x2f8] sm:$0xff] }
  0x27   :  { %531 = vst [vmem:[%s1161_s1 + $0x70] sm:$0xff] %v530_v10  ;;  %v532_v11 = vld [vmem:[%s1160_s0 + $0x2b0] sm:$0xff]  ;;  %v554_v22 = vld [vmem:[%s1160_s0 + $0x138] sm:$0xff]  ;;  %551 = vst [vmem:[%s1161_s1 + $0x38] sm:$0xff] %v550_v20 }
  0x28   :  { %v534_v12 = vld [vmem:[%s1160_s0 + $0xf0] sm:$0xff]  ;;  %533 = vst [vmem:[%s1161_s1 + $0x1f0] sm:$0xff] %v532_v11  ;;  %553 = vst [vmem:[%s1161_s1 + $0x1b8] sm:$0xff] %v552_v21  ;;  %v556_v23 = vld [vmem:[%s1160_s0 + $0x2b8] sm:$0xff] }
  0x29   :  { %v536_v13 = vld [vmem:[%s1160_s0 + $0x270] sm:$0xff]  ;;  %535 = vst [vmem:[%s1161_s1 + $0xb0] sm:$0xff] %v534_v12  ;;  %555 = vst [vmem:[%s1161_s1 + $0x78] sm:$0xff] %v554_v22  ;;  %v558_v24 = vld [vmem:[%s1160_s0 + $0xf8] sm:$0xff] }
  0x2a   :  { %537 = vst [vmem:[%s1161_s1 + $0x230] sm:$0xff] %v536_v13  ;;  %v538_v14 = vld [vmem:[%s1160_s0 + $0xb0] sm:$0xff]  ;;  %v560_v25 = vld [vmem:[%s1160_s0 + $0x278] sm:$0xff]  ;;  %557 = vst [vmem:[%s1161_s1 + $0x1f8] sm:$0xff] %v556_v23 }
  0x2b   :  { %v540_v15 = vld [vmem:[%s1160_s0 + $0x230] sm:$0xff]  ;;  %539 = vst [vmem:[%s1161_s1 + $0xf0] sm:$0xff] %v538_v14  ;;  %559 = vst [vmem:[%s1161_s1 + $0xb8] sm:$0xff] %v558_v24  ;;  %v562_v26 = vld [vmem:[%s1160_s0 + $0xb8] sm:$0xff] }
  0x2c   :  { %v542_v16 = vld [vmem:[%s1160_s0 + $0x70] sm:$0xff]  ;;  %541 = vst [vmem:[%s1161_s1 + $0x270] sm:$0xff] %v540_v15  ;;  %561 = vst [vmem:[%s1161_s1 + $0x238] sm:$0xff] %v560_v25  ;;  %v564_v27 = vld [vmem:[%s1160_s0 + $0x238] sm:$0xff] }
  0x2d   :  { %543 = vst [vmem:[%s1161_s1 + $0x130] sm:$0xff] %v542_v16  ;;  %v544_v17 = vld [vmem:[%s1160_s0 + $0x1f0] sm:$0xff]  ;;  %v566_v28 = vld [vmem:[%s1160_s0 + $0x78] sm:$0xff]  ;;  %563 = vst [vmem:[%s1161_s1 + $0xf8] sm:$0xff] %v562_v26 }
  0x2e   :  { %v546_v18 = vld [vmem:[%s1160_s0 + $0x30] sm:$0xff]  ;;  %545 = vst [vmem:[%s1161_s1 + $0x2b0] sm:$0xff] %v544_v17  ;;  %565 = vst [vmem:[%s1161_s1 + $0x278] sm:$0xff] %v564_v27  ;;  %v568_v29 = vld [vmem:[%s1160_s0 + $0x1f8] sm:$0xff] }
  0x2f   :  { %v548_v19 = vld [vmem:[%s1160_s0 + $0x1b0] sm:$0xff]  ;;  %547 = vst [vmem:[%s1161_s1 + $0x170] sm:$0xff] %v546_v18  ;;  %567 = vst [vmem:[%s1161_s1 + $0x138] sm:$0xff] %v566_v28  ;;  %v570_v30 = vld [vmem:[%s1160_s0 + $0x38] sm:$0xff] }
  0x30   :  { %549 = vst [vmem:[%s1161_s1 + $0x2f0] sm:$0xff] %v548_v19  ;;  %v572_v31 = vld [vmem:[%s1160_s0 + $0x1b8] sm:$0xff]  ;;  %569 = vst [vmem:[%s1161_s1 + $0x2b8] sm:$0xff] %v568_v29 }
  0x31   :  { %571 = vst [vmem:[%s1161_s1 + $0x178] sm:$0xff] %v570_v30  ;;  %573 = vst [vmem:[%s1161_s1 + $0x2f8] sm:$0xff] %v572_v31 }

// kernel: _lambda_.12
= control target key start
LH: loop header
LB: loop body
LE: loop exit
PB: predicated region body
PF: predicated region fallthrough
CT: control target
= control target key end

     0   :  { %13 = vsyncpa [#allocation3], 0  ;;  %s3848_s0 = inlined_call_operand.hbm [shape: f32[20,1792], index: 0, kind: input, shape index: {}]   ;;  %s3849_s1 = inlined_call_operand.hbm [shape: bf16[20,1792], index: 1, kind: input, shape index: {}]   ;;  %s3850_s2 = inlined_call_operand.hbm [shape: bf16[20,20], index: 2, kind: input, shape index: {}]   ;;  %s3851_s3 = inlined_call_operand.hbm [shape: f32[20,1], index: 3, kind: input, shape index: {}]   ;;  %s3852_s4 = inlined_call_operand.hbm [shape: bf16[20,20], index: 4, kind: input, shape index: {}]   ;;  %s3853_s5 = inlined_call_operand.hbm [shape: f32[20,1], index: 5, kind: input, shape index: {}]   ;;  %s3854_s6 = inlined_call_operand.hbm [shape: bf16[20,20], index: 6, kind: input, shape index: {}]   ;;  %s3855_s7 = inlined_call_operand.hbm [shape: f32[20,1], index: 7, kind: input, shape index: {}]   ;;  %s3856_s8 = inlined_call_operand.hbm [shape: bf16[20,1792], index: 8, kind: output, shape index: {}]  }
   0x1   :  { %14 = vsyncpa [#allocation6], 0 }
   0x2   :  { %15 = vsyncpa [#allocation9], 0 }
   0x3   :  { %16 = vsyncpa [#allocation12], 0 }
   0x4   :  { %17 = vsyncpa [#allocation15], 0 }
   0x5   :  { %18 = vsyncpa [#allocation4], 0  ;;  %s2992_s27 = smov [#allocation5]   ;;  %s2782_s9 = scalar_lea.hbm %s3849_s1, 2688 }
   0x6   :  { %s36_s28 = sshll.u32 %s2992_s27, 4  ;;  %p2783_p0 = scmp.ne.s32.totalorder %s3849_s1, %s2782_s9  ;;  %s37_s28 = int_to_ptr.vmem [resolvable:$true] %s36_s28 }
   0x7   :  { %p2786_p1 = scmp.lt.u32.totalorder %s2782_s9, %s3849_s1 }
   0x9   :  { %p2788_p2 = pnand %p2786_p1, %p2783_p0 }
   0xb   :  { %2791 = shalt.err (!%p2788_p2)
}
   0xc   :  { %s2792_s14 = scalar_lea.vmem %s37_s28, 2688  ;;  %p2797_p4 = scmp.lt.s32.totalorder %s37_s28, %s37_s28 }
   0xd   :  { %p2793_p3 = scmp.ne.s32.totalorder %s37_s28, %s2792_s14  ;;  %p2798_p5 = scmp.lt.s32.totalorder %s2792_s14, %s2792_s14 }
   0xf   :  { %p2799_p6 = por %p2798_p5, %p2797_p4 }
  0x11   :  { %p2800_p7 = pnand %p2799_p6, %p2793_p3 }
  0x13   :  { %2803 = shalt.err (!%p2800_p7)
}
  0x14   :  { %s2993_s15 = smov 896   ;;  %s2994_s16 = smov 56  }
  0x15   :  { %42 = dma.hbm_to_vmem [thread:$0]  %s3849_s1, 2688, %s37_s28, [#allocation6], %s2993_s15, %s2993_s15, %s2994_s16  }
  0x16   :  { %s2995_s19 = smov [#allocation8]   ;;  %s2804_s23 = scalar_lea.hbm %s3851_s3, 384 }
  0x17   :  { %s60_s20 = sshll.u32 %s2995_s19, 4  ;;  %p2805_p8 = scmp.ne.s32.totalorder %s3851_s3, %s2804_s23  ;;  %s61_s20 = int_to_ptr.vmem [resolvable:$true] %s60_s20 }
  0x18   :  { %p2808_p9 = scmp.lt.u32.totalorder %s2804_s23, %s3851_s3 }
  0x1a   :  { %p2810_p10 = pnand %p2808_p9, %p2805_p8 }
  0x1c   :  { %2813 = shalt.err (!%p2810_p10)
}
  0x1d   :  { %s2814_s29 = scalar_lea.vmem %s61_s20, 384  ;;  %p2819_p12 = scmp.lt.s32.totalorder %s61_s20, %s61_s20 }
  0x1e   :  { %p2815_p11 = scmp.ne.s32.totalorder %s61_s20, %s2814_s29  ;;  %p2820_p13 = scmp.lt.s32.totalorder %s2814_s29, %s2814_s29 }
  0x20   :  { %p2821_p0 = por %p2820_p13, %p2819_p12 }
  0x22   :  { %p2822_p1 = pnand %p2821_p0, %p2815_p11 }
  0x24   :  { %2825 = shalt.err (!%p2822_p1)
}
  0x25   :  { %s2996_s1 = smov 128   ;;  %s2997_s28 = smov 8  }
  0x26   :  { %66 = dma.hbm_to_vmem [thread:$0]  %s3851_s3, 384, %s61_s20, [#allocation9], %s2996_s1, %s2996_s1, %s2997_s28  }
  0x27   :  { %s2998_s10 = smov [#allocation11]   ;;  %s2999_s12 = smov [#allocation2]  }
  0x28   :  { %s84_s11 = sshll.u32 %s2998_s10, 4  ;;  %s24_s13 = sshll.u32 %s2999_s12, 4  ;;  %s85_s11 = int_to_ptr.vmem [resolvable:$true] %s84_s11  ;;  %s3085_s13 = int_to_ptr.vmem [resolvable:$true] %s24_s13 }
  0x29   :  { %s2826_s18 = scalar_lea.hbm %s3853_s5, 384 }
  0x2a   :  { %p2827_p2 = scmp.ne.s32.totalorder %s3853_s5, %s2826_s18  ;;  %p2830_p3 = scmp.lt.u32.totalorder %s2826_s18, %s3853_s5 }
  0x2c   :  { %p2832_p4 = pnand %p2830_p3, %p2827_p2 }
  0x2e   :  { %2835 = shalt.err (!%p2832_p4)
}
  0x2f   :  { %s2836_s3 = scalar_lea.vmem %s85_s11, 384  ;;  %p2841_p6 = scmp.lt.s32.totalorder %s85_s11, %s85_s11 }
  0x30   :  { %p2837_p5 = scmp.ne.s32.totalorder %s85_s11, %s2836_s3  ;;  %p2842_p7 = scmp.lt.s32.totalorder %s2836_s3, %s2836_s3 }
  0x32   :  { %p2843_p8 = por %p2842_p7, %p2841_p6 }
  0x34   :  { %p2844_p9 = pnand %p2843_p8, %p2837_p5 }
  0x36   :  { %2847 = shalt.err (!%p2844_p9)
}
  0x37   :  { %90 = dma.hbm_to_vmem [thread:$0]  %s3853_s5, 384, %s85_s11, [#allocation12], %s2996_s1, %s2996_s1, %s2997_s28  }
  0x38   :  { %s2848_s27 = scalar_lea.hbm %s3848_s0, 5376 }
  0x39   :  { %p2849_p10 = scmp.ne.s32.totalorder %s3848_s0, %s2848_s27  ;;  %p2852_p11 = scmp.lt.u32.totalorder %s2848_s27, %s3848_s0 }
  0x3b   :  { %p2854_p12 = pnand %p2852_p11, %p2849_p10 }
  0x3d   :  { %2857 = shalt.err (!%p2854_p12)
}
  0x3e   :  { %s2858_s12 = scalar_lea.vmem %s3085_s13, 5376  ;;  %p2863_p0 = scmp.lt.s32.totalorder %s3085_s13, %s3085_s13 }
  0x3f   :  { %p2859_p13 = scmp.ne.s32.totalorder %s3085_s13, %s2858_s12  ;;  %p2864_p1 = scmp.lt.s32.totalorder %s2858_s12, %s2858_s12 }
  0x41   :  { %p2865_p2 = por %p2864_p1, %p2863_p0 }
  0x43   :  { %p2866_p3 = pnand %p2865_p2, %p2859_p13 }
  0x45   :  { %2869 = shalt.err (!%p2866_p3)
}
  0x46   :  { %s3000_s5 = smov 1792   ;;  %s3001_s11 = smov 112  }
  0x47   :  { %30 = dma.hbm_to_vmem [thread:$0]  %s3848_s0, 5376, %s3085_s13, [#allocation3], %s3000_s5, %s3000_s5, %s3001_s11  }
  0x48   :  { %s3002_s18 = smov [#allocation7]   ;;  %s2870_s23 = scalar_lea.hbm %s3850_s2, 192 }
  0x49   :  { %s48_s19 = sshll.u32 %s3002_s18, 4  ;;  %p2871_p4 = scmp.ne.s32.totalorder %s3850_s2, %s2870_s23  ;;  %s49_s19 = int_to_ptr.vmem [resolvable:$true] %s48_s19 }
  0x4a   :  { %p2874_p5 = scmp.lt.u32.totalorder %s2870_s23, %s3850_s2 }
  0x4c   :  { %p2876_p6 = pnand %p2874_p5, %p2871_p4 }
  0x4e   :  { %2879 = shalt.err (!%p2876_p6)
}
  0x4f   :  { %s2880_s26 = scalar_lea.vmem %s49_s19, 192  ;;  %p2885_p8 = scmp.lt.s32.totalorder %s49_s19, %s49_s19 }
  0x50   :  { %p2881_p7 = scmp.ne.s32.totalorder %s49_s19, %s2880_s26  ;;  %p2886_p9 = scmp.lt.s32.totalorder %s2880_s26, %s2880_s26 }
  0x52   :  { %p2887_p10 = por %p2886_p9, %p2885_p8 }
  0x54   :  { %p2888_p11 = pnand %p2887_p10, %p2881_p7 }
  0x56   :  { %2891 = shalt.err (!%p2888_p11)
}
  0x57   :  { %s3003_s0 = smov 64   ;;  %s3004_s13 = smov 4  }
  0x58   :  { %54 = dma.hbm_to_vmem [thread:$0]  %s3850_s2, 192, %s49_s19, [#allocation6], %s3003_s0, %s3003_s0, %s3004_s13  }
  0x59   :  { %s3005_s30 = smov [#allocation10]   ;;  %s3006_s10 = smov [#allocation13]  }
  0x5a   :  { %s72_s9 = sshll.u32 %s3005_s30, 4  ;;  %s96_s12 = sshll.u32 %s3006_s10, 4  ;;  %s73_s9 = int_to_ptr.vmem [resolvable:$true] %s72_s9  ;;  %s97_s12 = int_to_ptr.vmem [resolvable:$true] %s96_s12 }
  0x5b   :  { %s2892_s14 = scalar_lea.hbm %s3852_s4, 192 }
  0x5c   :  { %p2893_p12 = scmp.ne.s32.totalorder %s3852_s4, %s2892_s14  ;;  %p2896_p13 = scmp.lt.u32.totalorder %s2892_s14, %s3852_s4 }
  0x5e   :  { %p2898_p0 = pnand %p2896_p13, %p2893_p12 }
  0x60   :  { %2901 = shalt.err (!%p2898_p0)
}
  0x61   :  { %s2902_s2 = scalar_lea.vmem %s73_s9, 192  ;;  %p2907_p2 = scmp.lt.s32.totalorder %s73_s9, %s73_s9 }
  0x62   :  { %p2903_p1 = scmp.ne.s32.totalorder %s73_s9, %s2902_s2  ;;  %p2908_p3 = scmp.lt.s32.totalorder %s2902_s2, %s2902_s2 }
  0x64   :  { %p2909_p4 = por %p2908_p3, %p2907_p2 }
  0x66   :  { %p2910_p5 = pnand %p2909_p4, %p2903_p1 }
  0x68   :  { %2913 = shalt.err (!%p2910_p5)
}
  0x69   :  { %78 = dma.hbm_to_vmem [thread:$0]  %s3852_s4, 192, %s73_s9, [#allocation9], %s3003_s0, %s3003_s0, %s3004_s13  }
  0x6a   :  { %s2914_s24 = scalar_lea.hbm %s3854_s6, 192 }
  0x6b   :  { %p2915_p6 = scmp.ne.s32.totalorder %s3854_s6, %s2914_s24  ;;  %p2918_p7 = scmp.lt.u32.totalorder %s2914_s24, %s3854_s6 }
  0x6d   :  { %p2920_p8 = pnand %p2918_p7, %p2915_p6 }
  0x6f   :  { %2923 = shalt.err (!%p2920_p8)
}
  0x70   :  { %s2924_s30 = scalar_lea.vmem %s97_s12, 192  ;;  %p2929_p10 = scmp.lt.s32.totalorder %s97_s12, %s97_s12 }
  0x71   :  { %p2925_p9 = scmp.ne.s32.totalorder %s97_s12, %s2924_s30  ;;  %p2930_p11 = scmp.lt.s32.totalorder %s2924_s30, %s2924_s30 }
  0x73   :  { %p2931_p12 = por %p2930_p11, %p2929_p10 }
  0x75   :  { %p2932_p13 = pnand %p2931_p12, %p2925_p9 }
  0x77   :  { %2935 = shalt.err (!%p2932_p13)
}
  0x78   :  { %102 = dma.hbm_to_vmem [thread:$0]  %s3854_s6, 192, %s97_s12, [#allocation12], %s3003_s0, %s3003_s0, %s3004_s13  }
  0x79   :  { %s3007_s10 = smov [#allocation14]   ;;  %s2936_s17 = scalar_lea.hbm %s3855_s7, 384 }
  0x7a   :  { %s108_s5 = sshll.u32 %s3007_s10, 4  ;;  %p2937_p0 = scmp.ne.s32.totalorder %s3855_s7, %s2936_s17  ;;  %s109_s5 = int_to_ptr.vmem [resolvable:$true] %s108_s5 }
  0x7b   :  { %p2940_p1 = scmp.lt.u32.totalorder %s2936_s17, %s3855_s7 }
  0x7d   :  { %p2942_p2 = pnand %p2940_p1, %p2937_p0 }
  0x7f   :  { %2945 = shalt.err (!%p2942_p2)
}
  0x80   :  { %s2946_s19 = scalar_lea.vmem %s109_s5, 384  ;;  %p2951_p4 = scmp.lt.s32.totalorder %s109_s5, %s109_s5 }
  0x81   :  { %p2947_p3 = scmp.ne.s32.totalorder %s109_s5, %s2946_s19  ;;  %p2952_p5 = scmp.lt.s32.totalorder %s2946_s19, %s2946_s19 }
  0x83   :  { %p2953_p6 = por %p2952_p5, %p2951_p4 }
  0x85   :  { %p2954_p7 = pnand %p2953_p6, %p2947_p3 }
  0x87   :  { %2957 = shalt.err (!%p2954_p7)
}
  0x88   :  { %114 = dma.hbm_to_vmem [thread:$0]  %s3855_s7, 384, %s109_s5, [#allocation15], %s2996_s1, %s2996_s1, %s2997_s28  }
  0x89   :  { %2980 = dma.done.wait [#allocation3], 5376  }
  0x8a   :  { %2981 = vsyncadd [#allocation3], 4294961920 }
  0x8b   :  { %2982 = dma.done.wait [#allocation6], 2880  }
  0x8c   :  { %2983 = vsyncadd [#allocation6], 4294964416 }
  0x8d   :  { %2984 = dma.done.wait [#allocation9], 576  }
  0x8e   :  { %2985 = vsyncadd [#allocation9], 4294966720 }
  0x8f   :  { %2986 = dma.done.wait [#allocation12], 576  }
  0x90   :  { %2987 = vsyncadd [#allocation12], 4294966720 }
  0x91   :  { %2988 = dma.done.wait [#allocation15], 384  }
  0x92   :  { %2989 = vsyncadd [#allocation15], 4294966912  ;;  %v3008_v0 = vmov 0   ;;  %v141_v1 = vld [vmem:[#allocation2 + $0x8] sm:$0xff]  ;;  %v155_v2 = vld [vmem:[#allocation2 + $0x78] sm:$0xff]  ;;  %vm267_vm0 = vcmask 1041408  }
  0x93   :  { %342 = vmatprep.mubr.bf16.mxu0 %v3008_v0  ;;  %403 = vmatprep.mubr.bf16.mxu1 %v3008_v0  ;;  %v143_v3 = vld [vmem:[#allocation2 + $0x18] sm:$0xff]  ;;  %v183_v4 = vpack.c.bf16 %v155_v2, %v141_v1  ;;  %v157_v5 = vld [vmem:[#allocation2 + $0x88] sm:$0xff]  ;;  %v140_v6 = vld [vmem:[#allocation2] sm:$0xff]  ;;  %vm260_vm1 = vcmask 162816   ;;  %s3009_s7 = smov [#allocation16]  }
  0x94   :  { %2571 = vset.pattern.permute.xlu0 %v3008_v0  ;;  %2572 = vset.pattern.permute.xlu1 %v3008_v0  ;;  %v154_v7 = vld [vmem:[#allocation2 + $0x70] sm:$0xff]  ;;  %v185_v8 = vpack.c.bf16 %v157_v5, %v143_v3  ;;  %v156_v11 = vld [vmem:[#allocation2 + $0x80] sm:$0xff]  ;;  %v169_v12 = vld [vmem:[#allocation2 + $0xe8] sm:$0xf]  ;;  %s2338_s1 = sshll.u32 %s3009_s7, 4  ;;  %s2339_s1 = int_to_ptr.vmem [resolvable:$true] %s2338_s1 }
  0x95   :  { %v182_v9 = vpack.c.bf16 %v154_v7, %v140_v6  ;;  %v142_v10 = vld [vmem:[#allocation2 + $0x10] sm:$0xff]  ;;  %310 = vmatprep.subr.bf16.mxu0 %v183_v4  ;;  %v197_v14 = vpack.c.bf16 %v169_v12, %v169_v12  ;;  %v171_v15 = vld [vmem:[#allocation2 + $0xf8] sm:$0xf]  ;;  %v168_v16 = vld [vmem:[#allocation2 + $0xe0] sm:$0xf]  ;;  %s2958_s28 = scalar_lea.vmem %s2339_s1, 2688  ;;  %p2963_p9 = scmp.lt.s32.totalorder %s2339_s1, %s2339_s1 }
  0x96   :  { %v184_v13 = vpack.c.bf16 %v156_v11, %v142_v10  ;;  %v170_v17 = vld [vmem:[#allocation2 + $0xf0] sm:$0xf]  ;;  %2493 = vmatprep.subr.bf16.mxu1 %v185_v8  ;;  %v199_v18 = vpack.c.bf16 %v171_v15, %v171_v15  ;;  %v196_v19 = vpack.c.bf16 %v168_v16, %v168_v16  ;;  %v147_v21 = vld [vmem:[#allocation2 + $0x38] sm:$0xff]  ;;  %v161_v24 = vld [vmem:[#allocation2 + $0xa8] sm:$0xff]  ;;  %p2959_p8 = scmp.ne.s32.totalorder %s2339_s1, %s2958_s28  ;;  %p2964_p10 = scmp.lt.s32.totalorder %s2958_s28, %s2958_s28 }
  0x97   :  { %311 = vmatpush1.bf16.msra.mxu0 %v182_v9  ;;  %v198_v20 = vpack.c.bf16 %v170_v17, %v170_v17  ;;  %v146_v25 = vld [vmem:[#allocation2 + $0x30] sm:$0xff]  ;;  %v160_v26 = vld [vmem:[#allocation2 + $0xa0] sm:$0xff]  ;;  %v3187_v27 = vld [vmem:[#allocation7] sm:$0xff]   ;;  %v189_v28 = vpack.c.bf16 %v161_v24, %v147_v21 }
  0x98   :  { %2495 = vmatpush1.bf16.msra.mxu1 %v184_v13  ;;  %2356 = vmatprep.subr.msk.bf16.mxu0 %vm267_vm0, %v197_v14  ;;  %v269_v22 = vsel %vm267_vm0, %v196_v19, 0  ;;  %v175_v29 = vld [vmem:[#allocation2 + $0x118] sm:$0xf]  ;;  %v174_v30 = vld [vmem:[#allocation2 + $0x110] sm:$0xf]  ;;  %v188_v32 = vpack.c.bf16 %v160_v26, %v146_v25  ;;  %v145_v35 = vld [vmem:[#allocation2 + $0x28] sm:$0xff]  ;;  %p2965_p11 = por %p2964_p10, %p2963_p9 }
  0x99   :  { %2494 = vmatprep.subr.msk.bf16.mxu1 %vm267_vm0, %v199_v18  ;;  %v275_v23 = vsel %vm267_vm0, %v198_v20, 0  ;;  %v3189_v31 = vld [vmem:[#allocation7 + $0x8] ss:$0 sps:$4 sm:$0x33]   ;;  %v203_v33 = vpack.c.bf16 %v175_v29, %v175_v29  ;;  %v202_v34 = vpack.c.bf16 %v174_v30, %v174_v30  ;;  %v159_v36 = vld [vmem:[#allocation2 + $0x98] sm:$0xff]  ;;  %v165_v38 = vld [vmem:[#allocation2 + $0xc8] sm:$0xff] }
  0x9a   :  { %v151_v37 = vld [vmem:[#allocation2 + $0x58] sm:$0xff]  ;;  %v187_v40 = vpack.c.bf16 %v159_v36, %v145_v35  ;;  %v150_v42 = vld [vmem:[#allocation2 + $0x50] sm:$0xff]  ;;  %v164_v43 = vld [vmem:[#allocation2 + $0xc0] sm:$0xff]  ;;  %p2966_p12 = pnand %p2965_p11, %p2959_p8 }
  0x9b   :  { %313 = vmatpush1.bf16.msra.mxu0 %v269_v22  ;;  %v287_v39 = vsel %vm267_vm0, %v202_v34, 0  ;;  %v193_v41 = vpack.c.bf16 %v165_v38, %v151_v37  ;;  %v179_v44 = vld [vmem:[#allocation2 + $0x138] sm:$0xf]  ;;  %v178_v45 = vld [vmem:[#allocation2 + $0x130] sm:$0xf]  ;;  %v234_v46 = vld [vmem:[#allocation8] sm:$0xff]  ;;  %v192_v47 = vpack.c.bf16 %v164_v43, %v150_v42 }
  0x9c   :  { %2496 = vmatpush1.bf16.msra.mxu1 %v275_v23  ;;  %361 = vmatprep.subr.bf16.mxu0 %v185_v8  ;;  %v236_v48 = vld [vmem:[#allocation8 + $0x10] sm:$0xf]  ;;  %v207_v49 = vpack.c.bf16 %v179_v44, %v179_v44  ;;  %v206_v50 = vpack.c.bf16 %v178_v45, %v178_v45  ;;  %v235_v51 = vld [vmem:[#allocation8 + $0x8] sm:$0xff]  ;;  %v910_v52 = vld [vmem:[#allocation11 + $0x10] sm:$0xf] }
  0x9d   :  { %463 = vmatprep.subr.bf16.mxu1 %v189_v28  ;;  %239 = vperm.xlu0 %2571, %v234_v46   ;;  %v144_v53 = vld [vmem:[#allocation2 + $0x20] sm:$0xff]  ;;  %v158_v54 = vld [vmem:[#allocation2 + $0x90] sm:$0xff]  ;;  %v173_v55 = vld [vmem:[#allocation2 + $0x108] sm:$0xf] }
  0x9e   :  { %2357 = vmatmul.mubr.msk.bf16.vlgmr.msra.gmra.mrb[0].mxu0 %vm260_vm1, %v3187_v27  ;;  %249 = vperm.xlu1 %2572, %v236_v48   ;;  %v172_v56 = vld [vmem:[#allocation2 + $0x100] sm:$0xf]  ;;  %v908_v57 = vld [vmem:[#allocation11] sm:$0xff]  ;;  %v299_v58 = vsel %vm267_vm0, %v206_v50, 0  ;;  %v909_v59 = vld [vmem:[#allocation11 + $0x8] sm:$0xff]  ;;  %v186_v60 = vpack.c.bf16 %v158_v54, %v144_v53  ;;  %v201_v61 = vpack.c.bf16 %v173_v55, %v173_v55 }
  0x9f   :  { %2361 = vmatmul.mubr.msk.bf16.vlgmr.msra.gmra.mrb[0].mxu1 %vm260_vm1, %v3189_v31  ;;  %352 = vmatprep.mubr.bf16.mxu0 %v3008_v0  ;;  %v200_v62 = vpack.c.bf16 %v172_v56, %v172_v56  ;;  %v149_v63 = vld [vmem:[#allocation2 + $0x48] sm:$0xff]  ;;  %v163_v1 = vld [vmem:[#allocation2 + $0xb8] sm:$0xff]  ;;  %v148_v6 = vld [vmem:[#allocation2 + $0x40] sm:$0xff] }
  0xa0   :  { %464 = vmatpush1.bf16.msra.mxu1 %v188_v32  ;;  %362 = vmatpush1.bf16.msra.mxu0 %v184_v13  ;;  %v1902_v2 = vld [vmem:[#allocation14] sm:$0xff]  ;;  %v1903_v3 = vld [vmem:[#allocation14 + $0x8] sm:$0xff]  ;;  %v191_v5 = vpack.c.bf16 %v163_v1, %v149_v63  ;;  %v177_v8 = vld [vmem:[#allocation2 + $0x128] sm:$0xf] }
  0xa1   :  { %2365 = vmatprep.subr.msk.bf16.mxu1 %vm267_vm0, %v203_v33  ;;  %495 = vmatprep.mubr.bf16.mxu1 %v3008_v0  ;;  %v281_v4 = vsel %vm267_vm0, %v200_v62, 0  ;;  %v162_v7 = vld [vmem:[#allocation2 + $0xb0] sm:$0xff]  ;;  %v176_v9 = vld [vmem:[#allocation2 + $0x120] sm:$0xf]  ;;  %v1904_v10 = vld [vmem:[#allocation14 + $0x10] sm:$0xf]  ;;  %v205_v12 = vpack.c.bf16 %v177_v8, %v177_v8 }
  0xa2   :  { %2359 = vmatprep.subr.msk.bf16.mxu0 %vm267_vm0, %v199_v18  ;;  %244 = vperm.xlu0 %2571, %v235_v51   ;;  %v190_v11 = vpack.c.bf16 %v162_v7, %v148_v6  ;;  %v204_v13 = vpack.c.bf16 %v176_v9, %v176_v9  ;;  %v153_v14 = vld [vmem:[#allocation2 + $0x68] sm:$0xff]  ;;  %v167_v15 = vld [vmem:[#allocation2 + $0xd8] sm:$0xff]  ;;  %v152_v18 = vld [vmem:[#allocation2 + $0x60] sm:$0xff] }
  0xa3   :  { %923 = vperm.xlu1 %2572, %v910_v52   ;;  %v195_v17 = vpack.c.bf16 %v167_v15, %v153_v14  ;;  %v166_v19 = vld [vmem:[#allocation2 + $0xd0] sm:$0xff]  ;;  %v181_v20 = vld [vmem:[#allocation2 + $0x148] sm:$0xf]  ;;  %v180_v21 = vld [vmem:[#allocation2 + $0x140] sm:$0xf] }
  0xa4   :  { %466 = vmatpush1.bf16.msra.mxu1 %v287_v39  ;;  %364 = vmatpush1.bf16.msra.mxu0 %v275_v23  ;;  %v293_v16 = vsel %vm267_vm0, %v204_v13, 0  ;;  %v194_v22 = vpack.c.bf16 %v166_v19, %v152_v18  ;;  %v209_v23 = vpack.c.bf16 %v181_v20, %v181_v20  ;;  %v208_v24 = vpack.c.bf16 %v180_v21, %v180_v21 }
  0xa5   :  { %412 = vmatprep.subr.bf16.mxu0 %v187_v40  ;;  %565 = vmatprep.subr.bf16.mxu1 %v193_v41 }
  0xa6   :  { %2358 = vmatmul.mubr.msk.bf16.gmra.mrb[4].mxu0 %vm260_vm1, %v3189_v31  ;;  %913 = vperm.xlu0 %2571, %v908_v57   ;;  %v305_v25 = vsel %vm267_vm0, %v208_v24, 0 }
  0xa7   :  { %2366 = vmatmul.mubr.msk.bf16.vlgmr.msra.gmra.mrb[4].mxu1 %vm260_vm1, %v3187_v27  ;;  %393 = vmatprep.mubr.bf16.mxu0 %v3008_v0 }
  0xa8   :  { %505 = vmatprep.mubr.bf16.mxu1 %v3008_v0  ;;  %566 = vmatpush1.bf16.msra.mxu1 %v192_v47 }
  0xa9   :  { %2371 = vmatprep.subr.msk.bf16.mxu1 %vm267_vm0, %v207_v49  ;;  %918 = vperm.xlu1 %2572, %v909_v59  }
  0xaa   :  { %1907 = vperm.xlu0 %2571, %v1902_v2  }
  0xac   :  { %568 = vmatpush1.bf16.msra.mxu1 %v299_v58 }
  0xad   :  { %1912 = vperm.xlu1 %2572, %v1903_v3  }
  0xae   :  { %2360 = vmatmul.mubr.msk.bf16.vlgmr.msra.gmra.mrb[8].mxu0 %vm260_vm1, %v3187_v27  ;;  %1917 = vperm.xlu0 %2571, %v1904_v10  }
  0xaf   :  { %2367 = vmatmul.mubr.msk.bf16.gmra.mrb[8].mxu1 %vm260_vm1, %v3189_v31  ;;  %413 = vmatpush1.bf16.msra.mxu0 %v186_v60 }
  0xb0   :  { %2362 = vmatprep.subr.msk.bf16.mxu0 %vm267_vm0, %v201_v61  ;;  %444 = vmatprep.mubr.bf16.mxu0 %v3008_v0 }
  0xb1   :  { %597 = vmatprep.mubr.bf16.mxu1 %v3008_v0 }
  0xb3   :  { %415 = vmatpush1.bf16.msra.mxu0 %v281_v4 }
  0xb4   :  { %514 = vmatprep.subr.bf16.mxu0 %v191_v5 }
  0xb6   :  { %2363 = vmatmul.mubr.msk.bf16.vlgmr.msra.gmra.mrb[12].mxu0 %vm260_vm1, %v3187_v27 }
  0xb7   :  { %2372 = vmatmul.mubr.msk.bf16.vlgmr.msra.gmra.mrb[12].mxu1 %vm260_vm1, %v3187_v27  ;;  %454 = vmatprep.mubr.bf16.mxu0 %v3008_v0 }
  0xb8   :  { %515 = vmatpush1.bf16.msra.mxu0 %v190_v11  ;;  %607 = vmatprep.mubr.bf16.mxu1 %v3008_v0 }
  0xb9   :  { %2368 = vmatprep.subr.msk.bf16.mxu0 %vm267_vm0, %v205_v12 }
  0xbc   :  { %517 = vmatpush1.bf16.msra.mxu0 %v293_v16 }
  0xbd   :  { %616 = vmatprep.subr.bf16.mxu0 %v195_v17 }
  0xbe   :  { %2364 = vmatmul.mubr.msk.bf16.gmra.mrb[16].mxu0 %vm260_vm1, %v3189_v31 }
  0xbf   :  { %2373 = vmatmul.mubr.msk.bf16.gmra.mrb[16].mxu1 %vm260_vm1, %v3189_v31  ;;  %546 = vmatprep.mubr.bf16.mxu0 %v3008_v0 }
  0xc0   :  { %1014 = vmatprep.mubr.bf16.mxu1 %v3008_v0 }
  0xc6   :  { %2369 = vmatmul.mubr.msk.bf16.vlgmr.msra.gmra.mrb[20].mxu0 %vm260_vm1, %v3187_v27 }
  0xc7   :  { %556 = vmatprep.mubr.bf16.mxu0 %v3008_v0  ;;  %617 = vmatpush1.bf16.msra.mxu0 %v194_v22 }
  0xc8   :  { %2374 = vmatprep.subr.msk.bf16.mxu0 %vm267_vm0, %v209_v23 }
  0xcb   :  { %619 = vmatpush1.bf16.msra.mxu0 %v305_v25 }
  0xce   :  { %2370 = vmatmul.mubr.msk.bf16.gmra.mrb[24].mxu0 %vm260_vm1, %v3189_v31 }
  0xcf   :  { %648 = vmatprep.mubr.bf16.mxu0 %v3008_v0 }
  0xd6   :  { %2375 = vmatmul.mubr.msk.bf16.vlgmr.msra.gmra.mrb[28].mxu0 %vm260_vm1, %v3187_v27 }
  0xd7   :  { %658 = vmatprep.mubr.bf16.mxu0 %v3008_v0 }
  0xde   :  { %2376 = vmatmul.mubr.msk.bf16.gmra.mrb[32].mxu0 %vm260_vm1, %v3189_v31 }
  0xdf   :  { %1065 = vmatprep.mubr.bf16.mxu0 %v3008_v0 }
 0x11c   :  { %v3244_v26 = vpop.permute.xlu0 %239 }
 0x11d   :  { %v3252_v44 = vpop.permute.xlu1 %249 }
 0x121   :  { %v3246_v28 = vpop.permute.xlu0 %244 }
 0x171   :  { %v344_v29 = vpop.f32.mrb[0].mxu0 }
 0x172   :  { %v345_v30 = vadd.f32 %v344_v29, %v3244_v26  ;;  %v346_v32 = vpop.f32.mrb[1].mxu0  ;;  %v405_v33 = vpop.f32.mrb[0].mxu1 }
 0x173   :  { %v347_v34 = vadd.f32 %v346_v32, %v3244_v26  ;;  %v348_v35 = vpop.f32.mrb[2].mxu0  ;;  %v407_v27 = vpop.f32.mrb[1].mxu1  ;;  %v406_v62 = vadd.f32 %v405_v33, %v3252_v44 }
 0x174   :  { %v709_v36 = vmul.f32 0.70710677, %v345_v30  ;;  %v349_v37 = vadd.f32 %v348_v35, %v3246_v28  ;;  %v350_v38 = vpop.f32.mrb[3].mxu0  ;;  %v409_v31 = vpop.f32.mrb[2].mxu1  ;;  %v408_v61 = vadd.f32 %v407_v27, %v3252_v44  ;;  %v667_v2 = vmul.f32 0.5, %v345_v30 }
 0x175   :  { %v710_v39 = vmul.f32 0.70710677, %v347_v34  ;;  %v351_v40 = vadd.f32 %v350_v38, %v3246_v28  ;;  %v410_v41 = vpop.f32.mrb[3].mxu1  ;;  %v668_v7 = vmul.f32 0.5, %v347_v34  ;;  %v739_v15 = vmul.f32 0.70710677, %v406_v62 }
 0x176   :  { %2614 = verf.f32 %v709_v36  ;;  %v723_v42 = vmul.f32 0.70710677, %v349_v37  ;;  %v681_v8 = vmul.f32 0.5, %v349_v37  ;;  %v740_v14 = vmul.f32 0.70710677, %v408_v61 }
 0x177   :  { %2616 = verf.f32 %v710_v39  ;;  %v724_v43 = vmul.f32 0.70710677, %v351_v40  ;;  %v682_v23 = vmul.f32 0.5, %v351_v40  ;;  %v3297_v40 = vmul.f32 0.5, %v406_v62 }
 0x178   :  { %2618 = verf.f32 %v723_v42 }
 0x179   :  { %2620 = verf.f32 %v724_v43  ;;  %v354_v45 = vpop.f32.mrb[4].mxu0  ;;  %v3301_v43 = vmul.f32 0.5, %v408_v61 }
 0x17a   :  { %v3255_v46 = vadd.f32 %v354_v45, %v3252_v44  ;;  %v497_v47 = vpop.f32.mrb[4].mxu1  ;;  %v356_v48 = vpop.f32.mrb[5].mxu0 }
 0x17b   :  { %v3258_v49 = vadd.f32 %v497_v47, %v3244_v26  ;;  %v3261_v50 = vadd.f32 %v356_v48, %v3252_v44  ;;  %v499_v51 = vpop.f32.mrb[5].mxu1  ;;  %v358_v52 = vpop.f32.mrb[6].mxu0 }
 0x17c   :  { %v3264_v53 = vadd.f32 %v499_v51, %v3244_v26  ;;  %v501_v54 = vpop.f32.mrb[6].mxu1  ;;  %v359_v55 = vpop.f32.mrb[7].mxu0  ;;  %v737_v56 = vmul.f32 0.70710677, %v3255_v46 }
 0x17d   :  { %v715_v57 = vmul.f32 0.70710677, %v3258_v49  ;;  %v738_v58 = vmul.f32 0.70710677, %v3261_v50  ;;  %v3270_v59 = vadd.f32 %v501_v54, %v3246_v28  ;;  %v503_v60 = vpop.f32.mrb[7].mxu1  ;;  %v695_v55 = vmul.f32 0.5, %v3255_v46 }
 0x17e   :  { %v3275_v63 = vadd.f32 %v503_v60, %v3246_v28  ;;  %v716_v3 = vmul.f32 0.70710677, %v3264_v53  ;;  %v673_v62 = vmul.f32 0.5, %v3258_v49  ;;  %v3314_v46 = vmul.f32 0.5, %v3264_v53 }
 0x17f   :  { %2622 = verf.f32 %v715_v57  ;;  %v729_v4 = vmul.f32 0.70710677, %v3270_v59 }
 0x180   :  { %v2615_v1 = vpop.eup %2614  ;;  %2624 = verf.f32 %v738_v58  ;;  %v730_v19 = vmul.f32 0.70710677, %v3275_v63 }
 0x181   :  { %v2617_v5 = vpop.eup %2616  ;;  %v793_v6 = vadd.f32 1.0, %v2615_v1  ;;  %2626 = verf.f32 %v737_v56  ;;  %v395_v9 = vpop.f32.mrb[8].mxu0  ;;  %v696_v1 = vmul.f32 0.5, %v3261_v50 }
 0x182   :  { %v2619_v10 = vpop.eup %2618  ;;  %2628 = verf.f32 %v729_v4  ;;  %v3280_v11 = vadd.f32 %v395_v9, %v3244_v26  ;;  %v507_v12 = vpop.f32.mrb[8].mxu1  ;;  %v794_v17 = vadd.f32 1.0, %v2617_v5 }
 0x183   :  { %v397_v13 = vpop.f32.mrb[9].mxu0  ;;  %v2621_v16 = vpop.eup %2620  ;;  %v807_v18 = vadd.f32 1.0, %v2619_v10  ;;  %v3284_v20 = vadd.f32 %v507_v12, %v3252_v44  ;;  %2630 = verf.f32 %v716_v3  ;;  %v835_v32 = vmul.f32 %v793_v6, %v667_v2 }
 0x184   :  { %v509_v21 = vpop.f32.mrb[9].mxu1  ;;  %v399_v22 = vpop.f32.mrb[10].mxu0  ;;  %v808_v24 = vadd.f32 1.0, %v2621_v16  ;;  %v711_v25 = vmul.f32 0.70710677, %v3280_v11  ;;  %v3289_v35 = vadd.f32 %v397_v13, %v3244_v26  ;;  %v836_v31 = vmul.f32 %v794_v17, %v668_v7 }
 0x185   :  { %v401_v29 = vpop.f32.mrb[11].mxu0  ;;  %v511_v30 = vpop.f32.mrb[10].mxu1  ;;  %v849_v33 = vmul.f32 %v807_v18, %v681_v8  ;;  %v743_v34 = vmul.f32 0.70710677, %v3284_v20  ;;  %v3292_v37 = vadd.f32 %v509_v21, %v3252_v44  ;;  %v3295_v38 = vadd.f32 %v399_v22, %v3246_v28 }
 0x186   :  { %v512_v27 = vpop.f32.mrb[11].mxu1  ;;  %v850_v36 = vmul.f32 %v808_v24, %v682_v23  ;;  %2632 = verf.f32 %v711_v25  ;;  %v712_v41 = vmul.f32 0.70710677, %v3289_v35  ;;  %v3305_v48 = vadd.f32 %v401_v29, %v3246_v28 }
 0x187   :  { %v877_v39 = vpack.c.bf16 %v849_v33, %v835_v32  ;;  %2634 = verf.f32 %v740_v14  ;;  %v725_v42 = vmul.f32 0.70710677, %v3295_v38  ;;  %v744_v47 = vmul.f32 0.70710677, %v3292_v37 }
 0x188   :  { %2636 = verf.f32 %v730_v19  ;;  %v878_v52 = vpack.c.bf16 %v850_v36, %v836_v31  ;;  %v687_v6 = vmul.f32 0.5, %v3270_v59  ;;  %v726_v7 = vmul.f32 0.70710677, %v3305_v48 }
 0x189   :  { %v2623_v45 = vpop.eup %2622  ;;  %v446_v51 = vpop.f32.mrb[12].mxu0  ;;  %2638 = verf.f32 %v739_v15  ;;  %v688_v19 = vmul.f32 0.5, %v3275_v63  ;;  %v669_v21 = vmul.f32 0.5, %v3280_v11  ;;  %v3331_v29 = vmul.f32 0.5, %v3284_v20 }
 0x18a   :  { %v2625_v54 = vpop.eup %2624  ;;  %v799_v56 = vadd.f32 1.0, %v2623_v45  ;;  %2640 = verf.f32 %v743_v34  ;;  %v3309_v57 = vadd.f32 %v446_v51, %v3244_v26  ;;  %v599_v58 = vpop.f32.mrb[12].mxu1  ;;  %982 = vmatprep.subr.bf16.mxu1 %v878_v52  ;;  %v3334_v30 = vmul.f32 0.5, %v3289_v35 }
 0x18b   :  { %v448_v60 = vpop.f32.mrb[13].mxu0  ;;  %v2627_v61 = vpop.eup %2626  ;;  %v822_v2 = vadd.f32 1.0, %v2625_v54  ;;  %2642 = verf.f32 %v725_v42  ;;  %983 = vmatpush1.bf16.msra.mxu1 %v877_v39  ;;  %v600_v53 = vadd.f32 %v599_v58, %v3244_v26  ;;  %v3338_v11 = vmul.f32 0.5, %v3292_v37 }
 0x18c   :  { %v601_v3 = vpop.f32.mrb[13].mxu1  ;;  %v450_v4 = vpop.f32.mrb[14].mxu0  ;;  %2644 = verf.f32 %v712_v41  ;;  %v713_v50 = vmul.f32 0.70710677, %v3309_v57  ;;  %v821_v14 = vadd.f32 1.0, %v2627_v61  ;;  %v3319_v15 = vmul.f32 %v799_v56, %v673_v62 }
 0x18d   :  { %v2629_v5 = vpop.eup %2628  ;;  %v603_v8 = vpop.f32.mrb[14].mxu1  ;;  %v864_v49 = vmul.f32 %v822_v2, %v696_v1  ;;  %2646 = verf.f32 %v744_v47  ;;  %v449_v17 = vadd.f32 %v448_v60, %v3244_v26  ;;  %v719_v22 = vmul.f32 0.70710677, %v600_v53 }
 0x18e   :  { %v452_v9 = vpop.f32.mrb[15].mxu0  ;;  %v813_v10 = vadd.f32 1.0, %v2629_v5  ;;  %v605_v12 = vpop.f32.mrb[15].mxu1  ;;  %2648 = verf.f32 %v726_v7  ;;  %v602_v23 = vadd.f32 %v601_v3, %v3244_v26  ;;  %v863_v34 = vmul.f32 %v821_v14, %v695_v55 }
 0x18f   :  { %v2631_v13 = vpop.eup %2630  ;;  %v892_v59 = vpack.c.bf16 %v864_v49, %v864_v49  ;;  %2650 = verf.f32 %v713_v50  ;;  %v714_v32 = vmul.f32 0.70710677, %v449_v17  ;;  %v451_v35 = vadd.f32 %v450_v4, %v3246_v28 }
 0x190   :  { %v3322_v16 = vmul.f32 %v813_v10, %v687_v6  ;;  %v2633_v18 = vpop.eup %2632  ;;  %2652 = verf.f32 %v719_v22  ;;  %v720_v27 = vmul.f32 0.70710677, %v602_v23  ;;  %v800_v20 = vadd.f32 1.0, %v2631_v13 }
 0x191   :  { %v2635_v24 = vpop.eup %2634  ;;  %2379 = vmatprep.subr.msk.bf16.mxu1 %vm267_vm0, %v892_v59  ;;  %v456_v33 = vpop.f32.mrb[16].mxu0  ;;  %v795_v41 = vadd.f32 1.0, %v2633_v18  ;;  %v604_v42 = vadd.f32 %v603_v8, %v3246_v28  ;;  %v683_v37 = vmul.f32 0.5, %v3295_v38  ;;  %2654 = verf.f32 %v714_v32 }
 0x192   :  { %v883_v25 = vpack.c.bf16 %v3322_v16, %v3319_v15  ;;  %v2637_v63 = vpop.eup %2636  ;;  %v609_v36 = vpop.f32.mrb[16].mxu1  ;;  %v453_v52 = vadd.f32 %v452_v9, %v3246_v28  ;;  %v3350_v55 = vadd.f32 1.0, %v2635_v24  ;;  %v684_v61 = vmul.f32 0.5, %v3305_v48 }
 0x193   :  { %v3340_v31 = vpop.f32.mrb[17].mxu0  ;;  %v3342_v39 = vpop.eup %2638  ;;  %v814_v60 = vadd.f32 1.0, %v2637_v63  ;;  %2656 = verf.f32 %v720_v27  ;;  %v727_v62 = vmul.f32 0.70710677, %v451_v35  ;;  %v891_v3 = vpack.c.bf16 %v863_v34, %v863_v34 }
 0x194   :  { %v3346_v45 = vpop.f32.mrb[17].mxu1  ;;  %v460_v47 = vpop.f32.mrb[18].mxu0  ;;  %v671_v5 = vmul.f32 0.5, %v3309_v57  ;;  %v733_v38 = vmul.f32 0.70710677, %v604_v42  ;;  %v3355_v7 = vmul.f32 %v800_v20, %v3314_v46  ;;  %v3357_v8 = vmul.f32 %v795_v41, %v669_v21  ;;  %v3379_v41 = vld [vmem:[#allocation10] sm:$0xff]  }
 0x195   :  { %v2641_v51 = vpop.eup %2640  ;;  %v461_v54 = vpop.f32.mrb[19].mxu0  ;;  %2658 = verf.f32 %v727_v62  ;;  %v728_v9 = vmul.f32 0.70710677, %v453_v52  ;;  %v606_v48 = vadd.f32 %v605_v12, %v3246_v28  ;;  %v457_v50 = vadd.f32 %v456_v33, %v3252_v44 }
 0x196   :  { %v613_v56 = vpop.f32.mrb[18].mxu1  ;;  %v2643_v58 = vpop.eup %2642  ;;  %2660 = verf.f32 %v733_v38  ;;  %v3363_v14 = vmul.f32 %v814_v60, %v688_v19  ;;  %v677_v57 = vmul.f32 0.5, %v600_v53  ;;  %v3365_v59 = vmul.f32 0.5, %v449_v17 }
 0x197   :  { %v614_v1 = vpop.f32.mrb[19].mxu1  ;;  %v2645_v2 = vpop.eup %2644  ;;  %v809_v4 = vadd.f32 1.0, %v2643_v58  ;;  %2662 = verf.f32 %v728_v9  ;;  %v3367_v18 = vadd.f32 1.0, %v2641_v51  ;;  %v734_v24 = vmul.f32 0.70710677, %v606_v48 }
 0x198   :  { %v2647_v6 = vpop.eup %2646  ;;  %v796_v63 = vadd.f32 1.0, %v2645_v2  ;;  %v3373_v33 = vmul.f32 0.5, %v602_v23  ;;  %v741_v19 = vmul.f32 0.70710677, %v457_v50  ;;  %v3376_v27 = vadd.f32 %v609_v36, %v3252_v44 }
 0x199   :  { %v2649_v49 = vpop.eup %2648  ;;  %v3359_v10 = vmul.f32 %v809_v4, %v683_v37  ;;  %v548_v46 = vpop.f32.mrb[20].mxu0  ;;  %v3371_v12 = vadd.f32 1.0, %v2647_v6  ;;  %2664 = verf.f32 %v734_v24  ;;  %v941_v20 = vsel %vm267_vm0, %v891_v3, 0 }
 0x19a   :  { %v2651_v13 = vpop.eup %2650  ;;  %v810_v22 = vadd.f32 1.0, %v2649_v49  ;;  %v550_v32 = vpop.f32.mrb[21].mxu0  ;;  %v685_v37 = vmul.f32 0.5, %v451_v35  ;;  %2666 = verf.f32 %v741_v19  ;;  %985 = vmatpush1.bf16.msra.mxu1 %v941_v20  ;;  %v3383_v23 = vadd.f32 %v3340_v31, %v3252_v44 }
 0x19b   :  { %v879_v21 = vpack.c.bf16 %v3359_v10, %v3357_v8  ;;  %v552_v34 = vpop.f32.mrb[22].mxu0  ;;  %v2653_v53 = vpop.eup %2652  ;;  %v797_v17 = vadd.f32 1.0, %v2651_v13  ;;  %v691_v58 = vmul.f32 0.5, %v604_v42  ;;  %v3386_v60 = vadd.f32 %v548_v46, %v3244_v26 }
 0x19c   :  { %v554_v47 = vpop.f32.mrb[23].mxu0  ;;  %v803_v51 = vadd.f32 1.0, %v2653_v53  ;;  %v2655_v54 = vpop.eup %2654  ;;  %v852_v56 = vmul.f32 %v810_v22, %v684_v61  ;;  %v3389_v36 = vadd.f32 %v550_v32, %v3244_v26  ;;  %v838_v1 = vmul.f32 %v796_v63, %v3334_v30  ;;  %v3413_v53 = vld [vmem:[#allocation10 + $0x8] ss:$0 sps:$4 sm:$0x33]  }
 0x19d   :  { %v2657_v62 = vpop.eup %2656  ;;  %v686_v2 = vmul.f32 0.5, %v453_v52  ;;  %v692_v35 = vmul.f32 0.5, %v606_v48  ;;  %v742_v3 = vmul.f32 0.70710677, %v3383_v23  ;;  %v3393_v4 = vmul.f32 %v797_v17, %v671_v5  ;;  %2380 = vmatmul.mubr.msk.bf16.vlgmr.msra.gmra.mrb[20].mxu1 %vm260_vm1, %v3379_v41 }
 0x19e   :  { %v699_v31 = vmul.f32 0.5, %v457_v50  ;;  %v747_v38 = vmul.f32 0.70710677, %v3376_v27  ;;  %v3398_v42 = vadd.f32 %v3346_v45, %v3252_v44  ;;  %v3402_v6 = vmul.f32 %v803_v51, %v677_v57  ;;  %1024 = vmatprep.mubr.bf16.mxu1 %v3008_v0 }
 0x19f   :  { %v2659_v61 = vpop.eup %2658  ;;  %v798_v30 = vadd.f32 1.0, %v2655_v54  ;;  %2668 = verf.f32 %v742_v3  ;;  %v717_v52 = vmul.f32 0.70710677, %v3386_v60  ;;  %v804_v49 = vadd.f32 1.0, %v2657_v62 }
 0x1a0   :  { %v2661_v9 = vpop.eup %2660  ;;  %v811_v48 = vadd.f32 1.0, %v2659_v61  ;;  %v718_v50 = vmul.f32 0.70710677, %v3389_v36  ;;  %v880_v45 = vpack.c.bf16 %v852_v56, %v838_v1  ;;  %v3408_v57 = vadd.f32 %v552_v34, %v3246_v28 }
 0x1a1   :  { %v558_v5 = vpop.f32.mrb[24].mxu0  ;;  %v2663_v46 = vpop.eup %2662  ;;  %v817_v22 = vadd.f32 1.0, %v2661_v9  ;;  %2670 = verf.f32 %v717_v52  ;;  %v3411_v24 = vadd.f32 %v554_v47, %v3246_v28  ;;  %v866_v17 = vmul.f32 %v3350_v55, %v3301_v43 }
 0x1a2   :  { %v560_v13 = vpop.f32.mrb[25].mxu0  ;;  %v853_v63 = vmul.f32 %v811_v48, %v685_v37  ;;  %v812_v19 = vadd.f32 1.0, %v2663_v46  ;;  %2672 = verf.f32 %v718_v50  ;;  %1033 = vmatprep.subr.bf16.mxu0 %v880_v45  ;;  %v840_v51 = vmul.f32 %v798_v30, %v3365_v59 }
 0x1a3   :  { %v562_v32 = vpop.f32.mrb[26].mxu0  ;;  %v3418_v54 = vmul.f32 %v817_v22, %v691_v58  ;;  %v748_v34 = vmul.f32 0.70710677, %v3398_v42  ;;  %v731_v47 = vmul.f32 0.70710677, %v3408_v57  ;;  %1034 = vmatpush1.bf16.msra.mxu0 %v879_v21  ;;  %v2665_v37 = vpop.eup %2664  ;;  %v894_v43 = vpack.c.bf16 %v866_v17, %v866_v17 }
 0x1a4   :  { %v563_v20 = vpop.f32.mrb[27].mxu0  ;;  %v881_v56 = vpack.c.bf16 %v853_v63, %v3393_v4  ;;  %v854_v62 = vmul.f32 %v812_v19, %v686_v2  ;;  %v732_v1 = vmul.f32 0.70710677, %v3411_v24  ;;  %v2667_v55 = vpop.eup %2666  ;;  %v818_v58 = vadd.f32 1.0, %v2665_v37 }
 0x1a5   :  { %v887_v59 = vpack.c.bf16 %v3418_v54, %v3402_v6  ;;  %2674 = verf.f32 %v731_v47  ;;  %v823_v3 = vadd.f32 1.0, %v3342_v39  ;;  %v825_v61 = vadd.f32 1.0, %v2667_v55  ;;  %2381 = vmatmul.mubr.msk.bf16.gmra.mrb[24].mxu1 %vm260_vm1, %v3413_v53  ;;  %2382 = vmatprep.subr.msk.bf16.mxu0 %vm267_vm0, %v894_v43 }
 0x1a6   :  { %2676 = verf.f32 %v732_v1  ;;  %v884_v8 = vpack.c.bf16 %v3363_v14, %v3355_v7  ;;  %v3436_v10 = vadd.f32 %v558_v5, %v3252_v44  ;;  %v3440_v21 = vmul.f32 %v3367_v18, %v3331_v29  ;;  %1116 = vmatprep.mubr.bf16.mxu1 %v3008_v0 }
 0x1a7   :  { %2678 = verf.f32 %v747_v38  ;;  %v865_v39 = vmul.f32 %v823_v3, %v3297_v40  ;;  %v3444_v2 = vadd.f32 %v560_v13, %v3252_v44  ;;  %v3447_v30 = vmul.f32 %v818_v58, %v692_v35 }
 0x1a8   :  { %v867_v52 = vmul.f32 %v825_v61, %v699_v31  ;;  %v745_v7 = vmul.f32 0.70710677, %v3436_v10  ;;  %v882_v14 = vpack.c.bf16 %v854_v62, %v840_v51  ;;  %v870_v29 = vmul.f32 %v3371_v12, %v3338_v11 }
 0x1a9   :  { %v650_v4 = vpop.f32.mrb[28].mxu0  ;;  %v2669_v9 = vpop.eup %2668  ;;  %2680 = verf.f32 %v748_v34  ;;  %v893_v18 = vpack.c.bf16 %v865_v39, %v865_v39  ;;  %v746_v40 = vmul.f32 0.70710677, %v3444_v2  ;;  %v3454_v48 = vmul.f32 %v804_v49, %v3373_v33 }
 0x1aa   :  { %v652_v5 = vpop.f32.mrb[29].mxu0  ;;  %v700_v35 = vmul.f32 0.5, %v3383_v23  ;;  %v826_v50 = vadd.f32 1.0, %v2669_v9  ;;  %2682 = verf.f32 %v745_v7  ;;  %1084 = vmatprep.subr.bf16.mxu1 %v882_v14  ;;  %v895_v13 = vpack.c.bf16 %v867_v52, %v867_v52 }
 0x1ab   :  { %v654_v38 = vpop.f32.mrb[30].mxu0  ;;  %v2671_v45 = vpop.eup %2670  ;;  %v947_v46 = vsel %vm267_vm0, %v893_v18, 0  ;;  %2684 = verf.f32 %v746_v40  ;;  %1085 = vmatpush1.bf16.msra.mxu1 %v881_v56  ;;  %v897_v12 = vpack.c.bf16 %v3440_v21, %v3440_v21  ;;  %v888_v33 = vpack.c.bf16 %v3447_v30, %v3454_v48 }
 0x1ac   :  { %v656_v31 = vpop.f32.mrb[31].mxu0  ;;  %v2673_v11 = vpop.eup %2672  ;;  %v868_v22 = vmul.f32 %v826_v50, %v700_v35  ;;  %1036 = vmatpush1.bf16.msra.mxu0 %v947_v46  ;;  %v3463_v23 = vadd.f32 %v650_v4, %v3244_v26  ;;  %v898_v49 = vpack.c.bf16 %v870_v29, %v870_v29  ;;  %v675_v32 = vmul.f32 0.5, %v3386_v60 }
 0x1ad   :  { %v676_v63 = vmul.f32 0.5, %v3389_v36  ;;  %1135 = vmatprep.subr.bf16.mxu0 %v884_v8  ;;  %v3468_v19 = vadd.f32 %v652_v5, %v3244_v26  ;;  %v801_v20 = vadd.f32 1.0, %v2671_v45  ;;  %v689_v51 = vmul.f32 0.5, %v3408_v57 }
 0x1ae   :  { %v896_v17 = vpack.c.bf16 %v868_v22, %v868_v22  ;;  %v721_v34 = vmul.f32 0.70710677, %v3463_v23  ;;  %v802_v37 = vadd.f32 1.0, %v2673_v11  ;;  %v690_v56 = vmul.f32 0.5, %v3411_v24 }
 0x1af   :  { %v2675_v47 = vpop.eup %2674  ;;  %2383 = vmatmul.mubr.msk.bf16.vlgmr.msra.gmra.mrb[36].mxu0 %vm260_vm1, %v3379_v41  ;;  %v953_v60 = vsel %vm267_vm0, %v895_v13, 0  ;;  %v722_v36 = vmul.f32 0.70710677, %v3468_v19  ;;  %v3482_v57 = vadd.f32 %v654_v38, %v3246_v28  ;;  %v3485_v24 = vadd.f32 %v656_v31, %v3246_v28 }
 0x1b0   :  { %v2677_v26 = vpop.eup %2676  ;;  %v815_v1 = vadd.f32 1.0, %v2675_v47  ;;  %1136 = vmatpush1.bf16.msra.mxu0 %v883_v25  ;;  %2385 = vmatprep.subr.msk.bf16.mxu1 %vm267_vm0, %v896_v17  ;;  %2686 = verf.f32 %v721_v34  ;;  %v843_v3 = vmul.f32 %v801_v20, %v675_v32  ;;  %v959_v28 = vsel %vm267_vm0, %v897_v12, 0 }
 0x1b1   :  { %v660_v62 = vpop.f32.mrb[32].mxu0  ;;  %v2679_v55 = vpop.eup %2678  ;;  %v816_v58 = vadd.f32 1.0, %v2677_v26  ;;  %2388 = vmatprep.subr.msk.bf16.mxu0 %vm267_vm0, %v898_v49  ;;  %1075 = vmatprep.mubr.bf16.mxu0 %v3008_v0  ;;  %2688 = verf.f32 %v722_v36  ;;  %v735_v8 = vmul.f32 0.70710677, %v3482_v57  ;;  %v844_v4 = vmul.f32 %v802_v37, %v676_v63 }
 0x1b2   :  { %v662_v43 = vpop.f32.mrb[33].mxu0  ;;  %v3490_v15 = vadd.f32 %v660_v62, %v3252_v44  ;;  %v857_v61 = vmul.f32 %v815_v1, %v689_v51  ;;  %1087 = vmatpush1.bf16.msra.mxu1 %v953_v60  ;;  %v736_v52 = vmul.f32 0.70710677, %v3485_v24  ;;  %v703_v29 = vmul.f32 0.5, %v3436_v10 }
 0x1b3   :  { %v3493_v16 = vadd.f32 %v662_v43, %v3252_v44  ;;  %v664_v25 = vpop.f32.mrb[34].mxu0  ;;  %v2681_v39 = vpop.eup %2680  ;;  %v858_v30 = vmul.f32 %v816_v58, %v690_v56  ;;  %2690 = verf.f32 %v735_v8  ;;  %v831_v38 = vadd.f32 1.0, %v2679_v55  ;;  %v2579_v43 = vld [vmem:[#allocation5 + $0xc] ss:$56 sps:$4 sm:$0xff]   ;;  %v225_v8 = vld [vmem:[#allocation5 + $0x78] sm:$0x33] }
 0x1b4   :  { %v665_v21 = vpop.f32.mrb[35].mxu0  ;;  %v749_v7 = vmul.f32 0.70710677, %v3490_v15  ;;  %v2683_v14 = vpop.eup %2682  ;;  %v885_v5 = vpack.c.bf16 %v857_v61, %v843_v3  ;;  %1138 = vmatpush1.bf16.msra.mxu0 %v959_v28  ;;  %2692 = verf.f32 %v736_v52  ;;  %v704_v48 = vmul.f32 0.5, %v3444_v2  ;;  %v2584_v28 = vld [vmem:[#allocation5 + $0x4] ss:$56 sps:$4 sm:$0xff]  }
 0x1b5   :  { %v750_v44 = vmul.f32 0.70710677, %v3493_v16  ;;  %v2685_v9 = vpop.eup %2684  ;;  %v829_v18 = vadd.f32 1.0, %v2683_v14  ;;  %1237 = vmatprep.subr.bf16.mxu0 %v888_v33  ;;  %2386 = vmatmul.mubr.msk.bf16.vlgmr.msra.gmra.mrb[28].mxu1 %vm260_vm1, %v3379_v41  ;;  %v886_v40 = vpack.c.bf16 %v858_v30, %v844_v4  ;;  %v832_v50 = vadd.f32 1.0, %v2681_v39  ;;  %v2577_v21 = vld [vmem:[#allocation5 + $0x8] ss:$56 sps:$4 sm:$0xff]  }
 0x1b6   :  { %v830_v35 = vadd.f32 1.0, %v2685_v9  ;;  %2694 = verf.f32 %v749_v7  ;;  %1126 = vmatprep.mubr.bf16.mxu1 %v3008_v0  ;;  %v705_v10 = vmul.f32 0.5, %v3376_v27  ;;  %v706_v13 = vmul.f32 0.5, %v3398_v42  ;;  %v224_v30 = vld [vmem:[#allocation5 + $0x70] sm:$0x33] }
 0x1b7   :  { %v871_v31 = vmul.f32 %v829_v18, %v703_v29  ;;  %2384 = vmatmul.mubr.msk.bf16.gmra.mrb[40].mxu0 %vm260_vm1, %v3413_v53  ;;  %2696 = verf.f32 %v750_v44  ;;  %1186 = vmatprep.subr.bf16.mxu1 %v886_v40  ;;  %v679_v51 = vmul.f32 0.5, %v3463_v23  ;;  %v693_v34 = vmul.f32 0.5, %v3482_v57  ;;  %v2591_v7 = vld [vmem:[#allocation5 + $0x1c] ss:$56 sps:$4 sm:$0xff]   ;;  %v2582_v14 = vld [vmem:[#allocation5] ss:$56 sps:$4 sm:$0xff]  }
 0x1b8   :  { %v872_v45 = vmul.f32 %v830_v35, %v704_v48  ;;  %1167 = vmatprep.mubr.bf16.mxu0 %v3008_v0  ;;  %1187 = vmatpush1.bf16.msra.mxu1 %v885_v5  ;;  %v873_v11 = vmul.f32 %v831_v38, %v705_v10  ;;  %v874_v33 = vmul.f32 %v832_v50, %v706_v13  ;;  %v680_v56 = vmul.f32 0.5, %v3468_v19  ;;  %v2596_v29 = vld [vmem:[#allocation5 + $0x14] ss:$56 sps:$4 sm:$0xff]   ;;  %v226_v35 = vld [vmem:[#allocation5 + $0x80] sm:$0x33] }
 0x1b9   :  { %v899_v2 = vpack.c.bf16 %v871_v31, %v871_v31  ;;  %v694_v60 = vmul.f32 0.5, %v3485_v24  ;;  %v707_v1 = vmul.f32 0.5, %v3490_v15  ;;  %v708_v24 = vmul.f32 0.5, %v3493_v16  ;;  %v227_v18 = vld [vmem:[#allocation5 + $0x88] sm:$0x33]  ;;  %v3553_v40 = vld [vmem:[#allocation13] sm:$0xff]  }
 0x1ba   :  { %v2687_v46 = vpop.eup %2686  ;;  %v900_v12 = vpack.c.bf16 %v872_v45, %v872_v45  ;;  %v901_v63 = vpack.c.bf16 %v873_v11, %v873_v11  ;;  %v902_v20 = vpack.c.bf16 %v874_v33, %v874_v33  ;;  %v2419_v39 = vcombine.high %v225_v8, %v225_v8  ;;  %v2601_v31 = vld [vmem:[#allocation5 + $0x2c] ss:$56 sps:$4 sm:$0xff]   ;;  %v2594_v10 = vld [vmem:[#allocation5 + $0x10] ss:$56 sps:$4 sm:$0xff]   ;;  %v229_v11 = vld [vmem:[#allocation5 + $0x98] sm:$0x33] }
 0x1bb   :  { %v2689_v22 = vpop.eup %2688  ;;  %v965_v49 = vsel %vm267_vm0, %v899_v2, 0  ;;  %v805_v32 = vadd.f32 1.0, %v2687_v46  ;;  %v2418_v4 = vcombine.low %v225_v8, %v225_v8  ;;  %v2417_v5 = vcombine.high %v224_v30, %v224_v30  ;;  %v2588_v45 = vld [vmem:[#allocation13 + $0x8] ss:$0 sps:$4 sm:$0x33]  }
 0x1bc   :  { %2391 = vmatprep.subr.msk.bf16.mxu1 %vm267_vm0, %v900_v12  ;;  %v806_v17 = vadd.f32 1.0, %v2689_v22  ;;  %v971_v6 = vsel %vm267_vm0, %v901_v63, 0  ;;  %v2416_v44 = vcombine.low %v224_v30, %v224_v30  ;;  %v2423_v38 = vcombine.high %v227_v18, %v227_v18  ;;  %v2606_v46 = vld [vmem:[#allocation5 + $0x24] ss:$56 sps:$4 sm:$0xff]   ;;  %v2599_v12 = vld [vmem:[#allocation5 + $0x28] ss:$56 sps:$4 sm:$0xff]  }
 0x1bd   :  { %2387 = vmatmul.mubr.msk.bf16.gmra.mrb[32].mxu1 %vm260_vm1, %v3413_v53  ;;  %v2691_v27 = vpop.eup %2690  ;;  %v847_v23 = vmul.f32 %v805_v32, %v679_v51  ;;  %v1468_v52 = vsel %vm267_vm0, %v2418_v4, 0  ;;  %v2422_v48 = vcombine.low %v227_v18, %v227_v18  ;;  %v2421_v13 = vcombine.high %v226_v35, %v226_v35  ;;  %v230_v51 = vld [vmem:[#allocation5 + $0xa0] sm:$0x33]  ;;  %v3609_v4 = vpop.permute.xlu0 %913 }
 0x1be   :  { %1189 = vmatpush1.bf16.msra.mxu1 %v965_v49  ;;  %1218 = vmatprep.mubr.bf16.mxu1 %v3008_v0  ;;  %v2693_v42 = vpop.eup %2692  ;;  %v819_v47 = vadd.f32 1.0, %v2691_v27  ;;  %v848_v55 = vmul.f32 %v806_v17, %v680_v56  ;;  %v1462_v9 = vsel %vm267_vm0, %v2416_v44, 0  ;;  %v2427_v22 = vcombine.high %v229_v11, %v229_v11  ;;  %v228_v49 = vld [vmem:[#allocation5 + $0x90] sm:$0x33]  ;;  %v2604_v27 = vld [vmem:[#allocation5 + $0x20] ss:$56 sps:$4 sm:$0xff]  }
 0x1bf   :  { %2389 = vmatmul.mubr.msk.bf16.vlgmr.msra.gmra.mrb[44].mxu0 %vm260_vm1, %v3379_v41  ;;  %v820_v36 = vadd.f32 1.0, %v2693_v42  ;;  %v1480_v50 = vsel %vm267_vm0, %v2422_v48, 0  ;;  %v2426_v33 = vcombine.low %v229_v11, %v229_v11  ;;  %v2425_v63 = vcombine.high %v228_v49, %v228_v49 }
 0x1c0   :  { %v2695_v37 = vpop.eup %2694  ;;  %1238 = vmatpush1.bf16.msra.mxu0 %v887_v59  ;;  %1177 = vmatprep.mubr.bf16.mxu0 %v3008_v0  ;;  %v861_v26 = vmul.f32 %v819_v47, %v693_v34  ;;  %v2424_v17 = vcombine.low %v228_v49, %v228_v49  ;;  %v2609_v34 = vld [vmem:[#allocation5 + $0x30] ss:$56 sps:$4 sm:$0xff]   ;;  %v2429_v47 = vcombine.high %v230_v51, %v230_v51 }
 0x1c1   :  { %v2697_v62 = vpop.eup %2696  ;;  %v833_v57 = vadd.f32 1.0, %v2695_v37  ;;  %2394 = vmatprep.subr.msk.bf16.mxu0 %vm267_vm0, %v902_v20  ;;  %v862_v19 = vmul.f32 %v820_v36, %v694_v60  ;;  %v1492_v32 = vsel %vm267_vm0, %v2426_v33, 0  ;;  %v2611_v20 = vld [vmem:[#allocation5 + $0x34] ss:$56 sps:$4 sm:$0xff]   ;;  %v2428_v37 = vcombine.low %v230_v51, %v230_v51  ;;  %v3618_v18 = vpop.permute.xlu0 %1907 }
 0x1c2   :  { %v834_v58 = vadd.f32 1.0, %v2697_v62  ;;  %v889_v25 = vpack.c.bf16 %v861_v26, %v847_v23  ;;  %v1486_v42 = vsel %vm267_vm0, %v2424_v17, 0 }
 0x1c3   :  { %v875_v3 = vmul.f32 %v833_v57, %v707_v1  ;;  %v890_v59 = vpack.c.bf16 %v862_v19, %v848_v55  ;;  %v1498_v56 = vsel %vm267_vm0, %v2428_v37, 0 }
 0x1c4   :  { %v876_v54 = vmul.f32 %v834_v58, %v708_v24  ;;  %1240 = vmatpush1.bf16.msra.mxu0 %v971_v6 }
 0x1c5   :  { %v903_v61 = vpack.c.bf16 %v875_v3, %v875_v3  ;;  %2392 = vmatmul.mubr.msk.bf16.vlgmr.msra.gmra.mrb[36].mxu1 %vm260_vm1, %v3379_v41  ;;  %1554 = vmatprep.subr.bf16.mxu0 %v2579_v43 }
 0x1c6   :  { %v904_v15 = vpack.c.bf16 %v876_v54, %v876_v54  ;;  %1288 = vmatprep.subr.bf16.mxu1 %v890_v59  ;;  %1228 = vmatprep.mubr.bf16.mxu1 %v3008_v0 }
 0x1c7   :  { %2390 = vmatmul.mubr.msk.bf16.gmra.mrb[48].mxu0 %vm260_vm1, %v3413_v53  ;;  %1289 = vmatpush1.bf16.msra.mxu1 %v889_v25  ;;  %v977_v16 = vsel %vm267_vm0, %v903_v61, 0 }
 0x1c8   :  { %1269 = vmatprep.mubr.bf16.mxu0 %v3008_v0  ;;  %2397 = vmatprep.subr.msk.bf16.mxu1 %vm267_vm0, %v904_v15 }
 0x1cb   :  { %1291 = vmatpush1.bf16.msra.mxu1 %v977_v16  ;;  %v3603_v16 = vpop.permute.xlu1 %923 }
 0x1cc   :  { %1503 = vmatprep.subr.bf16.mxu1 %v2584_v28 }
 0x1cd   :  { %2393 = vmatmul.mubr.msk.bf16.gmra.mrb[40].mxu1 %vm260_vm1, %v3413_v53 }
 0x1ce   :  { %1320 = vmatprep.mubr.bf16.mxu1 %v3008_v0 }
 0x1cf   :  { %2395 = vmatmul.mubr.msk.bf16.vlgmr.msra.gmra.mrb[52].mxu0 %vm260_vm1, %v3379_v41  ;;  %v3611_v30 = vpop.permute.xlu1 %918 }
 0x1d0   :  { %1279 = vmatprep.mubr.bf16.mxu0 %v3008_v0  ;;  %1555 = vmatpush1.bf16.msra.mxu0 %v2577_v21 }
 0x1d1   :  { %2433 = vmatprep.subr.msk.bf16.mxu0 %vm267_vm0, %v2419_v39 }
 0x1d4   :  { %1557 = vmatpush1.bf16.msra.mxu0 %v1468_v52 }
 0x1d5   :  { %2398 = vmatmul.mubr.msk.bf16.vlgmr.msra.gmra.mrb[44].mxu1 %vm260_vm1, %v3379_v41  ;;  %1656 = vmatprep.subr.bf16.mxu0 %v2591_v7  ;;  %v2589_v41 = vld [vmem:[#allocation5 + $0x18] ss:$56 sps:$4 sm:$0xff]  }
 0x1d6   :  { %1330 = vmatprep.mubr.bf16.mxu1 %v3008_v0  ;;  %1504 = vmatpush1.bf16.msra.mxu1 %v2582_v14 }
 0x1d7   :  { %2396 = vmatmul.mubr.msk.bf16.gmra.mrb[56].mxu0 %vm260_vm1, %v3413_v53  ;;  %2430 = vmatprep.subr.msk.bf16.mxu1 %vm267_vm0, %v2417_v5 }
 0x1d8   :  { %1586 = vmatprep.mubr.bf16.mxu0 %v3008_v0 }
 0x1da   :  { %1506 = vmatpush1.bf16.msra.mxu1 %v1462_v9 }
 0x1db   :  { %1605 = vmatprep.subr.bf16.mxu1 %v2596_v29 }
 0x1dd   :  { %2399 = vmatmul.mubr.msk.bf16.gmra.mrb[48].mxu1 %vm260_vm1, %v3413_v53  ;;  %v2420_v53 = vcombine.low %v226_v35, %v226_v35 }
 0x1de   :  { %1535 = vmatprep.mubr.bf16.mxu1 %v3008_v0 }
 0x1df   :  { %2434 = vmatmul.mubr.msk.bf16.vlgmr.msra.gmra.mrb[36].mxu0 %vm260_vm1, %v3553_v40  ;;  %v1474_v2 = vsel %vm267_vm0, %v2420_v53, 0 }
 0x1e0   :  { %1596 = vmatprep.mubr.bf16.mxu0 %v3008_v0  ;;  %1657 = vmatpush1.bf16.msra.mxu0 %v2589_v41 }
 0x1e1   :  { %2439 = vmatprep.subr.msk.bf16.mxu0 %vm267_vm0, %v2423_v38 }
 0x1e4   :  { %1659 = vmatpush1.bf16.msra.mxu0 %v1480_v50  ;;  %v3623_v50 = vpop.permute.xlu1 %1912 }
 0x1e5   :  { %2431 = vmatmul.mubr.msk.bf16.vlgmr.msra.gmra.mrb[20].mxu1 %vm260_vm1, %v3553_v40  ;;  %1758 = vmatprep.subr.bf16.mxu0 %v2601_v31 }
 0x1e6   :  { %1545 = vmatprep.mubr.bf16.mxu1 %v3008_v0  ;;  %1606 = vmatpush1.bf16.msra.mxu1 %v2594_v10 }
 0x1e7   :  { %2435 = vmatmul.mubr.msk.bf16.gmra.mrb[60].mxu0 %vm260_vm1, %v2588_v45  ;;  %2436 = vmatprep.subr.msk.bf16.mxu1 %vm267_vm0, %v2421_v13 }
 0x1e8   :  { %1688 = vmatprep.mubr.bf16.mxu0 %v3008_v0 }
 0x1ea   :  { %1608 = vmatpush1.bf16.msra.mxu1 %v1474_v2 }
 0x1eb   :  { %1707 = vmatprep.subr.bf16.mxu1 %v2606_v46 }
 0x1ed   :  { %2432 = vmatmul.mubr.msk.bf16.gmra.mrb[52].mxu1 %vm260_vm1, %v2588_v45 }
 0x1ee   :  { %1637 = vmatprep.mubr.bf16.mxu1 %v3008_v0 }
 0x1ef   :  { %2440 = vmatmul.mubr.msk.bf16.vlgmr.msra.gmra.mrb[44].mxu0 %vm260_vm1, %v3553_v40 }
 0x1f0   :  { %1698 = vmatprep.mubr.bf16.mxu0 %v3008_v0  ;;  %1759 = vmatpush1.bf16.msra.mxu0 %v2599_v12 }
 0x1f1   :  { %2445 = vmatprep.subr.msk.bf16.mxu0 %vm267_vm0, %v2427_v22 }
 0x1f4   :  { %1761 = vmatpush1.bf16.msra.mxu0 %v1492_v32 }
 0x1f5   :  { %2437 = vmatmul.mubr.msk.bf16.vlgmr.msra.gmra.mrb[28].mxu1 %vm260_vm1, %v3553_v40 }
 0x1f6   :  { %1647 = vmatprep.mubr.bf16.mxu1 %v3008_v0  ;;  %1708 = vmatpush1.bf16.msra.mxu1 %v2604_v27 }
 0x1f7   :  { %2441 = vmatmul.mubr.msk.bf16.gmra.mrb[64].mxu0 %vm260_vm1, %v2588_v45  ;;  %2442 = vmatprep.subr.msk.bf16.mxu1 %vm267_vm0, %v2425_v63 }
 0x1f8   :  { %1790 = vmatprep.mubr.bf16.mxu0 %v3008_v0 }
 0x1fa   :  { %1710 = vmatpush1.bf16.msra.mxu1 %v1486_v42 }
 0x1fb   :  { %1809 = vmatprep.subr.bf16.mxu1 %v2611_v20 }
 0x1fd   :  { %2438 = vmatmul.mubr.msk.bf16.gmra.mrb[56].mxu1 %vm260_vm1, %v2588_v45 }
 0x1fe   :  { %1739 = vmatprep.mubr.bf16.mxu1 %v3008_v0 }
 0x1ff   :  { %2446 = vmatmul.mubr.msk.bf16.vlgmr.msra.gmra.mrb[52].mxu0 %vm260_vm1, %v3553_v40 }
 0x200   :  { %1800 = vmatprep.mubr.bf16.mxu0 %v3008_v0 }
 0x205   :  { %2443 = vmatmul.mubr.msk.bf16.vlgmr.msra.gmra.mrb[36].mxu1 %vm260_vm1, %v3553_v40 }
 0x206   :  { %1749 = vmatprep.mubr.bf16.mxu1 %v3008_v0  ;;  %1810 = vmatpush1.bf16.msra.mxu1 %v2609_v34 }
 0x207   :  { %2447 = vmatmul.mubr.msk.bf16.gmra.mrb[68].mxu0 %vm260_vm1, %v2588_v45  ;;  %2448 = vmatprep.subr.msk.bf16.mxu1 %vm267_vm0, %v2429_v47 }
 0x20a   :  { %1812 = vmatpush1.bf16.msra.mxu1 %v1498_v56 }
 0x20d   :  { %2444 = vmatmul.mubr.msk.bf16.gmra.mrb[60].mxu1 %vm260_vm1, %v2588_v45 }
 0x20e   :  { %1841 = vmatprep.mubr.bf16.mxu1 %v3008_v0 }
 0x215   :  { %2449 = vmatmul.mubr.msk.bf16.vlgmr.msra.gmra.mrb[44].mxu1 %vm260_vm1, %v3553_v40 }
 0x216   :  { %1851 = vmatprep.mubr.bf16.mxu1 %v3008_v0 }
 0x21d   :  { %2450 = vmatmul.mubr.msk.bf16.gmra.mrb[64].mxu1 %vm260_vm1, %v2588_v45 }
 0x278   :  { %v1026_v60 = vpop.f32.mrb[24].mxu1 }
 0x279   :  { %v1028_v36 = vpop.f32.mrb[25].mxu1  ;;  %v1027_v31 = vadd.f32 %v1026_v60, %v3603_v16 }
 0x27a   :  { %v1030_v62 = vpop.f32.mrb[26].mxu1  ;;  %v1029_v10 = vadd.f32 %v1028_v36, %v3603_v16 }
 0x27b   :  { %v1031_v23 = vpop.f32.mrb[27].mxu1 }
 0x28a   :  { %v1077_v26 = vpop.f32.mrb[40].mxu0 }
 0x28b   :  { %v1079_v1 = vpop.f32.mrb[41].mxu0  ;;  %v1078_v53 = vadd.f32 %v1077_v26, %v3603_v16  ;;  %v3649_v26 = vpop.permute.xlu0 %1917 }
 0x28c   :  { %v1081_v57 = vpop.f32.mrb[42].mxu0  ;;  %v1080_v2 = vadd.f32 %v1079_v1, %v3603_v16 }
 0x28d   :  { %v1082_v43 = vpop.f32.mrb[43].mxu0 }
 0x290   :  { %v1128_v55 = vpop.f32.mrb[32].mxu1 }
 0x291   :  { %v1130_v19 = vpop.f32.mrb[33].mxu1  ;;  %v3633_v12 = vadd.f32 %v1128_v55, %v3603_v16 }
 0x292   :  { %v1132_v24 = vpop.f32.mrb[34].mxu1  ;;  %v3636_v22 = vadd.f32 %v1130_v19, %v3603_v16 }
 0x293   :  { %v1133_v58 = vpop.f32.mrb[35].mxu1 }
 0x29a   :  { %v1179_v25 = vpop.f32.mrb[48].mxu0 }
 0x29b   :  { %v1181_v3 = vpop.f32.mrb[49].mxu0  ;;  %v3640_v27 = vadd.f32 %v1179_v25, %v3603_v16 }
 0x29c   :  { %v1183_v6 = vpop.f32.mrb[50].mxu0  ;;  %v3644_v20 = vadd.f32 %v1181_v3, %v3603_v16 }
 0x29d   :  { %v1184_v54 = vpop.f32.mrb[51].mxu0 }
 0x2a0   :  { %v1230_v59 = vpop.f32.mrb[40].mxu1 }
 0x2a1   :  { %v3601_v0 = vpop.f32.mrb[41].mxu1  ;;  %v3654_v19 = vadd.f32 %v1230_v59, %v3603_v16 }
 0x2a2   :  { %v1234_v61 = vpop.f32.mrb[42].mxu1  ;;  %v3660_v6 = vadd.f32 %v3601_v0, %v3603_v16 }
 0x2a3   :  { %v1235_v15 = vpop.f32.mrb[43].mxu1 }
 0x2aa   :  { %v3605_v28 = vpop.f32.mrb[56].mxu0 }
 0x2ab   :  { %v3607_v8 = vpop.f32.mrb[57].mxu0  ;;  %v3668_v59 = vadd.f32 %v3605_v28, %v3603_v16 }
 0x2ac   :  { %v1285_v21 = vpop.f32.mrb[58].mxu0 }
 0x2ad   :  { %v1286_v39 = vpop.f32.mrb[59].mxu0  ;;  %v3672_v21 = vadd.f32 %v3607_v8, %v3603_v16 }
 0x2b0   :  { %v3613_v52 = vpop.f32.mrb[48].mxu1 }
 0x2b1   :  { %v3615_v7 = vpop.f32.mrb[49].mxu1 }
 0x2b2   :  { %v1588_v14 = vpop.f32.mrb[36].mxu0  ;;  %v1336_v5 = vpop.f32.mrb[50].mxu1 }
 0x2b3   :  { %v2501_v44 = vadd.f32 %v1588_v14, %v3609_v4  ;;  %v1590_v9 = vpop.f32.mrb[37].mxu0  ;;  %v1337_v29 = vpop.f32.mrb[51].mxu1 }
 0x2b4   :  { %v2502_v40 = vadd.f32 %v1590_v9, %v3609_v4  ;;  %v1592_v41 = vpop.f32.mrb[38].mxu0 }
 0x2b5   :  { %v1922_v38 = vadd.f32 %v2501_v44, %v3618_v18  ;;  %v2503_v48 = vadd.f32 %v1592_v41, %v3611_v30  ;;  %v1594_v35 = vpop.f32.mrb[39].mxu0 }
 0x2b6   :  { %v1923_v45 = vadd.f32 %v2502_v40, %v3618_v18  ;;  %v2504_v13 = vadd.f32 %v1594_v35, %v3611_v30 }
 0x2b7   :  { %v2006_v46 = vmul.f32 0.70710677, %v1922_v38  ;;  %v1936_v11 = vadd.f32 %v2503_v48, %v3623_v50  ;;  %v1964_v14 = vmul.f32 0.5, %v1922_v38 }
 0x2b8   :  { %v2007_v33 = vmul.f32 0.70710677, %v1923_v45  ;;  %v1937_v49 = vadd.f32 %v2504_v13, %v3623_v50  ;;  %v1537_v32 = vpop.f32.mrb[20].mxu1  ;;  %v1965_v9 = vmul.f32 0.5, %v1923_v45 }
 0x2b9   :  { %2698 = verf.f32 %v2006_v46  ;;  %v2020_v63 = vmul.f32 0.70710677, %v1936_v11  ;;  %v2497_v17 = vadd.f32 %v1537_v32, %v3609_v4  ;;  %v1539_v42 = vpop.f32.mrb[21].mxu1  ;;  %v1978_v48 = vmul.f32 0.5, %v1936_v11 }
 0x2ba   :  { %2700 = verf.f32 %v2007_v33  ;;  %v2021_v51 = vmul.f32 0.70710677, %v1937_v49  ;;  %v1598_v34 = vpop.f32.mrb[60].mxu0  ;;  %v2498_v47 = vadd.f32 %v1539_v42, %v3609_v4  ;;  %v1541_v37 = vpop.f32.mrb[22].mxu1  ;;  %v1979_v28 = vmul.f32 0.5, %v1937_v49 }
 0x2bb   :  { %2702 = verf.f32 %v2020_v63  ;;  %v1890_v56 = vadd.f32 %v1598_v34, %v1078_v53  ;;  %v1600_v60 = vpop.f32.mrb[61].mxu0  ;;  %v1920_v36 = vadd.f32 %v2497_v17, %v3618_v18  ;;  %v2499_v62 = vadd.f32 %v1541_v37, %v3611_v30  ;;  %v1543_v23 = vpop.f32.mrb[23].mxu1 }
 0x2bc   :  { %2704 = verf.f32 %v2021_v51  ;;  %v1891_v1 = vadd.f32 %v1600_v60, %v1080_v2  ;;  %v1921_v57 = vadd.f32 %v2498_v47, %v3618_v18  ;;  %v2500_v43 = vadd.f32 %v1543_v23, %v3611_v30  ;;  %v1602_v55 = vpop.f32.mrb[62].mxu0 }
 0x2bd   :  { %v1950_v24 = vadd.f32 %v3649_v26, %v1890_v56  ;;  %v2004_v58 = vmul.f32 0.70710677, %v1920_v36  ;;  %v1934_v25 = vadd.f32 %v2499_v62, %v3623_v50  ;;  %v1603_v3 = vpop.f32.mrb[63].mxu0  ;;  %v1962_v2 = vmul.f32 0.5, %v1920_v36 }
 0x2be   :  { %v1951_v54 = vadd.f32 %v3649_v26, %v1891_v1  ;;  %v2005_v61 = vmul.f32 0.70710677, %v1921_v57  ;;  %v3664_v15 = vadd.f32 %v2500_v43, %v3623_v50 }
 0x2bf   :  { %v2034_v39 = vmul.f32 0.70710677, %v1950_v24  ;;  %2706 = verf.f32 %v2004_v58  ;;  %v2018_v0 = vmul.f32 0.70710677, %v1934_v25  ;;  %v1976_v58 = vmul.f32 0.5, %v1934_v25 }
 0x2c0   :  { %v2035_v5 = vmul.f32 0.70710677, %v1951_v54  ;;  %2708 = verf.f32 %v2005_v61  ;;  %v1547_v44 = vpop.f32.mrb[52].mxu1  ;;  %v2019_v29 = vmul.f32 0.70710677, %v3664_v15 }
 0x2c1   :  { %2710 = verf.f32 %v2034_v39  ;;  %v1888_v40 = vadd.f32 %v1547_v44, %v1027_v31  ;;  %v1549_v41 = vpop.f32.mrb[53].mxu1  ;;  %v1963_v31 = vmul.f32 0.5, %v1921_v57  ;;  %v1992_v57 = vmul.f32 0.5, %v1950_v24 }
 0x2c2   :  { %2712 = verf.f32 %v2035_v5  ;;  %v1690_v35 = vpop.f32.mrb[44].mxu0  ;;  %v1889_v13 = vadd.f32 %v1549_v41, %v1029_v10  ;;  %v1551_v8 = vpop.f32.mrb[54].mxu1 }
 0x2c3   :  { %v2699_v53 = vpop.eup %2698  ;;  %2714 = verf.f32 %v2018_v0  ;;  %v2509_v38 = vadd.f32 %v1690_v35, %v3609_v4  ;;  %v1692_v46 = vpop.f32.mrb[45].mxu0  ;;  %v3677_v33 = vadd.f32 %v3649_v26, %v1888_v40  ;;  %v1977_v8 = vmul.f32 0.5, %v3664_v15 }
 0x2c4   :  { %v1552_v45 = vpop.f32.mrb[55].mxu1  ;;  %v2701_v32 = vpop.eup %2700  ;;  %v2090_v63 = vadd.f32 1.0, %v2699_v53  ;;  %2716 = verf.f32 %v2019_v29  ;;  %v2510_v11 = vadd.f32 %v1692_v46, %v3609_v4  ;;  %v3685_v34 = vadd.f32 %v3649_v26, %v1889_v13 }
 0x2c5   :  { %v1694_v49 = vpop.f32.mrb[46].mxu0  ;;  %v2703_v17 = vpop.eup %2702  ;;  %v2091_v10 = vadd.f32 1.0, %v2701_v32  ;;  %v3681_v42 = vadd.f32 %v2509_v38, %v3618_v18  ;;  %v2032_v51 = vmul.f32 0.70710677, %v3677_v33 }
 0x2c6   :  { %v1696_v47 = vpop.f32.mrb[47].mxu0  ;;  %v2705_v37 = vpop.eup %2704  ;;  %v2132_v56 = vmul.f32 %v2090_v63, %v1964_v14  ;;  %v2104_v60 = vadd.f32 1.0, %v2703_v17  ;;  %v3688_v36 = vadd.f32 %v2510_v11, %v3618_v18  ;;  %v2511_v62 = vadd.f32 %v1694_v49, %v3611_v30 }
 0x2c7   :  { %v2133_v23 = vmul.f32 %v2091_v10, %v1965_v9  ;;  %v2105_v1 = vadd.f32 1.0, %v2705_v37  ;;  %v2010_v43 = vmul.f32 0.70710677, %v3681_v42  ;;  %2718 = verf.f32 %v2032_v51 }
 0x2c8   :  { %v2146_v55 = vmul.f32 %v2104_v60, %v1978_v48  ;;  %v2011_v3 = vmul.f32 0.70710677, %v3688_v36  ;;  %v1639_v61 = vpop.f32.mrb[28].mxu1  ;;  %v3694_v0 = vadd.f32 %v2511_v62, %v3623_v50  ;;  %v1993_v9 = vmul.f32 0.5, %v1951_v54 }
 0x2c9   :  { %v2707_v39 = vpop.eup %2706  ;;  %v2473_v5 = vpack.c.bf16 %v2133_v23, %v2132_v56  ;;  %v2147_v14 = vmul.f32 %v2105_v1, %v1979_v28  ;;  %2720 = verf.f32 %v2010_v43  ;;  %v1641_v44 = vpop.f32.mrb[29].mxu1  ;;  %v2033_v24 = vmul.f32 0.70710677, %v3685_v34 }
 0x2ca   :  { %v2709_v29 = vpop.eup %2708  ;;  %v2088_v40 = vadd.f32 1.0, %v2707_v39  ;;  %2722 = verf.f32 %v2011_v3  ;;  %v1700_v41 = vpop.f32.mrb[64].mxu0  ;;  %v2024_v28 = vmul.f32 0.70710677, %v3694_v0  ;;  %v2512_v54 = vadd.f32 %v1696_v47, %v3611_v30 }
 0x2cb   :  { %v1643_v25 = vpop.f32.mrb[30].mxu1  ;;  %v2711_v48 = vpop.eup %2710  ;;  %2313 = vst [vmem:[#allocation16 + $0x8] sm:$0xff] %v2473_v5  ;;  %v2480_v35 = vpack.c.bf16 %v2147_v14, %v2146_v55  ;;  %v2089_v13 = vadd.f32 1.0, %v2709_v29  ;;  %2724 = verf.f32 %v2033_v24  ;;  %v1894_v10 = vadd.f32 %v1700_v41, %v3640_v27 }
 0x2cc   :  { %v1702_v53 = vpop.f32.mrb[65].mxu0  ;;  %v1645_v38 = vpop.f32.mrb[31].mxu1  ;;  %v2118_v45 = vadd.f32 1.0, %v2711_v48  ;;  %v2130_v32 = vmul.f32 %v2088_v40, %v1962_v2  ;;  %2726 = verf.f32 %v2024_v28  ;;  %v1941_v60 = vadd.f32 %v2512_v54, %v3623_v50 }
 0x2cd   :  { %v2713_v46 = vpop.eup %2712  ;;  %v1704_v63 = vpop.f32.mrb[66].mxu0  ;;  %2320 = vst [vmem:[#allocation16 + $0x40] sm:$0xff] %v2480_v35  ;;  %v2131_v17 = vmul.f32 %v2089_v13, %v1963_v31  ;;  %v1895_v62 = vadd.f32 %v1702_v53, %v3644_v20  ;;  %v1954_v47 = vadd.f32 %v3649_v26, %v1894_v10  ;;  %v1990_v55 = vmul.f32 0.5, %v3677_v33 }
 0x2ce   :  { %v2715_v11 = vpop.eup %2714  ;;  %v2119_v49 = vadd.f32 1.0, %v2713_v46  ;;  %v1705_v51 = vpop.f32.mrb[67].mxu0  ;;  %v2160_v37 = vmul.f32 %v2118_v45, %v1992_v57  ;;  %v2025_v31 = vmul.f32 0.70710677, %v1941_v60  ;;  %v1968_v5 = vmul.f32 0.5, %v3681_v42 }
 0x2cf   :  { %v2717_v15 = vpop.eup %2716  ;;  %v2102_v56 = vadd.f32 1.0, %v2715_v11  ;;  %v2472_v23 = vpack.c.bf16 %v2131_v17, %v2130_v32  ;;  %v3706_v3 = vadd.f32 %v3649_v26, %v1895_v62  ;;  %v2038_v20 = vmul.f32 0.70710677, %v1954_v47 }
 0x2d0   :  { %v2161_v2 = vmul.f32 %v2119_v49, %v1993_v9  ;;  %v2103_v1 = vadd.f32 1.0, %v2717_v15  ;;  %v3708_v27 = vpop.f32.mrb[56].mxu1  ;;  %v1969_v9 = vmul.f32 0.5, %v3688_v36  ;;  %2728 = verf.f32 %v2025_v31 }
 0x2d1   :  { %v2144_v43 = vmul.f32 %v2102_v56, %v1976_v58  ;;  %2312 = vst [vmem:[#allocation16] sm:$0xff] %v2472_v23  ;;  %v3711_v14 = vpop.f32.mrb[57].mxu1  ;;  %v2719_v29 = vpop.eup %2718  ;;  %v2039_v33 = vmul.f32 0.70710677, %v3706_v3  ;;  %v2505_v58 = vadd.f32 %v1639_v61, %v3609_v4  ;;  %2730 = verf.f32 %v2038_v20 }
 0x2d2   :  { %v2487_v57 = vpack.c.bf16 %v2161_v2, %v2160_v37  ;;  %v2145_v39 = vmul.f32 %v2103_v1, %v1977_v8  ;;  %v1792_v40 = vpop.f32.mrb[52].mxu0  ;;  %v1653_v24 = vpop.f32.mrb[58].mxu1  ;;  %v2116_v35 = vadd.f32 1.0, %v2719_v29  ;;  %v2506_v42 = vadd.f32 %v1641_v44, %v3609_v4 }
 0x2d3   :  { %v2721_v41 = vpop.eup %2720  ;;  %v1794_v13 = vpop.f32.mrb[53].mxu0  ;;  %2732 = verf.f32 %v2039_v33  ;;  %v1924_v36 = vadd.f32 %v2505_v58, %v3618_v18  ;;  %v2507_v46 = vadd.f32 %v1643_v25, %v3611_v30  ;;  %v1991_v32 = vmul.f32 0.5, %v3685_v34 }
 0x2d4   :  { %2327 = vst [vmem:[#allocation16 + $0x78] sm:$0x33] %v2487_v57  ;;  %v2479_v48 = vpack.c.bf16 %v2145_v39, %v2144_v43  ;;  %v1654_v8 = vpop.f32.mrb[59].mxu1  ;;  %v2723_v28 = vpop.eup %2722  ;;  %v2094_v53 = vadd.f32 1.0, %v2721_v41  ;;  %v1925_v54 = vadd.f32 %v2506_v42, %v3618_v18  ;;  %v2508_v63 = vadd.f32 %v1645_v38, %v3611_v30 }
 0x2d5   :  { %v1796_v45 = vpop.f32.mrb[54].mxu0  ;;  %v2095_v61 = vadd.f32 1.0, %v2723_v28  ;;  %v2725_v44 = vpop.eup %2724  ;;  %v1982_v17 = vmul.f32 0.5, %v3694_v0  ;;  %v2008_v10 = vmul.f32 0.70710677, %v1924_v36  ;;  %v1938_v51 = vadd.f32 %v2507_v46, %v3623_v50 }
 0x2d6   :  { %2319 = vst [vmem:[#allocation16 + $0x38] sm:$0xff] %v2479_v48  ;;  %v1798_v11 = vpop.f32.mrb[55].mxu0  ;;  %v2136_v49 = vmul.f32 %v2094_v53, %v1968_v5  ;;  %v2727_v15 = vpop.eup %2726  ;;  %v2158_v25 = vmul.f32 %v2116_v35, %v1990_v55  ;;  %v2117_v56 = vadd.f32 1.0, %v2725_v44  ;;  %v2009_v62 = vmul.f32 0.70710677, %v1925_v54 }
 0x2d7   :  { %v2137_v37 = vmul.f32 %v2095_v61, %v1969_v9  ;;  %v2108_v2 = vadd.f32 1.0, %v2727_v15  ;;  %v1983_v23 = vmul.f32 0.5, %v1941_v60  ;;  %2734 = verf.f32 %v2008_v10 }
 0x2d8   :  { %v2022_v34 = vmul.f32 0.70710677, %v1938_v51  ;;  %v3724_v1 = vpop.f32.mrb[36].mxu1  ;;  %v2159_v43 = vmul.f32 %v2117_v56, %v1991_v32  ;;  %2736 = verf.f32 %v2009_v62  ;;  %v1939_v31 = vadd.f32 %v2508_v63, %v3623_v50 }
 0x2d9   :  { %v2475_v38 = vpack.c.bf16 %v2137_v37, %v2136_v49  ;;  %v3727_v0 = vpop.f32.mrb[37].mxu1  ;;  %v1996_v57 = vmul.f32 0.5, %v1954_v47  ;;  %v2517_v39 = vadd.f32 %v1792_v40, %v3609_v4  ;;  %v2518_v55 = vadd.f32 %v1794_v13, %v3609_v4 }
 0x2da   :  { %2738 = verf.f32 %v2022_v34  ;;  %v3731_v5 = vpop.f32.mrb[68].mxu0  ;;  %v3733_v60 = vpop.f32.mrb[38].mxu1  ;;  %v2486_v20 = vpack.c.bf16 %v2159_v43, %v2158_v25  ;;  %v1997_v29 = vmul.f32 0.5, %v3706_v3  ;;  %v2023_v9 = vmul.f32 0.70710677, %v1939_v31 }
 0x2db   :  { %2315 = vst [vmem:[#allocation16 + $0x18] sm:$0xff] %v2475_v38  ;;  %v1892_v33 = vadd.f32 %v3708_v27, %v3633_v12  ;;  %v1804_v58 = vpop.f32.mrb[69].mxu0  ;;  %v3738_v24 = vpop.f32.mrb[39].mxu1  ;;  %v1930_v40 = vadd.f32 %v2517_v39, %v3618_v18  ;;  %v3742_v41 = vadd.f32 %v2518_v55, %v3618_v18  ;;  %v2519_v48 = vadd.f32 %v1796_v45, %v3611_v30 }
 0x2dc   :  { %v2729_v47 = vpop.eup %2728  ;;  %v1893_v35 = vadd.f32 %v3711_v14, %v3636_v22  ;;  %v1806_v42 = vpop.f32.mrb[70].mxu0  ;;  %v2150_v13 = vmul.f32 %v2108_v2, %v1982_v17  ;;  %2326 = vst [vmem:[#allocation16 + $0x70] sm:$0x33] %v2486_v20  ;;  %2740 = verf.f32 %v2023_v9  ;;  %v1966_v46 = vmul.f32 0.5, %v1924_v36 }
 0x2dd   :  { %v2731_v3 = vpop.eup %2730  ;;  %v2109_v8 = vadd.f32 1.0, %v2729_v47  ;;  %v1952_v12 = vadd.f32 %v3649_v26, %v1892_v33  ;;  %v1807_v27 = vpop.f32.mrb[71].mxu0  ;;  %v2014_v61 = vmul.f32 0.70710677, %v1930_v40  ;;  %v2520_v32 = vadd.f32 %v1798_v11, %v3611_v30 }
 0x2de   :  { %v2733_v28 = vpop.eup %2732  ;;  %v2122_v53 = vadd.f32 1.0, %v2731_v3  ;;  %v1967_v44 = vmul.f32 0.5, %v1925_v54  ;;  %v2015_v22 = vmul.f32 0.70710677, %v3742_v41  ;;  %v1944_v17 = vadd.f32 %v2519_v48, %v3623_v50 }
 0x2df   :  { %v2151_v63 = vmul.f32 %v2109_v8, %v1983_v23  ;;  %v2123_v45 = vadd.f32 1.0, %v2733_v28  ;;  %2742 = verf.f32 %v2014_v61  ;;  %v2036_v49 = vmul.f32 0.70710677, %v1952_v12 }
 0x2e0   :  { %v2164_v14 = vmul.f32 %v2122_v53, %v1996_v57  ;;  %v3751_v10 = vpop.f32.mrb[60].mxu1  ;;  %2744 = verf.f32 %v2015_v22  ;;  %v1953_v36 = vadd.f32 %v3649_v26, %v1893_v35  ;;  %v1980_v56 = vmul.f32 0.5, %v1938_v51 }
 0x2e1   :  { %v2482_v15 = vpack.c.bf16 %v2151_v63, %v2150_v13  ;;  %v2165_v37 = vmul.f32 %v2123_v45, %v1997_v29  ;;  %v3754_v25 = vpop.f32.mrb[61].mxu1  ;;  %v2735_v11 = vpop.eup %2734  ;;  %2746 = verf.f32 %v2036_v49  ;;  %v2028_v54 = vmul.f32 0.70710677, %v1944_v17 }
 0x2e2   :  { %v1945_v62 = vadd.f32 %v2520_v32, %v3623_v50  ;;  %v1755_v2 = vpop.f32.mrb[62].mxu1  ;;  %v2737_v23 = vpop.eup %2736  ;;  %v2092_v38 = vadd.f32 1.0, %v2735_v11  ;;  %v1981_v43 = vmul.f32 0.5, %v1939_v31  ;;  %v2037_v57 = vmul.f32 0.70710677, %v1953_v36 }
 0x2e3   :  { %2322 = vst [vmem:[#allocation16 + $0x50] sm:$0xff] %v2482_v15  ;;  %v2489_v34 = vpack.c.bf16 %v2165_v37, %v2164_v14  ;;  %v1756_v39 = vpop.f32.mrb[63].mxu1  ;;  %v2093_v20 = vadd.f32 1.0, %v2737_v23  ;;  %v1972_v29 = vmul.f32 0.5, %v1930_v40  ;;  %2748 = verf.f32 %v2028_v54 }
 0x2e4   :  { %v2739_v55 = vpop.eup %2738  ;;  %v2029_v9 = vmul.f32 0.70710677, %v1945_v62  ;;  %v2134_v33 = vmul.f32 %v2092_v38, %v1966_v46  ;;  %2750 = verf.f32 %v2037_v57  ;;  %v1898_v47 = vadd.f32 %v3731_v5, %v3668_v59 }
 0x2e5   :  { %2329 = vst [vmem:[#allocation16 + $0x88] sm:$0x33] %v2489_v34  ;;  %v2106_v51 = vadd.f32 1.0, %v2739_v55  ;;  %v2135_v48 = vmul.f32 %v2093_v20, %v1967_v44  ;;  %v1899_v35 = vadd.f32 %v1804_v58, %v3672_v21  ;;  %v2513_v31 = vadd.f32 %v3724_v1, %v3609_v4 }
 0x2e6   :  { %2752 = verf.f32 %v2029_v9  ;;  %v2741_v42 = vpop.eup %2740  ;;  %v3763_v40 = vadd.f32 %v3649_v26, %v1898_v47  ;;  %v2514_v13 = vadd.f32 %v3727_v0, %v3609_v4  ;;  %v2515_v8 = vadd.f32 %v3733_v60, %v3611_v30 }
 0x2e7   :  { %v2148_v3 = vmul.f32 %v2106_v51, %v1980_v56  ;;  %v2474_v27 = vpack.c.bf16 %v2135_v48, %v2134_v33  ;;  %v2107_v59 = vadd.f32 1.0, %v2741_v42  ;;  %v1959_v5 = vadd.f32 %v3649_v26, %v1899_v35 }
 0x2e8   :  { %v3771_v21 = vadd.f32 %v2513_v31, %v3618_v18  ;;  %v1843_v58 = vpop.f32.mrb[44].mxu1  ;;  %v1973_v1 = vmul.f32 0.5, %v3742_v41  ;;  %v1994_v28 = vmul.f32 0.5, %v1952_v12  ;;  %v2042_v53 = vmul.f32 0.70710677, %v3763_v40 }
 0x2e9   :  { %v3776_v46 = vadd.f32 %v2514_v13, %v3618_v18  ;;  %v3778_v0 = vpop.f32.mrb[45].mxu1  ;;  %v2743_v61 = vpop.eup %2742  ;;  %2314 = vst [vmem:[#allocation16 + $0x10] sm:$0xff] %v2474_v27  ;;  %v2149_v60 = vmul.f32 %v2107_v59, %v1981_v43  ;;  %v1986_v32 = vmul.f32 0.5, %v1944_v17  ;;  %v2043_v63 = vmul.f32 0.70710677, %v1959_v5 }
 0x2ea   :  { %v3781_v45 = vadd.f32 %v2515_v8, %v3623_v50  ;;  %v1847_v44 = vpop.f32.mrb[46].mxu1  ;;  %v2745_v22 = vpop.eup %2744  ;;  %v2098_v14 = vadd.f32 1.0, %v2743_v61  ;;  %v1995_v41 = vmul.f32 0.5, %v1953_v36  ;;  %2754 = verf.f32 %v2042_v53 }
 0x2eb   :  { %v2012_v12 = vmul.f32 0.70710677, %v3771_v21  ;;  %v3784_v49 = vpop.f32.mrb[47].mxu1  ;;  %v2747_v15 = vpop.eup %2746  ;;  %v2481_v37 = vpack.c.bf16 %v2149_v60, %v2148_v3  ;;  %v2099_v11 = vadd.f32 1.0, %v2745_v22  ;;  %2756 = verf.f32 %v2043_v63 }
 0x2ec   :  { %v2013_v56 = vmul.f32 0.70710677, %v3776_v46  ;;  %v2140_v17 = vmul.f32 %v2098_v14, %v1972_v29  ;;  %v2120_v54 = vadd.f32 1.0, %v2747_v15  ;;  %v1987_v2 = vmul.f32 0.5, %v1945_v62 }
 0x2ed   :  { %2758 = verf.f32 %v2012_v12  ;;  %v2749_v23 = vpop.eup %2748  ;;  %2321 = vst [vmem:[#allocation16 + $0x48] sm:$0xff] %v2481_v37  ;;  %v2141_v34 = vmul.f32 %v2099_v11, %v1973_v1  ;;  %v2026_v36 = vmul.f32 0.70710677, %v3781_v45  ;;  %v2516_v38 = vadd.f32 %v3738_v24, %v3611_v30 }
 0x2ee   :  { %2760 = verf.f32 %v2013_v56  ;;  %v2751_v43 = vpop.eup %2750  ;;  %v2162_v57 = vmul.f32 %v2120_v54, %v1994_v28  ;;  %v2112_v39 = vadd.f32 1.0, %v2749_v23  ;;  %v1896_v55 = vadd.f32 %v3751_v10, %v3654_v19 }
 0x2ef   :  { %v1897_v20 = vadd.f32 %v3754_v25, %v3660_v6  ;;  %v2477_v29 = vpack.c.bf16 %v2141_v34, %v2140_v17  ;;  %v2121_v9 = vadd.f32 1.0, %v2751_v43  ;;  %2762 = verf.f32 %v2026_v36 }
 0x2f0   :  { %v2753_v62 = vpop.eup %2752  ;;  %v3795_v33 = vadd.f32 %v2516_v38, %v3623_v50  ;;  %v1853_v51 = vpop.f32.mrb[64].mxu1  ;;  %v2154_v47 = vmul.f32 %v2112_v39, %v1986_v32  ;;  %v3798_v24 = vadd.f32 %v3649_v26, %v1896_v55  ;;  %v1333_v6 = vadd.f32 %v3613_v52, %v3603_v16 }
 0x2f1   :  { %v2113_v48 = vadd.f32 1.0, %v2753_v62  ;;  %v3801_v35 = vadd.f32 %v3649_v26, %v1897_v20  ;;  %v1855_v19 = vpop.f32.mrb[65].mxu1  ;;  %2317 = vst [vmem:[#allocation16 + $0x28] sm:$0xff] %v2477_v29  ;;  %v2163_v10 = vmul.f32 %v2121_v9, %v1995_v41  ;;  %v2521_v31 = vadd.f32 %v1843_v58, %v3609_v4 }
 0x2f2   :  { %v2027_v25 = vmul.f32 0.70710677, %v3795_v33  ;;  %v1857_v42 = vpop.f32.mrb[66].mxu1  ;;  %v2000_v13 = vmul.f32 0.5, %v3763_v40  ;;  %v2001_v8 = vmul.f32 0.5, %v1959_v5  ;;  %v2522_v58 = vadd.f32 %v3778_v0, %v3609_v4 }
 0x2f3   :  { %v2155_v3 = vmul.f32 %v2113_v48, %v1987_v2  ;;  %v2040_v27 = vmul.f32 0.70710677, %v3798_v24  ;;  %v1858_v59 = vpop.f32.mrb[67].mxu1  ;;  %v2488_v1 = vpack.c.bf16 %v2163_v10, %v2162_v57  ;;  %v2041_v28 = vmul.f32 0.70710677, %v3801_v35 }
 0x2f4   :  { %2764 = verf.f32 %v2027_v25  ;;  %v3811_v52 = vadd.f32 %v2521_v31, %v3618_v18  ;;  %v2755_v53 = vpop.eup %2754  ;;  %v2523_v60 = vadd.f32 %v1847_v44, %v3611_v30  ;;  %v1970_v32 = vmul.f32 0.5, %v3771_v21 }
 0x2f5   :  { %v2484_v61 = vpack.c.bf16 %v2155_v3, %v2154_v47  ;;  %2766 = verf.f32 %v2040_v27  ;;  %v2757_v40 = vpop.eup %2756  ;;  %2328 = vst [vmem:[#allocation16 + $0x80] sm:$0x33] %v2488_v1  ;;  %v2126_v5 = vadd.f32 1.0, %v2755_v53  ;;  %v1933_v41 = vadd.f32 %v2522_v58, %v3618_v18 }
 0x2f6   :  { %2768 = verf.f32 %v2041_v28  ;;  %v2016_v63 = vmul.f32 0.70710677, %v3811_v52  ;;  %v2127_v14 = vadd.f32 1.0, %v2757_v40  ;;  %v1946_v12 = vadd.f32 %v2523_v60, %v3623_v50 }
 0x2f7   :  { %v2759_v22 = vpop.eup %2758  ;;  %2324 = vst [vmem:[#allocation16 + $0x60] sm:$0xff] %v2484_v61  ;;  %v2524_v4 = vadd.f32 %v3784_v49, %v3611_v30  ;;  %v2168_v44 = vmul.f32 %v2126_v5, %v2000_v13  ;;  %v1900_v37 = vadd.f32 %v1853_v51, %v1333_v6  ;;  %v1971_v21 = vmul.f32 0.5, %v3776_v46 }
 0x2f8   :  { %v2761_v0 = vpop.eup %2760  ;;  %v2096_v15 = vadd.f32 1.0, %v2759_v22  ;;  %2770 = verf.f32 %v2016_v63  ;;  %v2169_v11 = vmul.f32 %v2127_v14, %v2001_v8  ;;  %v2017_v17 = vmul.f32 0.70710677, %v1933_v41 }
 0x2f9   :  { %v2097_v56 = vadd.f32 1.0, %v2761_v0  ;;  %v2763_v54 = vpop.eup %2762  ;;  %v1335_v2 = vadd.f32 %v3615_v7, %v3603_v16  ;;  %v2030_v23 = vmul.f32 0.70710677, %v1946_v12  ;;  %v1947_v34 = vadd.f32 %v2524_v4, %v3623_v50 }
 0x2fa   :  { %v2138_v18 = vmul.f32 %v2096_v15, %v1970_v32  ;;  %v2491_v36 = vpack.c.bf16 %v2169_v11, %v2168_v44  ;;  %v2110_v49 = vadd.f32 1.0, %v2763_v54  ;;  %2772 = verf.f32 %v2017_v17 }
 0x2fb   :  { %v2139_v30 = vmul.f32 %v2097_v56, %v1971_v21  ;;  %2774 = verf.f32 %v2030_v23  ;;  %v2031_v38 = vmul.f32 0.70710677, %v1947_v34  ;;  %v1960_v43 = vadd.f32 %v3649_v26, %v1900_v37 }
 0x2fc   :  { %2331 = vst [vmem:[#allocation16 + $0x98] sm:$0x33] %v2491_v36  ;;  %v1984_v57 = vmul.f32 0.5, %v3781_v45  ;;  %v1901_v39 = vadd.f32 %v1855_v19, %v1335_v2  ;;  %v1985_v50 = vmul.f32 0.5, %v3795_v33  ;;  %v1998_v51 = vmul.f32 0.5, %v3798_v24 }
 0x2fd   :  { %v2476_v46 = vpack.c.bf16 %v2139_v30, %v2138_v18  ;;  %2776 = verf.f32 %v2031_v38  ;;  %v2044_v16 = vmul.f32 0.70710677, %v1960_v43  ;;  %v1999_v45 = vmul.f32 0.5, %v3801_v35 }
 0x2fe   :  { %v2765_v55 = vpop.eup %2764  ;;  %v2152_v20 = vmul.f32 %v2110_v49, %v1984_v57  ;;  %v1961_v29 = vadd.f32 %v3649_v26, %v1901_v39  ;;  %v1974_v33 = vmul.f32 0.5, %v3811_v52  ;;  %v1975_v27 = vmul.f32 0.5, %v1933_v41 }
 0x2ff   :  { %v2767_v7 = vpop.eup %2766  ;;  %2316 = vst [vmem:[#allocation16 + $0x20] sm:$0xff] %v2476_v46  ;;  %v2111_v62 = vadd.f32 1.0, %v2765_v55  ;;  %2778 = verf.f32 %v2044_v16  ;;  %v1988_v1 = vmul.f32 0.5, %v1946_v12  ;;  %v1989_v58 = vmul.f32 0.5, %v1947_v34 }
 0x300   :  { %v2769_v9 = vpop.eup %2768  ;;  %v2124_v47 = vadd.f32 1.0, %v2767_v7  ;;  %v2045_v6 = vmul.f32 0.70710677, %v1961_v29  ;;  %v2002_v52 = vmul.f32 0.5, %v1960_v43  ;;  %v2003_v0 = vmul.f32 0.5, %v1961_v29 }
 0x301   :  { %v2153_v48 = vmul.f32 %v2111_v62, %v1985_v50  ;;  %v2125_v19 = vadd.f32 1.0, %v2769_v9 }
 0x302   :  { %v2771_v10 = vpop.eup %2770  ;;  %v2166_v25 = vmul.f32 %v2124_v47, %v1998_v51  ;;  %2780 = verf.f32 %v2045_v6 }
 0x303   :  { %v2483_v31 = vpack.c.bf16 %v2153_v48, %v2152_v20  ;;  %v2167_v42 = vmul.f32 %v2125_v19, %v1999_v45  ;;  %v2100_v3 = vadd.f32 1.0, %v2771_v10 }
 0x304   :  { %v2773_v13 = vpop.eup %2772 }
 0x305   :  { %2323 = vst [vmem:[#allocation16 + $0x58] sm:$0xff] %v2483_v31  ;;  %v2490_v26 = vpack.c.bf16 %v2167_v42, %v2166_v25  ;;  %v2775_v8 = vpop.eup %2774  ;;  %v2142_v24 = vmul.f32 %v2100_v3, %v1974_v33  ;;  %v2101_v59 = vadd.f32 1.0, %v2773_v13 }
 0x306   :  { %v2114_v35 = vadd.f32 1.0, %v2775_v8 }
 0x307   :  { %2330 = vst [vmem:[#allocation16 + $0x90] sm:$0x33] %v2490_v26  ;;  %v2777_v28 = vpop.eup %2776  ;;  %v2143_v53 = vmul.f32 %v2101_v59, %v1975_v27 }
 0x308   :  { %v2156_v61 = vmul.f32 %v2114_v35, %v1988_v1  ;;  %v2115_v60 = vadd.f32 1.0, %v2777_v28 }
 0x309   :  { %v2779_v40 = vpop.eup %2778  ;;  %v2478_v5 = vpack.c.bf16 %v2143_v53, %v2142_v24 }
 0x30a   :  { %v2157_v32 = vmul.f32 %v2115_v60, %v1989_v58  ;;  %v2128_v63 = vadd.f32 1.0, %v2779_v40 }
 0x30b   :  { %2318 = vst [vmem:[#allocation16 + $0x30] sm:$0xff] %v2478_v5 }
 0x30c   :  { %v2781_v22 = vpop.eup %2780  ;;  %v2485_v14 = vpack.c.bf16 %v2157_v32, %v2156_v61  ;;  %v2170_v4 = vmul.f32 %v2128_v63, %v2002_v52 }
 0x30d   :  { %v2129_v41 = vadd.f32 1.0, %v2781_v22 }
 0x30e   :  { %2325 = vst [vmem:[#allocation16 + $0x68] sm:$0xff] %v2485_v14 }
 0x30f   :  { %v2171_v12 = vmul.f32 %v2129_v41, %v2003_v0 }
 0x311   :  { %v2492_v44 = vpack.c.bf16 %v2171_v12, %v2170_v4 }
 0x313   :  { %2332 = vst [vmem:[#allocation16 + $0xa0] sm:$0x33] %v2492_v44 }
 0x314   :  { %2969 = shalt.err (!%p2966_p12)
}
 0x315   :  { %s2970_s23 = scalar_lea.hbm %s3856_s8, 2688 }
 0x316   :  { %p2971_p13 = scmp.ne.s32.totalorder %s3856_s8, %s2970_s23  ;;  %p2974_p0 = scmp.lt.u32.totalorder %s2970_s23, %s3856_s8 }
 0x318   :  { %p2976_p1 = pnand %p2974_p0, %p2971_p13 }
 0x31a   :  { %2979 = shalt.err (!%p2976_p1)
}
 0x31b   :  { %2344 = dma.vmem_to_hbm [thread:$0]  %s2339_s1, 2688, %s3856_s8, [#allocation4], %s2993_s15, %s2993_s15, %s2994_s16  }
 0x31c   :  { %2990 = dma.done.wait [#allocation4], 2688  }
 0x31d   :  { %2991 = vsyncadd [#allocation4], 4294964608 }
 0x31e   :  { %2348 = vsyncpa [#allocation3], 1 }
 0x31f   :  { %2349 = vsyncpa [#allocation6], 1 }
 0x320   :  { %2350 = vsyncpa [#allocation9], 1 }
 0x321   :  { %2351 = vsyncpa [#allocation12], 1 }
 0x322   :  { %2352 = vsyncpa [#allocation15], 1 }
 0x323   :  { %2353 = vsyncpa [#allocation4], 1 }

// kernel: _lambda_.18
= control target key start
LH: loop header
LB: loop body
LE: loop exit
PB: predicated region body
PF: predicated region fallthrough
CT: control target
= control target key end

     0   :  { %13 = vsyncpa [#allocation3], 0  ;;  %s3454_s0 = inlined_call_operand.hbm [shape: f32[20,1792], index: 0, kind: input, shape index: {}]   ;;  %s3455_s1 = inlined_call_operand.hbm [shape: bf16[20,1792], index: 1, kind: input, shape index: {}]   ;;  %s3456_s2 = inlined_call_operand.hbm [shape: bf16[20,20], index: 2, kind: input, shape index: {}]   ;;  %s3457_s3 = inlined_call_operand.hbm [shape: f32[20,1], index: 3, kind: input, shape index: {}]   ;;  %s3458_s4 = inlined_call_operand.hbm [shape: bf16[20,20], index: 4, kind: input, shape index: {}]   ;;  %s3459_s5 = inlined_call_operand.hbm [shape: f32[20,1], index: 5, kind: input, shape index: {}]   ;;  %s3460_s6 = inlined_call_operand.hbm [shape: bf16[20,20], index: 6, kind: input, shape index: {}]   ;;  %s3461_s7 = inlined_call_operand.hbm [shape: f32[20,1], index: 7, kind: input, shape index: {}]   ;;  %s3462_s8 = inlined_call_operand.hbm [shape: bf16[20,1792], index: 8, kind: output, shape index: {}]  }
   0x1   :  { %14 = vsyncpa [#allocation6], 0 }
   0x2   :  { %15 = vsyncpa [#allocation9], 0 }
   0x3   :  { %16 = vsyncpa [#allocation12], 0 }
   0x4   :  { %17 = vsyncpa [#allocation15], 0 }
   0x5   :  { %18 = vsyncpa [#allocation4], 0  ;;  %s2698_s27 = smov [#allocation5]   ;;  %s2488_s9 = scalar_lea.hbm %s3455_s1, 2688 }
   0x6   :  { %s36_s28 = sshll.u32 %s2698_s27, 4  ;;  %p2489_p0 = scmp.ne.s32.totalorder %s3455_s1, %s2488_s9  ;;  %s37_s28 = int_to_ptr.vmem [resolvable:$true] %s36_s28 }
   0x7   :  { %p2492_p1 = scmp.lt.u32.totalorder %s2488_s9, %s3455_s1 }
   0x9   :  { %p2494_p2 = pnand %p2492_p1, %p2489_p0 }
   0xb   :  { %2497 = shalt.err (!%p2494_p2)
}
   0xc   :  { %s2498_s14 = scalar_lea.vmem %s37_s28, 2688  ;;  %p2503_p4 = scmp.lt.s32.totalorder %s37_s28, %s37_s28 }
   0xd   :  { %p2499_p3 = scmp.ne.s32.totalorder %s37_s28, %s2498_s14  ;;  %p2504_p5 = scmp.lt.s32.totalorder %s2498_s14, %s2498_s14 }
   0xf   :  { %p2505_p6 = por %p2504_p5, %p2503_p4 }
  0x11   :  { %p2506_p7 = pnand %p2505_p6, %p2499_p3 }
  0x13   :  { %2509 = shalt.err (!%p2506_p7)
}
  0x14   :  { %s2699_s15 = smov 896   ;;  %s2700_s16 = smov 56  }
  0x15   :  { %42 = dma.hbm_to_vmem [thread:$0]  %s3455_s1, 2688, %s37_s28, [#allocation6], %s2699_s15, %s2699_s15, %s2700_s16  }
  0x16   :  { %s2701_s19 = smov [#allocation8]   ;;  %s2510_s23 = scalar_lea.hbm %s3457_s3, 384 }
  0x17   :  { %s60_s20 = sshll.u32 %s2701_s19, 4  ;;  %p2511_p8 = scmp.ne.s32.totalorder %s3457_s3, %s2510_s23  ;;  %s61_s20 = int_to_ptr.vmem [resolvable:$true] %s60_s20 }
  0x18   :  { %p2514_p9 = scmp.lt.u32.totalorder %s2510_s23, %s3457_s3 }
  0x1a   :  { %p2516_p10 = pnand %p2514_p9, %p2511_p8 }
  0x1c   :  { %2519 = shalt.err (!%p2516_p10)
}
  0x1d   :  { %s2520_s29 = scalar_lea.vmem %s61_s20, 384  ;;  %p2525_p12 = scmp.lt.s32.totalorder %s61_s20, %s61_s20 }
  0x1e   :  { %p2521_p11 = scmp.ne.s32.totalorder %s61_s20, %s2520_s29  ;;  %p2526_p13 = scmp.lt.s32.totalorder %s2520_s29, %s2520_s29 }
  0x20   :  { %p2527_p0 = por %p2526_p13, %p2525_p12 }
  0x22   :  { %p2528_p1 = pnand %p2527_p0, %p2521_p11 }
  0x24   :  { %2531 = shalt.err (!%p2528_p1)
}
  0x25   :  { %s2702_s1 = smov 128   ;;  %s2703_s28 = smov 8  }
  0x26   :  { %66 = dma.hbm_to_vmem [thread:$0]  %s3457_s3, 384, %s61_s20, [#allocation9], %s2702_s1, %s2702_s1, %s2703_s28  }
  0x27   :  { %s2704_s10 = smov [#allocation11]   ;;  %s2705_s12 = smov [#allocation2]  }
  0x28   :  { %s84_s11 = sshll.u32 %s2704_s10, 4  ;;  %s24_s13 = sshll.u32 %s2705_s12, 4  ;;  %s85_s11 = int_to_ptr.vmem [resolvable:$true] %s84_s11  ;;  %s2791_s13 = int_to_ptr.vmem [resolvable:$true] %s24_s13 }
  0x29   :  { %s2532_s18 = scalar_lea.hbm %s3459_s5, 384 }
  0x2a   :  { %p2533_p2 = scmp.ne.s32.totalorder %s3459_s5, %s2532_s18  ;;  %p2536_p3 = scmp.lt.u32.totalorder %s2532_s18, %s3459_s5 }
  0x2c   :  { %p2538_p4 = pnand %p2536_p3, %p2533_p2 }
  0x2e   :  { %2541 = shalt.err (!%p2538_p4)
}
  0x2f   :  { %s2542_s3 = scalar_lea.vmem %s85_s11, 384  ;;  %p2547_p6 = scmp.lt.s32.totalorder %s85_s11, %s85_s11 }
  0x30   :  { %p2543_p5 = scmp.ne.s32.totalorder %s85_s11, %s2542_s3  ;;  %p2548_p7 = scmp.lt.s32.totalorder %s2542_s3, %s2542_s3 }
  0x32   :  { %p2549_p8 = por %p2548_p7, %p2547_p6 }
  0x34   :  { %p2550_p9 = pnand %p2549_p8, %p2543_p5 }
  0x36   :  { %2553 = shalt.err (!%p2550_p9)
}
  0x37   :  { %90 = dma.hbm_to_vmem [thread:$0]  %s3459_s5, 384, %s85_s11, [#allocation12], %s2702_s1, %s2702_s1, %s2703_s28  }
  0x38   :  { %s2554_s27 = scalar_lea.hbm %s3454_s0, 5376 }
  0x39   :  { %p2555_p10 = scmp.ne.s32.totalorder %s3454_s0, %s2554_s27  ;;  %p2558_p11 = scmp.lt.u32.totalorder %s2554_s27, %s3454_s0 }
  0x3b   :  { %p2560_p12 = pnand %p2558_p11, %p2555_p10 }
  0x3d   :  { %2563 = shalt.err (!%p2560_p12)
}
  0x3e   :  { %s2564_s12 = scalar_lea.vmem %s2791_s13, 5376  ;;  %p2569_p0 = scmp.lt.s32.totalorder %s2791_s13, %s2791_s13 }
  0x3f   :  { %p2565_p13 = scmp.ne.s32.totalorder %s2791_s13, %s2564_s12  ;;  %p2570_p1 = scmp.lt.s32.totalorder %s2564_s12, %s2564_s12 }
  0x41   :  { %p2571_p2 = por %p2570_p1, %p2569_p0 }
  0x43   :  { %p2572_p3 = pnand %p2571_p2, %p2565_p13 }
  0x45   :  { %2575 = shalt.err (!%p2572_p3)
}
  0x46   :  { %s2706_s5 = smov 1792   ;;  %s2707_s11 = smov 112  }
  0x47   :  { %30 = dma.hbm_to_vmem [thread:$0]  %s3454_s0, 5376, %s2791_s13, [#allocation3], %s2706_s5, %s2706_s5, %s2707_s11  }
  0x48   :  { %s2708_s18 = smov [#allocation7]   ;;  %s2576_s23 = scalar_lea.hbm %s3456_s2, 192 }
  0x49   :  { %s48_s19 = sshll.u32 %s2708_s18, 4  ;;  %p2577_p4 = scmp.ne.s32.totalorder %s3456_s2, %s2576_s23  ;;  %s49_s19 = int_to_ptr.vmem [resolvable:$true] %s48_s19 }
  0x4a   :  { %p2580_p5 = scmp.lt.u32.totalorder %s2576_s23, %s3456_s2 }
  0x4c   :  { %p2582_p6 = pnand %p2580_p5, %p2577_p4 }
  0x4e   :  { %2585 = shalt.err (!%p2582_p6)
}
  0x4f   :  { %s2586_s26 = scalar_lea.vmem %s49_s19, 192  ;;  %p2591_p8 = scmp.lt.s32.totalorder %s49_s19, %s49_s19 }
  0x50   :  { %p2587_p7 = scmp.ne.s32.totalorder %s49_s19, %s2586_s26  ;;  %p2592_p9 = scmp.lt.s32.totalorder %s2586_s26, %s2586_s26 }
  0x52   :  { %p2593_p10 = por %p2592_p9, %p2591_p8 }
  0x54   :  { %p2594_p11 = pnand %p2593_p10, %p2587_p7 }
  0x56   :  { %2597 = shalt.err (!%p2594_p11)
}
  0x57   :  { %s2709_s0 = smov 64   ;;  %s2710_s13 = smov 4  }
  0x58   :  { %54 = dma.hbm_to_vmem [thread:$0]  %s3456_s2, 192, %s49_s19, [#allocation6], %s2709_s0, %s2709_s0, %s2710_s13  }
  0x59   :  { %s2711_s30 = smov [#allocation10]   ;;  %s2712_s10 = smov [#allocation13]  }
  0x5a   :  { %s72_s9 = sshll.u32 %s2711_s30, 4  ;;  %s96_s12 = sshll.u32 %s2712_s10, 4  ;;  %s73_s9 = int_to_ptr.vmem [resolvable:$true] %s72_s9  ;;  %s97_s12 = int_to_ptr.vmem [resolvable:$true] %s96_s12 }
  0x5b   :  { %s2598_s14 = scalar_lea.hbm %s3458_s4, 192 }
  0x5c   :  { %p2599_p12 = scmp.ne.s32.totalorder %s3458_s4, %s2598_s14  ;;  %p2602_p13 = scmp.lt.u32.totalorder %s2598_s14, %s3458_s4 }
  0x5e   :  { %p2604_p0 = pnand %p2602_p13, %p2599_p12 }
  0x60   :  { %2607 = shalt.err (!%p2604_p0)
}
  0x61   :  { %s2608_s2 = scalar_lea.vmem %s73_s9, 192  ;;  %p2613_p2 = scmp.lt.s32.totalorder %s73_s9, %s73_s9 }
  0x62   :  { %p2609_p1 = scmp.ne.s32.totalorder %s73_s9, %s2608_s2  ;;  %p2614_p3 = scmp.lt.s32.totalorder %s2608_s2, %s2608_s2 }
  0x64   :  { %p2615_p4 = por %p2614_p3, %p2613_p2 }
  0x66   :  { %p2616_p5 = pnand %p2615_p4, %p2609_p1 }
  0x68   :  { %2619 = shalt.err (!%p2616_p5)
}
  0x69   :  { %78 = dma.hbm_to_vmem [thread:$0]  %s3458_s4, 192, %s73_s9, [#allocation9], %s2709_s0, %s2709_s0, %s2710_s13  }
  0x6a   :  { %s2620_s24 = scalar_lea.hbm %s3460_s6, 192 }
  0x6b   :  { %p2621_p6 = scmp.ne.s32.totalorder %s3460_s6, %s2620_s24  ;;  %p2624_p7 = scmp.lt.u32.totalorder %s2620_s24, %s3460_s6 }
  0x6d   :  { %p2626_p8 = pnand %p2624_p7, %p2621_p6 }
  0x6f   :  { %2629 = shalt.err (!%p2626_p8)
}
  0x70   :  { %s2630_s30 = scalar_lea.vmem %s97_s12, 192  ;;  %p2635_p10 = scmp.lt.s32.totalorder %s97_s12, %s97_s12 }
  0x71   :  { %p2631_p9 = scmp.ne.s32.totalorder %s97_s12, %s2630_s30  ;;  %p2636_p11 = scmp.lt.s32.totalorder %s2630_s30, %s2630_s30 }
  0x73   :  { %p2637_p12 = por %p2636_p11, %p2635_p10 }
  0x75   :  { %p2638_p13 = pnand %p2637_p12, %p2631_p9 }
  0x77   :  { %2641 = shalt.err (!%p2638_p13)
}
  0x78   :  { %102 = dma.hbm_to_vmem [thread:$0]  %s3460_s6, 192, %s97_s12, [#allocation12], %s2709_s0, %s2709_s0, %s2710_s13  }
  0x79   :  { %s2713_s10 = smov [#allocation14]   ;;  %s2642_s17 = scalar_lea.hbm %s3461_s7, 384 }
  0x7a   :  { %s108_s5 = sshll.u32 %s2713_s10, 4  ;;  %p2643_p0 = scmp.ne.s32.totalorder %s3461_s7, %s2642_s17  ;;  %s109_s5 = int_to_ptr.vmem [resolvable:$true] %s108_s5 }
  0x7b   :  { %p2646_p1 = scmp.lt.u32.totalorder %s2642_s17, %s3461_s7 }
  0x7d   :  { %p2648_p2 = pnand %p2646_p1, %p2643_p0 }
  0x7f   :  { %2651 = shalt.err (!%p2648_p2)
}
  0x80   :  { %s2652_s19 = scalar_lea.vmem %s109_s5, 384  ;;  %p2657_p4 = scmp.lt.s32.totalorder %s109_s5, %s109_s5 }
  0x81   :  { %p2653_p3 = scmp.ne.s32.totalorder %s109_s5, %s2652_s19  ;;  %p2658_p5 = scmp.lt.s32.totalorder %s2652_s19, %s2652_s19 }
  0x83   :  { %p2659_p6 = por %p2658_p5, %p2657_p4 }
  0x85   :  { %p2660_p7 = pnand %p2659_p6, %p2653_p3 }
  0x87   :  { %2663 = shalt.err (!%p2660_p7)
}
  0x88   :  { %114 = dma.hbm_to_vmem [thread:$0]  %s3461_s7, 384, %s109_s5, [#allocation15], %s2702_s1, %s2702_s1, %s2703_s28  }
  0x89   :  { %2686 = dma.done.wait [#allocation3], 5376  }
  0x8a   :  { %2687 = vsyncadd [#allocation3], 4294961920 }
  0x8b   :  { %2688 = dma.done.wait [#allocation6], 2880  }
  0x8c   :  { %2689 = vsyncadd [#allocation6], 4294964416 }
  0x8d   :  { %2690 = dma.done.wait [#allocation9], 576  }
  0x8e   :  { %2691 = vsyncadd [#allocation9], 4294966720 }
  0x8f   :  { %2692 = dma.done.wait [#allocation12], 576  }
  0x90   :  { %2693 = vsyncadd [#allocation12], 4294966720 }
  0x91   :  { %2694 = dma.done.wait [#allocation15], 384  }
  0x92   :  { %2695 = vsyncadd [#allocation15], 4294966912  ;;  %v2714_v0 = vmov 0   ;;  %v141_v1 = vld [vmem:[#allocation2 + $0x8] sm:$0xff]  ;;  %v155_v2 = vld [vmem:[#allocation2 + $0x78] sm:$0xff]  ;;  %vm267_vm0 = vcmask 1041408  }
  0x93   :  { %342 = vmatprep.mubr.bf16.mxu0 %v2714_v0  ;;  %403 = vmatprep.mubr.bf16.mxu1 %v2714_v0  ;;  %v143_v3 = vld [vmem:[#allocation2 + $0x18] sm:$0xff]  ;;  %v183_v4 = vpack.c.bf16 %v155_v2, %v141_v1  ;;  %v157_v5 = vld [vmem:[#allocation2 + $0x88] sm:$0xff]  ;;  %v140_v6 = vld [vmem:[#allocation2] sm:$0xff]  ;;  %vm260_vm1 = vcmask 162816   ;;  %s2715_s7 = smov [#allocation16]  }
  0x94   :  { %2361 = vset.pattern.permute.xlu0 %v2714_v0  ;;  %2362 = vset.pattern.permute.xlu1 %v2714_v0  ;;  %v154_v7 = vld [vmem:[#allocation2 + $0x70] sm:$0xff]  ;;  %v185_v8 = vpack.c.bf16 %v157_v5, %v143_v3  ;;  %v156_v11 = vld [vmem:[#allocation2 + $0x80] sm:$0xff]  ;;  %v169_v12 = vld [vmem:[#allocation2 + $0xe8] sm:$0xf]  ;;  %s2128_s1 = sshll.u32 %s2715_s7, 4  ;;  %s2129_s1 = int_to_ptr.vmem [resolvable:$true] %s2128_s1 }
  0x95   :  { %v182_v9 = vpack.c.bf16 %v154_v7, %v140_v6  ;;  %v142_v10 = vld [vmem:[#allocation2 + $0x10] sm:$0xff]  ;;  %310 = vmatprep.subr.bf16.mxu0 %v183_v4  ;;  %v197_v14 = vpack.c.bf16 %v169_v12, %v169_v12  ;;  %v171_v15 = vld [vmem:[#allocation2 + $0xf8] sm:$0xf]  ;;  %v168_v16 = vld [vmem:[#allocation2 + $0xe0] sm:$0xf]  ;;  %s2664_s28 = scalar_lea.vmem %s2129_s1, 2688  ;;  %p2669_p9 = scmp.lt.s32.totalorder %s2129_s1, %s2129_s1 }
  0x96   :  { %v184_v13 = vpack.c.bf16 %v156_v11, %v142_v10  ;;  %v170_v17 = vld [vmem:[#allocation2 + $0xf0] sm:$0xf]  ;;  %2283 = vmatprep.subr.bf16.mxu1 %v185_v8  ;;  %v199_v18 = vpack.c.bf16 %v171_v15, %v171_v15  ;;  %v196_v19 = vpack.c.bf16 %v168_v16, %v168_v16  ;;  %v147_v21 = vld [vmem:[#allocation2 + $0x38] sm:$0xff]  ;;  %v161_v24 = vld [vmem:[#allocation2 + $0xa8] sm:$0xff]  ;;  %p2665_p8 = scmp.ne.s32.totalorder %s2129_s1, %s2664_s28  ;;  %p2670_p10 = scmp.lt.s32.totalorder %s2664_s28, %s2664_s28 }
  0x97   :  { %311 = vmatpush1.bf16.msra.mxu0 %v182_v9  ;;  %v198_v20 = vpack.c.bf16 %v170_v17, %v170_v17  ;;  %v146_v25 = vld [vmem:[#allocation2 + $0x30] sm:$0xff]  ;;  %v160_v26 = vld [vmem:[#allocation2 + $0xa0] sm:$0xff]  ;;  %v2893_v27 = vld [vmem:[#allocation7] sm:$0xff]   ;;  %v189_v28 = vpack.c.bf16 %v161_v24, %v147_v21 }
  0x98   :  { %2285 = vmatpush1.bf16.msra.mxu1 %v184_v13  ;;  %2146 = vmatprep.subr.msk.bf16.mxu0 %vm267_vm0, %v197_v14  ;;  %v269_v22 = vsel %vm267_vm0, %v196_v19, 0  ;;  %v175_v29 = vld [vmem:[#allocation2 + $0x118] sm:$0xf]  ;;  %v174_v30 = vld [vmem:[#allocation2 + $0x110] sm:$0xf]  ;;  %v188_v32 = vpack.c.bf16 %v160_v26, %v146_v25  ;;  %v145_v35 = vld [vmem:[#allocation2 + $0x28] sm:$0xff]  ;;  %p2671_p11 = por %p2670_p10, %p2669_p9 }
  0x99   :  { %2284 = vmatprep.subr.msk.bf16.mxu1 %vm267_vm0, %v199_v18  ;;  %v275_v23 = vsel %vm267_vm0, %v198_v20, 0  ;;  %v2895_v31 = vld [vmem:[#allocation7 + $0x8] ss:$0 sps:$4 sm:$0x33]   ;;  %v203_v33 = vpack.c.bf16 %v175_v29, %v175_v29  ;;  %v202_v34 = vpack.c.bf16 %v174_v30, %v174_v30  ;;  %v159_v36 = vld [vmem:[#allocation2 + $0x98] sm:$0xff]  ;;  %v165_v38 = vld [vmem:[#allocation2 + $0xc8] sm:$0xff] }
  0x9a   :  { %v151_v37 = vld [vmem:[#allocation2 + $0x58] sm:$0xff]  ;;  %v187_v40 = vpack.c.bf16 %v159_v36, %v145_v35  ;;  %v150_v42 = vld [vmem:[#allocation2 + $0x50] sm:$0xff]  ;;  %v164_v43 = vld [vmem:[#allocation2 + $0xc0] sm:$0xff]  ;;  %p2672_p12 = pnand %p2671_p11, %p2665_p8 }
  0x9b   :  { %313 = vmatpush1.bf16.msra.mxu0 %v269_v22  ;;  %v287_v39 = vsel %vm267_vm0, %v202_v34, 0  ;;  %v193_v41 = vpack.c.bf16 %v165_v38, %v151_v37  ;;  %v179_v44 = vld [vmem:[#allocation2 + $0x138] sm:$0xf]  ;;  %v178_v45 = vld [vmem:[#allocation2 + $0x130] sm:$0xf]  ;;  %v234_v46 = vld [vmem:[#allocation8] sm:$0xff]  ;;  %v192_v47 = vpack.c.bf16 %v164_v43, %v150_v42 }
  0x9c   :  { %2286 = vmatpush1.bf16.msra.mxu1 %v275_v23  ;;  %361 = vmatprep.subr.bf16.mxu0 %v185_v8  ;;  %v236_v48 = vld [vmem:[#allocation8 + $0x10] sm:$0xf]  ;;  %v207_v49 = vpack.c.bf16 %v179_v44, %v179_v44  ;;  %v206_v50 = vpack.c.bf16 %v178_v45, %v178_v45  ;;  %v235_v51 = vld [vmem:[#allocation8 + $0x8] sm:$0xff]  ;;  %v910_v52 = vld [vmem:[#allocation11 + $0x10] sm:$0xf] }
  0x9d   :  { %463 = vmatprep.subr.bf16.mxu1 %v189_v28  ;;  %239 = vperm.xlu0 %2361, %v234_v46   ;;  %v144_v53 = vld [vmem:[#allocation2 + $0x20] sm:$0xff]  ;;  %v158_v54 = vld [vmem:[#allocation2 + $0x90] sm:$0xff]  ;;  %v173_v55 = vld [vmem:[#allocation2 + $0x108] sm:$0xf] }
  0x9e   :  { %2147 = vmatmul.mubr.msk.bf16.vlgmr.msra.gmra.mrb[0].mxu0 %vm260_vm1, %v2893_v27  ;;  %249 = vperm.xlu1 %2362, %v236_v48   ;;  %v172_v56 = vld [vmem:[#allocation2 + $0x100] sm:$0xf]  ;;  %v908_v57 = vld [vmem:[#allocation11] sm:$0xff]  ;;  %v299_v58 = vsel %vm267_vm0, %v206_v50, 0  ;;  %v909_v59 = vld [vmem:[#allocation11 + $0x8] sm:$0xff]  ;;  %v186_v60 = vpack.c.bf16 %v158_v54, %v144_v53  ;;  %v201_v61 = vpack.c.bf16 %v173_v55, %v173_v55 }
  0x9f   :  { %2151 = vmatmul.mubr.msk.bf16.vlgmr.msra.gmra.mrb[0].mxu1 %vm260_vm1, %v2895_v31  ;;  %352 = vmatprep.mubr.bf16.mxu0 %v2714_v0  ;;  %v200_v62 = vpack.c.bf16 %v172_v56, %v172_v56  ;;  %v149_v63 = vld [vmem:[#allocation2 + $0x48] sm:$0xff]  ;;  %v163_v1 = vld [vmem:[#allocation2 + $0xb8] sm:$0xff]  ;;  %v148_v6 = vld [vmem:[#allocation2 + $0x40] sm:$0xff] }
  0xa0   :  { %464 = vmatpush1.bf16.msra.mxu1 %v188_v32  ;;  %362 = vmatpush1.bf16.msra.mxu0 %v184_v13  ;;  %v1902_v2 = vld [vmem:[#allocation14] sm:$0xff]  ;;  %v1903_v3 = vld [vmem:[#allocation14 + $0x8] sm:$0xff]  ;;  %v191_v5 = vpack.c.bf16 %v163_v1, %v149_v63  ;;  %v177_v8 = vld [vmem:[#allocation2 + $0x128] sm:$0xf] }
  0xa1   :  { %2155 = vmatprep.subr.msk.bf16.mxu1 %vm267_vm0, %v203_v33  ;;  %495 = vmatprep.mubr.bf16.mxu1 %v2714_v0  ;;  %v281_v4 = vsel %vm267_vm0, %v200_v62, 0  ;;  %v162_v7 = vld [vmem:[#allocation2 + $0xb0] sm:$0xff]  ;;  %v176_v9 = vld [vmem:[#allocation2 + $0x120] sm:$0xf]  ;;  %v1904_v10 = vld [vmem:[#allocation14 + $0x10] sm:$0xf]  ;;  %v205_v12 = vpack.c.bf16 %v177_v8, %v177_v8 }
  0xa2   :  { %2149 = vmatprep.subr.msk.bf16.mxu0 %vm267_vm0, %v199_v18  ;;  %244 = vperm.xlu0 %2361, %v235_v51   ;;  %v190_v11 = vpack.c.bf16 %v162_v7, %v148_v6  ;;  %v204_v13 = vpack.c.bf16 %v176_v9, %v176_v9  ;;  %v153_v14 = vld [vmem:[#allocation2 + $0x68] sm:$0xff]  ;;  %v167_v15 = vld [vmem:[#allocation2 + $0xd8] sm:$0xff]  ;;  %v152_v18 = vld [vmem:[#allocation2 + $0x60] sm:$0xff] }
  0xa3   :  { %923 = vperm.xlu1 %2362, %v910_v52   ;;  %v195_v17 = vpack.c.bf16 %v167_v15, %v153_v14  ;;  %v166_v19 = vld [vmem:[#allocation2 + $0xd0] sm:$0xff]  ;;  %v181_v20 = vld [vmem:[#allocation2 + $0x148] sm:$0xf]  ;;  %v180_v21 = vld [vmem:[#allocation2 + $0x140] sm:$0xf] }
  0xa4   :  { %466 = vmatpush1.bf16.msra.mxu1 %v287_v39  ;;  %364 = vmatpush1.bf16.msra.mxu0 %v275_v23  ;;  %v293_v16 = vsel %vm267_vm0, %v204_v13, 0  ;;  %v194_v22 = vpack.c.bf16 %v166_v19, %v152_v18  ;;  %v209_v23 = vpack.c.bf16 %v181_v20, %v181_v20  ;;  %v208_v24 = vpack.c.bf16 %v180_v21, %v180_v21 }
  0xa5   :  { %412 = vmatprep.subr.bf16.mxu0 %v187_v40  ;;  %565 = vmatprep.subr.bf16.mxu1 %v193_v41 }
  0xa6   :  { %2148 = vmatmul.mubr.msk.bf16.gmra.mrb[4].mxu0 %vm260_vm1, %v2895_v31  ;;  %913 = vperm.xlu0 %2361, %v908_v57   ;;  %v305_v25 = vsel %vm267_vm0, %v208_v24, 0 }
  0xa7   :  { %2156 = vmatmul.mubr.msk.bf16.vlgmr.msra.gmra.mrb[4].mxu1 %vm260_vm1, %v2893_v27  ;;  %393 = vmatprep.mubr.bf16.mxu0 %v2714_v0 }
  0xa8   :  { %505 = vmatprep.mubr.bf16.mxu1 %v2714_v0  ;;  %566 = vmatpush1.bf16.msra.mxu1 %v192_v47 }
  0xa9   :  { %2161 = vmatprep.subr.msk.bf16.mxu1 %vm267_vm0, %v207_v49  ;;  %918 = vperm.xlu1 %2362, %v909_v59  }
  0xaa   :  { %1907 = vperm.xlu0 %2361, %v1902_v2  }
  0xac   :  { %568 = vmatpush1.bf16.msra.mxu1 %v299_v58 }
  0xad   :  { %1912 = vperm.xlu1 %2362, %v1903_v3  }
  0xae   :  { %2150 = vmatmul.mubr.msk.bf16.vlgmr.msra.gmra.mrb[8].mxu0 %vm260_vm1, %v2893_v27  ;;  %1917 = vperm.xlu0 %2361, %v1904_v10  }
  0xaf   :  { %2157 = vmatmul.mubr.msk.bf16.gmra.mrb[8].mxu1 %vm260_vm1, %v2895_v31  ;;  %413 = vmatpush1.bf16.msra.mxu0 %v186_v60 }
  0xb0   :  { %2152 = vmatprep.subr.msk.bf16.mxu0 %vm267_vm0, %v201_v61  ;;  %444 = vmatprep.mubr.bf16.mxu0 %v2714_v0 }
  0xb1   :  { %597 = vmatprep.mubr.bf16.mxu1 %v2714_v0 }
  0xb3   :  { %415 = vmatpush1.bf16.msra.mxu0 %v281_v4 }
  0xb4   :  { %514 = vmatprep.subr.bf16.mxu0 %v191_v5 }
  0xb6   :  { %2153 = vmatmul.mubr.msk.bf16.vlgmr.msra.gmra.mrb[12].mxu0 %vm260_vm1, %v2893_v27 }
  0xb7   :  { %2162 = vmatmul.mubr.msk.bf16.vlgmr.msra.gmra.mrb[12].mxu1 %vm260_vm1, %v2893_v27  ;;  %454 = vmatprep.mubr.bf16.mxu0 %v2714_v0 }
  0xb8   :  { %515 = vmatpush1.bf16.msra.mxu0 %v190_v11  ;;  %607 = vmatprep.mubr.bf16.mxu1 %v2714_v0 }
  0xb9   :  { %2158 = vmatprep.subr.msk.bf16.mxu0 %vm267_vm0, %v205_v12 }
  0xbc   :  { %517 = vmatpush1.bf16.msra.mxu0 %v293_v16 }
  0xbd   :  { %616 = vmatprep.subr.bf16.mxu0 %v195_v17 }
  0xbe   :  { %2154 = vmatmul.mubr.msk.bf16.gmra.mrb[16].mxu0 %vm260_vm1, %v2895_v31 }
  0xbf   :  { %2163 = vmatmul.mubr.msk.bf16.gmra.mrb[16].mxu1 %vm260_vm1, %v2895_v31  ;;  %546 = vmatprep.mubr.bf16.mxu0 %v2714_v0 }
  0xc0   :  { %1014 = vmatprep.mubr.bf16.mxu1 %v2714_v0 }
  0xc6   :  { %2159 = vmatmul.mubr.msk.bf16.vlgmr.msra.gmra.mrb[20].mxu0 %vm260_vm1, %v2893_v27 }
  0xc7   :  { %556 = vmatprep.mubr.bf16.mxu0 %v2714_v0  ;;  %617 = vmatpush1.bf16.msra.mxu0 %v194_v22 }
  0xc8   :  { %2164 = vmatprep.subr.msk.bf16.mxu0 %vm267_vm0, %v209_v23 }
  0xcb   :  { %619 = vmatpush1.bf16.msra.mxu0 %v305_v25 }
  0xce   :  { %2160 = vmatmul.mubr.msk.bf16.gmra.mrb[24].mxu0 %vm260_vm1, %v2895_v31 }
  0xcf   :  { %648 = vmatprep.mubr.bf16.mxu0 %v2714_v0 }
  0xd6   :  { %2165 = vmatmul.mubr.msk.bf16.vlgmr.msra.gmra.mrb[28].mxu0 %vm260_vm1, %v2893_v27 }
  0xd7   :  { %658 = vmatprep.mubr.bf16.mxu0 %v2714_v0 }
  0xde   :  { %2166 = vmatmul.mubr.msk.bf16.gmra.mrb[32].mxu0 %vm260_vm1, %v2895_v31 }
  0xdf   :  { %1065 = vmatprep.mubr.bf16.mxu0 %v2714_v0 }
 0x11c   :  { %v2950_v26 = vpop.permute.xlu0 %239 }
 0x11d   :  { %v2958_v44 = vpop.permute.xlu1 %249 }
 0x121   :  { %v2952_v28 = vpop.permute.xlu0 %244 }
 0x171   :  { %v344_v29 = vpop.f32.mrb[0].mxu0 }
 0x172   :  { %v345_v30 = vadd.f32 %v344_v29, %v2950_v26  ;;  %v346_v32 = vpop.f32.mrb[1].mxu0  ;;  %v405_v33 = vpop.f32.mrb[0].mxu1 }
 0x173   :  { %v347_v34 = vadd.f32 %v346_v32, %v2950_v26  ;;  %v348_v35 = vpop.f32.mrb[2].mxu0  ;;  %v407_v27 = vpop.f32.mrb[1].mxu1  ;;  %v406_v62 = vadd.f32 %v405_v33, %v2958_v44 }
 0x174   :  { %v709_v36 = vmul.f32 0.70710677, %v345_v30  ;;  %v349_v37 = vadd.f32 %v348_v35, %v2952_v28  ;;  %v350_v38 = vpop.f32.mrb[3].mxu0  ;;  %v409_v31 = vpop.f32.mrb[2].mxu1  ;;  %v408_v61 = vadd.f32 %v407_v27, %v2958_v44  ;;  %v667_v2 = vmul.f32 0.5, %v345_v30 }
 0x175   :  { %v710_v39 = vmul.f32 0.70710677, %v347_v34  ;;  %v351_v40 = vadd.f32 %v350_v38, %v2952_v28  ;;  %v410_v41 = vpop.f32.mrb[3].mxu1  ;;  %v668_v7 = vmul.f32 0.5, %v347_v34  ;;  %v739_v15 = vmul.f32 0.70710677, %v406_v62 }
 0x176   :  { %2404 = verf.f32 %v709_v36  ;;  %v723_v42 = vmul.f32 0.70710677, %v349_v37  ;;  %v681_v8 = vmul.f32 0.5, %v349_v37  ;;  %v740_v14 = vmul.f32 0.70710677, %v408_v61 }
 0x177   :  { %2406 = verf.f32 %v710_v39  ;;  %v724_v43 = vmul.f32 0.70710677, %v351_v40  ;;  %v682_v23 = vmul.f32 0.5, %v351_v40  ;;  %v3003_v40 = vmul.f32 0.5, %v406_v62 }
 0x178   :  { %2408 = verf.f32 %v723_v42 }
 0x179   :  { %2410 = verf.f32 %v724_v43  ;;  %v354_v45 = vpop.f32.mrb[4].mxu0  ;;  %v3007_v43 = vmul.f32 0.5, %v408_v61 }
 0x17a   :  { %v2961_v46 = vadd.f32 %v354_v45, %v2958_v44  ;;  %v497_v47 = vpop.f32.mrb[4].mxu1  ;;  %v356_v48 = vpop.f32.mrb[5].mxu0 }
 0x17b   :  { %v2964_v49 = vadd.f32 %v497_v47, %v2950_v26  ;;  %v2967_v50 = vadd.f32 %v356_v48, %v2958_v44  ;;  %v499_v51 = vpop.f32.mrb[5].mxu1  ;;  %v358_v52 = vpop.f32.mrb[6].mxu0 }
 0x17c   :  { %v2970_v53 = vadd.f32 %v499_v51, %v2950_v26  ;;  %v501_v54 = vpop.f32.mrb[6].mxu1  ;;  %v359_v55 = vpop.f32.mrb[7].mxu0  ;;  %v737_v56 = vmul.f32 0.70710677, %v2961_v46 }
 0x17d   :  { %v715_v57 = vmul.f32 0.70710677, %v2964_v49  ;;  %v738_v58 = vmul.f32 0.70710677, %v2967_v50  ;;  %v2976_v59 = vadd.f32 %v501_v54, %v2952_v28  ;;  %v503_v60 = vpop.f32.mrb[7].mxu1  ;;  %v695_v55 = vmul.f32 0.5, %v2961_v46 }
 0x17e   :  { %v2981_v63 = vadd.f32 %v503_v60, %v2952_v28  ;;  %v716_v3 = vmul.f32 0.70710677, %v2970_v53  ;;  %v673_v62 = vmul.f32 0.5, %v2964_v49  ;;  %v3020_v46 = vmul.f32 0.5, %v2970_v53 }
 0x17f   :  { %2412 = verf.f32 %v715_v57  ;;  %v729_v4 = vmul.f32 0.70710677, %v2976_v59 }
 0x180   :  { %v2405_v1 = vpop.eup %2404  ;;  %2414 = verf.f32 %v738_v58  ;;  %v730_v19 = vmul.f32 0.70710677, %v2981_v63 }
 0x181   :  { %v2407_v5 = vpop.eup %2406  ;;  %v793_v6 = vadd.f32 1.0, %v2405_v1  ;;  %2416 = verf.f32 %v737_v56  ;;  %v395_v9 = vpop.f32.mrb[8].mxu0  ;;  %v696_v1 = vmul.f32 0.5, %v2967_v50 }
 0x182   :  { %v2409_v10 = vpop.eup %2408  ;;  %2418 = verf.f32 %v729_v4  ;;  %v2986_v11 = vadd.f32 %v395_v9, %v2950_v26  ;;  %v507_v12 = vpop.f32.mrb[8].mxu1  ;;  %v794_v17 = vadd.f32 1.0, %v2407_v5 }
 0x183   :  { %v397_v13 = vpop.f32.mrb[9].mxu0  ;;  %v2411_v16 = vpop.eup %2410  ;;  %v807_v18 = vadd.f32 1.0, %v2409_v10  ;;  %v2990_v20 = vadd.f32 %v507_v12, %v2958_v44  ;;  %2420 = verf.f32 %v716_v3  ;;  %v835_v32 = vmul.f32 %v793_v6, %v667_v2 }
 0x184   :  { %v509_v21 = vpop.f32.mrb[9].mxu1  ;;  %v399_v22 = vpop.f32.mrb[10].mxu0  ;;  %v808_v24 = vadd.f32 1.0, %v2411_v16  ;;  %v711_v25 = vmul.f32 0.70710677, %v2986_v11  ;;  %v2995_v35 = vadd.f32 %v397_v13, %v2950_v26  ;;  %v836_v31 = vmul.f32 %v794_v17, %v668_v7 }
 0x185   :  { %v401_v29 = vpop.f32.mrb[11].mxu0  ;;  %v511_v30 = vpop.f32.mrb[10].mxu1  ;;  %v849_v33 = vmul.f32 %v807_v18, %v681_v8  ;;  %v743_v34 = vmul.f32 0.70710677, %v2990_v20  ;;  %v2998_v37 = vadd.f32 %v509_v21, %v2958_v44  ;;  %v3001_v38 = vadd.f32 %v399_v22, %v2952_v28 }
 0x186   :  { %v512_v27 = vpop.f32.mrb[11].mxu1  ;;  %v850_v36 = vmul.f32 %v808_v24, %v682_v23  ;;  %2422 = verf.f32 %v711_v25  ;;  %v712_v41 = vmul.f32 0.70710677, %v2995_v35  ;;  %v3011_v48 = vadd.f32 %v401_v29, %v2952_v28 }
 0x187   :  { %v877_v39 = vpack.c.bf16 %v849_v33, %v835_v32  ;;  %2424 = verf.f32 %v740_v14  ;;  %v725_v42 = vmul.f32 0.70710677, %v3001_v38  ;;  %v744_v47 = vmul.f32 0.70710677, %v2998_v37 }
 0x188   :  { %2426 = verf.f32 %v730_v19  ;;  %v878_v52 = vpack.c.bf16 %v850_v36, %v836_v31  ;;  %v687_v6 = vmul.f32 0.5, %v2976_v59  ;;  %v726_v7 = vmul.f32 0.70710677, %v3011_v48 }
 0x189   :  { %v2413_v45 = vpop.eup %2412  ;;  %v446_v51 = vpop.f32.mrb[12].mxu0  ;;  %2428 = verf.f32 %v739_v15  ;;  %v688_v19 = vmul.f32 0.5, %v2981_v63  ;;  %v669_v21 = vmul.f32 0.5, %v2986_v11  ;;  %v3037_v29 = vmul.f32 0.5, %v2990_v20 }
 0x18a   :  { %v2415_v54 = vpop.eup %2414  ;;  %v799_v56 = vadd.f32 1.0, %v2413_v45  ;;  %2430 = verf.f32 %v743_v34  ;;  %v3015_v57 = vadd.f32 %v446_v51, %v2950_v26  ;;  %v599_v58 = vpop.f32.mrb[12].mxu1  ;;  %982 = vmatprep.subr.bf16.mxu1 %v878_v52  ;;  %v3040_v30 = vmul.f32 0.5, %v2995_v35 }
 0x18b   :  { %v448_v60 = vpop.f32.mrb[13].mxu0  ;;  %v2417_v61 = vpop.eup %2416  ;;  %v822_v2 = vadd.f32 1.0, %v2415_v54  ;;  %2432 = verf.f32 %v725_v42  ;;  %983 = vmatpush1.bf16.msra.mxu1 %v877_v39  ;;  %v600_v53 = vadd.f32 %v599_v58, %v2950_v26  ;;  %v3044_v11 = vmul.f32 0.5, %v2998_v37 }
 0x18c   :  { %v601_v3 = vpop.f32.mrb[13].mxu1  ;;  %v450_v4 = vpop.f32.mrb[14].mxu0  ;;  %2434 = verf.f32 %v712_v41  ;;  %v713_v50 = vmul.f32 0.70710677, %v3015_v57  ;;  %v821_v14 = vadd.f32 1.0, %v2417_v61  ;;  %v3025_v15 = vmul.f32 %v799_v56, %v673_v62 }
 0x18d   :  { %v2419_v5 = vpop.eup %2418  ;;  %v603_v8 = vpop.f32.mrb[14].mxu1  ;;  %v864_v49 = vmul.f32 %v822_v2, %v696_v1  ;;  %2436 = verf.f32 %v744_v47  ;;  %v449_v17 = vadd.f32 %v448_v60, %v2950_v26  ;;  %v719_v22 = vmul.f32 0.70710677, %v600_v53 }
 0x18e   :  { %v452_v9 = vpop.f32.mrb[15].mxu0  ;;  %v813_v10 = vadd.f32 1.0, %v2419_v5  ;;  %v605_v12 = vpop.f32.mrb[15].mxu1  ;;  %2438 = verf.f32 %v726_v7  ;;  %v602_v23 = vadd.f32 %v601_v3, %v2950_v26  ;;  %v863_v34 = vmul.f32 %v821_v14, %v695_v55 }
 0x18f   :  { %v2421_v13 = vpop.eup %2420  ;;  %v892_v59 = vpack.c.bf16 %v864_v49, %v864_v49  ;;  %2440 = verf.f32 %v713_v50  ;;  %v714_v32 = vmul.f32 0.70710677, %v449_v17  ;;  %v451_v35 = vadd.f32 %v450_v4, %v2952_v28 }
 0x190   :  { %v3028_v16 = vmul.f32 %v813_v10, %v687_v6  ;;  %v2423_v18 = vpop.eup %2422  ;;  %2442 = verf.f32 %v719_v22  ;;  %v720_v27 = vmul.f32 0.70710677, %v602_v23  ;;  %v800_v20 = vadd.f32 1.0, %v2421_v13 }
 0x191   :  { %v2425_v24 = vpop.eup %2424  ;;  %2169 = vmatprep.subr.msk.bf16.mxu1 %vm267_vm0, %v892_v59  ;;  %v456_v33 = vpop.f32.mrb[16].mxu0  ;;  %v795_v41 = vadd.f32 1.0, %v2423_v18  ;;  %v604_v42 = vadd.f32 %v603_v8, %v2952_v28  ;;  %v683_v37 = vmul.f32 0.5, %v3001_v38  ;;  %2444 = verf.f32 %v714_v32 }
 0x192   :  { %v883_v25 = vpack.c.bf16 %v3028_v16, %v3025_v15  ;;  %v2427_v63 = vpop.eup %2426  ;;  %v609_v36 = vpop.f32.mrb[16].mxu1  ;;  %v453_v52 = vadd.f32 %v452_v9, %v2952_v28  ;;  %v3056_v55 = vadd.f32 1.0, %v2425_v24  ;;  %v684_v61 = vmul.f32 0.5, %v3011_v48 }
 0x193   :  { %v3046_v31 = vpop.f32.mrb[17].mxu0  ;;  %v3048_v39 = vpop.eup %2428  ;;  %v814_v60 = vadd.f32 1.0, %v2427_v63  ;;  %2446 = verf.f32 %v720_v27  ;;  %v727_v62 = vmul.f32 0.70710677, %v451_v35  ;;  %v891_v3 = vpack.c.bf16 %v863_v34, %v863_v34 }
 0x194   :  { %v3052_v45 = vpop.f32.mrb[17].mxu1  ;;  %v460_v47 = vpop.f32.mrb[18].mxu0  ;;  %v671_v5 = vmul.f32 0.5, %v3015_v57  ;;  %v733_v38 = vmul.f32 0.70710677, %v604_v42  ;;  %v3061_v7 = vmul.f32 %v800_v20, %v3020_v46  ;;  %v3063_v8 = vmul.f32 %v795_v41, %v669_v21  ;;  %v3085_v41 = vld [vmem:[#allocation10] sm:$0xff]  }
 0x195   :  { %v2431_v51 = vpop.eup %2430  ;;  %v461_v54 = vpop.f32.mrb[19].mxu0  ;;  %2448 = verf.f32 %v727_v62  ;;  %v728_v9 = vmul.f32 0.70710677, %v453_v52  ;;  %v606_v48 = vadd.f32 %v605_v12, %v2952_v28  ;;  %v457_v50 = vadd.f32 %v456_v33, %v2958_v44 }
 0x196   :  { %v613_v56 = vpop.f32.mrb[18].mxu1  ;;  %v2433_v58 = vpop.eup %2432  ;;  %2450 = verf.f32 %v733_v38  ;;  %v3069_v14 = vmul.f32 %v814_v60, %v688_v19  ;;  %v677_v57 = vmul.f32 0.5, %v600_v53  ;;  %v3071_v59 = vmul.f32 0.5, %v449_v17 }
 0x197   :  { %v614_v1 = vpop.f32.mrb[19].mxu1  ;;  %v2435_v2 = vpop.eup %2434  ;;  %v809_v4 = vadd.f32 1.0, %v2433_v58  ;;  %2452 = verf.f32 %v728_v9  ;;  %v3073_v18 = vadd.f32 1.0, %v2431_v51  ;;  %v734_v24 = vmul.f32 0.70710677, %v606_v48 }
 0x198   :  { %v2437_v6 = vpop.eup %2436  ;;  %v796_v63 = vadd.f32 1.0, %v2435_v2  ;;  %v3079_v33 = vmul.f32 0.5, %v602_v23  ;;  %v741_v19 = vmul.f32 0.70710677, %v457_v50  ;;  %v3082_v27 = vadd.f32 %v609_v36, %v2958_v44 }
 0x199   :  { %v2439_v49 = vpop.eup %2438  ;;  %v3065_v10 = vmul.f32 %v809_v4, %v683_v37  ;;  %v548_v46 = vpop.f32.mrb[20].mxu0  ;;  %v3077_v12 = vadd.f32 1.0, %v2437_v6  ;;  %2454 = verf.f32 %v734_v24  ;;  %v941_v20 = vsel %vm267_vm0, %v891_v3, 0 }
 0x19a   :  { %v2441_v13 = vpop.eup %2440  ;;  %v810_v22 = vadd.f32 1.0, %v2439_v49  ;;  %v550_v32 = vpop.f32.mrb[21].mxu0  ;;  %v685_v37 = vmul.f32 0.5, %v451_v35  ;;  %2456 = verf.f32 %v741_v19  ;;  %985 = vmatpush1.bf16.msra.mxu1 %v941_v20  ;;  %v3089_v23 = vadd.f32 %v3046_v31, %v2958_v44 }
 0x19b   :  { %v879_v21 = vpack.c.bf16 %v3065_v10, %v3063_v8  ;;  %v552_v34 = vpop.f32.mrb[22].mxu0  ;;  %v2443_v53 = vpop.eup %2442  ;;  %v797_v17 = vadd.f32 1.0, %v2441_v13  ;;  %v691_v58 = vmul.f32 0.5, %v604_v42  ;;  %v3092_v60 = vadd.f32 %v548_v46, %v2950_v26 }
 0x19c   :  { %v554_v47 = vpop.f32.mrb[23].mxu0  ;;  %v803_v51 = vadd.f32 1.0, %v2443_v53  ;;  %v2445_v54 = vpop.eup %2444  ;;  %v852_v56 = vmul.f32 %v810_v22, %v684_v61  ;;  %v3095_v36 = vadd.f32 %v550_v32, %v2950_v26  ;;  %v838_v1 = vmul.f32 %v796_v63, %v3040_v30  ;;  %v3119_v53 = vld [vmem:[#allocation10 + $0x8] ss:$0 sps:$4 sm:$0x33]  }
 0x19d   :  { %v2447_v62 = vpop.eup %2446  ;;  %v686_v2 = vmul.f32 0.5, %v453_v52  ;;  %v692_v35 = vmul.f32 0.5, %v606_v48  ;;  %v742_v3 = vmul.f32 0.70710677, %v3089_v23  ;;  %v3099_v4 = vmul.f32 %v797_v17, %v671_v5  ;;  %2170 = vmatmul.mubr.msk.bf16.vlgmr.msra.gmra.mrb[20].mxu1 %vm260_vm1, %v3085_v41 }
 0x19e   :  { %v699_v31 = vmul.f32 0.5, %v457_v50  ;;  %v747_v38 = vmul.f32 0.70710677, %v3082_v27  ;;  %v3104_v42 = vadd.f32 %v3052_v45, %v2958_v44  ;;  %v3108_v6 = vmul.f32 %v803_v51, %v677_v57  ;;  %1024 = vmatprep.mubr.bf16.mxu1 %v2714_v0 }
 0x19f   :  { %v2449_v61 = vpop.eup %2448  ;;  %v798_v30 = vadd.f32 1.0, %v2445_v54  ;;  %2458 = verf.f32 %v742_v3  ;;  %v717_v52 = vmul.f32 0.70710677, %v3092_v60  ;;  %v804_v49 = vadd.f32 1.0, %v2447_v62 }
 0x1a0   :  { %v2451_v9 = vpop.eup %2450  ;;  %v811_v48 = vadd.f32 1.0, %v2449_v61  ;;  %v718_v50 = vmul.f32 0.70710677, %v3095_v36  ;;  %v880_v45 = vpack.c.bf16 %v852_v56, %v838_v1  ;;  %v3114_v57 = vadd.f32 %v552_v34, %v2952_v28 }
 0x1a1   :  { %v558_v5 = vpop.f32.mrb[24].mxu0  ;;  %v2453_v46 = vpop.eup %2452  ;;  %v817_v22 = vadd.f32 1.0, %v2451_v9  ;;  %2460 = verf.f32 %v717_v52  ;;  %v3117_v24 = vadd.f32 %v554_v47, %v2952_v28  ;;  %v866_v17 = vmul.f32 %v3056_v55, %v3007_v43 }
 0x1a2   :  { %v560_v13 = vpop.f32.mrb[25].mxu0  ;;  %v853_v63 = vmul.f32 %v811_v48, %v685_v37  ;;  %v812_v19 = vadd.f32 1.0, %v2453_v46  ;;  %2462 = verf.f32 %v718_v50  ;;  %1033 = vmatprep.subr.bf16.mxu0 %v880_v45  ;;  %v840_v51 = vmul.f32 %v798_v30, %v3071_v59 }
 0x1a3   :  { %v562_v32 = vpop.f32.mrb[26].mxu0  ;;  %v3124_v54 = vmul.f32 %v817_v22, %v691_v58  ;;  %v748_v34 = vmul.f32 0.70710677, %v3104_v42  ;;  %v731_v47 = vmul.f32 0.70710677, %v3114_v57  ;;  %1034 = vmatpush1.bf16.msra.mxu0 %v879_v21  ;;  %v2455_v37 = vpop.eup %2454  ;;  %v894_v43 = vpack.c.bf16 %v866_v17, %v866_v17 }
 0x1a4   :  { %v563_v20 = vpop.f32.mrb[27].mxu0  ;;  %v881_v56 = vpack.c.bf16 %v853_v63, %v3099_v4  ;;  %v854_v62 = vmul.f32 %v812_v19, %v686_v2  ;;  %v732_v1 = vmul.f32 0.70710677, %v3117_v24  ;;  %v2457_v55 = vpop.eup %2456  ;;  %v818_v58 = vadd.f32 1.0, %v2455_v37 }
 0x1a5   :  { %v887_v59 = vpack.c.bf16 %v3124_v54, %v3108_v6  ;;  %2464 = verf.f32 %v731_v47  ;;  %v823_v3 = vadd.f32 1.0, %v3048_v39  ;;  %v825_v61 = vadd.f32 1.0, %v2457_v55  ;;  %2171 = vmatmul.mubr.msk.bf16.gmra.mrb[24].mxu1 %vm260_vm1, %v3119_v53  ;;  %2172 = vmatprep.subr.msk.bf16.mxu0 %vm267_vm0, %v894_v43 }
 0x1a6   :  { %2466 = verf.f32 %v732_v1  ;;  %v884_v8 = vpack.c.bf16 %v3069_v14, %v3061_v7  ;;  %v3142_v10 = vadd.f32 %v558_v5, %v2958_v44  ;;  %v3146_v21 = vmul.f32 %v3073_v18, %v3037_v29  ;;  %1116 = vmatprep.mubr.bf16.mxu1 %v2714_v0 }
 0x1a7   :  { %2468 = verf.f32 %v747_v38  ;;  %v865_v39 = vmul.f32 %v823_v3, %v3003_v40  ;;  %v3150_v2 = vadd.f32 %v560_v13, %v2958_v44  ;;  %v3153_v30 = vmul.f32 %v818_v58, %v692_v35 }
 0x1a8   :  { %v867_v52 = vmul.f32 %v825_v61, %v699_v31  ;;  %v745_v7 = vmul.f32 0.70710677, %v3142_v10  ;;  %v882_v14 = vpack.c.bf16 %v854_v62, %v840_v51  ;;  %v870_v29 = vmul.f32 %v3077_v12, %v3044_v11 }
 0x1a9   :  { %v650_v4 = vpop.f32.mrb[28].mxu0  ;;  %v2459_v9 = vpop.eup %2458  ;;  %2470 = verf.f32 %v748_v34  ;;  %v893_v18 = vpack.c.bf16 %v865_v39, %v865_v39  ;;  %v746_v40 = vmul.f32 0.70710677, %v3150_v2  ;;  %v3160_v48 = vmul.f32 %v804_v49, %v3079_v33 }
 0x1aa   :  { %v652_v5 = vpop.f32.mrb[29].mxu0  ;;  %v700_v35 = vmul.f32 0.5, %v3089_v23  ;;  %v826_v50 = vadd.f32 1.0, %v2459_v9  ;;  %2472 = verf.f32 %v745_v7  ;;  %1084 = vmatprep.subr.bf16.mxu1 %v882_v14  ;;  %v895_v13 = vpack.c.bf16 %v867_v52, %v867_v52 }
 0x1ab   :  { %v654_v38 = vpop.f32.mrb[30].mxu0  ;;  %v2461_v45 = vpop.eup %2460  ;;  %v947_v46 = vsel %vm267_vm0, %v893_v18, 0  ;;  %2474 = verf.f32 %v746_v40  ;;  %1085 = vmatpush1.bf16.msra.mxu1 %v881_v56  ;;  %v897_v12 = vpack.c.bf16 %v3146_v21, %v3146_v21  ;;  %v888_v33 = vpack.c.bf16 %v3153_v30, %v3160_v48 }
 0x1ac   :  { %v656_v31 = vpop.f32.mrb[31].mxu0  ;;  %v2463_v11 = vpop.eup %2462  ;;  %v868_v22 = vmul.f32 %v826_v50, %v700_v35  ;;  %1036 = vmatpush1.bf16.msra.mxu0 %v947_v46  ;;  %v3169_v23 = vadd.f32 %v650_v4, %v2950_v26  ;;  %v898_v49 = vpack.c.bf16 %v870_v29, %v870_v29  ;;  %v675_v32 = vmul.f32 0.5, %v3092_v60 }
 0x1ad   :  { %v676_v63 = vmul.f32 0.5, %v3095_v36  ;;  %1135 = vmatprep.subr.bf16.mxu0 %v884_v8  ;;  %v3174_v19 = vadd.f32 %v652_v5, %v2950_v26  ;;  %v801_v20 = vadd.f32 1.0, %v2461_v45  ;;  %v689_v51 = vmul.f32 0.5, %v3114_v57 }
 0x1ae   :  { %v896_v17 = vpack.c.bf16 %v868_v22, %v868_v22  ;;  %v721_v34 = vmul.f32 0.70710677, %v3169_v23  ;;  %v802_v37 = vadd.f32 1.0, %v2463_v11  ;;  %v690_v56 = vmul.f32 0.5, %v3117_v24 }
 0x1af   :  { %v2465_v47 = vpop.eup %2464  ;;  %2173 = vmatmul.mubr.msk.bf16.vlgmr.msra.gmra.mrb[36].mxu0 %vm260_vm1, %v3085_v41  ;;  %v953_v60 = vsel %vm267_vm0, %v895_v13, 0  ;;  %v722_v36 = vmul.f32 0.70710677, %v3174_v19  ;;  %v3188_v57 = vadd.f32 %v654_v38, %v2952_v28  ;;  %v3191_v24 = vadd.f32 %v656_v31, %v2952_v28 }
 0x1b0   :  { %v2467_v26 = vpop.eup %2466  ;;  %v815_v1 = vadd.f32 1.0, %v2465_v47  ;;  %1136 = vmatpush1.bf16.msra.mxu0 %v883_v25  ;;  %2175 = vmatprep.subr.msk.bf16.mxu1 %vm267_vm0, %v896_v17  ;;  %2476 = verf.f32 %v721_v34  ;;  %v843_v3 = vmul.f32 %v801_v20, %v675_v32  ;;  %v959_v28 = vsel %vm267_vm0, %v897_v12, 0 }
 0x1b1   :  { %v660_v62 = vpop.f32.mrb[32].mxu0  ;;  %v2469_v55 = vpop.eup %2468  ;;  %v816_v58 = vadd.f32 1.0, %v2467_v26  ;;  %2178 = vmatprep.subr.msk.bf16.mxu0 %vm267_vm0, %v898_v49  ;;  %1075 = vmatprep.mubr.bf16.mxu0 %v2714_v0  ;;  %2478 = verf.f32 %v722_v36  ;;  %v735_v8 = vmul.f32 0.70710677, %v3188_v57  ;;  %v844_v4 = vmul.f32 %v802_v37, %v676_v63 }
 0x1b2   :  { %v662_v43 = vpop.f32.mrb[33].mxu0  ;;  %v3196_v15 = vadd.f32 %v660_v62, %v2958_v44  ;;  %v857_v61 = vmul.f32 %v815_v1, %v689_v51  ;;  %1087 = vmatpush1.bf16.msra.mxu1 %v953_v60  ;;  %v736_v52 = vmul.f32 0.70710677, %v3191_v24  ;;  %v703_v29 = vmul.f32 0.5, %v3142_v10 }
 0x1b3   :  { %v3199_v16 = vadd.f32 %v662_v43, %v2958_v44  ;;  %v664_v25 = vpop.f32.mrb[34].mxu0  ;;  %v2471_v39 = vpop.eup %2470  ;;  %v858_v30 = vmul.f32 %v816_v58, %v690_v56  ;;  %2480 = verf.f32 %v735_v8  ;;  %v831_v38 = vadd.f32 1.0, %v2469_v55  ;;  %v2369_v43 = vld [vmem:[#allocation5 + $0xc] ss:$56 sps:$4 sm:$0xff]   ;;  %v225_v8 = vld [vmem:[#allocation5 + $0x78] sm:$0x33] }
 0x1b4   :  { %v665_v21 = vpop.f32.mrb[35].mxu0  ;;  %v749_v7 = vmul.f32 0.70710677, %v3196_v15  ;;  %v2473_v14 = vpop.eup %2472  ;;  %v885_v5 = vpack.c.bf16 %v857_v61, %v843_v3  ;;  %1138 = vmatpush1.bf16.msra.mxu0 %v959_v28  ;;  %2482 = verf.f32 %v736_v52  ;;  %v704_v48 = vmul.f32 0.5, %v3150_v2  ;;  %v2374_v28 = vld [vmem:[#allocation5 + $0x4] ss:$56 sps:$4 sm:$0xff]  }
 0x1b5   :  { %v750_v44 = vmul.f32 0.70710677, %v3199_v16  ;;  %v2475_v9 = vpop.eup %2474  ;;  %v829_v18 = vadd.f32 1.0, %v2473_v14  ;;  %1237 = vmatprep.subr.bf16.mxu0 %v888_v33  ;;  %2176 = vmatmul.mubr.msk.bf16.vlgmr.msra.gmra.mrb[28].mxu1 %vm260_vm1, %v3085_v41  ;;  %v886_v40 = vpack.c.bf16 %v858_v30, %v844_v4  ;;  %v832_v50 = vadd.f32 1.0, %v2471_v39  ;;  %v2367_v21 = vld [vmem:[#allocation5 + $0x8] ss:$56 sps:$4 sm:$0xff]  }
 0x1b6   :  { %v830_v35 = vadd.f32 1.0, %v2475_v9  ;;  %2484 = verf.f32 %v749_v7  ;;  %1126 = vmatprep.mubr.bf16.mxu1 %v2714_v0  ;;  %v705_v10 = vmul.f32 0.5, %v3082_v27  ;;  %v706_v13 = vmul.f32 0.5, %v3104_v42  ;;  %v224_v30 = vld [vmem:[#allocation5 + $0x70] sm:$0x33] }
 0x1b7   :  { %v871_v31 = vmul.f32 %v829_v18, %v703_v29  ;;  %2174 = vmatmul.mubr.msk.bf16.gmra.mrb[40].mxu0 %vm260_vm1, %v3119_v53  ;;  %2486 = verf.f32 %v750_v44  ;;  %1186 = vmatprep.subr.bf16.mxu1 %v886_v40  ;;  %v679_v51 = vmul.f32 0.5, %v3169_v23  ;;  %v693_v34 = vmul.f32 0.5, %v3188_v57  ;;  %v2381_v7 = vld [vmem:[#allocation5 + $0x1c] ss:$56 sps:$4 sm:$0xff]   ;;  %v2372_v14 = vld [vmem:[#allocation5] ss:$56 sps:$4 sm:$0xff]  }
 0x1b8   :  { %v872_v45 = vmul.f32 %v830_v35, %v704_v48  ;;  %1167 = vmatprep.mubr.bf16.mxu0 %v2714_v0  ;;  %1187 = vmatpush1.bf16.msra.mxu1 %v885_v5  ;;  %v873_v11 = vmul.f32 %v831_v38, %v705_v10  ;;  %v874_v33 = vmul.f32 %v832_v50, %v706_v13  ;;  %v680_v56 = vmul.f32 0.5, %v3174_v19  ;;  %v2386_v29 = vld [vmem:[#allocation5 + $0x14] ss:$56 sps:$4 sm:$0xff]   ;;  %v226_v35 = vld [vmem:[#allocation5 + $0x80] sm:$0x33] }
 0x1b9   :  { %v899_v2 = vpack.c.bf16 %v871_v31, %v871_v31  ;;  %v694_v60 = vmul.f32 0.5, %v3191_v24  ;;  %v707_v1 = vmul.f32 0.5, %v3196_v15  ;;  %v708_v24 = vmul.f32 0.5, %v3199_v16  ;;  %v227_v18 = vld [vmem:[#allocation5 + $0x88] sm:$0x33]  ;;  %v3259_v40 = vld [vmem:[#allocation13] sm:$0xff]  }
 0x1ba   :  { %v2477_v46 = vpop.eup %2476  ;;  %v900_v12 = vpack.c.bf16 %v872_v45, %v872_v45  ;;  %v901_v63 = vpack.c.bf16 %v873_v11, %v873_v11  ;;  %v902_v20 = vpack.c.bf16 %v874_v33, %v874_v33  ;;  %v2209_v39 = vcombine.high %v225_v8, %v225_v8  ;;  %v2391_v31 = vld [vmem:[#allocation5 + $0x2c] ss:$56 sps:$4 sm:$0xff]   ;;  %v2384_v10 = vld [vmem:[#allocation5 + $0x10] ss:$56 sps:$4 sm:$0xff]   ;;  %v229_v11 = vld [vmem:[#allocation5 + $0x98] sm:$0x33] }
 0x1bb   :  { %v2479_v22 = vpop.eup %2478  ;;  %v965_v49 = vsel %vm267_vm0, %v899_v2, 0  ;;  %v805_v32 = vadd.f32 1.0, %v2477_v46  ;;  %v2208_v4 = vcombine.low %v225_v8, %v225_v8  ;;  %v2207_v5 = vcombine.high %v224_v30, %v224_v30  ;;  %v2378_v45 = vld [vmem:[#allocation13 + $0x8] ss:$0 sps:$4 sm:$0x33]  }
 0x1bc   :  { %2181 = vmatprep.subr.msk.bf16.mxu1 %vm267_vm0, %v900_v12  ;;  %v806_v17 = vadd.f32 1.0, %v2479_v22  ;;  %v971_v6 = vsel %vm267_vm0, %v901_v63, 0  ;;  %v2206_v44 = vcombine.low %v224_v30, %v224_v30  ;;  %v2213_v38 = vcombine.high %v227_v18, %v227_v18  ;;  %v2396_v46 = vld [vmem:[#allocation5 + $0x24] ss:$56 sps:$4 sm:$0xff]   ;;  %v2389_v12 = vld [vmem:[#allocation5 + $0x28] ss:$56 sps:$4 sm:$0xff]  }
 0x1bd   :  { %2177 = vmatmul.mubr.msk.bf16.gmra.mrb[32].mxu1 %vm260_vm1, %v3119_v53  ;;  %v2481_v27 = vpop.eup %2480  ;;  %v847_v23 = vmul.f32 %v805_v32, %v679_v51  ;;  %v1468_v52 = vsel %vm267_vm0, %v2208_v4, 0  ;;  %v2212_v48 = vcombine.low %v227_v18, %v227_v18  ;;  %v2211_v13 = vcombine.high %v226_v35, %v226_v35  ;;  %v230_v51 = vld [vmem:[#allocation5 + $0xa0] sm:$0x33]  ;;  %v3329_v4 = vpop.permute.xlu0 %913 }
 0x1be   :  { %1189 = vmatpush1.bf16.msra.mxu1 %v965_v49  ;;  %1218 = vmatprep.mubr.bf16.mxu1 %v2714_v0  ;;  %v2483_v42 = vpop.eup %2482  ;;  %v819_v47 = vadd.f32 1.0, %v2481_v27  ;;  %v848_v55 = vmul.f32 %v806_v17, %v680_v56  ;;  %v1462_v9 = vsel %vm267_vm0, %v2206_v44, 0  ;;  %v2217_v22 = vcombine.high %v229_v11, %v229_v11  ;;  %v228_v49 = vld [vmem:[#allocation5 + $0x90] sm:$0x33]  ;;  %v2394_v27 = vld [vmem:[#allocation5 + $0x20] ss:$56 sps:$4 sm:$0xff]  }
 0x1bf   :  { %2179 = vmatmul.mubr.msk.bf16.vlgmr.msra.gmra.mrb[44].mxu0 %vm260_vm1, %v3085_v41  ;;  %v820_v36 = vadd.f32 1.0, %v2483_v42  ;;  %v1480_v50 = vsel %vm267_vm0, %v2212_v48, 0  ;;  %v2216_v33 = vcombine.low %v229_v11, %v229_v11  ;;  %v2215_v63 = vcombine.high %v228_v49, %v228_v49 }
 0x1c0   :  { %v2485_v37 = vpop.eup %2484  ;;  %1238 = vmatpush1.bf16.msra.mxu0 %v887_v59  ;;  %1177 = vmatprep.mubr.bf16.mxu0 %v2714_v0  ;;  %v861_v26 = vmul.f32 %v819_v47, %v693_v34  ;;  %v2214_v17 = vcombine.low %v228_v49, %v228_v49  ;;  %v2399_v34 = vld [vmem:[#allocation5 + $0x30] ss:$56 sps:$4 sm:$0xff]   ;;  %v2219_v47 = vcombine.high %v230_v51, %v230_v51 }
 0x1c1   :  { %v2487_v62 = vpop.eup %2486  ;;  %v833_v57 = vadd.f32 1.0, %v2485_v37  ;;  %2184 = vmatprep.subr.msk.bf16.mxu0 %vm267_vm0, %v902_v20  ;;  %v862_v19 = vmul.f32 %v820_v36, %v694_v60  ;;  %v1492_v32 = vsel %vm267_vm0, %v2216_v33, 0  ;;  %v2401_v20 = vld [vmem:[#allocation5 + $0x34] ss:$56 sps:$4 sm:$0xff]   ;;  %v2218_v37 = vcombine.low %v230_v51, %v230_v51 }
 0x1c2   :  { %v834_v58 = vadd.f32 1.0, %v2487_v62  ;;  %v889_v25 = vpack.c.bf16 %v861_v26, %v847_v23  ;;  %v1486_v42 = vsel %vm267_vm0, %v2214_v17, 0 }
 0x1c3   :  { %v875_v3 = vmul.f32 %v833_v57, %v707_v1  ;;  %v890_v59 = vpack.c.bf16 %v862_v19, %v848_v55  ;;  %v1498_v56 = vsel %vm267_vm0, %v2218_v37, 0 }
 0x1c4   :  { %v876_v54 = vmul.f32 %v834_v58, %v708_v24  ;;  %1240 = vmatpush1.bf16.msra.mxu0 %v971_v6 }
 0x1c5   :  { %v903_v61 = vpack.c.bf16 %v875_v3, %v875_v3  ;;  %2182 = vmatmul.mubr.msk.bf16.vlgmr.msra.gmra.mrb[36].mxu1 %vm260_vm1, %v3085_v41  ;;  %1554 = vmatprep.subr.bf16.mxu0 %v2369_v43 }
 0x1c6   :  { %v904_v15 = vpack.c.bf16 %v876_v54, %v876_v54  ;;  %1288 = vmatprep.subr.bf16.mxu1 %v890_v59  ;;  %1228 = vmatprep.mubr.bf16.mxu1 %v2714_v0 }
 0x1c7   :  { %2180 = vmatmul.mubr.msk.bf16.gmra.mrb[48].mxu0 %vm260_vm1, %v3119_v53  ;;  %1289 = vmatpush1.bf16.msra.mxu1 %v889_v25  ;;  %v977_v16 = vsel %vm267_vm0, %v903_v61, 0 }
 0x1c8   :  { %1269 = vmatprep.mubr.bf16.mxu0 %v2714_v0  ;;  %2187 = vmatprep.subr.msk.bf16.mxu1 %vm267_vm0, %v904_v15 }
 0x1cb   :  { %1291 = vmatpush1.bf16.msra.mxu1 %v977_v16  ;;  %v3323_v16 = vpop.permute.xlu1 %923 }
 0x1cc   :  { %1503 = vmatprep.subr.bf16.mxu1 %v2374_v28 }
 0x1cd   :  { %2183 = vmatmul.mubr.msk.bf16.gmra.mrb[40].mxu1 %vm260_vm1, %v3119_v53 }
 0x1ce   :  { %1320 = vmatprep.mubr.bf16.mxu1 %v2714_v0 }
 0x1cf   :  { %2185 = vmatmul.mubr.msk.bf16.vlgmr.msra.gmra.mrb[52].mxu0 %vm260_vm1, %v3085_v41  ;;  %v3331_v30 = vpop.permute.xlu1 %918 }
 0x1d0   :  { %1279 = vmatprep.mubr.bf16.mxu0 %v2714_v0  ;;  %1555 = vmatpush1.bf16.msra.mxu0 %v2367_v21 }
 0x1d1   :  { %2223 = vmatprep.subr.msk.bf16.mxu0 %vm267_vm0, %v2209_v39 }
 0x1d4   :  { %1557 = vmatpush1.bf16.msra.mxu0 %v1468_v52 }
 0x1d5   :  { %2188 = vmatmul.mubr.msk.bf16.vlgmr.msra.gmra.mrb[44].mxu1 %vm260_vm1, %v3085_v41  ;;  %1656 = vmatprep.subr.bf16.mxu0 %v2381_v7  ;;  %v2379_v41 = vld [vmem:[#allocation5 + $0x18] ss:$56 sps:$4 sm:$0xff]  }
 0x1d6   :  { %1330 = vmatprep.mubr.bf16.mxu1 %v2714_v0  ;;  %1504 = vmatpush1.bf16.msra.mxu1 %v2372_v14 }
 0x1d7   :  { %2186 = vmatmul.mubr.msk.bf16.gmra.mrb[56].mxu0 %vm260_vm1, %v3119_v53  ;;  %2220 = vmatprep.subr.msk.bf16.mxu1 %vm267_vm0, %v2207_v5 }
 0x1d8   :  { %1586 = vmatprep.mubr.bf16.mxu0 %v2714_v0 }
 0x1da   :  { %1506 = vmatpush1.bf16.msra.mxu1 %v1462_v9 }
 0x1db   :  { %1605 = vmatprep.subr.bf16.mxu1 %v2386_v29 }
 0x1dd   :  { %2189 = vmatmul.mubr.msk.bf16.gmra.mrb[48].mxu1 %vm260_vm1, %v3119_v53  ;;  %v2210_v53 = vcombine.low %v226_v35, %v226_v35 }
 0x1de   :  { %1535 = vmatprep.mubr.bf16.mxu1 %v2714_v0 }
 0x1df   :  { %2224 = vmatmul.mubr.msk.bf16.vlgmr.msra.gmra.mrb[36].mxu0 %vm260_vm1, %v3259_v40  ;;  %v1474_v2 = vsel %vm267_vm0, %v2210_v53, 0 }
 0x1e0   :  { %1596 = vmatprep.mubr.bf16.mxu0 %v2714_v0  ;;  %1657 = vmatpush1.bf16.msra.mxu0 %v2379_v41  ;;  %v3340_v41 = vpop.permute.xlu0 %1907 }
 0x1e1   :  { %2229 = vmatprep.subr.msk.bf16.mxu0 %vm267_vm0, %v2213_v38 }
 0x1e4   :  { %1659 = vmatpush1.bf16.msra.mxu0 %v1480_v50  ;;  %v3357_v37 = vpop.permute.xlu0 %1917 }
 0x1e5   :  { %2221 = vmatmul.mubr.msk.bf16.vlgmr.msra.gmra.mrb[20].mxu1 %vm260_vm1, %v3259_v40  ;;  %1758 = vmatprep.subr.bf16.mxu0 %v2391_v31 }
 0x1e6   :  { %1545 = vmatprep.mubr.bf16.mxu1 %v2714_v0  ;;  %1606 = vmatpush1.bf16.msra.mxu1 %v2384_v10  ;;  %v3345_v10 = vpop.permute.xlu1 %1912 }
 0x1e7   :  { %2225 = vmatmul.mubr.msk.bf16.gmra.mrb[60].mxu0 %vm260_vm1, %v2378_v45  ;;  %2226 = vmatprep.subr.msk.bf16.mxu1 %vm267_vm0, %v2211_v13 }
 0x1e8   :  { %1688 = vmatprep.mubr.bf16.mxu0 %v2714_v0 }
 0x1ea   :  { %1608 = vmatpush1.bf16.msra.mxu1 %v1474_v2 }
 0x1eb   :  { %1707 = vmatprep.subr.bf16.mxu1 %v2396_v46 }
 0x1ed   :  { %2222 = vmatmul.mubr.msk.bf16.gmra.mrb[52].mxu1 %vm260_vm1, %v2378_v45 }
 0x1ee   :  { %1637 = vmatprep.mubr.bf16.mxu1 %v2714_v0 }
 0x1ef   :  { %2230 = vmatmul.mubr.msk.bf16.vlgmr.msra.gmra.mrb[44].mxu0 %vm260_vm1, %v3259_v40 }
 0x1f0   :  { %1698 = vmatprep.mubr.bf16.mxu0 %v2714_v0  ;;  %1759 = vmatpush1.bf16.msra.mxu0 %v2389_v12 }
 0x1f1   :  { %2235 = vmatprep.subr.msk.bf16.mxu0 %vm267_vm0, %v2217_v22 }
 0x1f4   :  { %1761 = vmatpush1.bf16.msra.mxu0 %v1492_v32 }
 0x1f5   :  { %2227 = vmatmul.mubr.msk.bf16.vlgmr.msra.gmra.mrb[28].mxu1 %vm260_vm1, %v3259_v40 }
 0x1f6   :  { %1647 = vmatprep.mubr.bf16.mxu1 %v2714_v0  ;;  %1708 = vmatpush1.bf16.msra.mxu1 %v2394_v27 }
 0x1f7   :  { %2231 = vmatmul.mubr.msk.bf16.gmra.mrb[64].mxu0 %vm260_vm1, %v2378_v45  ;;  %2232 = vmatprep.subr.msk.bf16.mxu1 %vm267_vm0, %v2215_v63 }
 0x1f8   :  { %1790 = vmatprep.mubr.bf16.mxu0 %v2714_v0 }
 0x1fa   :  { %1710 = vmatpush1.bf16.msra.mxu1 %v1486_v42 }
 0x1fb   :  { %1809 = vmatprep.subr.bf16.mxu1 %v2401_v20 }
 0x1fd   :  { %2228 = vmatmul.mubr.msk.bf16.gmra.mrb[56].mxu1 %vm260_vm1, %v2378_v45 }
 0x1fe   :  { %1739 = vmatprep.mubr.bf16.mxu1 %v2714_v0 }
 0x1ff   :  { %2236 = vmatmul.mubr.msk.bf16.vlgmr.msra.gmra.mrb[52].mxu0 %vm260_vm1, %v3259_v40 }
 0x200   :  { %1800 = vmatprep.mubr.bf16.mxu0 %v2714_v0 }
 0x205   :  { %2233 = vmatmul.mubr.msk.bf16.vlgmr.msra.gmra.mrb[36].mxu1 %vm260_vm1, %v3259_v40 }
 0x206   :  { %1749 = vmatprep.mubr.bf16.mxu1 %v2714_v0  ;;  %1810 = vmatpush1.bf16.msra.mxu1 %v2399_v34 }
 0x207   :  { %2237 = vmatmul.mubr.msk.bf16.gmra.mrb[68].mxu0 %vm260_vm1, %v2378_v45  ;;  %2238 = vmatprep.subr.msk.bf16.mxu1 %vm267_vm0, %v2219_v47 }
 0x20a   :  { %1812 = vmatpush1.bf16.msra.mxu1 %v1498_v56 }
 0x20d   :  { %2234 = vmatmul.mubr.msk.bf16.gmra.mrb[60].mxu1 %vm260_vm1, %v2378_v45 }
 0x20e   :  { %1841 = vmatprep.mubr.bf16.mxu1 %v2714_v0 }
 0x215   :  { %2239 = vmatmul.mubr.msk.bf16.vlgmr.msra.gmra.mrb[44].mxu1 %vm260_vm1, %v3259_v40 }
 0x216   :  { %1851 = vmatprep.mubr.bf16.mxu1 %v2714_v0 }
 0x21d   :  { %2240 = vmatmul.mubr.msk.bf16.gmra.mrb[64].mxu1 %vm260_vm1, %v2378_v45 }
 0x278   :  { %v3307_v60 = vpop.f32.mrb[24].mxu1 }
 0x279   :  { %v3309_v36 = vpop.f32.mrb[25].mxu1 }
 0x27a   :  { %v1030_v62 = vpop.f32.mrb[26].mxu1 }
 0x27b   :  { %v1031_v23 = vpop.f32.mrb[27].mxu1 }
 0x28a   :  { %v1077_v26 = vpop.f32.mrb[40].mxu0 }
 0x28b   :  { %v1079_v1 = vpop.f32.mrb[41].mxu0  ;;  %v1078_v12 = vadd.f32 %v1077_v26, %v3323_v16 }
 0x28c   :  { %v1081_v57 = vpop.f32.mrb[42].mxu0  ;;  %v1080_v49 = vadd.f32 %v1079_v1, %v3323_v16 }
 0x28d   :  { %v1082_v43 = vpop.f32.mrb[43].mxu0 }
 0x290   :  { %v3311_v55 = vpop.f32.mrb[32].mxu1 }
 0x291   :  { %v3313_v19 = vpop.f32.mrb[33].mxu1 }
 0x292   :  { %v1132_v24 = vpop.f32.mrb[34].mxu1 }
 0x293   :  { %v1133_v58 = vpop.f32.mrb[35].mxu1 }
 0x29a   :  { %v3315_v25 = vpop.f32.mrb[48].mxu0 }
 0x29b   :  { %v3317_v0 = vpop.f32.mrb[49].mxu0 }
 0x29c   :  { %v1183_v3 = vpop.f32.mrb[50].mxu0 }
 0x29d   :  { %v1184_v6 = vpop.f32.mrb[51].mxu0 }
 0x29e   :  { %v1027_v6 = vadd.f32 %v3307_v60, %v3323_v16 }
 0x2a0   :  { %v3319_v54 = vpop.f32.mrb[40].mxu1 }
 0x2a1   :  { %v3321_v59 = vpop.f32.mrb[41].mxu1 }
 0x2a2   :  { %v1234_v61 = vpop.f32.mrb[42].mxu1 }
 0x2a3   :  { %v1235_v15 = vpop.f32.mrb[43].mxu1  ;;  %v1029_v61 = vadd.f32 %v3309_v36, %v3323_v16 }
 0x2aa   :  { %v3325_v28 = vpop.f32.mrb[56].mxu0 }
 0x2ab   :  { %v3327_v8 = vpop.f32.mrb[57].mxu0 }
 0x2ac   :  { %v1285_v21 = vpop.f32.mrb[58].mxu0 }
 0x2ad   :  { %v1286_v39 = vpop.f32.mrb[59].mxu0 }
 0x2b0   :  { %v1332_v52 = vpop.f32.mrb[48].mxu1 }
 0x2b1   :  { %v3334_v7 = vadd.f32 %v1332_v52, %v3323_v16  ;;  %v1334_v14 = vpop.f32.mrb[49].mxu1 }
 0x2b2   :  { %v1588_v5 = vpop.f32.mrb[36].mxu0  ;;  %v3337_v44 = vadd.f32 %v1334_v14, %v3323_v16  ;;  %v1336_v9 = vpop.f32.mrb[50].mxu1 }
 0x2b3   :  { %v2291_v29 = vadd.f32 %v1588_v5, %v3329_v4  ;;  %v1590_v18 = vpop.f32.mrb[37].mxu0  ;;  %v1337_v40 = vpop.f32.mrb[51].mxu1 }
 0x2b4   :  { %v2292_v38 = vadd.f32 %v1590_v18, %v3329_v4  ;;  %v1592_v48 = vpop.f32.mrb[38].mxu0 }
 0x2b5   :  { %v1922_v35 = vadd.f32 %v2291_v29, %v3340_v41  ;;  %v2293_v50 = vadd.f32 %v1592_v48, %v3331_v30  ;;  %v1594_v31 = vpop.f32.mrb[39].mxu0 }
 0x2b6   :  { %v1923_v45 = vadd.f32 %v2292_v38, %v3340_v41  ;;  %v2294_v13 = vadd.f32 %v1594_v31, %v3331_v30 }
 0x2b7   :  { %v1936_v53 = vadd.f32 %v2293_v50, %v3345_v10 }
 0x2b8   :  { %v2263_v2 = vpack.c.bf16 %v1923_v45, %v1922_v35  ;;  %v1937_v46 = vadd.f32 %v2294_v13, %v3345_v10  ;;  %v1537_v11 = vpop.f32.mrb[20].mxu1 }
 0x2b9   :  { %v2287_v22 = vadd.f32 %v1537_v11, %v3329_v4  ;;  %v1539_v33 = vpop.f32.mrb[21].mxu1 }
 0x2ba   :  { %2103 = vst [vmem:[#allocation16 + $0x8] sm:$0xff] %v2263_v2  ;;  %v2270_v32 = vpack.c.bf16 %v1937_v46, %v1936_v53  ;;  %v1598_v27 = vpop.f32.mrb[60].mxu0  ;;  %v2288_v63 = vadd.f32 %v1539_v33, %v3329_v4  ;;  %v1541_v17 = vpop.f32.mrb[22].mxu1  ;;  %v1180_v33 = vadd.f32 %v3315_v25, %v3323_v16 }
 0x2bb   :  { %v1890_v42 = vadd.f32 %v1598_v27, %v1078_v12  ;;  %v1600_v20 = vpop.f32.mrb[61].mxu0  ;;  %v1920_v51 = vadd.f32 %v2287_v22, %v3340_v41  ;;  %v2289_v34 = vadd.f32 %v1541_v17, %v3331_v30  ;;  %v1543_v47 = vpop.f32.mrb[23].mxu1  ;;  %v1182_v27 = vadd.f32 %v3317_v0, %v3323_v16 }
 0x2bc   :  { %2110 = vst [vmem:[#allocation16 + $0x40] sm:$0xff] %v2270_v32  ;;  %v1891_v56 = vadd.f32 %v1600_v20, %v1080_v49  ;;  %v1921_v62 = vadd.f32 %v2288_v63, %v3340_v41  ;;  %v2290_v23 = vadd.f32 %v1543_v47, %v3331_v30  ;;  %v1602_v26 = vpop.f32.mrb[62].mxu0 }
 0x2bd   :  { %v1950_v1 = vadd.f32 %v3357_v37, %v1890_v42  ;;  %v1934_v57 = vadd.f32 %v2289_v34, %v3345_v10  ;;  %v1603_v43 = vpop.f32.mrb[63].mxu0 }
 0x2be   :  { %v1951_v24 = vadd.f32 %v3357_v37, %v1891_v56  ;;  %v2262_v58 = vpack.c.bf16 %v1921_v62, %v1920_v51  ;;  %v1935_v3 = vadd.f32 %v2290_v23, %v3345_v10 }
 0x2c0   :  { %v2277_v15 = vpack.c.bf16 %v1951_v24, %v1950_v1  ;;  %2102 = vst [vmem:[#allocation16] sm:$0xff] %v2262_v58  ;;  %v2269_v21 = vpack.c.bf16 %v1935_v3, %v1934_v57  ;;  %v1547_v39 = vpop.f32.mrb[52].mxu1 }
 0x2c1   :  { %v1888_v52 = vadd.f32 %v1547_v39, %v1027_v6  ;;  %v1549_v14 = vpop.f32.mrb[53].mxu1  ;;  %v1129_v6 = vadd.f32 %v3311_v55, %v3323_v16 }
 0x2c2   :  { %2117 = vst [vmem:[#allocation16 + $0x78] sm:$0x33] %v2277_v15  ;;  %2109 = vst [vmem:[#allocation16 + $0x38] sm:$0xff] %v2269_v21  ;;  %v1690_v5 = vpop.f32.mrb[44].mxu0  ;;  %v1889_v9 = vadd.f32 %v1549_v14, %v1029_v61  ;;  %v1551_v29 = vpop.f32.mrb[54].mxu1  ;;  %v1131_v61 = vadd.f32 %v3313_v19, %v3323_v16 }
 0x2c3   :  { %v2299_v18 = vadd.f32 %v1690_v5, %v3329_v4  ;;  %v1692_v40 = vpop.f32.mrb[45].mxu0  ;;  %v1948_v38 = vadd.f32 %v3357_v37, %v1888_v52  ;;  %v1552_v60 = vpop.f32.mrb[55].mxu1 }
 0x2c4   :  { %v2300_v48 = vadd.f32 %v1692_v40, %v3329_v4  ;;  %v1694_v36 = vpop.f32.mrb[46].mxu0  ;;  %v1949_v35 = vadd.f32 %v3357_v37, %v1889_v9 }
 0x2c5   :  { %v1926_v50 = vadd.f32 %v2299_v18, %v3340_v41  ;;  %v2301_v31 = vadd.f32 %v1694_v36, %v3331_v30  ;;  %v1696_v45 = vpop.f32.mrb[47].mxu0 }
 0x2c6   :  { %v1927_v13 = vadd.f32 %v2300_v48, %v3340_v41  ;;  %v2276_v53 = vpack.c.bf16 %v1949_v35, %v1948_v38  ;;  %v2302_v2 = vadd.f32 %v1696_v45, %v3331_v30 }
 0x2c7   :  { %v1940_v46 = vadd.f32 %v2301_v31, %v3345_v10 }
 0x2c8   :  { %v2265_v11 = vpack.c.bf16 %v1927_v13, %v1926_v50  ;;  %2116 = vst [vmem:[#allocation16 + $0x70] sm:$0x33] %v2276_v53  ;;  %v1941_v12 = vadd.f32 %v2302_v2, %v3345_v10  ;;  %v1639_v22 = vpop.f32.mrb[28].mxu1 }
 0x2c9   :  { %v2295_v49 = vadd.f32 %v1639_v22, %v3329_v4  ;;  %v1641_v32 = vpop.f32.mrb[29].mxu1 }
 0x2ca   :  { %2105 = vst [vmem:[#allocation16 + $0x18] sm:$0xff] %v2265_v11  ;;  %v2272_v63 = vpack.c.bf16 %v1941_v12, %v1940_v46  ;;  %v1700_v17 = vpop.f32.mrb[64].mxu0  ;;  %v2296_v42 = vadd.f32 %v1641_v32, %v3329_v4  ;;  %v1643_v20 = vpop.f32.mrb[30].mxu1  ;;  %v1282_v12 = vadd.f32 %v3325_v28, %v3323_v16 }
 0x2cb   :  { %v1894_v51 = vadd.f32 %v1700_v17, %v1180_v33  ;;  %v1702_v34 = vpop.f32.mrb[65].mxu0  ;;  %v1924_v47 = vadd.f32 %v2295_v49, %v3340_v41  ;;  %v2297_v56 = vadd.f32 %v1643_v20, %v3331_v30  ;;  %v1645_v62 = vpop.f32.mrb[31].mxu1  ;;  %v1284_v49 = vadd.f32 %v3327_v8, %v3323_v16 }
 0x2cc   :  { %2112 = vst [vmem:[#allocation16 + $0x50] sm:$0xff] %v2272_v63  ;;  %v1895_v25 = vadd.f32 %v1702_v34, %v1182_v27  ;;  %v1925_v23 = vadd.f32 %v2296_v42, %v3340_v41  ;;  %v2298_v26 = vadd.f32 %v1645_v62, %v3331_v30  ;;  %v1704_v0 = vpop.f32.mrb[66].mxu0 }
 0x2cd   :  { %v1954_v1 = vadd.f32 %v3357_v37, %v1894_v51  ;;  %v1938_v57 = vadd.f32 %v2297_v56, %v3345_v10  ;;  %v1705_v43 = vpop.f32.mrb[67].mxu0 }
 0x2ce   :  { %v1955_v24 = vadd.f32 %v3357_v37, %v1895_v25  ;;  %v2264_v58 = vpack.c.bf16 %v1925_v23, %v1924_v47  ;;  %v1939_v3 = vadd.f32 %v2298_v26, %v3345_v10  ;;  %v1231_v43 = vadd.f32 %v3319_v54, %v3323_v16 }
 0x2d0   :  { %v2279_v15 = vpack.c.bf16 %v1955_v24, %v1954_v1  ;;  %2104 = vst [vmem:[#allocation16 + $0x10] sm:$0xff] %v2264_v58  ;;  %v2271_v21 = vpack.c.bf16 %v1939_v3, %v1938_v57  ;;  %v1649_v39 = vpop.f32.mrb[56].mxu1  ;;  %v1233_v24 = vadd.f32 %v3321_v59, %v3323_v16 }
 0x2d1   :  { %v1892_v52 = vadd.f32 %v1649_v39, %v1129_v6  ;;  %v1651_v14 = vpop.f32.mrb[57].mxu1 }
 0x2d2   :  { %2119 = vst [vmem:[#allocation16 + $0x88] sm:$0x33] %v2279_v15  ;;  %2111 = vst [vmem:[#allocation16 + $0x48] sm:$0xff] %v2271_v21  ;;  %v1792_v5 = vpop.f32.mrb[52].mxu0  ;;  %v1893_v9 = vadd.f32 %v1651_v14, %v1131_v61  ;;  %v1653_v29 = vpop.f32.mrb[58].mxu1 }
 0x2d3   :  { %v2307_v18 = vadd.f32 %v1792_v5, %v3329_v4  ;;  %v1794_v40 = vpop.f32.mrb[53].mxu0  ;;  %v1952_v38 = vadd.f32 %v3357_v37, %v1892_v52  ;;  %v1654_v55 = vpop.f32.mrb[59].mxu1 }
 0x2d4   :  { %v2308_v60 = vadd.f32 %v1794_v40, %v3329_v4  ;;  %v1796_v19 = vpop.f32.mrb[54].mxu0  ;;  %v1953_v48 = vadd.f32 %v3357_v37, %v1893_v9 }
 0x2d5   :  { %v1930_v36 = vadd.f32 %v2307_v18, %v3340_v41  ;;  %v2309_v35 = vadd.f32 %v1796_v19, %v3331_v30  ;;  %v1798_v50 = vpop.f32.mrb[55].mxu0 }
 0x2d6   :  { %v1931_v31 = vadd.f32 %v2308_v60, %v3340_v41  ;;  %v2278_v45 = vpack.c.bf16 %v1953_v48, %v1952_v38  ;;  %v2310_v13 = vadd.f32 %v1798_v50, %v3331_v30 }
 0x2d7   :  { %v1944_v53 = vadd.f32 %v2309_v35, %v3345_v10 }
 0x2d8   :  { %v2267_v2 = vpack.c.bf16 %v1931_v31, %v1930_v36  ;;  %2118 = vst [vmem:[#allocation16 + $0x80] sm:$0x33] %v2278_v45  ;;  %v1945_v46 = vadd.f32 %v2310_v13, %v3345_v10  ;;  %v1741_v11 = vpop.f32.mrb[36].mxu1 }
 0x2d9   :  { %v2303_v22 = vadd.f32 %v1741_v11, %v3329_v4  ;;  %v1743_v33 = vpop.f32.mrb[37].mxu1 }
 0x2da   :  { %2107 = vst [vmem:[#allocation16 + $0x28] sm:$0xff] %v2267_v2  ;;  %v2274_v32 = vpack.c.bf16 %v1945_v46, %v1944_v53  ;;  %v1802_v27 = vpop.f32.mrb[68].mxu0  ;;  %v2304_v63 = vadd.f32 %v1743_v33, %v3329_v4  ;;  %v1745_v17 = vpop.f32.mrb[38].mxu1 }
 0x2db   :  { %v1898_v42 = vadd.f32 %v1802_v27, %v1282_v12  ;;  %v1804_v20 = vpop.f32.mrb[69].mxu0  ;;  %v1928_v51 = vadd.f32 %v2303_v22, %v3340_v41  ;;  %v2305_v34 = vadd.f32 %v1745_v17, %v3331_v30  ;;  %v1747_v47 = vpop.f32.mrb[39].mxu1 }
 0x2dc   :  { %2114 = vst [vmem:[#allocation16 + $0x60] sm:$0xff] %v2274_v32  ;;  %v1899_v28 = vadd.f32 %v1804_v20, %v1284_v49  ;;  %v1929_v56 = vadd.f32 %v2304_v63, %v3340_v41  ;;  %v2306_v62 = vadd.f32 %v1747_v47, %v3331_v30  ;;  %v1806_v8 = vpop.f32.mrb[70].mxu0 }
 0x2dd   :  { %v1958_v25 = vadd.f32 %v3357_v37, %v1898_v42  ;;  %v1942_v23 = vadd.f32 %v2305_v34, %v3345_v10  ;;  %v1807_v26 = vpop.f32.mrb[71].mxu0 }
 0x2de   :  { %v1959_v0 = vadd.f32 %v3357_v37, %v1899_v28  ;;  %v2266_v1 = vpack.c.bf16 %v1929_v56, %v1928_v51  ;;  %v1943_v57 = vadd.f32 %v2306_v62, %v3345_v10 }
 0x2e0   :  { %v2281_v58 = vpack.c.bf16 %v1959_v0, %v1958_v25  ;;  %2106 = vst [vmem:[#allocation16 + $0x20] sm:$0xff] %v2266_v1  ;;  %v2273_v3 = vpack.c.bf16 %v1943_v57, %v1942_v23  ;;  %v1751_v6 = vpop.f32.mrb[60].mxu1 }
 0x2e1   :  { %v1896_v61 = vadd.f32 %v1751_v6, %v1231_v43  ;;  %v1753_v15 = vpop.f32.mrb[61].mxu1 }
 0x2e2   :  { %2121 = vst [vmem:[#allocation16 + $0x98] sm:$0x33] %v2281_v58  ;;  %2113 = vst [vmem:[#allocation16 + $0x58] sm:$0xff] %v2273_v3  ;;  %v1897_v21 = vadd.f32 %v1753_v15, %v1233_v24  ;;  %v1755_v39 = vpop.f32.mrb[62].mxu1 }
 0x2e3   :  { %v1956_v52 = vadd.f32 %v3357_v37, %v1896_v61  ;;  %v1756_v14 = vpop.f32.mrb[63].mxu1 }
 0x2e4   :  { %v1957_v5 = vadd.f32 %v3357_v37, %v1897_v21 }
 0x2e6   :  { %v2280_v9 = vpack.c.bf16 %v1957_v5, %v1956_v52 }
 0x2e8   :  { %2120 = vst [vmem:[#allocation16 + $0x90] sm:$0x33] %v2280_v9  ;;  %v1843_v54 = vpop.f32.mrb[44].mxu1 }
 0x2e9   :  { %v2311_v59 = vadd.f32 %v1843_v54, %v3329_v4  ;;  %v1845_v16 = vpop.f32.mrb[45].mxu1 }
 0x2ea   :  { %v2312_v29 = vadd.f32 %v1845_v16, %v3329_v4  ;;  %v1847_v18 = vpop.f32.mrb[46].mxu1 }
 0x2eb   :  { %v1932_v40 = vadd.f32 %v2311_v59, %v3340_v41  ;;  %v2313_v38 = vadd.f32 %v1847_v18, %v3331_v30  ;;  %v1849_v55 = vpop.f32.mrb[47].mxu1 }
 0x2ec   :  { %v1933_v60 = vadd.f32 %v2312_v29, %v3340_v41  ;;  %v2314_v19 = vadd.f32 %v1849_v55, %v3331_v30 }
 0x2ed   :  { %v1946_v48 = vadd.f32 %v2313_v38, %v3345_v10 }
 0x2ee   :  { %v2268_v36 = vpack.c.bf16 %v1933_v60, %v1932_v40  ;;  %v1947_v35 = vadd.f32 %v2314_v19, %v3345_v10 }
 0x2f0   :  { %2108 = vst [vmem:[#allocation16 + $0x30] sm:$0xff] %v2268_v36  ;;  %v2275_v50 = vpack.c.bf16 %v1947_v35, %v1946_v48  ;;  %v1853_v31 = vpop.f32.mrb[64].mxu1 }
 0x2f1   :  { %v1900_v4 = vadd.f32 %v1853_v31, %v3334_v7  ;;  %v1855_v45 = vpop.f32.mrb[65].mxu1 }
 0x2f2   :  { %2115 = vst [vmem:[#allocation16 + $0x68] sm:$0xff] %v2275_v50  ;;  %v1901_v13 = vadd.f32 %v1855_v45, %v3337_v44  ;;  %v1857_v53 = vpop.f32.mrb[66].mxu1 }
 0x2f3   :  { %v1960_v2 = vadd.f32 %v3357_v37, %v1900_v4  ;;  %v1858_v41 = vpop.f32.mrb[67].mxu1 }
 0x2f4   :  { %v1961_v30 = vadd.f32 %v3357_v37, %v1901_v13 }
 0x2f6   :  { %v2282_v46 = vpack.c.bf16 %v1961_v30, %v1960_v2 }
 0x2f8   :  { %2122 = vst [vmem:[#allocation16 + $0xa0] sm:$0x33] %v2282_v46 }
 0x2f9   :  { %2675 = shalt.err (!%p2672_p12)
}
 0x2fa   :  { %s2676_s23 = scalar_lea.hbm %s3462_s8, 2688 }
 0x2fb   :  { %p2677_p13 = scmp.ne.s32.totalorder %s3462_s8, %s2676_s23  ;;  %p2680_p0 = scmp.lt.u32.totalorder %s2676_s23, %s3462_s8 }
 0x2fd   :  { %p2682_p1 = pnand %p2680_p0, %p2677_p13 }
 0x2ff   :  { %2685 = shalt.err (!%p2682_p1)
}
 0x300   :  { %2134 = dma.vmem_to_hbm [thread:$0]  %s2129_s1, 2688, %s3462_s8, [#allocation4], %s2699_s15, %s2699_s15, %s2700_s16  }
 0x301   :  { %2696 = dma.done.wait [#allocation4], 2688  }
 0x302   :  { %2697 = vsyncadd [#allocation4], 4294964608 }
 0x303   :  { %2138 = vsyncpa [#allocation3], 1 }
 0x304   :  { %2139 = vsyncpa [#allocation6], 1 }
 0x305   :  { %2140 = vsyncpa [#allocation9], 1 }
 0x306   :  { %2141 = vsyncpa [#allocation12], 1 }
 0x307   :  { %2142 = vsyncpa [#allocation15], 1 }
 0x308   :  { %2143 = vsyncpa [#allocation4], 1 }

// kernel: _lambda_.19
= control target key start
LH: loop header
LB: loop body
LE: loop exit
PB: predicated region body
PF: predicated region fallthrough
CT: control target
= control target key end

     0   :  { %10 = vsyncpa [#allocation3], 0  ;;  %s2528_s0 = inlined_call_operand.hbm [shape: bf16[20,1024], index: 0, kind: input, shape index: {}]   ;;  %s2529_s1 = inlined_call_operand.hbm [shape: bf16[80,20], index: 1, kind: input, shape index: {}]   ;;  %s2530_s2 = inlined_call_operand.hbm [shape: f32[80,1], index: 2, kind: input, shape index: {}]   ;;  %s2531_s3 = inlined_call_operand.hbm [shape: bf16[3,80], index: 3, kind: input, shape index: {}]   ;;  %s2532_s4 = inlined_call_operand.hbm [shape: f32[3,1], index: 4, kind: input, shape index: {}]   ;;  %s2533_s5 = inlined_call_operand.hbm [shape: f32[3,1024], index: 5, kind: output, shape index: {}]  }
   0x1   :  { %11 = vsyncpa [#allocation6], 0 }
   0x2   :  { %12 = vsyncpa [#allocation9], 0 }
   0x3   :  { %13 = vsyncpa [#allocation4], 0  ;;  %s1655_s18 = smov [#allocation5]   ;;  %s1515_s22 = scalar_lea.hbm %s2529_s1, 640 }
   0x4   :  { %s31_s19 = sshll.u32 %s1655_s18, 4  ;;  %p1516_p0 = scmp.ne.s32.totalorder %s2529_s1, %s1515_s22  ;;  %s32_s19 = int_to_ptr.vmem [resolvable:$true] %s31_s19 }
   0x5   :  { %p1519_p1 = scmp.lt.u32.totalorder %s1515_s22, %s2529_s1 }
   0x7   :  { %p1521_p2 = pnand %p1519_p1, %p1516_p0 }
   0x9   :  { %1524 = shalt.err (!%p1521_p2)
}
   0xa   :  { %s1525_s27 = scalar_lea.vmem %s32_s19, 640  ;;  %p1530_p4 = scmp.lt.s32.totalorder %s32_s19, %s32_s19 }
   0xb   :  { %p1526_p3 = scmp.ne.s32.totalorder %s32_s19, %s1525_s27  ;;  %p1531_p5 = scmp.lt.s32.totalorder %s1525_s27, %s1525_s27 }
   0xd   :  { %p1532_p6 = por %p1531_p5, %p1530_p4 }
   0xf   :  { %p1533_p7 = pnand %p1532_p6, %p1526_p3 }
  0x11   :  { %1536 = shalt.err (!%p1533_p7)
}
  0x12   :  { %s1656_s28 = smov 64   ;;  %s1657_s29 = smov 4  }
  0x13   :  { %37 = dma.hbm_to_vmem [thread:$0]  %s2529_s1, 640, %s32_s19, [#allocation6], %s1656_s28, %s1656_s28, %s1657_s29  }
  0x14   :  { %s1658_s7 = smov [#allocation8]   ;;  %s1659_s9 = smov [#allocation2]  }
  0x15   :  { %s56_s8 = sshll.u32 %s1658_s7, 4  ;;  %s19_s10 = sshll.u32 %s1659_s9, 4  ;;  %s57_s8 = int_to_ptr.vmem [resolvable:$true] %s56_s8  ;;  %s20_s10 = int_to_ptr.vmem [resolvable:$true] %s19_s10 }
  0x16   :  { %s1537_s13 = scalar_lea.hbm %s2531_s3, 32 }
  0x17   :  { %p1538_p8 = scmp.ne.s32.totalorder %s2531_s3, %s1537_s13  ;;  %p1541_p9 = scmp.lt.u32.totalorder %s1537_s13, %s2531_s3 }
  0x19   :  { %p1543_p10 = pnand %p1541_p9, %p1538_p8 }
  0x1b   :  { %1546 = shalt.err (!%p1543_p10)
}
  0x1c   :  { %s1547_s1 = scalar_lea.vmem %s57_s8, 32  ;;  %p1552_p12 = scmp.lt.s32.totalorder %s57_s8, %s57_s8 }
  0x1d   :  { %p1548_p11 = scmp.ne.s32.totalorder %s57_s8, %s1547_s1  ;;  %p1553_p13 = scmp.lt.s32.totalorder %s1547_s1, %s1547_s1 }
  0x1f   :  { %p1554_p0 = por %p1553_p13, %p1552_p12 }
  0x21   :  { %p1555_p1 = pnand %p1554_p0, %p1548_p11 }
  0x23   :  { %1558 = shalt.err (!%p1555_p1)
}
  0x24   :  { %59 = dma.hbm_to_vmem [thread:$0]  %s2531_s3, 32, %s57_s8, [#allocation9]  }
  0x25   :  { %s1559_s22 = scalar_lea.hbm %s2528_s0, 1536 }
  0x26   :  { %p1560_p2 = scmp.ne.s32.totalorder %s2528_s0, %s1559_s22  ;;  %p1563_p3 = scmp.lt.u32.totalorder %s1559_s22, %s2528_s0 }
  0x28   :  { %p1565_p4 = pnand %p1563_p3, %p1560_p2 }
  0x2a   :  { %1568 = shalt.err (!%p1565_p4)
}
  0x2b   :  { %s1569_s27 = scalar_lea.vmem %s20_s10, 1536  ;;  %p1574_p6 = scmp.lt.s32.totalorder %s20_s10, %s20_s10 }
  0x2c   :  { %p1570_p5 = scmp.ne.s32.totalorder %s20_s10, %s1569_s27  ;;  %p1575_p7 = scmp.lt.s32.totalorder %s1569_s27, %s1569_s27 }
  0x2e   :  { %p1576_p8 = por %p1575_p7, %p1574_p6 }
  0x30   :  { %p1577_p9 = pnand %p1576_p8, %p1570_p5 }
  0x32   :  { %1580 = shalt.err (!%p1577_p9)
}
  0x33   :  { %s1660_s3 = smov 512   ;;  %s1661_s28 = smov 32  }
  0x34   :  { %25 = dma.hbm_to_vmem [thread:$0]  %s2528_s0, 1536, %s20_s10, [#allocation3], %s1660_s3, %s1660_s3, %s1661_s28  }
  0x35   :  { %s1662_s6 = smov [#allocation7]   ;;  %s1581_s11 = scalar_lea.hbm %s2530_s2, 1280 }
  0x36   :  { %s43_s7 = sshll.u32 %s1662_s6, 4  ;;  %p1582_p10 = scmp.ne.s32.totalorder %s2530_s2, %s1581_s11  ;;  %s44_s7 = int_to_ptr.vmem [resolvable:$true] %s43_s7 }
  0x37   :  { %p1585_p11 = scmp.lt.u32.totalorder %s1581_s11, %s2530_s2 }
  0x39   :  { %p1587_p12 = pnand %p1585_p11, %p1582_p10 }
  0x3b   :  { %1590 = shalt.err (!%p1587_p12)
}
  0x3c   :  { %s1591_s16 = scalar_lea.vmem %s44_s7, 1280  ;;  %p1596_p0 = scmp.lt.s32.totalorder %s44_s7, %s44_s7 }
  0x3d   :  { %p1592_p13 = scmp.ne.s32.totalorder %s44_s7, %s1591_s16  ;;  %p1597_p1 = scmp.lt.s32.totalorder %s1591_s16, %s1591_s16 }
  0x3f   :  { %p1598_p2 = por %p1597_p1, %p1596_p0 }
  0x41   :  { %p1599_p3 = pnand %p1598_p2, %p1592_p13 }
  0x43   :  { %1602 = shalt.err (!%p1599_p3)
}
  0x44   :  { %s1663_s0 = smov 128   ;;  %s1664_s10 = smov 8  }
  0x45   :  { %49 = dma.hbm_to_vmem [thread:$0]  %s2530_s2, 1280, %s44_s7, [#allocation6], %s1663_s0, %s1663_s0, %s1664_s10  }
  0x46   :  { %s1665_s18 = smov [#allocation10]   ;;  %s1603_s22 = scalar_lea.hbm %s2532_s4, 64 }
  0x47   :  { %s66_s19 = sshll.u32 %s1665_s18, 4  ;;  %p1604_p4 = scmp.ne.s32.totalorder %s2532_s4, %s1603_s22  ;;  %s67_s19 = int_to_ptr.vmem [resolvable:$true] %s66_s19 }
  0x48   :  { %p1607_p5 = scmp.lt.u32.totalorder %s1603_s22, %s2532_s4 }
  0x4a   :  { %p1609_p6 = pnand %p1607_p5, %p1604_p4 }
  0x4c   :  { %1612 = shalt.err (!%p1609_p6)
}
  0x4d   :  { %s1613_s27 = scalar_lea.vmem %s67_s19, 64  ;;  %p1618_p8 = scmp.lt.s32.totalorder %s67_s19, %s67_s19 }
  0x4e   :  { %p1614_p7 = scmp.ne.s32.totalorder %s67_s19, %s1613_s27  ;;  %p1619_p9 = scmp.lt.s32.totalorder %s1613_s27, %s1613_s27 }
  0x50   :  { %p1620_p10 = por %p1619_p9, %p1618_p8 }
  0x52   :  { %p1621_p11 = pnand %p1620_p10, %p1614_p7 }
  0x54   :  { %1624 = shalt.err (!%p1621_p11)
}
  0x55   :  { %69 = dma.hbm_to_vmem [thread:$0]  %s2532_s4, 64, %s67_s19, [#allocation9]  }
  0x56   :  { %1647 = dma.done.wait [#allocation3], 1536  }
  0x57   :  { %1648 = vsyncadd [#allocation3], 4294965760 }
  0x58   :  { %1649 = dma.done.wait [#allocation6], 1920  }
  0x59   :  { %1650 = vsyncadd [#allocation6], 4294965376 }
  0x5a   :  { %1651 = dma.done.wait [#allocation9], 96  }
  0x5b   :  { %1652 = vsyncadd [#allocation9], 4294967200  ;;  %v2534_v0 = vmov 0   ;;  %v86_v1 = vld [vmem:[#allocation2] sm:$0xff]  ;;  %v87_v3 = vld [vmem:[#allocation2 + $0x8] sm:$0xff]  ;;  %vm269_vm0 = vcmask 1041408  }
  0x5c   :  { %326 = vmatprep.mubr.bf16.mxu0 %v2534_v0  ;;  %409 = vmatprep.mubr.bf16.mxu1 %v2534_v0  ;;  %v90_v2 = vld [vmem:[#allocation2 + $0x20] sm:$0xff]  ;;  %v91_v5 = vld [vmem:[#allocation2 + $0x28] sm:$0xff]  ;;  %v88_v15 = vld [vmem:[#allocation2 + $0x10] sm:$0xff]  ;;  %vm253_vm1 = vcmask 162816   ;;  %vm1073_vm2 = vcmask 654336   ;;  %s1667_s4 = smov [#allocation11]  }
  0x5d   :  { %1340 = vset.pattern.permute.xlu0 %v2534_v0  ;;  %1341 = vset.pattern.permute.xlu1 %v2534_v0  ;;  %v1284_v4 = vcombine.high %v86_v1, %v90_v2  ;;  %v1283_v6 = vcombine.low %v86_v1, %v90_v2  ;;  %v94_v7 = vld [vmem:[#allocation2 + $0x40] sm:$0x33]  ;;  %v95_v8 = vld [vmem:[#allocation2 + $0x48] sm:$0x33]  ;;  %v1286_v9 = vcombine.high %v87_v3, %v91_v5  ;;  %v92_v16 = vld [vmem:[#allocation2 + $0x30] sm:$0xff]  ;;  %s1267_s28 = sshll.u32 %s1667_s4, 4  ;;  %s1268_s28 = int_to_ptr.vmem [resolvable:$true] %s1267_s28 }
  0x5e   :  { %v1285_v10 = vcombine.low %v87_v3, %v91_v5  ;;  %v1292_v11 = vcombine.high %v94_v7, %v94_v7  ;;  %v1294_v12 = vcombine.high %v95_v8, %v95_v8  ;;  %v1291_v13 = vcombine.low %v94_v7, %v94_v7  ;;  %v89_v17 = vld [vmem:[#allocation2 + $0x18] sm:$0xff]  ;;  %v1766_v22 = vld [vmem:[#allocation5] sm:$0xff]   ;;  %v96_v24 = vld [vmem:[#allocation2 + $0x50] sm:$0x33]  ;;  %s1625_s29 = scalar_lea.vmem %s1268_s28, 512  ;;  %p1630_p13 = scmp.lt.s32.totalorder %s1268_s28, %s1268_s28 }
  0x5f   :  { %294 = vmatprep.subr.bf16.mxu0 %v1284_v4  ;;  %v1293_v14 = vcombine.low %v95_v8, %v95_v8  ;;  %377 = vmatprep.subr.bf16.mxu1 %v1286_v9  ;;  %v93_v18 = vld [vmem:[#allocation2 + $0x38] sm:$0xff]  ;;  %v1288_v20 = vcombine.high %v88_v15, %v92_v16  ;;  %v1287_v26 = vcombine.low %v88_v15, %v92_v16  ;;  %v108_v29 = vld [vmem:[#allocation7] sm:$0xff]  ;;  %v109_v34 = vld [vmem:[#allocation7 + $0x8] sm:$0xff]  ;;  %p1626_p12 = scmp.ne.s32.totalorder %s1268_s28, %s1625_s29  ;;  %p1631_p0 = scmp.lt.s32.totalorder %s1625_s29, %s1625_s29 }
  0x60   :  { %295 = vmatpush1.bf16.msra.mxu0 %v1283_v6  ;;  %378 = vmatpush1.bf16.msra.mxu1 %v1285_v10  ;;  %v271_v19 = vsel %vm269_vm0, %v1291_v13, 0  ;;  %v1290_v23 = vcombine.high %v89_v17, %v93_v18  ;;  %v97_v25 = vld [vmem:[#allocation2 + $0x58] sm:$0x33]  ;;  %v1289_v27 = vcombine.low %v89_v17, %v93_v18  ;;  %v1295_v28 = vcombine.low %v96_v24, %v96_v24  ;;  %v111_v36 = vld [vmem:[#allocation7 + $0x18] sm:$0xff]  ;;  %v1347_v38 = vld [vmem:[#allocation5 + $0x8] sm:$0xff]  }
  0x61   :  { %1299 = vmatprep.subr.msk.bf16.mxu0 %vm269_vm0, %v1292_v11  ;;  %1305 = vmatprep.subr.msk.bf16.mxu1 %vm269_vm0, %v1294_v12  ;;  %v277_v21 = vsel %vm269_vm0, %v1293_v14, 0  ;;  %v1296_v30 = vcombine.high %v96_v24, %v96_v24  ;;  %v1297_v31 = vcombine.low %v97_v25, %v97_v25  ;;  %v110_v32 = vld [vmem:[#allocation7 + $0x10] sm:$0xff]  ;;  %v1298_v33 = vcombine.high %v97_v25, %v97_v25  ;;  %v112_v39 = vld [vmem:[#allocation7 + $0x20] sm:$0xff]  ;;  %v113_v40 = vld [vmem:[#allocation7 + $0x28] sm:$0xff]  ;;  %p1632_p1 = por %p1631_p0, %p1630_p13 }
  0x62   :  { %120 = vperm.xlu0 %1340, %v108_v29   ;;  %130 = vperm.xlu1 %1341, %v110_v32   ;;  %v283_v35 = vsel %vm269_vm0, %v1295_v28, 0  ;;  %v114_v41 = vld [vmem:[#allocation7 + $0x30] sm:$0xff]  ;;  %v115_v42 = vld [vmem:[#allocation7 + $0x38] sm:$0xff]  ;;  %v1348_v43 = vld [vmem:[#allocation5 + $0x10] sm:$0xff]  }
  0x63   :  { %v289_v37 = vsel %vm269_vm0, %v1297_v31, 0  ;;  %v116_v44 = vld [vmem:[#allocation7 + $0x40] sm:$0xff]  ;;  %v117_v45 = vld [vmem:[#allocation7 + $0x48] sm:$0xff]  ;;  %v1067_v46 = vld [vmem:[#allocation10] sm:$0x7]  ;;  %p1633_p2 = pnand %p1632_p1, %p1626_p12 }
  0x64   :  { %297 = vmatpush1.bf16.msra.mxu0 %v271_v19  ;;  %380 = vmatpush1.bf16.msra.mxu1 %v277_v21  ;;  %v1353_v47 = vld [vmem:[#allocation5 + $0x18] sm:$0xff]   ;;  %v1354_v48 = vld [vmem:[#allocation5 + $0x20] sm:$0xff]  }
  0x65   :  { %460 = vmatprep.subr.bf16.mxu0 %v1288_v20  ;;  %543 = vmatprep.subr.bf16.mxu1 %v1290_v23 }
  0x66   :  { %125 = vperm.xlu0 %1340, %v109_v34   ;;  %135 = vperm.xlu1 %1341, %v111_v36  }
  0x67   :  { %1300 = vmatmul.mubr.msk.bf16.vlgmr.msra.gmra.mrb[0].mxu0 %vm253_vm1, %v1766_v22  ;;  %1306 = vmatmul.mubr.msk.bf16.vlgmr.msra.gmra.mrb[0].mxu1 %vm253_vm1, %v1766_v22 }
  0x68   :  { %461 = vmatpush1.bf16.msra.mxu0 %v1287_v26  ;;  %544 = vmatpush1.bf16.msra.mxu1 %v1289_v27 }
  0x69   :  { %336 = vmatprep.mubr.bf16.mxu0 %v2534_v0  ;;  %419 = vmatprep.mubr.bf16.mxu1 %v2534_v0 }
  0x6a   :  { %1311 = vmatprep.subr.msk.bf16.mxu0 %vm269_vm0, %v1296_v30  ;;  %1317 = vmatprep.subr.msk.bf16.mxu1 %vm269_vm0, %v1298_v33 }
  0x6b   :  { %140 = vperm.xlu0 %1340, %v112_v39   ;;  %145 = vperm.xlu1 %1341, %v113_v40  }
  0x6c   :  { %463 = vmatpush1.bf16.msra.mxu0 %v283_v35  ;;  %546 = vmatpush1.bf16.msra.mxu1 %v289_v37 }
  0x6f   :  { %1301 = vmatmul.mubr.msk.bf16.gmra.mrb[4].mxu0 %vm253_vm1, %v1347_v38  ;;  %1307 = vmatmul.mubr.msk.bf16.gmra.mrb[4].mxu1 %vm253_vm1, %v1347_v38 }
  0x70   :  { %346 = vmatprep.mubr.bf16.mxu0 %v2534_v0  ;;  %429 = vmatprep.mubr.bf16.mxu1 %v2534_v0 }
  0x71   :  { %150 = vperm.xlu0 %1340, %v114_v41   ;;  %155 = vperm.xlu1 %1341, %v115_v42  }
  0x75   :  { %160 = vperm.xlu0 %1340, %v116_v44   ;;  %165 = vperm.xlu1 %1341, %v117_v45  }
  0x77   :  { %1302 = vmatmul.mubr.msk.bf16.gmra.mrb[8].mxu0 %vm253_vm1, %v1348_v43  ;;  %1308 = vmatmul.mubr.msk.bf16.gmra.mrb[8].mxu1 %vm253_vm1, %v1348_v43 }
  0x78   :  { %356 = vmatprep.mubr.bf16.mxu0 %v2534_v0  ;;  %439 = vmatprep.mubr.bf16.mxu1 %v2534_v0 }
  0x79   :  { %1070 = vperm.xlu0 %1340, %v1067_v46  }
  0x7f   :  { %1303 = vmatmul.mubr.msk.bf16.gmra.mrb[12].mxu0 %vm253_vm1, %v1353_v47  ;;  %1309 = vmatmul.mubr.msk.bf16.gmra.mrb[12].mxu1 %vm253_vm1, %v1353_v47 }
  0x80   :  { %366 = vmatprep.mubr.bf16.mxu0 %v2534_v0  ;;  %449 = vmatprep.mubr.bf16.mxu1 %v2534_v0 }
  0x87   :  { %1304 = vmatmul.mubr.msk.bf16.gmra.mrb[16].mxu0 %vm253_vm1, %v1354_v48  ;;  %1310 = vmatmul.mubr.msk.bf16.gmra.mrb[16].mxu1 %vm253_vm1, %v1354_v48 }
  0x88   :  { %492 = vmatprep.mubr.bf16.mxu0 %v2534_v0  ;;  %575 = vmatprep.mubr.bf16.mxu1 %v2534_v0 }
  0x8f   :  { %1312 = vmatmul.mubr.msk.bf16.vlgmr.msra.gmra.mrb[20].mxu0 %vm253_vm1, %v1766_v22  ;;  %1318 = vmatmul.mubr.msk.bf16.vlgmr.msra.gmra.mrb[20].mxu1 %vm253_vm1, %v1766_v22 }
  0x90   :  { %502 = vmatprep.mubr.bf16.mxu0 %v2534_v0  ;;  %585 = vmatprep.mubr.bf16.mxu1 %v2534_v0 }
  0x97   :  { %1313 = vmatmul.mubr.msk.bf16.gmra.mrb[24].mxu0 %vm253_vm1, %v1347_v38  ;;  %1319 = vmatmul.mubr.msk.bf16.gmra.mrb[24].mxu1 %vm253_vm1, %v1347_v38 }
  0x98   :  { %512 = vmatprep.mubr.bf16.mxu0 %v2534_v0  ;;  %595 = vmatprep.mubr.bf16.mxu1 %v2534_v0 }
  0x9f   :  { %1314 = vmatmul.mubr.msk.bf16.gmra.mrb[28].mxu0 %vm253_vm1, %v1348_v43  ;;  %1320 = vmatmul.mubr.msk.bf16.gmra.mrb[28].mxu1 %vm253_vm1, %v1348_v43 }
  0xa0   :  { %522 = vmatprep.mubr.bf16.mxu0 %v2534_v0  ;;  %605 = vmatprep.mubr.bf16.mxu1 %v2534_v0 }
  0xa7   :  { %1315 = vmatmul.mubr.msk.bf16.gmra.mrb[32].mxu0 %vm253_vm1, %v1353_v47  ;;  %1321 = vmatmul.mubr.msk.bf16.gmra.mrb[32].mxu1 %vm253_vm1, %v1353_v47 }
  0xa8   :  { %532 = vmatprep.mubr.bf16.mxu0 %v2534_v0  ;;  %615 = vmatprep.mubr.bf16.mxu1 %v2534_v0 }
  0xaf   :  { %1316 = vmatmul.mubr.msk.bf16.gmra.mrb[36].mxu0 %vm253_vm1, %v1354_v48  ;;  %1322 = vmatmul.mubr.msk.bf16.gmra.mrb[36].mxu1 %vm253_vm1, %v1354_v48 }
  0xb0   :  { %1109 = vmatprep.mubr.bf16.mxu0 %v2534_v0  ;;  %1150 = vmatprep.mubr.bf16.mxu1 %v2534_v0 }
  0xe1   :  { %v1816_v49 = vpop.permute.xlu0 %120  ;;  %v1818_v50 = vpop.permute.xlu1 %130 }
  0xe5   :  { %v1820_v51 = vpop.permute.xlu0 %125  ;;  %v1830_v15 = vpop.permute.xlu1 %135 }
  0xe6   :  { %2550 = vst [vmem:[#allocation16_spill] sm:$0xff] %v1830_v15 }
  0xea   :  { %v1843_v41 = vpop.permute.xlu0 %140 }
  0xeb   :  { %2551 = vst [vmem:[#allocation17_spill] sm:$0xff] %v1843_v41 }
 0x13a   :  { %v328_v52 = vpop.f32.mrb[0].mxu0  ;;  %v411_v54 = vpop.f32.mrb[0].mxu1 }
 0x13b   :  { %v329_v53 = vadd.f32 %v328_v52, %v1816_v49  ;;  %v330_v55 = vpop.f32.mrb[1].mxu0  ;;  %v412_v56 = vadd.f32 %v411_v54, %v1816_v49  ;;  %v413_v58 = vpop.f32.mrb[1].mxu1 }
 0x13c   :  { %v331_v57 = vadd.f32 %v330_v55, %v1816_v49  ;;  %v332_v59 = vpop.f32.mrb[2].mxu0  ;;  %v414_v61 = vadd.f32 %v413_v58, %v1816_v49  ;;  %v415_v63 = vpop.f32.mrb[2].mxu1 }
 0x13d   :  { %v706_v60 = vmul.f32 0.70710677, %v329_v53  ;;  %v333_v62 = vadd.f32 %v332_v59, %v1820_v51  ;;  %v334_v1 = vpop.f32.mrb[3].mxu0  ;;  %v708_v2 = vmul.f32 0.70710677, %v412_v56  ;;  %v417_v5 = vpop.f32.mrb[3].mxu1  ;;  %v416_v7 = vadd.f32 %v415_v63, %v1820_v51 }
 0x13e   :  { %v707_v3 = vmul.f32 0.70710677, %v331_v57  ;;  %v709_v4 = vmul.f32 0.70710677, %v414_v61  ;;  %v335_v8 = vadd.f32 %v334_v1, %v1820_v51  ;;  %v418_v9 = vadd.f32 %v417_v5, %v1820_v51 }
 0x13f   :  { %1355 = verf.f32 %v706_v60  ;;  %v714_v6 = vmul.f32 0.70710677, %v333_v62  ;;  %v716_v10 = vmul.f32 0.70710677, %v416_v7  ;;  %v626_v24 = vmul.f32 0.5, %v329_v53 }
 0x140   :  { %1357 = verf.f32 %v708_v2  ;;  %v715_v12 = vmul.f32 0.70710677, %v335_v8  ;;  %v717_v13 = vmul.f32 0.70710677, %v418_v9  ;;  %v628_v25 = vmul.f32 0.5, %v412_v56 }
 0x141   :  { %1359 = verf.f32 %v707_v3  ;;  %v1836_v29 = vmul.f32 0.5, %v331_v57  ;;  %v1840_v36 = vmul.f32 0.5, %v414_v61  ;;  %v634_v37 = vmul.f32 0.5, %v333_v62 }
 0x142   :  { %1361 = verf.f32 %v709_v4  ;;  %v338_v11 = vpop.f32.mrb[4].mxu0  ;;  %v421_v14 = vpop.f32.mrb[4].mxu1  ;;  %v636_v40 = vmul.f32 0.5, %v416_v7  ;;  %v1848_v47 = vmul.f32 0.5, %v335_v8  ;;  %v1850_v55 = vmul.f32 0.5, %v418_v9 }
 0x143   :  { %1363 = verf.f32 %v714_v6  ;;  %v339_v16 = vadd.f32 %v338_v11, %v1818_v50  ;;  %v422_v17 = vadd.f32 %v421_v14, %v1818_v50  ;;  %v340_v18 = vpop.f32.mrb[5].mxu0  ;;  %v423_v19 = vpop.f32.mrb[5].mxu1 }
 0x144   :  { %1365 = verf.f32 %v716_v10  ;;  %v341_v20 = vadd.f32 %v340_v18, %v1818_v50  ;;  %v424_v21 = vadd.f32 %v423_v19, %v1818_v50  ;;  %v342_v22 = vpop.f32.mrb[6].mxu0  ;;  %v425_v23 = vpop.f32.mrb[6].mxu1 }
 0x145   :  { %1367 = verf.f32 %v715_v12  ;;  %v722_v26 = vmul.f32 0.70710677, %v339_v16  ;;  %v344_v27 = vpop.f32.mrb[7].mxu0  ;;  %v427_v28 = vpop.f32.mrb[7].mxu1  ;;  %v724_v30 = vmul.f32 0.70710677, %v422_v17  ;;  %v343_v33 = vadd.f32 %v342_v22, %v1830_v15 }
 0x146   :  { %1369 = verf.f32 %v717_v13  ;;  %v723_v31 = vmul.f32 0.70710677, %v341_v20  ;;  %v725_v32 = vmul.f32 0.70710677, %v424_v21  ;;  %v426_v34 = vadd.f32 %v425_v23, %v1830_v15 }
 0x147   :  { %1371 = verf.f32 %v722_v26  ;;  %v345_v38 = vadd.f32 %v344_v27, %v1830_v15  ;;  %v730_v42 = vmul.f32 0.70710677, %v343_v33  ;;  %v1846_v43 = vadd.f32 %v427_v28, %v1830_v15  ;;  %v1879_v27 = vpop.permute.xlu1 %145 }
 0x148   :  { %1373 = verf.f32 %v724_v30  ;;  %v732_v48 = vmul.f32 0.70710677, %v426_v34  ;;  %v1852_v56 = vmul.f32 0.5, %v339_v16  ;;  %v1854_v57 = vmul.f32 0.5, %v422_v17  ;;  %2552 = vst [vmem:[#allocation18_spill] sm:$0xff] %v1879_v27 }
 0x149   :  { %v1356_v35 = vpop.eup %1355  ;;  %1375 = verf.f32 %v723_v31  ;;  %v1856_v62 = vmul.f32 0.5, %v341_v20  ;;  %v731_v63 = vmul.f32 0.70710677, %v345_v38  ;;  %v1860_v5 = vmul.f32 0.5, %v424_v21 }
 0x14a   :  { %v1358_v39 = vpop.eup %1357  ;;  %v348_v44 = vpop.f32.mrb[8].mxu0  ;;  %v866_v46 = vadd.f32 1.0, %v1356_v35  ;;  %1377 = verf.f32 %v725_v32  ;;  %v650_v6 = vmul.f32 0.5, %v343_v33  ;;  %v733_v7 = vmul.f32 0.70710677, %v1846_v43 }
 0x14b   :  { %v1360_v45 = vpop.eup %1359  ;;  %v431_v52 = vpop.f32.mrb[8].mxu1  ;;  %1379 = verf.f32 %v730_v42  ;;  %v868_v61 = vadd.f32 1.0, %v1358_v39  ;;  %v652_v11 = vmul.f32 0.5, %v426_v34  ;;  %v349_v12 = vadd.f32 %v348_v44, %v1843_v41 }
 0x14c   :  { %v350_v53 = vpop.f32.mrb[9].mxu0  ;;  %v1362_v54 = vpop.eup %1361  ;;  %1381 = verf.f32 %v732_v48  ;;  %v1865_v9 = vmul.f32 %v866_v46, %v626_v24  ;;  %v867_v14 = vadd.f32 1.0, %v1360_v45  ;;  %v432_v17 = vadd.f32 %v431_v52, %v1843_v41 }
 0x14d   :  { %v433_v58 = vpop.f32.mrb[9].mxu1  ;;  %v352_v59 = vpop.f32.mrb[10].mxu0  ;;  %1383 = verf.f32 %v731_v63  ;;  %v1871_v19 = vmul.f32 %v868_v61, %v628_v25  ;;  %v869_v20 = vadd.f32 1.0, %v1362_v54  ;;  %v738_v22 = vmul.f32 0.70710677, %v349_v12 }
 0x14e   :  { %v1364_v60 = vpop.eup %1363  ;;  %v435_v1 = vpop.f32.mrb[10].mxu1  ;;  %v1877_v26 = vmul.f32 0.5, %v345_v38  ;;  %1385 = verf.f32 %v733_v7  ;;  %v740_v28 = vmul.f32 0.70710677, %v432_v17  ;;  %v351_v39 = vadd.f32 %v350_v53, %v1843_v41 }
 0x14f   :  { %v1858_v2 = vpop.f32.mrb[11].mxu0  ;;  %v1366_v3 = vpop.eup %1365  ;;  %v874_v4 = vadd.f32 1.0, %v1364_v60  ;;  %1387 = verf.f32 %v738_v22  ;;  %v1896_v46 = vmul.f32 %v867_v14, %v1836_v29  ;;  %v1899_v48 = vmul.f32 %v869_v20, %v1840_v36 }
 0x150   :  { %v1863_v8 = vpop.f32.mrb[11].mxu1  ;;  %v876_v10 = vadd.f32 1.0, %v1366_v3  ;;  %v1368_v13 = vpop.eup %1367  ;;  %1389 = verf.f32 %v740_v28  ;;  %v1902_v52 = vmul.f32 0.5, %v1846_v43  ;;  %v353_v54 = vadd.f32 %v352_v59, %v1879_v27 }
 0x151   :  { %v1868_v16 = vmul.f32 %v874_v4, %v634_v37  ;;  %v1370_v18 = vpop.eup %1369  ;;  %v875_v32 = vadd.f32 1.0, %v1368_v13  ;;  %v1909_v63 = vmul.f32 0.5, %v349_v12  ;;  %v739_v3 = vmul.f32 0.70710677, %v351_v39  ;;  %v1925_v28 = vpop.permute.xlu0 %150 }
 0x152   :  { %v1873_v21 = vmul.f32 %v876_v10, %v636_v40  ;;  %v1372_v23 = vpop.eup %1371  ;;  %v1881_v30 = vpop.f32.mrb[12].mxu0  ;;  %v434_v40 = vadd.f32 %v433_v58, %v1843_v41  ;;  %v877_v61 = vadd.f32 1.0, %v1370_v18  ;;  %v436_v29 = vadd.f32 %v435_v1, %v1879_v27  ;;  %2553 = vst [vmem:[#allocation19_spill] sm:$0xff] %v1925_v28 }
 0x153   :  { %v1374_v31 = vpop.eup %1373  ;;  %v882_v33 = vadd.f32 1.0, %v1372_v23  ;;  %v1885_v34 = vpop.f32.mrb[12].mxu1  ;;  %v955_v7 = vmul.f32 %v875_v32, %v1848_v47  ;;  %v1915_v10 = vmul.f32 0.5, %v432_v17  ;;  %1391 = verf.f32 %v739_v3 }
 0x154   :  { %v1887_v35 = vpop.f32.mrb[13].mxu0  ;;  %v1376_v37 = vpop.eup %1375  ;;  %v884_v38 = vadd.f32 1.0, %v1374_v31  ;;  %v741_v59 = vmul.f32 0.70710677, %v434_v40  ;;  %v746_v1 = vmul.f32 0.70710677, %v353_v54  ;;  %v438_v32 = vadd.f32 %v1863_v8, %v1879_v27 }
 0x155   :  { %v1891_v42 = vpop.f32.mrb[13].mxu1  ;;  %v1893_v44 = vpop.f32.mrb[14].mxu0  ;;  %v1918_v13 = vmul.f32 %v882_v33, %v1852_v56  ;;  %v883_v12 = vadd.f32 1.0, %v1376_v37  ;;  %v748_v17 = vmul.f32 0.70710677, %v436_v29  ;;  %v355_v56 = vadd.f32 %v1858_v2, %v1879_v27 }
 0x156   :  { %v1378_v45 = vpop.eup %1377  ;;  %v1905_v60 = vpop.f32.mrb[14].mxu1  ;;  %v1921_v14 = vmul.f32 %v884_v38, %v1854_v57  ;;  %1393 = verf.f32 %v741_v59  ;;  %v1934_v57 = vmul.f32 %v877_v61, %v1850_v55  ;;  %v1946_v38 = vmul.f32 0.5, %v351_v39 }
 0x157   :  { %v1907_v53 = vpop.f32.mrb[15].mxu0  ;;  %v1380_v58 = vpop.eup %1379  ;;  %v885_v20 = vadd.f32 1.0, %v1378_v45  ;;  %1395 = verf.f32 %v746_v1  ;;  %v1948_v45 = vmul.f32 0.5, %v434_v40  ;;  %v1955_v8 = vmul.f32 %v883_v12, %v1856_v62 }
 0x158   :  { %v1912_v4 = vpop.f32.mrb[15].mxu1  ;;  %v1382_v36 = vpop.eup %1381  ;;  %v890_v43 = vadd.f32 1.0, %v1380_v58  ;;  %1397 = verf.f32 %v748_v17  ;;  %v359_v40 = vadd.f32 %v1881_v30, %v1925_v28  ;;  %v442_v1 = vadd.f32 %v1885_v34, %v1925_v28 }
 0x159   :  { %v892_v18 = vadd.f32 1.0, %v1382_v36  ;;  %v1384_v23 = vpop.eup %1383  ;;  %v747_v36 = vmul.f32 0.70710677, %v355_v56  ;;  %v1960_v39 = vmul.f32 %v885_v20, %v1860_v5  ;;  %v1968_v17 = vadd.f32 %v1887_v35, %v1925_v28  ;;  %v1979_v34 = vpop.permute.xlu1 %155 }
 0x15a   :  { %v1923_v22 = vmul.f32 %v890_v43, %v650_v6  ;;  %v1931_v31 = vpop.f32.mrb[16].mxu0  ;;  %v1940_v33 = vpop.f32.mrb[16].mxu1  ;;  %v891_v3 = vadd.f32 1.0, %v1384_v23  ;;  %v749_v43 = vmul.f32 0.70710677, %v438_v32  ;;  %v1976_v5 = vadd.f32 %v1891_v42, %v1925_v28  ;;  %2554 = vst [vmem:[#allocation20_spill] sm:$0xff] %v1979_v34 }
 0x15b   :  { %v1927_v47 = vmul.f32 %v892_v18, %v652_v11  ;;  %v1942_v11 = vpop.f32.mrb[17].mxu0  ;;  %v1386_v37 = vpop.eup %1385  ;;  %1399 = verf.f32 %v747_v36  ;;  %v1027_v20 = vpack.c.bf16 %v955_v7, %v1896_v46  ;;  %v666_v0 = vmul.f32 0.5, %v353_v54 }
 0x15c   :  { %v1950_v55 = vpop.f32.mrb[17].mxu1  ;;  %v1952_v58 = vpop.f32.mrb[18].mxu0  ;;  %v893_v23 = vadd.f32 1.0, %v1386_v37  ;;  %1401 = verf.f32 %v749_v43  ;;  %v754_v2 = vmul.f32 0.70710677, %v359_v40  ;;  %v1982_v35 = vmul.f32 %v891_v3, %v1877_v26 }
 0x15d   :  { %v1388_v61 = vpop.eup %1387  ;;  %v1957_v59 = vpop.f32.mrb[18].mxu1  ;;  %v668_v25 = vmul.f32 0.5, %v436_v29  ;;  %v756_v24 = vmul.f32 0.70710677, %v442_v1  ;;  %1077 = vmatprep.subr.bf16.mxu0 %v1027_v20  ;;  %v1986_v36 = vmul.f32 0.5, %v355_v56  ;;  %v2556_v54 = vpack.c.bf16 %v1868_v16, %v1865_v9 }
 0x15e   :  { %v1390_v18 = vpop.eup %1389  ;;  %v1970_v62 = vpop.f32.mrb[19].mxu0  ;;  %v898_v30 = vadd.f32 1.0, %v1388_v61  ;;  %1403 = verf.f32 %v754_v2  ;;  %v755_v42 = vmul.f32 0.70710677, %v1968_v17  ;;  %v757_v46 = vmul.f32 0.70710677, %v1976_v5 }
 0x15f   :  { %v1972_v12 = vpop.f32.mrb[19].mxu1  ;;  %v900_v6 = vadd.f32 1.0, %v1390_v18  ;;  %v1984_v37 = vpop.permute.xlu0 %160  ;;  %1078 = vmatpush1.bf16.msra.mxu0 %v2556_v54  ;;  %v1996_v29 = vmul.f32 %v893_v23, %v1902_v52  ;;  %1405 = verf.f32 %v756_v24  ;;  %v1029_v56 = vpack.c.bf16 %v1934_v57, %v1899_v48 }
 0x160   :  { %2555 = vst [vmem:[#allocation21_spill] sm:$0xff] %v1984_v37  ;;  %v1392_v26 = vpop.eup %1391  ;;  %v363_v2 = vadd.f32 %v1893_v44, %v1979_v34  ;;  %v2007_v9 = vmul.f32 %v898_v30, %v1909_v63  ;;  %v2009_v16 = vmul.f32 0.5, %v438_v32  ;;  %v446_v52 = vadd.f32 %v1905_v60, %v1979_v34 }
 0x161   :  { %v1394_v43 = vpop.eup %1393  ;;  %v365_v24 = vadd.f32 %v1907_v53, %v1979_v34  ;;  %v2020_v18 = vmul.f32 %v900_v6, %v1915_v10  ;;  %v2022_v23 = vmul.f32 0.5, %v359_v40  ;;  %1407 = verf.f32 %v755_v42  ;;  %1118 = vmatprep.subr.bf16.mxu1 %v1029_v56 }
 0x162   :  { %v1993_v7 = vpop.f32.mrb[20].mxu0  ;;  %v2002_v61 = vpop.f32.mrb[20].mxu1  ;;  %v762_v63 = vmul.f32 0.70710677, %v363_v2  ;;  %v2028_v53 = vmul.f32 0.5, %v442_v1  ;;  %1409 = verf.f32 %v757_v46  ;;  %v2557_v28 = vpack.c.bf16 %v1873_v21, %v1871_v19 }
 0x163   :  { %v2004_v3 = vpop.f32.mrb[21].mxu0  ;;  %v2015_v48 = vpop.f32.mrb[21].mxu1  ;;  %v764_v54 = vmul.f32 0.70710677, %v446_v52  ;;  %v899_v6 = vadd.f32 1.0, %v1392_v26  ;;  %v369_v1 = vadd.f32 %v1931_v31, %v1984_v37  ;;  %v901_v27 = vadd.f32 1.0, %v1394_v43 }
 0x164   :  { %v2017_v57 = vpop.f32.mrb[22].mxu0  ;;  %v1396_v44 = vpop.eup %1395  ;;  %1119 = vmatpush1.bf16.msra.mxu1 %v2557_v28  ;;  %1411 = verf.f32 %v762_v63  ;;  %v763_v42 = vmul.f32 0.70710677, %v365_v24  ;;  %v2044_v19 = vmul.f32 0.5, %v1968_v17  ;;  %v452_v21 = vadd.f32 %v1940_v33, %v1984_v37 }
 0x165   :  { %v2024_v32 = vpop.f32.mrb[22].mxu1  ;;  %v2026_v20 = vpop.f32.mrb[23].mxu0  ;;  %v906_v30 = vadd.f32 1.0, %v1396_v44  ;;  %1413 = verf.f32 %v764_v54  ;;  %v448_v44 = vadd.f32 %v1912_v4, %v1979_v34  ;;  %v2051_v26 = vmul.f32 0.5, %v1976_v5 }
 0x166   :  { %v1398_v60 = vpop.eup %1397  ;;  %v2033_v10 = vpop.f32.mrb[23].mxu1  ;;  %1415 = verf.f32 %v763_v42  ;;  %v770_v43 = vmul.f32 0.70710677, %v369_v1  ;;  %v2062_v33 = vadd.f32 %v1942_v11, %v1984_v37  ;;  %v682_v54 = vmul.f32 0.5, %v363_v2 }
 0x167   :  { %v908_v40 = vadd.f32 1.0, %v1398_v60  ;;  %v2035_v56 = vmul.f32 %v906_v30, %v666_v0  ;;  %v1400_v46 = vpop.eup %1399  ;;  %v765_v4 = vmul.f32 0.70710677, %v448_v44  ;;  %v2073_v17 = vmul.f32 %v901_v27, %v1948_v45 }
 0x168   :  { %v1402_v28 = vpop.eup %1401  ;;  %v907_v30 = vadd.f32 1.0, %v1400_v46  ;;  %v684_v11 = vmul.f32 0.5, %v446_v52  ;;  %v2081_v46 = vmul.f32 0.5, %v365_v24  ;;  %v2087_v45 = vmul.f32 0.5, %v448_v44 }
 0x169   :  { %v2041_v41 = vmul.f32 %v908_v40, %v668_v25  ;;  %v2056_v25 = vmul.f32 %v899_v6, %v1946_v38  ;;  %v1404_v5 = vpop.eup %1403  ;;  %1417 = verf.f32 %v765_v4  ;;  %v772_v40 = vmul.f32 0.70710677, %v452_v21 }
 0x16a   :  { %v2053_v31 = vpop.f32.mrb[24].mxu0  ;;  %v2064_v63 = vpop.f32.mrb[24].mxu1  ;;  %v909_v0 = vadd.f32 1.0, %v1402_v28  ;;  %1419 = verf.f32 %v770_v43  ;;  %v914_v2 = vadd.f32 1.0, %v1404_v5  ;;  %v454_v4 = vadd.f32 %v1950_v55, %v1984_v37 }
 0x16b   :  { %v2066_v60 = vpop.f32.mrb[25].mxu0  ;;  %v2068_v42 = vpop.f32.mrb[25].mxu1  ;;  %1421 = verf.f32 %v772_v40  ;;  %v771_v52 = vmul.f32 0.70710677, %v2062_v33  ;;  %v1035_v28 = vpack.c.bf16 %v1982_v35, %v1955_v8  ;;  %v1037_v43 = vpack.c.bf16 %v1996_v29, %v1960_v39 }
 0x16c   :  { %2558 = vst [vmem:[#allocation22_spill] sm:$0xff] %v2066_v60  ;;  %v2070_v38 = vpop.f32.mrb[26].mxu0  ;;  %v1406_v6 = vpop.eup %1405  ;;  %v2095_v24 = vmul.f32 %v907_v30, %v1986_v36  ;;  %v2099_v55 = vmul.f32 0.5, %v452_v21  ;;  %v2102_v44 = vmul.f32 %v909_v0, %v2009_v16  ;;  %v2109_v36 = vmul.f32 %v914_v2, %v2022_v23 }
 0x16d   :  { %2559 = vst [vmem:[#allocation23_spill] sm:$0xff] %v2070_v38  ;;  %v2075_v34 = vpop.f32.mrb[26].mxu1  ;;  %v2077_v15 = vpop.f32.mrb[27].mxu0  ;;  %v916_v40 = vadd.f32 1.0, %v1406_v6  ;;  %1079 = vmatprep.subr.bf16.mxu0 %v1035_v28  ;;  %1120 = vmatprep.subr.bf16.mxu1 %v1037_v43  ;;  %v2563_v21 = vpack.c.bf16 %v1923_v22, %v1918_v13  ;;  %v2564_v16 = vpack.c.bf16 %v1927_v47, %v1921_v14  ;;  %1423 = verf.f32 %v771_v52 }
 0x16e   :  { %2560 = vst [vmem:[#allocation24_spill] sm:$0xff] %v2077_v15  ;;  %v2079_v60 = vpop.permute.xlu1 %165  ;;  %v2085_v38 = vpop.f32.mrb[27].mxu1  ;;  %v2097_v15 = vmul.f32 0.5, %v369_v1 }
 0x16f   :  { %2561 = vst [vmem:[#allocation25_spill] sm:$0xff] %v2079_v60  ;;  %2562 = vst [vmem:[#allocation26_spill] sm:$0xff] %v2085_v38  ;;  %v1408_v27 = vpop.eup %1407  ;;  %v773_v38 = vmul.f32 0.70710677, %v454_v4  ;;  %v373_v8 = vadd.f32 %v1952_v58, %v2079_v60  ;;  %v456_v39 = vadd.f32 %v1957_v59, %v2079_v60  ;;  %1080 = vmatpush1.bf16.msra.mxu0 %v2563_v21  ;;  %1121 = vmatpush1.bf16.msra.mxu1 %v2564_v16 }
 0x170   :  { %v1410_v5 = vpop.eup %1409  ;;  %v915_v29 = vadd.f32 1.0, %v1408_v27  ;;  %v375_v58 = vadd.f32 %v1970_v62, %v2079_v60  ;;  %v458_v23 = vadd.f32 %v1972_v12, %v2079_v60  ;;  %v2128_v22 = vmul.f32 %v916_v40, %v2028_v53 }
 0x171   :  { %v1412_v37 = vpop.eup %1411  ;;  %v778_v30 = vmul.f32 0.70710677, %v373_v8  ;;  %1425 = verf.f32 %v773_v38  ;;  %v780_v47 = vmul.f32 0.70710677, %v456_v39  ;;  %v917_v27 = vadd.f32 1.0, %v1410_v5 }
 0x172   :  { %v1414_v35 = vpop.eup %1413  ;;  %v922_v1 = vadd.f32 1.0, %v1412_v37  ;;  %v2119_v0 = vpop.f32.mrb[28].mxu0  ;;  %v779_v12 = vmul.f32 0.70710677, %v375_v58  ;;  %v2147_v38 = vmul.f32 0.5, %v454_v4  ;;  %v497_v4 = vadd.f32 %v2004_v3, %v1816_v49 }
 0x173   :  { %v924_v59 = vadd.f32 1.0, %v1414_v35  ;;  %v2123_v37 = vpop.f32.mrb[28].mxu1  ;;  %v2125_v6 = vpop.f32.mrb[29].mxu0  ;;  %1427 = verf.f32 %v778_v30  ;;  %v781_v16 = vmul.f32 0.70710677, %v458_v23  ;;  %v495_v30 = vadd.f32 %v1993_v7, %v1816_v49 }
 0x174   :  { %v1416_v13 = vpop.eup %1415  ;;  %v2130_v14 = vmul.f32 %v922_v1, %v682_v54  ;;  %v2132_v62 = vpop.f32.mrb[29].mxu1  ;;  %v2145_v54 = vmul.f32 0.5, %v2062_v33  ;;  %1429 = verf.f32 %v780_v47  ;;  %v578_v33 = vadd.f32 %v2002_v61, %v1816_v49 }
 0x175   :  { %v2134_v2 = vpop.f32.mrb[30].mxu0  ;;  %v2136_v52 = vmul.f32 %v924_v59, %v684_v11  ;;  %v2138_v28 = vpop.f32.mrb[30].mxu1  ;;  %v923_v1 = vadd.f32 1.0, %v1416_v13  ;;  %1431 = verf.f32 %v779_v12  ;;  %v2160_v47 = vmul.f32 %v915_v29, %v2044_v19 }
 0x176   :  { %v2140_v43 = vpop.f32.mrb[31].mxu0  ;;  %v1418_v35 = vpop.eup %1417  ;;  %v2163_v53 = vmul.f32 %v917_v27, %v2051_v26  ;;  %1433 = verf.f32 %v781_v16  ;;  %v2167_v13 = vadd.f32 %v2015_v48, %v1816_v49  ;;  %v700_v7 = vmul.f32 0.5, %v456_v39 }
 0x177   :  { %v2149_v40 = vpop.f32.mrb[31].mxu1  ;;  %v1420_v11 = vpop.eup %1419  ;;  %v925_v21 = vadd.f32 1.0, %v1418_v35  ;;  %v698_v35 = vmul.f32 0.5, %v373_v8  ;;  %v710_v5 = vmul.f32 0.70710677, %v495_v30  ;;  %v2172_v61 = vmul.f32 %v923_v1, %v2081_v46 }
 0x178   :  { %v1422_v59 = vpop.eup %1421  ;;  %v930_v12 = vadd.f32 1.0, %v1420_v11  ;;  %v2174_v19 = vmul.f32 0.5, %v375_v58  ;;  %v712_v29 = vmul.f32 0.70710677, %v578_v33  ;;  %v2183_v48 = vmul.f32 0.5, %v458_v23 }
 0x179   :  { %v932_v3 = vadd.f32 1.0, %v1422_v59  ;;  %v2181_v49 = vmul.f32 %v925_v21, %v2087_v45  ;;  %1435 = verf.f32 %v710_v5  ;;  %v711_v8 = vmul.f32 0.70710677, %v497_v4  ;;  %v1424_v11 = vpop.eup %1423 }
 0x17a   :  { %v2169_v60 = vpop.f32.mrb[32].mxu0  ;;  %v2176_v26 = vpop.f32.mrb[32].mxu1  ;;  %1437 = verf.f32 %v712_v29  ;;  %v713_v46 = vmul.f32 0.70710677, %v2167_v13  ;;  %v1043_v58 = vpack.c.bf16 %v2095_v24, %v2056_v25  ;;  %v1045_v1 = vpack.c.bf16 %v2102_v44, %v2073_v17 }
 0x17b   :  { %v2178_v27 = vpop.f32.mrb[33].mxu0  ;;  %v2185_v39 = vpop.f32.mrb[33].mxu1  ;;  %v2197_v5 = vmul.f32 %v930_v12, %v2097_v15  ;;  %v2199_v21 = vmul.f32 0.5, %v495_v30  ;;  %v499_v59 = vadd.f32 %v2017_v57, %v1820_v51  ;;  %v582_v29 = vadd.f32 %v2024_v32, %v1820_v51 }
 0x17c   :  { %v2192_v16 = vpop.f32.mrb[34].mxu0  ;;  %v2194_v45 = vpop.f32.mrb[34].mxu1  ;;  %v2210_v44 = vmul.f32 %v932_v3, %v2099_v55  ;;  %1081 = vmatprep.subr.bf16.mxu0 %v1043_v58  ;;  %1122 = vmatprep.subr.bf16.mxu1 %v1045_v1  ;;  %v501_v15 = vadd.f32 %v2026_v20, %v1820_v51  ;;  %v584_v57 = vadd.f32 %v2033_v10, %v1820_v51  ;;  %v931_v32 = vadd.f32 1.0, %v1424_v11 }
 0x17d   :  { %2565 = vst [vmem:[#allocation27_spill] sm:$0xff] %v2194_v45  ;;  %v1426_v23 = vpop.eup %1425  ;;  %v2205_v25 = vpop.f32.mrb[35].mxu0  ;;  %v2212_v45 = vmul.f32 0.5, %v578_v33  ;;  %1439 = verf.f32 %v711_v8  ;;  %v2569_v55 = vpack.c.bf16 %v2041_v41, %v2020_v18  ;;  %v720_v3 = vmul.f32 0.70710677, %v582_v29 }
 0x17e   :  { %2566 = vst [vmem:[#allocation28_spill] sm:$0xff] %v2205_v25  ;;  %v2207_v24 = vpop.f32.mrb[35].mxu1  ;;  %v1428_v17 = vpop.eup %1427  ;;  %v718_v25 = vmul.f32 0.70710677, %v499_v59  ;;  %1441 = verf.f32 %v713_v46  ;;  %v505_v20 = vadd.f32 %v2053_v31, %v1818_v50  ;;  %v2228_v11 = vmul.f32 0.5, %v497_v4 }
 0x17f   :  { %2567 = vst [vmem:[#allocation29_spill] sm:$0xff] %v2207_v24  ;;  %v1430_v30 = vpop.eup %1429  ;;  %v938_v12 = vadd.f32 1.0, %v1428_v17  ;;  %v2568_v24 = vpack.c.bf16 %v2035_v56, %v2007_v9  ;;  %1123 = vmatpush1.bf16.msra.mxu1 %v2569_v55  ;;  %v719_v8 = vmul.f32 0.70710677, %v501_v15  ;;  %v933_v56 = vadd.f32 1.0, %v1426_v23  ;;  %v2571_v55 = vld [vmem:[#allocation22_spill] sm:$0xff] }
 0x180   :  { %v940_v33 = vadd.f32 1.0, %v1430_v30  ;;  %v1432_v51 = vpop.eup %1431  ;;  %1443 = verf.f32 %v718_v25  ;;  %v721_v41 = vmul.f32 0.70710677, %v584_v57  ;;  %v2239_v31 = vmul.f32 %v931_v32, %v2145_v54 }
 0x181   :  { %1082 = vmatpush1.bf16.msra.mxu0 %v2568_v24  ;;  %v2226_v10 = vmul.f32 %v938_v12, %v698_v35  ;;  %v1434_v9 = vpop.eup %1433  ;;  %1445 = verf.f32 %v720_v3  ;;  %v2244_v35 = vmul.f32 0.5, %v2167_v13  ;;  %v939_v24 = vadd.f32 1.0, %v1432_v51 }
 0x182   :  { %v2230_v58 = vpop.f32.mrb[36].mxu0  ;;  %v2232_v1 = vmul.f32 %v940_v33, %v700_v7  ;;  %v2234_v18 = vpop.f32.mrb[36].mxu1  ;;  %1447 = verf.f32 %v719_v8  ;;  %v726_v17 = vmul.f32 0.70710677, %v505_v20  ;;  %v941_v12 = vadd.f32 1.0, %v1434_v9 }
 0x183   :  { %v2236_v46 = vpop.f32.mrb[37].mxu0  ;;  %v2246_v25 = vpop.f32.mrb[37].mxu1  ;;  %1449 = verf.f32 %v721_v41  ;;  %v588_v13 = vadd.f32 %v2064_v63, %v1818_v50  ;;  %v507_v33 = vadd.f32 %v2571_v55, %v1818_v50  ;;  %v590_v3 = vadd.f32 %v2068_v42, %v1818_v50 }
 0x184   :  { %v2248_v7 = vpop.f32.mrb[38].mxu0  ;;  %v2252_v30 = vpop.f32.mrb[38].mxu1  ;;  %v2265_v41 = vmul.f32 %v933_v56, %v2147_v38  ;;  %1451 = verf.f32 %v726_v17  ;;  %v1051_v23 = vpack.c.bf16 %v2172_v61, %v2160_v47  ;;  %v1053_v9 = vpack.c.bf16 %v2181_v49, %v2163_v53 }
 0x185   :  { %v2254_v54 = vpop.f32.mrb[39].mxu0  ;;  %v1436_v32 = vpop.eup %1435  ;;  %v638_v63 = vmul.f32 0.5, %v499_v59  ;;  %v640_v4 = vmul.f32 0.5, %v582_v29  ;;  %v728_v55 = vmul.f32 0.70710677, %v588_v13  ;;  %v2274_v50 = vmul.f32 %v939_v24, %v2174_v19 }
 0x186   :  { %2570 = vst [vmem:[#allocation30_spill] sm:$0xff] %v2254_v54  ;;  %v2262_v8 = vpop.f32.mrb[39].mxu1  ;;  %v1438_v51 = vpop.eup %1437  ;;  %v2271_v54 = vmul.f32 0.5, %v501_v15  ;;  %v870_v42 = vadd.f32 1.0, %v1436_v32  ;;  %v727_v38 = vmul.f32 0.70710677, %v507_v33  ;;  %1083 = vmatprep.subr.bf16.mxu0 %v1051_v23  ;;  %1124 = vmatprep.subr.bf16.mxu1 %v1053_v9  ;;  %v2279_v47 = vmul.f32 %v941_v12, %v2183_v48 }
 0x187   :  { %2572 = vst [vmem:[#allocation22_spill] sm:$0xff] %v2262_v8  ;;  %v2276_v8 = vmul.f32 0.5, %v584_v57  ;;  %v1440_v56 = vpop.eup %1439  ;;  %v872_v61 = vadd.f32 1.0, %v1438_v51  ;;  %v2281_v53 = vmul.f32 0.5, %v505_v20  ;;  %v729_v49 = vmul.f32 0.70710677, %v590_v3 }
 0x188   :  { %v2573_v59 = vpack.c.bf16 %v2130_v14, %v2109_v36  ;;  %v2574_v19 = vpack.c.bf16 %v2136_v52, %v2128_v22  ;;  %v1442_v29 = vpop.eup %1441  ;;  %v2289_v15 = vmul.f32 0.5, %v588_v13  ;;  %1453 = verf.f32 %v728_v55  ;;  %v2575_v57 = vld [vmem:[#allocation16_spill] sm:$0xff]  ;;  %v2576_v23 = vld [vmem:[#allocation23_spill] sm:$0xff]  ;;  %v2578_v22 = vld [vmem:[#allocation26_spill] sm:$0xff] }
 0x189   :  { %v509_v48 = vadd.f32 %v2576_v23, %v2575_v57  ;;  %v592_v20 = vadd.f32 %v2075_v34, %v2575_v57  ;;  %v2295_v17 = vmul.f32 0.5, %v507_v33  ;;  %1455 = verf.f32 %v727_v38  ;;  %v2577_v36 = vld [vmem:[#allocation24_spill] sm:$0xff] }
 0x18a   :  { %1084 = vmatpush1.bf16.msra.mxu0 %v2573_v59  ;;  %1125 = vmatpush1.bf16.msra.mxu1 %v2574_v19  ;;  %v1444_v24 = vpop.eup %1443  ;;  %v511_v14 = vadd.f32 %v2577_v36, %v2575_v57  ;;  %v594_v52 = vadd.f32 %v2578_v22, %v2575_v57  ;;  %v2302_v12 = vmul.f32 %v870_v42, %v2199_v21  ;;  %v871_v13 = vadd.f32 1.0, %v1440_v56 }
 0x18b   :  { %v1446_v32 = vpop.eup %1445  ;;  %v878_v51 = vadd.f32 1.0, %v1444_v24  ;;  %v734_v9 = vmul.f32 0.70710677, %v509_v48  ;;  %1457 = verf.f32 %v729_v49  ;;  %v736_v34 = vmul.f32 0.70710677, %v592_v20 }
 0x18c   :  { %v1448_v55 = vpop.eup %1447  ;;  %v880_v59 = vadd.f32 1.0, %v1446_v32  ;;  %v735_v33 = vmul.f32 0.70710677, %v511_v14  ;;  %v2305_v38 = vmul.f32 %v872_v61, %v2212_v45  ;;  %v2309_v36 = vmul.f32 0.5, %v590_v3  ;;  %v2579_v61 = vld [vmem:[#allocation17_spill] sm:$0xff] }
 0x18d   :  { %v1450_v19 = vpop.eup %1449  ;;  %v2307_v23 = vmul.f32 %v878_v51, %v638_v63  ;;  %1459 = verf.f32 %v734_v9  ;;  %v873_v21 = vadd.f32 1.0, %v1442_v29  ;;  %v737_v56 = vmul.f32 0.70710677, %v594_v52 }
 0x18e   :  { %v2311_v42 = vmul.f32 %v880_v59, %v640_v4  ;;  %1461 = verf.f32 %v736_v34  ;;  %v1452_v57 = vpop.eup %1451  ;;  %v2314_v49 = vmul.f32 %v871_v13, %v2228_v11  ;;  %v879_v45 = vadd.f32 1.0, %v1448_v55 }
 0x18f   :  { %v1030_v24 = vpack.c.bf16 %v2307_v23, %v2302_v12  ;;  %v515_v63 = vadd.f32 %v2119_v0, %v2579_v61  ;;  %v881_v22 = vadd.f32 1.0, %v1450_v19  ;;  %v886_v29 = vadd.f32 1.0, %v1452_v57 }
 0x190   :  { %v1032_v3 = vpack.c.bf16 %v2311_v42, %v2305_v38  ;;  %1463 = verf.f32 %v735_v33  ;;  %v598_v32 = vadd.f32 %v2123_v37, %v2579_v61  ;;  %v517_v11 = vadd.f32 %v2125_v6, %v2579_v61 }
 0x191   :  { %1465 = verf.f32 %v737_v56  ;;  %v742_v4 = vmul.f32 0.70710677, %v515_v63  ;;  %v2327_v13 = vmul.f32 %v873_v21, %v2244_v35  ;;  %v600_v0 = vadd.f32 %v2132_v62, %v2579_v61 }
 0x192   :  { %v1059_v51 = vpack.c.bf16 %v2274_v50, %v2239_v31  ;;  %v1061_v9 = vpack.c.bf16 %v2279_v47, %v2265_v41  ;;  %v1454_v55 = vpop.eup %1453  ;;  %v654_v59 = vmul.f32 0.5, %v509_v48  ;;  %v656_v34 = vmul.f32 0.5, %v592_v20  ;;  %v2356_v20 = vld [vmem:[#allocation8] sm:$0x3] }
 0x193   :  { %v2335_v33 = vmul.f32 0.5, %v511_v14  ;;  %v744_v37 = vmul.f32 0.70710677, %v598_v32  ;;  %v1456_v19 = vpop.eup %1455  ;;  %v2338_v6 = vmul.f32 %v879_v45, %v2271_v54  ;;  %v2340_v35 = vmul.f32 0.5, %v594_v52 }
 0x194   :  { %1467 = verf.f32 %v742_v4  ;;  %v743_v62 = vmul.f32 0.70710677, %v517_v11  ;;  %1085 = vmatprep.subr.bf16.mxu0 %v1059_v51  ;;  %1126 = vmatprep.subr.bf16.mxu1 %v1061_v9  ;;  %v2343_v31 = vmul.f32 %v881_v22, %v2276_v8  ;;  %v2346_v41 = vmul.f32 %v886_v29, %v2281_v53  ;;  %v2582_v8 = vld [vmem:[#allocation18_spill] sm:$0xff] }
 0x195   :  { %v2348_v50 = vmul.f32 0.5, %v515_v63  ;;  %v745_v47 = vmul.f32 0.70710677, %v600_v0  ;;  %v2580_v48 = vpack.c.bf16 %v2226_v10, %v2197_v5  ;;  %v2581_v54 = vpack.c.bf16 %v2232_v1, %v2210_v44  ;;  %v1458_v14 = vpop.eup %1457 }
 0x196   :  { %v888_v52 = vadd.f32 1.0, %v1454_v55  ;;  %1469 = verf.f32 %v744_v37  ;;  %v519_v53 = vadd.f32 %v2134_v2, %v2582_v8  ;;  %v602_v21 = vadd.f32 %v2138_v28, %v2582_v8 }
 0x197   :  { %1086 = vmatpush1.bf16.msra.mxu0 %v2580_v48  ;;  %1127 = vmatpush1.bf16.msra.mxu1 %v2581_v54  ;;  %v1460_v56 = vpop.eup %1459  ;;  %v887_v57 = vadd.f32 1.0, %v1456_v19  ;;  %v2362_v45 = vmul.f32 0.5, %v598_v32  ;;  %v521_v5 = vadd.f32 %v2140_v43, %v2582_v8  ;;  %v604_v44 = vadd.f32 %v2149_v40, %v2582_v8 }
 0x198   :  { %v1462_v10 = vpop.eup %1461  ;;  %v894_v1 = vadd.f32 1.0, %v1460_v56  ;;  %v2368_v61 = vmul.f32 0.5, %v517_v11  ;;  %1471 = verf.f32 %v743_v62  ;;  %v750_v63 = vmul.f32 0.70710677, %v519_v53 }
 0x199   :  { %v896_v2 = vadd.f32 1.0, %v1462_v10  ;;  %1473 = verf.f32 %v745_v47  ;;  %v752_v28 = vmul.f32 0.70710677, %v602_v21  ;;  %v751_v22 = vmul.f32 0.70710677, %v521_v5 }
 0x19a   :  { %1323 = vmatmul.mubr.msk.bf16.vlgmr.msra.gmra.mrb[40].mxu0 %vm1073_vm2, %v2356_v20  ;;  %1324 = vmatmul.mubr.msk.bf16.vlgmr.msra.gmra.mrb[40].mxu1 %vm1073_vm2, %v2356_v20  ;;  %v2583_v43 = vmov 0   ;;  %v1464_v40 = vpop.eup %1463  ;;  %v889_v29 = vadd.f32 1.0, %v1458_v14  ;;  %v2376_v4 = vmul.f32 %v894_v1, %v654_v59  ;;  %v2378_v32 = vmul.f32 0.5, %v600_v0  ;;  %v2584_v59 = vld [vmem:[#allocation19_spill] sm:$0xff] }
 0x19b   :  { %1191 = vmatprep.mubr.bf16.mxu0 %v2583_v43  ;;  %1232 = vmatprep.mubr.bf16.mxu1 %v2583_v43  ;;  %1475 = verf.f32 %v750_v63  ;;  %v1466_v11 = vpop.eup %1465  ;;  %v2381_v51 = vmul.f32 %v888_v52, %v2289_v15  ;;  %v2383_v9 = vmul.f32 %v896_v2, %v656_v34  ;;  %v753_v55 = vmul.f32 0.70710677, %v604_v44 }
 0x19c   :  { %1477 = verf.f32 %v752_v28  ;;  %v2386_v37 = vmul.f32 %v887_v57, %v2295_v17  ;;  %v1038_v19 = vpack.c.bf16 %v2376_v4, %v2346_v41  ;;  %v525_v0 = vadd.f32 %v2169_v60, %v2584_v59  ;;  %v2586_v28 = vld [vmem:[#allocation27_spill] sm:$0xff] }
 0x19d   :  { %1479 = verf.f32 %v751_v22  ;;  %v1040_v62 = vpack.c.bf16 %v2383_v9, %v2381_v51  ;;  %v895_v47 = vadd.f32 1.0, %v1464_v40  ;;  %v608_v15 = vadd.f32 %v2176_v26, %v2584_v59  ;;  %v2587_v40 = vld [vmem:[#allocation28_spill] sm:$0xff] }
 0x19e   :  { %1481 = verf.f32 %v753_v55  ;;  %v1468_v34 = vpop.eup %1467  ;;  %v2397_v48 = vmul.f32 %v889_v29, %v2309_v36  ;;  %v897_v17 = vadd.f32 1.0, %v1466_v11  ;;  %v758_v54 = vmul.f32 0.70710677, %v525_v0 }
 0x19f   :  { %v527_v14 = vadd.f32 %v2178_v27, %v2584_v59  ;;  %v670_v52 = vmul.f32 0.5, %v519_v53  ;;  %v760_v8 = vmul.f32 0.70710677, %v608_v15  ;;  %v610_v60 = vadd.f32 %v2185_v39, %v2584_v59 }
 0x1a0   :  { %v1031_v56 = vpack.c.bf16 %v2338_v6, %v2314_v49  ;;  %v1470_v57 = vpop.eup %1469  ;;  %v672_v10 = vmul.f32 0.5, %v602_v21  ;;  %v2405_v26 = vmul.f32 0.5, %v521_v5  ;;  %v2407_v1 = vmul.f32 0.5, %v604_v44  ;;  %v2585_v5 = vld [vmem:[#allocation20_spill] sm:$0xff] }
 0x1a1   :  { %1483 = verf.f32 %v758_v54  ;;  %v2410_v36 = vmul.f32 %v895_v47, %v2335_v33  ;;  %v902_v63 = vadd.f32 1.0, %v1468_v34  ;;  %v759_v27 = vmul.f32 0.70710677, %v527_v14 }
 0x1a2   :  { %1485 = verf.f32 %v760_v8  ;;  %1159 = vmatprep.subr.bf16.mxu0 %v1031_v56  ;;  %v1472_v53 = vpop.eup %1471  ;;  %v2413_v39 = vmul.f32 %v897_v17, %v2340_v35  ;;  %v2415_v2 = vmul.f32 0.5, %v525_v0  ;;  %v761_v49 = vmul.f32 0.70710677, %v610_v60 }
 0x1a3   :  { %v1033_v6 = vpack.c.bf16 %v2343_v31, %v2327_v13  ;;  %1160 = vmatpush1.bf16.msra.mxu0 %v1030_v24  ;;  %v1474_v33 = vpop.eup %1473  ;;  %v904_v21 = vadd.f32 1.0, %v1470_v57  ;;  %1487 = verf.f32 %v759_v27  ;;  %v529_v44 = vadd.f32 %v2192_v16, %v2585_v5  ;;  %v2588_v31 = vld [vmem:[#allocation29_spill] sm:$0xff] }
 0x1a4   :  { %v612_v35 = vadd.f32 %v2586_v28, %v2585_v5  ;;  %v680_v43 = vmul.f32 0.5, %v608_v15  ;;  %1489 = verf.f32 %v761_v49  ;;  %v531_v13 = vadd.f32 %v2587_v40, %v2585_v5 }
 0x1a5   :  { %v1476_v22 = vpop.eup %1475  ;;  %1200 = vmatprep.subr.bf16.mxu1 %v1033_v6  ;;  %v614_v12 = vadd.f32 %v2588_v31, %v2585_v5  ;;  %v2431_v24 = vmul.f32 %v902_v63, %v2348_v50  ;;  %v679_v11 = vmul.f32 0.5, %v527_v14  ;;  %v766_v16 = vmul.f32 0.70710677, %v529_v44 }
 0x1a6   :  { %v1478_v23 = vpop.eup %1477  ;;  %v910_v29 = vadd.f32 1.0, %v1476_v22  ;;  %1201 = vmatpush1.bf16.msra.mxu1 %v1032_v3  ;;  %v903_v59 = vadd.f32 1.0, %v1472_v53  ;;  %v768_v47 = vmul.f32 0.70710677, %v612_v35  ;;  %v767_v15 = vmul.f32 0.70710677, %v531_v13 }
 0x1a7   :  { %v1480_v55 = vpop.eup %1479  ;;  %v912_v0 = vadd.f32 1.0, %v1478_v23  ;;  %v2437_v17 = vmul.f32 %v904_v21, %v2362_v45  ;;  %v681_v50 = vmul.f32 0.5, %v610_v60  ;;  %1491 = verf.f32 %v766_v16  ;;  %v2589_v3 = vld [vmem:[#allocation21_spill] sm:$0xff] }
 0x1a8   :  { %v1482_v34 = vpop.eup %1481  ;;  %v2439_v54 = vmul.f32 %v910_v29, %v670_v52  ;;  %v905_v8 = vadd.f32 1.0, %v1474_v33  ;;  %1493 = verf.f32 %v768_v47  ;;  %v769_v56 = vmul.f32 0.70710677, %v614_v12  ;;  %v2590_v16 = vld [vmem:[#allocation25_spill] sm:$0xff] }
 0x1a9   :  { %v2441_v14 = vmul.f32 %v912_v0, %v672_v10  ;;  %v911_v42 = vadd.f32 1.0, %v1480_v55  ;;  %1495 = verf.f32 %v767_v15  ;;  %v2447_v57 = vadd.f32 %v2230_v58, %v2589_v3 }
 0x1aa   :  { %v1046_v38 = vpack.c.bf16 %v2439_v54, %v2431_v24  ;;  %v913_v60 = vadd.f32 1.0, %v1482_v34  ;;  %1497 = verf.f32 %v769_v56  ;;  %v2453_v10 = vadd.f32 %v2234_v18, %v2589_v3 }
 0x1ab   :  { %v1484_v45 = vpop.eup %1483  ;;  %v1048_v52 = vpack.c.bf16 %v2441_v14, %v2437_v17  ;;  %v983_v27 = vmul.f32 %v903_v59, %v2368_v61  ;;  %v774_v49 = vmul.f32 0.70710677, %v2447_v57  ;;  %v2459_v58 = vadd.f32 %v2236_v46, %v2589_v3 }
 0x1ac   :  { %v1486_v63 = vpop.eup %1485  ;;  %v918_v53 = vadd.f32 1.0, %v1484_v45  ;;  %v985_v6 = vmul.f32 %v905_v8, %v2378_v32  ;;  %v686_v33 = vmul.f32 0.5, %v529_v44  ;;  %v688_v21 = vmul.f32 0.5, %v612_v35 }
 0x1ad   :  { %v2464_v5 = vadd.f32 %v2246_v25, %v2589_v3  ;;  %v1488_v18 = vpop.eup %1487  ;;  %v920_v28 = vadd.f32 1.0, %v1486_v63  ;;  %v687_v22 = vmul.f32 0.5, %v531_v13  ;;  %v689_v40 = vmul.f32 0.5, %v614_v12 }
 0x1ae   :  { %v776_v61 = vmul.f32 0.70710677, %v2453_v10  ;;  %v1490_v31 = vpop.eup %1489  ;;  %v991_v23 = vmul.f32 %v911_v42, %v2405_v26  ;;  %v993_v46 = vmul.f32 %v913_v60, %v2407_v1  ;;  %v919_v29 = vadd.f32 1.0, %v1488_v18 }
 0x1af   :  { %v775_v32 = vmul.f32 0.70710677, %v2459_v58  ;;  %v998_v44 = vmul.f32 %v918_v53, %v2415_v2  ;;  %1499 = verf.f32 %v774_v49  ;;  %v777_v25 = vmul.f32 0.70710677, %v2464_v5  ;;  %v2591_v2 = vld [vmem:[#allocation30_spill] sm:$0xff] }
 0x1b0   :  { %v1039_v35 = vpack.c.bf16 %v2410_v36, %v2386_v37  ;;  %v921_v13 = vadd.f32 1.0, %v1490_v31  ;;  %v1041_v12 = vpack.c.bf16 %v2413_v39, %v2397_v48  ;;  %v539_v26 = vadd.f32 %v2248_v7, %v2590_v16  ;;  %v2592_v37 = vld [vmem:[#allocation22_spill] sm:$0xff] }
 0x1b1   :  { %v2480_v1 = vadd.f32 %v2252_v30, %v2590_v16  ;;  %v1492_v55 = vpop.eup %1491  ;;  %v1000_v59 = vmul.f32 %v920_v28, %v680_v43  ;;  %1501 = verf.f32 %v776_v61  ;;  %v2484_v0 = vadd.f32 %v2591_v2, %v2590_v16  ;;  %v1071_v2 = vpop.permute.xlu0 %1070 }
 0x1b2   :  { %1161 = vmatprep.subr.bf16.mxu0 %v1039_v35  ;;  %v2488_v36 = vadd.f32 %v2592_v37, %v2590_v16  ;;  %v1494_v48 = vpop.eup %1493  ;;  %v999_v39 = vmul.f32 %v919_v29, %v679_v11  ;;  %v926_v47 = vadd.f32 1.0, %v1492_v55  ;;  %1503 = verf.f32 %v775_v32  ;;  %1202 = vmatprep.subr.bf16.mxu1 %v1041_v12 }
 0x1b3   :  { %v782_v7 = vmul.f32 0.70710677, %v539_v26  ;;  %1162 = vmatpush1.bf16.msra.mxu0 %v1038_v19  ;;  %v1496_v30 = vpop.eup %1495  ;;  %v928_v43 = vadd.f32 1.0, %v1494_v48  ;;  %1505 = verf.f32 %v777_v25  ;;  %v784_v15 = vmul.f32 0.70710677, %v2480_v1  ;;  %1203 = vmatpush1.bf16.msra.mxu1 %v1040_v62 }
 0x1b4   :  { %v783_v34 = vmul.f32 0.70710677, %v2484_v0  ;;  %v1498_v11 = vpop.eup %1497  ;;  %v1001_v8 = vmul.f32 %v921_v13, %v681_v50  ;;  %v1006_v56 = vmul.f32 %v926_v47, %v686_v33  ;;  %v927_v42 = vadd.f32 1.0, %v1496_v30 }
 0x1b5   :  { %1507 = verf.f32 %v782_v7  ;;  %v1008_v3 = vmul.f32 %v928_v43, %v688_v21  ;;  %v929_v45 = vadd.f32 1.0, %v1498_v11  ;;  %v785_v41 = vmul.f32 0.70710677, %v2488_v36 }
 0x1b6   :  { %1509 = verf.f32 %v784_v15  ;;  %v1054_v4 = vpack.c.bf16 %v1006_v56, %v998_v44  ;;  %v1007_v19 = vmul.f32 %v927_v42, %v687_v22  ;;  %v1047_v60 = vpack.c.bf16 %v991_v23, %v983_v27 }
 0x1b7   :  { %1511 = verf.f32 %v783_v34  ;;  %v1056_v63 = vpack.c.bf16 %v1008_v3, %v1000_v59  ;;  %v1009_v53 = vmul.f32 %v929_v45, %v689_v40  ;;  %v1049_v51 = vpack.c.bf16 %v993_v46, %v985_v6 }
 0x1b8   :  { %1513 = verf.f32 %v785_v41  ;;  %1163 = vmatprep.subr.bf16.mxu0 %v1047_v60  ;;  %v1055_v9 = vpack.c.bf16 %v1007_v19, %v999_v39  ;;  %v694_v18 = vmul.f32 0.5, %v2447_v57  ;;  %v696_v28 = vmul.f32 0.5, %v2453_v10 }
 0x1b9   :  { %v1500_v62 = vpop.eup %1499  ;;  %1204 = vmatprep.subr.bf16.mxu1 %v1049_v51  ;;  %1164 = vmatpush1.bf16.msra.mxu0 %v1046_v38  ;;  %v1057_v50 = vpack.c.bf16 %v1009_v53, %v1001_v8  ;;  %v695_v54 = vmul.f32 0.5, %v2459_v58  ;;  %v702_v17 = vmul.f32 0.5, %v539_v26  ;;  %v697_v40 = vmul.f32 0.5, %v2464_v5 }
 0x1ba   :  { %1205 = vmatpush1.bf16.msra.mxu1 %v1048_v52  ;;  %1165 = vmatprep.subr.bf16.mxu0 %v1055_v9  ;;  %v934_v21 = vadd.f32 1.0, %v1500_v62  ;;  %v704_v31 = vmul.f32 0.5, %v2480_v1  ;;  %v703_v10 = vmul.f32 0.5, %v2484_v0  ;;  %v705_v58 = vmul.f32 0.5, %v2488_v36 }
 0x1bb   :  { %v1502_v49 = vpop.eup %1501  ;;  %1206 = vmatprep.subr.bf16.mxu1 %v1057_v50 }
 0x1bc   :  { %v1504_v27 = vpop.eup %1503  ;;  %v936_v22 = vadd.f32 1.0, %v1502_v49  ;;  %v1014_v29 = vmul.f32 %v934_v21, %v694_v18 }
 0x1bd   :  { %v1506_v33 = vpop.eup %1505  ;;  %1166 = vmatpush1.bf16.msra.mxu0 %v1054_v4  ;;  %v935_v38 = vadd.f32 1.0, %v1504_v27 }
 0x1be   :  { %1207 = vmatpush1.bf16.msra.mxu1 %v1056_v63  ;;  %v937_v61 = vadd.f32 1.0, %v1506_v33  ;;  %v1016_v44 = vmul.f32 %v936_v22, %v696_v28 }
 0x1bf   :  { %v1508_v6 = vpop.eup %1507  ;;  %v1015_v13 = vmul.f32 %v935_v38, %v695_v54 }
 0x1c0   :  { %v1510_v24 = vpop.eup %1509  ;;  %v942_v14 = vadd.f32 1.0, %v1508_v6  ;;  %v1017_v26 = vmul.f32 %v937_v61, %v697_v40 }
 0x1c1   :  { %v1512_v52 = vpop.eup %1511  ;;  %v944_v23 = vadd.f32 1.0, %v1510_v24 }
 0x1c2   :  { %v1514_v46 = vpop.eup %1513  ;;  %v1022_v57 = vmul.f32 %v942_v14, %v702_v17  ;;  %v943_v32 = vadd.f32 1.0, %v1512_v52 }
 0x1c3   :  { %v1024_v25 = vmul.f32 %v944_v23, %v704_v31  ;;  %v945_v35 = vadd.f32 1.0, %v1514_v46 }
 0x1c4   :  { %v1062_v12 = vpack.c.bf16 %v1022_v57, %v1014_v29  ;;  %v1023_v16 = vmul.f32 %v943_v32, %v703_v10 }
 0x1c5   :  { %v1064_v5 = vpack.c.bf16 %v1024_v25, %v1016_v44  ;;  %v1025_v55 = vmul.f32 %v945_v35, %v705_v58 }
 0x1c6   :  { %v1063_v59 = vpack.c.bf16 %v1023_v16, %v1015_v13 }
 0x1c7   :  { %v1065_v1 = vpack.c.bf16 %v1025_v55, %v1017_v26 }
 0x1c8   :  { %1167 = vmatprep.subr.bf16.mxu0 %v1063_v59 }
 0x1c9   :  { %1208 = vmatprep.subr.bf16.mxu1 %v1065_v1  ;;  %1168 = vmatpush1.bf16.msra.mxu0 %v1062_v12 }
 0x1ca   :  { %1209 = vmatpush1.bf16.msra.mxu1 %v1064_v5 }
 0x1cc   :  { %1325 = vmatmul.mubr.msk.bf16.vlgmr.msra.gmra.mrb[44].mxu0 %vm1073_vm2, %v2356_v20 }
 0x1cd   :  { %1326 = vmatmul.mubr.msk.bf16.vlgmr.msra.gmra.mrb[44].mxu1 %vm1073_vm2, %v2356_v20 }
 0x26d   :  { %v1111_v0 = vpop.f32.mrb[40].mxu0  ;;  %v1152_v37 = vpop.f32.mrb[40].mxu1 }
 0x26e   :  { %v1112_v36 = vadd.f32 %v1111_v0, %v1071_v2  ;;  %v1153_v48 = vadd.f32 %v1152_v37, %v1071_v2  ;;  %v1113_v39 = vpop.f32.mrb[41].mxu0  ;;  %v1154_v47 = vpop.f32.mrb[41].mxu1 }
 0x26f   :  { %v1114_v7 = vadd.f32 %v1113_v39, %v1071_v2  ;;  %v1155_v30 = vadd.f32 %v1154_v47, %v1071_v2  ;;  %v1115_v43 = vpop.f32.mrb[42].mxu0  ;;  %v1156_v15 = vpop.f32.mrb[42].mxu1 }
 0x270   :  { %v1116_v34 = vpop.f32.mrb[43].mxu0  ;;  %v1157_v11 = vpop.f32.mrb[43].mxu1 }
 0x271   :  { %v1249_v8 = vcombine.low %v1112_v36, %v1114_v7  ;;  %v1250_v56 = vcombine.low %v1153_v48, %v1155_v30 }
 0x273   :  { %1257 = vst [vmem:[#allocation11] sm:$0x77] %v1249_v8  ;;  %1258 = vst [vmem:[#allocation11 + $0x8] sm:$0x77] %v1250_v56 }
 0x29f   :  { %v1193_v42 = vpop.f32.mrb[44].mxu0 }
 0x2a0   :  { %v1194_v3 = vadd.f32 %v1193_v42, %v1071_v2  ;;  %v1234_v20 = vpop.f32.mrb[44].mxu1  ;;  %v1195_v45 = vpop.f32.mrb[45].mxu0 }
 0x2a1   :  { %v1235_v41 = vadd.f32 %v1234_v20, %v1071_v2  ;;  %v1196_v4 = vadd.f32 %v1195_v45, %v1071_v2  ;;  %v1236_v19 = vpop.f32.mrb[45].mxu1  ;;  %v1197_v60 = vpop.f32.mrb[46].mxu0 }
 0x2a2   :  { %v1237_v63 = vadd.f32 %v1236_v19, %v1071_v2  ;;  %v1238_v53 = vpop.f32.mrb[46].mxu1  ;;  %v1198_v51 = vpop.f32.mrb[47].mxu0 }
 0x2a3   :  { %v1251_v9 = vcombine.low %v1194_v3, %v1196_v4  ;;  %v1239_v62 = vpop.f32.mrb[47].mxu1 }
 0x2a4   :  { %v1252_v50 = vcombine.low %v1235_v41, %v1237_v63 }
 0x2a5   :  { %1259 = vst [vmem:[#allocation11 + $0x10] sm:$0x77] %v1251_v9 }
 0x2a6   :  { %1260 = vst [vmem:[#allocation11 + $0x18] sm:$0x77] %v1252_v50 }
 0x2a7   :  { %1636 = shalt.err (!%p1633_p2)
}
 0x2a8   :  { %s1637_s7 = scalar_lea.hbm %s2533_s5, 512 }
 0x2a9   :  { %p1638_p3 = scmp.ne.s32.totalorder %s2533_s5, %s1637_s7  ;;  %p1641_p4 = scmp.lt.u32.totalorder %s1637_s7, %s2533_s5 }
 0x2ab   :  { %p1643_p5 = pnand %p1641_p4, %p1638_p3 }
 0x2ad   :  { %1646 = shalt.err (!%p1643_p5)
}
 0x2ae   :  { %1270 = dma.vmem_to_hbm [thread:$0]  %s1268_s28, 512, %s2533_s5, [#allocation4]  }
 0x2af   :  { %1653 = dma.done.wait [#allocation4], 512  }
 0x2b0   :  { %1654 = vsyncadd [#allocation4], 4294966784 }
 0x2b1   :  { %1274 = vsyncpa [#allocation3], 1 }
 0x2b2   :  { %1275 = vsyncpa [#allocation6], 1 }
 0x2b3   :  { %1276 = vsyncpa [#allocation9], 1 }
 0x2b4   :  { %1277 = vsyncpa [#allocation4], 1 }

</bundles_post_ra>
